<compile_context>
chip_gen: v7x
topology: tpu7x:2x2x1
jax: 0.10.0
libtpu: 0.0.40
codegen_flags: <defaults>
</compile_context>

<pallas_src>
import jax
import jax.numpy as jnp
from jax.experimental import pallas as pl
from jax.experimental.pallas import tpu as pltpu


# ------------------------------------------------------------------ kernel --
def deconv_block_kernel(x_ref, rup_ref, cup_ref, w_ref, b_ref, out_ref,
                        planes_ref):
    # x_ref:      (C_in, H, W)           one input image (batch dim squeezed)
    # rup_ref:    (3*H2, H)              3 stacked shifted row upsample+pad ops
    # cup_ref:    (W, 3*W2)              3 stacked shifted col upsample+pad ops
    # w_ref:      (C_out*C_in*9,) SMEM   BN-folded 3x3 conv weights (flat, C-order)
    # b_ref:      (C_out,)        SMEM   BN-folded bias
    # out_ref:    (H2, W2)               one output-channel plane
    # planes_ref: (C_in, 3*H2, 3*W2)     VMEM scratch: 9 shifted tap planes / ci
    C_in, H, W = x_ref.shape
    H2, W2 = out_ref.shape
    co = pl.program_id(1)

    # 1) Once per image (co == 0): MXU builds every lane-exact shifted tap plane.
    #    planes[ci, di*H2 + i, dj*W2 + j] = zero-padded-upsampled-x[ci, i+di, j+dj]
    @pl.when(co == 0)
    def _():
        rup = rup_ref[...]
        cup = cup_ref[...]
        for ci in range(C_in):
            t = jnp.dot(x_ref[ci], cup, preferred_element_type=jnp.float32)
            planes_ref[ci] = jnp.dot(rup, t, preferred_element_type=jnp.float32)

    # 2) One output channel per grid step: 36 aligned whole-tile FMAs (VPU),
    #    single live accumulator, then bias + ReLU and a lane-dense store.
    acc = jnp.zeros((H2, W2), jnp.float32)
    for ci in range(C_in):
        for di in range(3):
            for dj in range(3):
                wv = w_ref[(co * C_in + ci) * 9 + di * 3 + dj]
                acc = acc + wv * planes_ref[ci,
                                            pl.ds(di * H2, H2),
                                            pl.ds(dj * W2, W2)]
    out_ref[...] = jnp.maximum(acc + b_ref[co], 0.0).astype(out_ref.dtype)


# ---------------------------------------------------------------- wrapper ---
def _shifted_upsample_operators(H, W):
    """Stacked row/col operators folding nearest-2x upsample, the conv's 1-px
    zero padding, AND the 3x3 tap shift:

        (rup[di] @ x @ cup[dj])[i, j] =
            x[(i+di-1)//2, (j+dj-1)//2]   if 1 <= i+di <= 2H and 1 <= j+dj <= 2W
            0                             otherwise
    """
    H2, W2 = 2 * H, 2 * W
    d = jnp.arange(3)

    i = jnp.arange(H2)
    p = i[None, :] + d[:, None]                                   # (3, H2)
    src_r = jnp.clip((p - 1) // 2, 0, H - 1)
    valid_r = (p >= 1) & (p <= H2)
    rup = (valid_r[:, :, None]
           & (jnp.arange(H)[None, None, :] == src_r[:, :, None])).astype(jnp.float32)
    rup = rup.reshape(3 * H2, H)                                  # (3*H2, H)

    j = jnp.arange(W2)
    q = j[None, :] + d[:, None]                                   # (3, W2)
    src_c = jnp.clip((q - 1) // 2, 0, W - 1)
    valid_c = (q >= 1) & (q <= W2)
    cup = (valid_c[:, :, None]
           & (jnp.arange(W)[None, None, :] == src_c[:, :, None])).astype(jnp.float32)
    cup = jnp.transpose(cup, (2, 0, 1)).reshape(W, 3 * W2)        # (W, 3*W2)
    return rup, cup


def deconv_block(x, params, *, eps=1e-5):
    N, C_in, H, W = x.shape
    w = params["w"].astype(jnp.float32)                           # (C_out, C_in, 3, 3)
    C_out = w.shape[0]
    H2, W2 = 2 * H, 2 * W

    # Fold eval-mode BatchNorm into the conv weights / bias.
    scale = params["gamma"] / jnp.sqrt(params["var"] + eps)       # (C_out,)
    w_f = w * scale[:, None, None, None]
    b_f = (params["b"] - params["mean"]) * scale + params["beta"]
    w_flat = w_f.reshape(-1).astype(jnp.float32)                  # (C_out*C_in*9,)
    b_f = b_f.astype(jnp.float32)

    rup, cup = _shifted_upsample_operators(H, W)

    out = pl.pallas_call(
        deconv_block_kernel,
        out_shape=jax.ShapeDtypeStruct((N, C_out, H2, W2), jnp.float32),
        grid_spec=pltpu.PrefetchScalarGridSpec(
            num_scalar_prefetch=0,
            grid=(N, C_out),
            in_specs=[
                # one full image per n; block unchanged across co -> no re-DMA
                pl.BlockSpec((None, C_in, H, W), lambda n, co: (n, 0, 0, 0)),
                pl.BlockSpec((3 * H2, H), lambda n, co: (0, 0)),    # rup (stacked)
                pl.BlockSpec((W, 3 * W2), lambda n, co: (0, 0)),    # cup (stacked)
                pl.BlockSpec(memory_space=pltpu.MemorySpace.SMEM),  # weights
                pl.BlockSpec(memory_space=pltpu.MemorySpace.SMEM),  # bias
            ],
            out_specs=pl.BlockSpec((None, None, H2, W2),
                                   lambda n, co: (n, co, 0, 0)),
            scratch_shapes=[
                pltpu.VMEM((C_in, 3 * H2, 3 * W2), jnp.float32),
            ],
        ),
        compiler_params=pltpu.CompilerParams(
            dimension_semantics=("parallel", "arbitrary")),
    )(x.astype(jnp.float32), rup, cup, w_flat, b_f)
    return out


# ---------------------------------------------------------------- reference -
def deconv_block_ref(x, params, eps=1e-5):
    xu = jnp.repeat(jnp.repeat(x, 2, axis=2), 2, axis=3)          # nearest 2x
    y = jax.lax.conv_general_dilated(
        xu, params["w"], window_strides=(1, 1), padding=((1, 1), (1, 1)),
        dimension_numbers=("NCHW", "OIHW", "NCHW"))
    y = y + params["b"][None, :, None, None]
    scale = params["gamma"] / jnp.sqrt(params["var"] + eps)
    y = (y - params["mean"][None, :, None, None]) * scale[None, :, None, None] \
        + params["beta"][None, :, None, None]
    return jnp.maximum(y, 0.0)


# ------------------------------------------------------------------- main ---
if __name__ == "__main__":
    N, C_in, C_out = 2, 4, 8
    H = W = 64            # upsampled output is 128x128 -> lane-dense stores

    key = jax.random.PRNGKey(0)
    ks = jax.random.split(key, 8)

    x = jax.random.normal(ks[0], (N, C_in, H, W), jnp.float32)
    params = {
        "w": jax.random.normal(ks[1], (C_out, C_in, 3, 3), jnp.float32) * 0.2,
        "b": jax.random.normal(ks[2], (C_out,), jnp.float32) * 0.1,
        "gamma": jnp.abs(jax.random.normal(ks[3], (C_out,), jnp.float32)) + 0.5,
        "beta": jax.random.normal(ks[4], (C_out,), jnp.float32) * 0.1,
        "mean": jax.random.normal(ks[5], (C_out,), jnp.float32) * 0.1,
        "var": jnp.abs(jax.random.normal(ks[6], (C_out,), jnp.float32)) + 0.5,
    }

    out = jax.block_until_ready(deconv_block(x, params))
    ref = deconv_block_ref(x, params)

    assert out.shape == (N, C_out, 2 * H, 2 * W)
    max_err = float(jnp.max(jnp.abs(out - ref)))
    assert jnp.allclose(out, ref, atol=2e-4, rtol=2e-4), f"mismatch: {max_err}"

    print("KERNEL_OK")
</pallas_src>

<mosaic_0001>
module attributes {stable_mosaic.version = 11 : i64} {
  func.func @deconv_block_kernel(%arg0: i32, %arg1: i32, %arg2: memref<1x4x64x64xf32, #tpu.memory_space<vmem>>, %arg3: memref<384x64xf32, #tpu.memory_space<vmem>>, %arg4: memref<64x384xf32, #tpu.memory_space<vmem>>, %arg5: memref<288xf32, #tpu.memory_space<smem>>, %arg6: memref<8xf32, #tpu.memory_space<smem>>, %arg7: memref<1x1x128x128xf32, #tpu.memory_space<vmem>>, %arg8: memref<4x384x384xf32, #tpu.memory_space<vmem>>) attributes {dimension_semantics = [#tpu.dimension_semantics<parallel>, #tpu.dimension_semantics<arbitrary>], iteration_bounds = array<i64: 2, 8>, scalar_prefetch = 0 : i64, scratch_operands = 1 : i64, tpu.core_type = #tpu.core_type<tc>, window_params = [{transform_indices = @transform_0, window_bounds = array<i64: 1, 4, 64, 64>}, {pipeline_mode = #tpu.pipeline_mode<synchronous>, transform_indices = @transform_1, window_bounds = array<i64: 384, 64>}, {pipeline_mode = #tpu.pipeline_mode<synchronous>, transform_indices = @transform_2, window_bounds = array<i64: 64, 384>}, {transform_indices = @transform_3, window_bounds = array<i64: 288>}, {transform_indices = @transform_4, window_bounds = array<i64: 8>}, {transform_indices = @transform_5, window_bounds = array<i64: 1, 1, 128, 128>}]} {
    %c0_i32 = arith.constant 0 : i32
    %0 = arith.cmpi eq, %arg1, %c0_i32 : i32
    %1 = arith.extui %0 : i1 to i32
    %c0_i32_0 = arith.constant 0 : i32
    %2 = arith.cmpi ne, %1, %c0_i32_0 : i32
    scf.if %2 {
      %c0_282 = arith.constant 0 : index
      %c0_283 = arith.constant 0 : index
      %445 = vector.load %arg3[%c0_282, %c0_283] : memref<384x64xf32, #tpu.memory_space<vmem>>, vector<384x64xf32>
      %c0_284 = arith.constant 0 : index
      %c0_285 = arith.constant 0 : index
      %446 = vector.load %arg4[%c0_284, %c0_285] : memref<64x384xf32, #tpu.memory_space<vmem>>, vector<64x384xf32>
      %c0_286 = arith.constant 0 : index
      %c0_287 = arith.constant 0 : index
      %c0_288 = arith.constant 0 : index
      %c0_289 = arith.constant 0 : index
      %447 = vector.load %arg2[%c0_286, %c0_287, %c0_288, %c0_289] : memref<1x4x64x64xf32, #tpu.memory_space<vmem>>, vector<1x1x64x64xf32>
      %448 = vector.shape_cast %447 : vector<1x1x64x64xf32> to vector<64x64xf32>
      %cst_290 = arith.constant dense<0.000000e+00> : vector<64x384xf32>
      %449 = tpu.matmul %448, %446, %cst_290 {dimension_numbers = #tpu.dot_dimension_numbers<[1], [0], [0], [1], [0, 0, 1, 1], [], []>} : vector<64x64xf32>, vector<64x384xf32>, vector<64x384xf32> -> vector<64x384xf32>
      %cst_291 = arith.constant dense<0.000000e+00> : vector<384x384xf32>
      %450 = tpu.matmul %445, %449, %cst_291 {dimension_numbers = #tpu.dot_dimension_numbers<[1], [0], [0], [1], [0, 0, 1, 1], [], []>} : vector<384x64xf32>, vector<64x384xf32>, vector<384x384xf32> -> vector<384x384xf32>
      %c0_292 = arith.constant 0 : index
      %c0_293 = arith.constant 0 : index
      %c0_294 = arith.constant 0 : index
      %451 = vector.load %arg8[%c0_292, %c0_293, %c0_294] : memref<4x384x384xf32, #tpu.memory_space<vmem>>, vector<1x384x384xf32>
      %452 = vector.shape_cast %451 : vector<1x384x384xf32> to vector<384x384xf32>
      %453 = vector.shape_cast %450 : vector<384x384xf32> to vector<1x384x384xf32>
      tpu.vector_store %arg8[%c0_292, %c0_293, %c0_294], %453 {strides = array<i32>} : memref<4x384x384xf32, #tpu.memory_space<vmem>>, vector<1x384x384xf32>,
      %c0_295 = arith.constant 0 : index
      %c1_296 = arith.constant 1 : index
      %c0_297 = arith.constant 0 : index
      %c0_298 = arith.constant 0 : index
      %454 = vector.load %arg2[%c0_295, %c1_296, %c0_297, %c0_298] : memref<1x4x64x64xf32, #tpu.memory_space<vmem>>, vector<1x1x64x64xf32>
      %455 = vector.shape_cast %454 : vector<1x1x64x64xf32> to vector<64x64xf32>
      %cst_299 = arith.constant dense<0.000000e+00> : vector<64x384xf32>
      %456 = tpu.matmul %455, %446, %cst_299 {dimension_numbers = #tpu.dot_dimension_numbers<[1], [0], [0], [1], [0, 0, 1, 1], [], []>} : vector<64x64xf32>, vector<64x384xf32>, vector<64x384xf32> -> vector<64x384xf32>
      %cst_300 = arith.constant dense<0.000000e+00> : vector<384x384xf32>
      %457 = tpu.matmul %445, %456, %cst_300 {dimension_numbers = #tpu.dot_dimension_numbers<[1], [0], [0], [1], [0, 0, 1, 1], [], []>} : vector<384x64xf32>, vector<64x384xf32>, vector<384x384xf32> -> vector<384x384xf32>
      %c1_301 = arith.constant 1 : index
      %c0_302 = arith.constant 0 : index
      %c0_303 = arith.constant 0 : index
      %458 = vector.load %arg8[%c1_301, %c0_302, %c0_303] : memref<4x384x384xf32, #tpu.memory_space<vmem>>, vector<1x384x384xf32>
      %459 = vector.shape_cast %458 : vector<1x384x384xf32> to vector<384x384xf32>
      %460 = vector.shape_cast %457 : vector<384x384xf32> to vector<1x384x384xf32>
      tpu.vector_store %arg8[%c1_301, %c0_302, %c0_303], %460 {strides = array<i32>} : memref<4x384x384xf32, #tpu.memory_space<vmem>>, vector<1x384x384xf32>,
      %c0_304 = arith.constant 0 : index
      %c2_305 = arith.constant 2 : index
      %c0_306 = arith.constant 0 : index
      %c0_307 = arith.constant 0 : index
      %461 = vector.load %arg2[%c0_304, %c2_305, %c0_306, %c0_307] : memref<1x4x64x64xf32, #tpu.memory_space<vmem>>, vector<1x1x64x64xf32>
      %462 = vector.shape_cast %461 : vector<1x1x64x64xf32> to vector<64x64xf32>
      %cst_308 = arith.constant dense<0.000000e+00> : vector<64x384xf32>
      %463 = tpu.matmul %462, %446, %cst_308 {dimension_numbers = #tpu.dot_dimension_numbers<[1], [0], [0], [1], [0, 0, 1, 1], [], []>} : vector<64x64xf32>, vector<64x384xf32>, vector<64x384xf32> -> vector<64x384xf32>
      %cst_309 = arith.constant dense<0.000000e+00> : vector<384x384xf32>
      %464 = tpu.matmul %445, %463, %cst_309 {dimension_numbers = #tpu.dot_dimension_numbers<[1], [0], [0], [1], [0, 0, 1, 1], [], []>} : vector<384x64xf32>, vector<64x384xf32>, vector<384x384xf32> -> vector<384x384xf32>
      %c2_310 = arith.constant 2 : index
      %c0_311 = arith.constant 0 : index
      %c0_312 = arith.constant 0 : index
      %465 = vector.load %arg8[%c2_310, %c0_311, %c0_312] : memref<4x384x384xf32, #tpu.memory_space<vmem>>, vector<1x384x384xf32>
      %466 = vector.shape_cast %465 : vector<1x384x384xf32> to vector<384x384xf32>
      %467 = vector.shape_cast %464 : vector<384x384xf32> to vector<1x384x384xf32>
      tpu.vector_store %arg8[%c2_310, %c0_311, %c0_312], %467 {strides = array<i32>} : memref<4x384x384xf32, #tpu.memory_space<vmem>>, vector<1x384x384xf32>,
      %c0_313 = arith.constant 0 : index
      %c3_314 = arith.constant 3 : index
      %c0_315 = arith.constant 0 : index
      %c0_316 = arith.constant 0 : index
      %468 = vector.load %arg2[%c0_313, %c3_314, %c0_315, %c0_316] : memref<1x4x64x64xf32, #tpu.memory_space<vmem>>, vector<1x1x64x64xf32>
      %469 = vector.shape_cast %468 : vector<1x1x64x64xf32> to vector<64x64xf32>
      %cst_317 = arith.constant dense<0.000000e+00> : vector<64x384xf32>
      %470 = tpu.matmul %469, %446, %cst_317 {dimension_numbers = #tpu.dot_dimension_numbers<[1], [0], [0], [1], [0, 0, 1, 1], [], []>} : vector<64x64xf32>, vector<64x384xf32>, vector<64x384xf32> -> vector<64x384xf32>
      %cst_318 = arith.constant dense<0.000000e+00> : vector<384x384xf32>
      %471 = tpu.matmul %445, %470, %cst_318 {dimension_numbers = #tpu.dot_dimension_numbers<[1], [0], [0], [1], [0, 0, 1, 1], [], []>} : vector<384x64xf32>, vector<64x384xf32>, vector<384x384xf32> -> vector<384x384xf32>
      %c3_319 = arith.constant 3 : index
      %c0_320 = arith.constant 0 : index
      %c0_321 = arith.constant 0 : index
      %472 = vector.load %arg8[%c3_319, %c0_320, %c0_321] : memref<4x384x384xf32, #tpu.memory_space<vmem>>, vector<1x384x384xf32>
      %473 = vector.shape_cast %472 : vector<1x384x384xf32> to vector<384x384xf32>
      %474 = vector.shape_cast %471 : vector<384x384xf32> to vector<1x384x384xf32>
      tpu.vector_store %arg8[%c3_319, %c0_320, %c0_321], %474 {strides = array<i32>} : memref<4x384x384xf32, #tpu.memory_space<vmem>>, vector<1x384x384xf32>,
    } else {
    }
    %cst = arith.constant 0.000000e+00 : f32
    %3 = vector.broadcast %cst : f32 to vector<128x128xf32>
    %c4_i32 = arith.constant 4 : i32
    %4 = arith.muli %arg1, %c4_i32 : i32
    %c0_i32_1 = arith.constant 0 : i32
    %5 = arith.addi %4, %c0_i32_1 : i32
    %c9_i32 = arith.constant 9 : i32
    %6 = arith.muli %5, %c9_i32 : i32
    %c0_i32_2 = arith.constant 0 : i32
    %7 = arith.addi %6, %c0_i32_2 : i32
    %c0_i32_3 = arith.constant 0 : i32
    %8 = arith.addi %7, %c0_i32_3 : i32
    %9 = arith.index_cast %8 : i32 to index
    %10 = memref.load %arg5[%9] : memref<288xf32, #tpu.memory_space<smem>>
    %c0 = arith.constant 0 : index
    %c0_4 = arith.constant 0 : index
    %c0_5 = arith.constant 0 : index
    %11 = vector.load %arg8[%c0, %c0_4, %c0_5] : memref<4x384x384xf32, #tpu.memory_space<vmem>>, vector<1x128x128xf32>
    %12 = vector.shape_cast %11 : vector<1x128x128xf32> to vector<128x128xf32>
    %13 = vector.broadcast %10 : f32 to vector<128x128xf32>
    %14 = arith.mulf %13, %12 : vector<128x128xf32>
    %15 = arith.addf %3, %14 : vector<128x128xf32>
    %c4_i32_6 = arith.constant 4 : i32
    %16 = arith.muli %arg1, %c4_i32_6 : i32
    %c0_i32_7 = arith.constant 0 : i32
    %17 = arith.addi %16, %c0_i32_7 : i32
    %c9_i32_8 = arith.constant 9 : i32
    %18 = arith.muli %17, %c9_i32_8 : i32
    %c0_i32_9 = arith.constant 0 : i32
    %19 = arith.addi %18, %c0_i32_9 : i32
    %c1_i32 = arith.constant 1 : i32
    %20 = arith.addi %19, %c1_i32 : i32
    %21 = arith.index_cast %20 : i32 to index
    %22 = memref.load %arg5[%21] : memref<288xf32, #tpu.memory_space<smem>>
    %c0_10 = arith.constant 0 : index
    %c0_11 = arith.constant 0 : index
    %c128 = arith.constant 128 : index
    %23 = vector.load %arg8[%c0_10, %c0_11, %c128] : memref<4x384x384xf32, #tpu.memory_space<vmem>>, vector<1x128x128xf32>
    %24 = vector.shape_cast %23 : vector<1x128x128xf32> to vector<128x128xf32>
    %25 = vector.broadcast %22 : f32 to vector<128x128xf32>
    %26 = arith.mulf %25, %24 : vector<128x128xf32>
    %27 = arith.addf %15, %26 : vector<128x128xf32>
    %c4_i32_12 = arith.constant 4 : i32
    %28 = arith.muli %arg1, %c4_i32_12 : i32
    %c0_i32_13 = arith.constant 0 : i32
    %29 = arith.addi %28, %c0_i32_13 : i32
    %c9_i32_14 = arith.constant 9 : i32
    %30 = arith.muli %29, %c9_i32_14 : i32
    %c0_i32_15 = arith.constant 0 : i32
    %31 = arith.addi %30, %c0_i32_15 : i32
    %c2_i32 = arith.constant 2 : i32
    %32 = arith.addi %31, %c2_i32 : i32
    %33 = arith.index_cast %32 : i32 to index
    %34 = memref.load %arg5[%33] : memref<288xf32, #tpu.memory_space<smem>>
    %c0_16 = arith.constant 0 : index
    %c0_17 = arith.constant 0 : index
    %c256 = arith.constant 256 : index
    %35 = vector.load %arg8[%c0_16, %c0_17, %c256] : memref<4x384x384xf32, #tpu.memory_space<vmem>>, vector<1x128x128xf32>
    %36 = vector.shape_cast %35 : vector<1x128x128xf32> to vector<128x128xf32>
    %37 = vector.broadcast %34 : f32 to vector<128x128xf32>
    %38 = arith.mulf %37, %36 : vector<128x128xf32>
    %39 = arith.addf %27, %38 : vector<128x128xf32>
    %c4_i32_18 = arith.constant 4 : i32
    %40 = arith.muli %arg1, %c4_i32_18 : i32
    %c0_i32_19 = arith.constant 0 : i32
    %41 = arith.addi %40, %c0_i32_19 : i32
    %c9_i32_20 = arith.constant 9 : i32
    %42 = arith.muli %41, %c9_i32_20 : i32
    %c3_i32 = arith.constant 3 : i32
    %43 = arith.addi %42, %c3_i32 : i32
    %c0_i32_21 = arith.constant 0 : i32
    %44 = arith.addi %43, %c0_i32_21 : i32
    %45 = arith.index_cast %44 : i32 to index
    %46 = memref.load %arg5[%45] : memref<288xf32, #tpu.memory_space<smem>>
    %c0_22 = arith.constant 0 : index
    %c128_23 = arith.constant 128 : index
    %c0_24 = arith.constant 0 : index
    %47 = vector.load %arg8[%c0_22, %c128_23, %c0_24] : memref<4x384x384xf32, #tpu.memory_space<vmem>>, vector<1x128x128xf32>
    %48 = vector.shape_cast %47 : vector<1x128x128xf32> to vector<128x128xf32>
    %49 = vector.broadcast %46 : f32 to vector<128x128xf32>
    %50 = arith.mulf %49, %48 : vector<128x128xf32>
    %51 = arith.addf %39, %50 : vector<128x128xf32>
    %c4_i32_25 = arith.constant 4 : i32
    %52 = arith.muli %arg1, %c4_i32_25 : i32
    %c0_i32_26 = arith.constant 0 : i32
    %53 = arith.addi %52, %c0_i32_26 : i32
    %c9_i32_27 = arith.constant 9 : i32
    %54 = arith.muli %53, %c9_i32_27 : i32
    %c3_i32_28 = arith.constant 3 : i32
    %55 = arith.addi %54, %c3_i32_28 : i32
    %c1_i32_29 = arith.constant 1 : i32
    %56 = arith.addi %55, %c1_i32_29 : i32
    %57 = arith.index_cast %56 : i32 to index
    %58 = memref.load %arg5[%57] : memref<288xf32, #tpu.memory_space<smem>>
    %c0_30 = arith.constant 0 : index
    %c128_31 = arith.constant 128 : index
    %c128_32 = arith.constant 128 : index
    %59 = vector.load %arg8[%c0_30, %c128_31, %c128_32] : memref<4x384x384xf32, #tpu.memory_space<vmem>>, vector<1x128x128xf32>
    %60 = vector.shape_cast %59 : vector<1x128x128xf32> to vector<128x128xf32>
    %61 = vector.broadcast %58 : f32 to vector<128x128xf32>
    %62 = arith.mulf %61, %60 : vector<128x128xf32>
    %63 = arith.addf %51, %62 : vector<128x128xf32>
    %c4_i32_33 = arith.constant 4 : i32
    %64 = arith.muli %arg1, %c4_i32_33 : i32
    %c0_i32_34 = arith.constant 0 : i32
    %65 = arith.addi %64, %c0_i32_34 : i32
    %c9_i32_35 = arith.constant 9 : i32
    %66 = arith.muli %65, %c9_i32_35 : i32
    %c3_i32_36 = arith.constant 3 : i32
    %67 = arith.addi %66, %c3_i32_36 : i32
    %c2_i32_37 = arith.constant 2 : i32
    %68 = arith.addi %67, %c2_i32_37 : i32
    %69 = arith.index_cast %68 : i32 to index
    %70 = memref.load %arg5[%69] : memref<288xf32, #tpu.memory_space<smem>>
    %c0_38 = arith.constant 0 : index
    %c128_39 = arith.constant 128 : index
    %c256_40 = arith.constant 256 : index
    %71 = vector.load %arg8[%c0_38, %c128_39, %c256_40] : memref<4x384x384xf32, #tpu.memory_space<vmem>>, vector<1x128x128xf32>
    %72 = vector.shape_cast %71 : vector<1x128x128xf32> to vector<128x128xf32>
    %73 = vector.broadcast %70 : f32 to vector<128x128xf32>
    %74 = arith.mulf %73, %72 : vector<128x128xf32>
    %75 = arith.addf %63, %74 : vector<128x128xf32>
    %c4_i32_41 = arith.constant 4 : i32
    %76 = arith.muli %arg1, %c4_i32_41 : i32
    %c0_i32_42 = arith.constant 0 : i32
    %77 = arith.addi %76, %c0_i32_42 : i32
    %c9_i32_43 = arith.constant 9 : i32
    %78 = arith.muli %77, %c9_i32_43 : i32
    %c6_i32 = arith.constant 6 : i32
    %79 = arith.addi %78, %c6_i32 : i32
    %c0_i32_44 = arith.constant 0 : i32
    %80 = arith.addi %79, %c0_i32_44 : i32
    %81 = arith.index_cast %80 : i32 to index
    %82 = memref.load %arg5[%81] : memref<288xf32, #tpu.memory_space<smem>>
    %c0_45 = arith.constant 0 : index
    %c256_46 = arith.constant 256 : index
    %c0_47 = arith.constant 0 : index
    %83 = vector.load %arg8[%c0_45, %c256_46, %c0_47] : memref<4x384x384xf32, #tpu.memory_space<vmem>>, vector<1x128x128xf32>
    %84 = vector.shape_cast %83 : vector<1x128x128xf32> to vector<128x128xf32>
    %85 = vector.broadcast %82 : f32 to vector<128x128xf32>
    %86 = arith.mulf %85, %84 : vector<128x128xf32>
    %87 = arith.addf %75, %86 : vector<128x128xf32>
    %c4_i32_48 = arith.constant 4 : i32
    %88 = arith.muli %arg1, %c4_i32_48 : i32
    %c0_i32_49 = arith.constant 0 : i32
    %89 = arith.addi %88, %c0_i32_49 : i32
    %c9_i32_50 = arith.constant 9 : i32
    %90 = arith.muli %89, %c9_i32_50 : i32
    %c6_i32_51 = arith.constant 6 : i32
    %91 = arith.addi %90, %c6_i32_51 : i32
    %c1_i32_52 = arith.constant 1 : i32
    %92 = arith.addi %91, %c1_i32_52 : i32
    %93 = arith.index_cast %92 : i32 to index
    %94 = memref.load %arg5[%93] : memref<288xf32, #tpu.memory_space<smem>>
    %c0_53 = arith.constant 0 : index
    %c256_54 = arith.constant 256 : index
    %c128_55 = arith.constant 128 : index
    %95 = vector.load %arg8[%c0_53, %c256_54, %c128_55] : memref<4x384x384xf32, #tpu.memory_space<vmem>>, vector<1x128x128xf32>
    %96 = vector.shape_cast %95 : vector<1x128x128xf32> to vector<128x128xf32>
    %97 = vector.broadcast %94 : f32 to vector<128x128xf32>
    %98 = arith.mulf %97, %96 : vector<128x128xf32>
    %99 = arith.addf %87, %98 : vector<128x128xf32>
    %c4_i32_56 = arith.constant 4 : i32
    %100 = arith.muli %arg1, %c4_i32_56 : i32
    %c0_i32_57 = arith.constant 0 : i32
    %101 = arith.addi %100, %c0_i32_57 : i32
    %c9_i32_58 = arith.constant 9 : i32
    %102 = arith.muli %101, %c9_i32_58 : i32
    %c6_i32_59 = arith.constant 6 : i32
    %103 = arith.addi %102, %c6_i32_59 : i32
    %c2_i32_60 = arith.constant 2 : i32
    %104 = arith.addi %103, %c2_i32_60 : i32
    %105 = arith.index_cast %104 : i32 to index
    %106 = memref.load %arg5[%105] : memref<288xf32, #tpu.memory_space<smem>>
    %c0_61 = arith.constant 0 : index
    %c256_62 = arith.constant 256 : index
    %c256_63 = arith.constant 256 : index
    %107 = vector.load %arg8[%c0_61, %c256_62, %c256_63] : memref<4x384x384xf32, #tpu.memory_space<vmem>>, vector<1x128x128xf32>
    %108 = vector.shape_cast %107 : vector<1x128x128xf32> to vector<128x128xf32>
    %109 = vector.broadcast %106 : f32 to vector<128x128xf32>
    %110 = arith.mulf %109, %108 : vector<128x128xf32>
    %111 = arith.addf %99, %110 : vector<128x128xf32>
    %c4_i32_64 = arith.constant 4 : i32
    %112 = arith.muli %arg1, %c4_i32_64 : i32
    %c1_i32_65 = arith.constant 1 : i32
    %113 = arith.addi %112, %c1_i32_65 : i32
    %c9_i32_66 = arith.constant 9 : i32
    %114 = arith.muli %113, %c9_i32_66 : i32
    %c0_i32_67 = arith.constant 0 : i32
    %115 = arith.addi %114, %c0_i32_67 : i32
    %c0_i32_68 = arith.constant 0 : i32
    %116 = arith.addi %115, %c0_i32_68 : i32
    %117 = arith.index_cast %116 : i32 to index
    %118 = memref.load %arg5[%117] : memref<288xf32, #tpu.memory_space<smem>>
    %c1 = arith.constant 1 : index
    %c0_69 = arith.constant 0 : index
    %c0_70 = arith.constant 0 : index
    %119 = vector.load %arg8[%c1, %c0_69, %c0_70] : memref<4x384x384xf32, #tpu.memory_space<vmem>>, vector<1x128x128xf32>
    %120 = vector.shape_cast %119 : vector<1x128x128xf32> to vector<128x128xf32>
    %121 = vector.broadcast %118 : f32 to vector<128x128xf32>
    %122 = arith.mulf %121, %120 : vector<128x128xf32>
    %123 = arith.addf %111, %122 : vector<128x128xf32>
    %c4_i32_71 = arith.constant 4 : i32
    %124 = arith.muli %arg1, %c4_i32_71 : i32
    %c1_i32_72 = arith.constant 1 : i32
    %125 = arith.addi %124, %c1_i32_72 : i32
    %c9_i32_73 = arith.constant 9 : i32
    %126 = arith.muli %125, %c9_i32_73 : i32
    %c0_i32_74 = arith.constant 0 : i32
    %127 = arith.addi %126, %c0_i32_74 : i32
    %c1_i32_75 = arith.constant 1 : i32
    %128 = arith.addi %127, %c1_i32_75 : i32
    %129 = arith.index_cast %128 : i32 to index
    %130 = memref.load %arg5[%129] : memref<288xf32, #tpu.memory_space<smem>>
    %c1_76 = arith.constant 1 : index
    %c0_77 = arith.constant 0 : index
    %c128_78 = arith.constant 128 : index
    %131 = vector.load %arg8[%c1_76, %c0_77, %c128_78] : memref<4x384x384xf32, #tpu.memory_space<vmem>>, vector<1x128x128xf32>
    %132 = vector.shape_cast %131 : vector<1x128x128xf32> to vector<128x128xf32>
    %133 = vector.broadcast %130 : f32 to vector<128x128xf32>
    %134 = arith.mulf %133, %132 : vector<128x128xf32>
    %135 = arith.addf %123, %134 : vector<128x128xf32>
    %c4_i32_79 = arith.constant 4 : i32
    %136 = arith.muli %arg1, %c4_i32_79 : i32
    %c1_i32_80 = arith.constant 1 : i32
    %137 = arith.addi %136, %c1_i32_80 : i32
    %c9_i32_81 = arith.constant 9 : i32
    %138 = arith.muli %137, %c9_i32_81 : i32
    %c0_i32_82 = arith.constant 0 : i32
    %139 = arith.addi %138, %c0_i32_82 : i32
    %c2_i32_83 = arith.constant 2 : i32
    %140 = arith.addi %139, %c2_i32_83 : i32
    %141 = arith.index_cast %140 : i32 to index
    %142 = memref.load %arg5[%141] : memref<288xf32, #tpu.memory_space<smem>>
    %c1_84 = arith.constant 1 : index
    %c0_85 = arith.constant 0 : index
    %c256_86 = arith.constant 256 : index
    %143 = vector.load %arg8[%c1_84, %c0_85, %c256_86] : memref<4x384x384xf32, #tpu.memory_space<vmem>>, vector<1x128x128xf32>
    %144 = vector.shape_cast %143 : vector<1x128x128xf32> to vector<128x128xf32>
    %145 = vector.broadcast %142 : f32 to vector<128x128xf32>
    %146 = arith.mulf %145, %144 : vector<128x128xf32>
    %147 = arith.addf %135, %146 : vector<128x128xf32>
    %c4_i32_87 = arith.constant 4 : i32
    %148 = arith.muli %arg1, %c4_i32_87 : i32
    %c1_i32_88 = arith.constant 1 : i32
    %149 = arith.addi %148, %c1_i32_88 : i32
    %c9_i32_89 = arith.constant 9 : i32
    %150 = arith.muli %149, %c9_i32_89 : i32
    %c3_i32_90 = arith.constant 3 : i32
    %151 = arith.addi %150, %c3_i32_90 : i32
    %c0_i32_91 = arith.constant 0 : i32
    %152 = arith.addi %151, %c0_i32_91 : i32
    %153 = arith.index_cast %152 : i32 to index
    %154 = memref.load %arg5[%153] : memref<288xf32, #tpu.memory_space<smem>>
    %c1_92 = arith.constant 1 : index
    %c128_93 = arith.constant 128 : index
    %c0_94 = arith.constant 0 : index
    %155 = vector.load %arg8[%c1_92, %c128_93, %c0_94] : memref<4x384x384xf32, #tpu.memory_space<vmem>>, vector<1x128x128xf32>
    %156 = vector.shape_cast %155 : vector<1x128x128xf32> to vector<128x128xf32>
    %157 = vector.broadcast %154 : f32 to vector<128x128xf32>
    %158 = arith.mulf %157, %156 : vector<128x128xf32>
    %159 = arith.addf %147, %158 : vector<128x128xf32>
    %c4_i32_95 = arith.constant 4 : i32
    %160 = arith.muli %arg1, %c4_i32_95 : i32
    %c1_i32_96 = arith.constant 1 : i32
    %161 = arith.addi %160, %c1_i32_96 : i32
    %c9_i32_97 = arith.constant 9 : i32
    %162 = arith.muli %161, %c9_i32_97 : i32
    %c3_i32_98 = arith.constant 3 : i32
    %163 = arith.addi %162, %c3_i32_98 : i32
    %c1_i32_99 = arith.constant 1 : i32
    %164 = arith.addi %163, %c1_i32_99 : i32
    %165 = arith.index_cast %164 : i32 to index
    %166 = memref.load %arg5[%165] : memref<288xf32, #tpu.memory_space<smem>>
    %c1_100 = arith.constant 1 : index
    %c128_101 = arith.constant 128 : index
    %c128_102 = arith.constant 128 : index
    %167 = vector.load %arg8[%c1_100, %c128_101, %c128_102] : memref<4x384x384xf32, #tpu.memory_space<vmem>>, vector<1x128x128xf32>
    %168 = vector.shape_cast %167 : vector<1x128x128xf32> to vector<128x128xf32>
    %169 = vector.broadcast %166 : f32 to vector<128x128xf32>
    %170 = arith.mulf %169, %168 : vector<128x128xf32>
    %171 = arith.addf %159, %170 : vector<128x128xf32>
    %c4_i32_103 = arith.constant 4 : i32
    %172 = arith.muli %arg1, %c4_i32_103 : i32
    %c1_i32_104 = arith.constant 1 : i32
    %173 = arith.addi %172, %c1_i32_104 : i32
    %c9_i32_105 = arith.constant 9 : i32
    %174 = arith.muli %173, %c9_i32_105 : i32
    %c3_i32_106 = arith.constant 3 : i32
    %175 = arith.addi %174, %c3_i32_106 : i32
    %c2_i32_107 = arith.constant 2 : i32
    %176 = arith.addi %175, %c2_i32_107 : i32
    %177 = arith.index_cast %176 : i32 to index
    %178 = memref.load %arg5[%177] : memref<288xf32, #tpu.memory_space<smem>>
    %c1_108 = arith.constant 1 : index
    %c128_109 = arith.constant 128 : index
    %c256_110 = arith.constant 256 : index
    %179 = vector.load %arg8[%c1_108, %c128_109, %c256_110] : memref<4x384x384xf32, #tpu.memory_space<vmem>>, vector<1x128x128xf32>
    %180 = vector.shape_cast %179 : vector<1x128x128xf32> to vector<128x128xf32>
    %181 = vector.broadcast %178 : f32 to vector<128x128xf32>
    %182 = arith.mulf %181, %180 : vector<128x128xf32>
    %183 = arith.addf %171, %182 : vector<128x128xf32>
    %c4_i32_111 = arith.constant 4 : i32
    %184 = arith.muli %arg1, %c4_i32_111 : i32
    %c1_i32_112 = arith.constant 1 : i32
    %185 = arith.addi %184, %c1_i32_112 : i32
    %c9_i32_113 = arith.constant 9 : i32
    %186 = arith.muli %185, %c9_i32_113 : i32
    %c6_i32_114 = arith.constant 6 : i32
    %187 = arith.addi %186, %c6_i32_114 : i32
    %c0_i32_115 = arith.constant 0 : i32
    %188 = arith.addi %187, %c0_i32_115 : i32
    %189 = arith.index_cast %188 : i32 to index
    %190 = memref.load %arg5[%189] : memref<288xf32, #tpu.memory_space<smem>>
    %c1_116 = arith.constant 1 : index
    %c256_117 = arith.constant 256 : index
    %c0_118 = arith.constant 0 : index
    %191 = vector.load %arg8[%c1_116, %c256_117, %c0_118] : memref<4x384x384xf32, #tpu.memory_space<vmem>>, vector<1x128x128xf32>
    %192 = vector.shape_cast %191 : vector<1x128x128xf32> to vector<128x128xf32>
    %193 = vector.broadcast %190 : f32 to vector<128x128xf32>
    %194 = arith.mulf %193, %192 : vector<128x128xf32>
    %195 = arith.addf %183, %194 : vector<128x128xf32>
    %c4_i32_119 = arith.constant 4 : i32
    %196 = arith.muli %arg1, %c4_i32_119 : i32
    %c1_i32_120 = arith.constant 1 : i32
    %197 = arith.addi %196, %c1_i32_120 : i32
    %c9_i32_121 = arith.constant 9 : i32
    %198 = arith.muli %197, %c9_i32_121 : i32
    %c6_i32_122 = arith.constant 6 : i32
    %199 = arith.addi %198, %c6_i32_122 : i32
    %c1_i32_123 = arith.constant 1 : i32
    %200 = arith.addi %199, %c1_i32_123 : i32
    %201 = arith.index_cast %200 : i32 to index
    %202 = memref.load %arg5[%201] : memref<288xf32, #tpu.memory_space<smem>>
    %c1_124 = arith.constant 1 : index
    %c256_125 = arith.constant 256 : index
    %c128_126 = arith.constant 128 : index
    %203 = vector.load %arg8[%c1_124, %c256_125, %c128_126] : memref<4x384x384xf32, #tpu.memory_space<vmem>>, vector<1x128x128xf32>
    %204 = vector.shape_cast %203 : vector<1x128x128xf32> to vector<128x128xf32>
    %205 = vector.broadcast %202 : f32 to vector<128x128xf32>
    %206 = arith.mulf %205, %204 : vector<128x128xf32>
    %207 = arith.addf %195, %206 : vector<128x128xf32>
    %c4_i32_127 = arith.constant 4 : i32
    %208 = arith.muli %arg1, %c4_i32_127 : i32
    %c1_i32_128 = arith.constant 1 : i32
    %209 = arith.addi %208, %c1_i32_128 : i32
    %c9_i32_129 = arith.constant 9 : i32
    %210 = arith.muli %209, %c9_i32_129 : i32
    %c6_i32_130 = arith.constant 6 : i32
    %211 = arith.addi %210, %c6_i32_130 : i32
    %c2_i32_131 = arith.constant 2 : i32
    %212 = arith.addi %211, %c2_i32_131 : i32
    %213 = arith.index_cast %212 : i32 to index
    %214 = memref.load %arg5[%213] : memref<288xf32, #tpu.memory_space<smem>>
    %c1_132 = arith.constant 1 : index
    %c256_133 = arith.constant 256 : index
    %c256_134 = arith.constant 256 : index
    %215 = vector.load %arg8[%c1_132, %c256_133, %c256_134] : memref<4x384x384xf32, #tpu.memory_space<vmem>>, vector<1x128x128xf32>
    %216 = vector.shape_cast %215 : vector<1x128x128xf32> to vector<128x128xf32>
    %217 = vector.broadcast %214 : f32 to vector<128x128xf32>
    %218 = arith.mulf %217, %216 : vector<128x128xf32>
    %219 = arith.addf %207, %218 : vector<128x128xf32>
    %c4_i32_135 = arith.constant 4 : i32
    %220 = arith.muli %arg1, %c4_i32_135 : i32
    %c2_i32_136 = arith.constant 2 : i32
    %221 = arith.addi %220, %c2_i32_136 : i32
    %c9_i32_137 = arith.constant 9 : i32
    %222 = arith.muli %221, %c9_i32_137 : i32
    %c0_i32_138 = arith.constant 0 : i32
    %223 = arith.addi %222, %c0_i32_138 : i32
    %c0_i32_139 = arith.constant 0 : i32
    %224 = arith.addi %223, %c0_i32_139 : i32
    %225 = arith.index_cast %224 : i32 to index
    %226 = memref.load %arg5[%225] : memref<288xf32, #tpu.memory_space<smem>>
    %c2 = arith.constant 2 : index
    %c0_140 = arith.constant 0 : index
    %c0_141 = arith.constant 0 : index
    %227 = vector.load %arg8[%c2, %c0_140, %c0_141] : memref<4x384x384xf32, #tpu.memory_space<vmem>>, vector<1x128x128xf32>
    %228 = vector.shape_cast %227 : vector<1x128x128xf32> to vector<128x128xf32>
    %229 = vector.broadcast %226 : f32 to vector<128x128xf32>
    %230 = arith.mulf %229, %228 : vector<128x128xf32>
    %231 = arith.addf %219, %230 : vector<128x128xf32>
    %c4_i32_142 = arith.constant 4 : i32
    %232 = arith.muli %arg1, %c4_i32_142 : i32
    %c2_i32_143 = arith.constant 2 : i32
    %233 = arith.addi %232, %c2_i32_143 : i32
    %c9_i32_144 = arith.constant 9 : i32
    %234 = arith.muli %233, %c9_i32_144 : i32
    %c0_i32_145 = arith.constant 0 : i32
    %235 = arith.addi %234, %c0_i32_145 : i32
    %c1_i32_146 = arith.constant 1 : i32
    %236 = arith.addi %235, %c1_i32_146 : i32
    %237 = arith.index_cast %236 : i32 to index
    %238 = memref.load %arg5[%237] : memref<288xf32, #tpu.memory_space<smem>>
    %c2_147 = arith.constant 2 : index
    %c0_148 = arith.constant 0 : index
    %c128_149 = arith.constant 128 : index
    %239 = vector.load %arg8[%c2_147, %c0_148, %c128_149] : memref<4x384x384xf32, #tpu.memory_space<vmem>>, vector<1x128x128xf32>
    %240 = vector.shape_cast %239 : vector<1x128x128xf32> to vector<128x128xf32>
    %241 = vector.broadcast %238 : f32 to vector<128x128xf32>
    %242 = arith.mulf %241, %240 : vector<128x128xf32>
    %243 = arith.addf %231, %242 : vector<128x128xf32>
    %c4_i32_150 = arith.constant 4 : i32
    %244 = arith.muli %arg1, %c4_i32_150 : i32
    %c2_i32_151 = arith.constant 2 : i32
    %245 = arith.addi %244, %c2_i32_151 : i32
    %c9_i32_152 = arith.constant 9 : i32
    %246 = arith.muli %245, %c9_i32_152 : i32
    %c0_i32_153 = arith.constant 0 : i32
    %247 = arith.addi %246, %c0_i32_153 : i32
    %c2_i32_154 = arith.constant 2 : i32
    %248 = arith.addi %247, %c2_i32_154 : i32
    %249 = arith.index_cast %248 : i32 to index
    %250 = memref.load %arg5[%249] : memref<288xf32, #tpu.memory_space<smem>>
    %c2_155 = arith.constant 2 : index
    %c0_156 = arith.constant 0 : index
    %c256_157 = arith.constant 256 : index
    %251 = vector.load %arg8[%c2_155, %c0_156, %c256_157] : memref<4x384x384xf32, #tpu.memory_space<vmem>>, vector<1x128x128xf32>
    %252 = vector.shape_cast %251 : vector<1x128x128xf32> to vector<128x128xf32>
    %253 = vector.broadcast %250 : f32 to vector<128x128xf32>
    %254 = arith.mulf %253, %252 : vector<128x128xf32>
    %255 = arith.addf %243, %254 : vector<128x128xf32>
    %c4_i32_158 = arith.constant 4 : i32
    %256 = arith.muli %arg1, %c4_i32_158 : i32
    %c2_i32_159 = arith.constant 2 : i32
    %257 = arith.addi %256, %c2_i32_159 : i32
    %c9_i32_160 = arith.constant 9 : i32
    %258 = arith.muli %257, %c9_i32_160 : i32
    %c3_i32_161 = arith.constant 3 : i32
    %259 = arith.addi %258, %c3_i32_161 : i32
    %c0_i32_162 = arith.constant 0 : i32
    %260 = arith.addi %259, %c0_i32_162 : i32
    %261 = arith.index_cast %260 : i32 to index
    %262 = memref.load %arg5[%261] : memref<288xf32, #tpu.memory_space<smem>>
    %c2_163 = arith.constant 2 : index
    %c128_164 = arith.constant 128 : index
    %c0_165 = arith.constant 0 : index
    %263 = vector.load %arg8[%c2_163, %c128_164, %c0_165] : memref<4x384x384xf32, #tpu.memory_space<vmem>>, vector<1x128x128xf32>
    %264 = vector.shape_cast %263 : vector<1x128x128xf32> to vector<128x128xf32>
    %265 = vector.broadcast %262 : f32 to vector<128x128xf32>
    %266 = arith.mulf %265, %264 : vector<128x128xf32>
    %267 = arith.addf %255, %266 : vector<128x128xf32>
    %c4_i32_166 = arith.constant 4 : i32
    %268 = arith.muli %arg1, %c4_i32_166 : i32
    %c2_i32_167 = arith.constant 2 : i32
    %269 = arith.addi %268, %c2_i32_167 : i32
    %c9_i32_168 = arith.constant 9 : i32
    %270 = arith.muli %269, %c9_i32_168 : i32
    %c3_i32_169 = arith.constant 3 : i32
    %271 = arith.addi %270, %c3_i32_169 : i32
    %c1_i32_170 = arith.constant 1 : i32
    %272 = arith.addi %271, %c1_i32_170 : i32
    %273 = arith.index_cast %272 : i32 to index
    %274 = memref.load %arg5[%273] : memref<288xf32, #tpu.memory_space<smem>>
    %c2_171 = arith.constant 2 : index
    %c128_172 = arith.constant 128 : index
    %c128_173 = arith.constant 128 : index
    %275 = vector.load %arg8[%c2_171, %c128_172, %c128_173] : memref<4x384x384xf32, #tpu.memory_space<vmem>>, vector<1x128x128xf32>
    %276 = vector.shape_cast %275 : vector<1x128x128xf32> to vector<128x128xf32>
    %277 = vector.broadcast %274 : f32 to vector<128x128xf32>
    %278 = arith.mulf %277, %276 : vector<128x128xf32>
    %279 = arith.addf %267, %278 : vector<128x128xf32>
    %c4_i32_174 = arith.constant 4 : i32
    %280 = arith.muli %arg1, %c4_i32_174 : i32
    %c2_i32_175 = arith.constant 2 : i32
    %281 = arith.addi %280, %c2_i32_175 : i32
    %c9_i32_176 = arith.constant 9 : i32
    %282 = arith.muli %281, %c9_i32_176 : i32
    %c3_i32_177 = arith.constant 3 : i32
    %283 = arith.addi %282, %c3_i32_177 : i32
    %c2_i32_178 = arith.constant 2 : i32
    %284 = arith.addi %283, %c2_i32_178 : i32
    %285 = arith.index_cast %284 : i32 to index
    %286 = memref.load %arg5[%285] : memref<288xf32, #tpu.memory_space<smem>>
    %c2_179 = arith.constant 2 : index
    %c128_180 = arith.constant 128 : index
    %c256_181 = arith.constant 256 : index
    %287 = vector.load %arg8[%c2_179, %c128_180, %c256_181] : memref<4x384x384xf32, #tpu.memory_space<vmem>>, vector<1x128x128xf32>
    %288 = vector.shape_cast %287 : vector<1x128x128xf32> to vector<128x128xf32>
    %289 = vector.broadcast %286 : f32 to vector<128x128xf32>
    %290 = arith.mulf %289, %288 : vector<128x128xf32>
    %291 = arith.addf %279, %290 : vector<128x128xf32>
    %c4_i32_182 = arith.constant 4 : i32
    %292 = arith.muli %arg1, %c4_i32_182 : i32
    %c2_i32_183 = arith.constant 2 : i32
    %293 = arith.addi %292, %c2_i32_183 : i32
    %c9_i32_184 = arith.constant 9 : i32
    %294 = arith.muli %293, %c9_i32_184 : i32
    %c6_i32_185 = arith.constant 6 : i32
    %295 = arith.addi %294, %c6_i32_185 : i32
    %c0_i32_186 = arith.constant 0 : i32
    %296 = arith.addi %295, %c0_i32_186 : i32
    %297 = arith.index_cast %296 : i32 to index
    %298 = memref.load %arg5[%297] : memref<288xf32, #tpu.memory_space<smem>>
    %c2_187 = arith.constant 2 : index
    %c256_188 = arith.constant 256 : index
    %c0_189 = arith.constant 0 : index
    %299 = vector.load %arg8[%c2_187, %c256_188, %c0_189] : memref<4x384x384xf32, #tpu.memory_space<vmem>>, vector<1x128x128xf32>
    %300 = vector.shape_cast %299 : vector<1x128x128xf32> to vector<128x128xf32>
    %301 = vector.broadcast %298 : f32 to vector<128x128xf32>
    %302 = arith.mulf %301, %300 : vector<128x128xf32>
    %303 = arith.addf %291, %302 : vector<128x128xf32>
    %c4_i32_190 = arith.constant 4 : i32
    %304 = arith.muli %arg1, %c4_i32_190 : i32
    %c2_i32_191 = arith.constant 2 : i32
    %305 = arith.addi %304, %c2_i32_191 : i32
    %c9_i32_192 = arith.constant 9 : i32
    %306 = arith.muli %305, %c9_i32_192 : i32
    %c6_i32_193 = arith.constant 6 : i32
    %307 = arith.addi %306, %c6_i32_193 : i32
    %c1_i32_194 = arith.constant 1 : i32
    %308 = arith.addi %307, %c1_i32_194 : i32
    %309 = arith.index_cast %308 : i32 to index
    %310 = memref.load %arg5[%309] : memref<288xf32, #tpu.memory_space<smem>>
    %c2_195 = arith.constant 2 : index
    %c256_196 = arith.constant 256 : index
    %c128_197 = arith.constant 128 : index
    %311 = vector.load %arg8[%c2_195, %c256_196, %c128_197] : memref<4x384x384xf32, #tpu.memory_space<vmem>>, vector<1x128x128xf32>
    %312 = vector.shape_cast %311 : vector<1x128x128xf32> to vector<128x128xf32>
    %313 = vector.broadcast %310 : f32 to vector<128x128xf32>
    %314 = arith.mulf %313, %312 : vector<128x128xf32>
    %315 = arith.addf %303, %314 : vector<128x128xf32>
    %c4_i32_198 = arith.constant 4 : i32
    %316 = arith.muli %arg1, %c4_i32_198 : i32
    %c2_i32_199 = arith.constant 2 : i32
    %317 = arith.addi %316, %c2_i32_199 : i32
    %c9_i32_200 = arith.constant 9 : i32
    %318 = arith.muli %317, %c9_i32_200 : i32
    %c6_i32_201 = arith.constant 6 : i32
    %319 = arith.addi %318, %c6_i32_201 : i32
    %c2_i32_202 = arith.constant 2 : i32
    %320 = arith.addi %319, %c2_i32_202 : i32
    %321 = arith.index_cast %320 : i32 to index
    %322 = memref.load %arg5[%321] : memref<288xf32, #tpu.memory_space<smem>>
    %c2_203 = arith.constant 2 : index
    %c256_204 = arith.constant 256 : index
    %c256_205 = arith.constant 256 : index
    %323 = vector.load %arg8[%c2_203, %c256_204, %c256_205] : memref<4x384x384xf32, #tpu.memory_space<vmem>>, vector<1x128x128xf32>
    %324 = vector.shape_cast %323 : vector<1x128x128xf32> to vector<128x128xf32>
    %325 = vector.broadcast %322 : f32 to vector<128x128xf32>
    %326 = arith.mulf %325, %324 : vector<128x128xf32>
    %327 = arith.addf %315, %326 : vector<128x128xf32>
    %c4_i32_206 = arith.constant 4 : i32
    %328 = arith.muli %arg1, %c4_i32_206 : i32
    %c3_i32_207 = arith.constant 3 : i32
    %329 = arith.addi %328, %c3_i32_207 : i32
    %c9_i32_208 = arith.constant 9 : i32
    %330 = arith.muli %329, %c9_i32_208 : i32
    %c0_i32_209 = arith.constant 0 : i32
    %331 = arith.addi %330, %c0_i32_209 : i32
    %c0_i32_210 = arith.constant 0 : i32
    %332 = arith.addi %331, %c0_i32_210 : i32
    %333 = arith.index_cast %332 : i32 to index
    %334 = memref.load %arg5[%333] : memref<288xf32, #tpu.memory_space<smem>>
    %c3 = arith.constant 3 : index
    %c0_211 = arith.constant 0 : index
    %c0_212 = arith.constant 0 : index
    %335 = vector.load %arg8[%c3, %c0_211, %c0_212] : memref<4x384x384xf32, #tpu.memory_space<vmem>>, vector<1x128x128xf32>
    %336 = vector.shape_cast %335 : vector<1x128x128xf32> to vector<128x128xf32>
    %337 = vector.broadcast %334 : f32 to vector<128x128xf32>
    %338 = arith.mulf %337, %336 : vector<128x128xf32>
    %339 = arith.addf %327, %338 : vector<128x128xf32>
    %c4_i32_213 = arith.constant 4 : i32
    %340 = arith.muli %arg1, %c4_i32_213 : i32
    %c3_i32_214 = arith.constant 3 : i32
    %341 = arith.addi %340, %c3_i32_214 : i32
    %c9_i32_215 = arith.constant 9 : i32
    %342 = arith.muli %341, %c9_i32_215 : i32
    %c0_i32_216 = arith.constant 0 : i32
    %343 = arith.addi %342, %c0_i32_216 : i32
    %c1_i32_217 = arith.constant 1 : i32
    %344 = arith.addi %343, %c1_i32_217 : i32
    %345 = arith.index_cast %344 : i32 to index
    %346 = memref.load %arg5[%345] : memref<288xf32, #tpu.memory_space<smem>>
    %c3_218 = arith.constant 3 : index
    %c0_219 = arith.constant 0 : index
    %c128_220 = arith.constant 128 : index
    %347 = vector.load %arg8[%c3_218, %c0_219, %c128_220] : memref<4x384x384xf32, #tpu.memory_space<vmem>>, vector<1x128x128xf32>
    %348 = vector.shape_cast %347 : vector<1x128x128xf32> to vector<128x128xf32>
    %349 = vector.broadcast %346 : f32 to vector<128x128xf32>
    %350 = arith.mulf %349, %348 : vector<128x128xf32>
    %351 = arith.addf %339, %350 : vector<128x128xf32>
    %c4_i32_221 = arith.constant 4 : i32
    %352 = arith.muli %arg1, %c4_i32_221 : i32
    %c3_i32_222 = arith.constant 3 : i32
    %353 = arith.addi %352, %c3_i32_222 : i32
    %c9_i32_223 = arith.constant 9 : i32
    %354 = arith.muli %353, %c9_i32_223 : i32
    %c0_i32_224 = arith.constant 0 : i32
    %355 = arith.addi %354, %c0_i32_224 : i32
    %c2_i32_225 = arith.constant 2 : i32
    %356 = arith.addi %355, %c2_i32_225 : i32
    %357 = arith.index_cast %356 : i32 to index
    %358 = memref.load %arg5[%357] : memref<288xf32, #tpu.memory_space<smem>>
    %c3_226 = arith.constant 3 : index
    %c0_227 = arith.constant 0 : index
    %c256_228 = arith.constant 256 : index
    %359 = vector.load %arg8[%c3_226, %c0_227, %c256_228] : memref<4x384x384xf32, #tpu.memory_space<vmem>>, vector<1x128x128xf32>
    %360 = vector.shape_cast %359 : vector<1x128x128xf32> to vector<128x128xf32>
    %361 = vector.broadcast %358 : f32 to vector<128x128xf32>
    %362 = arith.mulf %361, %360 : vector<128x128xf32>
    %363 = arith.addf %351, %362 : vector<128x128xf32>
    %c4_i32_229 = arith.constant 4 : i32
    %364 = arith.muli %arg1, %c4_i32_229 : i32
    %c3_i32_230 = arith.constant 3 : i32
    %365 = arith.addi %364, %c3_i32_230 : i32
    %c9_i32_231 = arith.constant 9 : i32
    %366 = arith.muli %365, %c9_i32_231 : i32
    %c3_i32_232 = arith.constant 3 : i32
    %367 = arith.addi %366, %c3_i32_232 : i32
    %c0_i32_233 = arith.constant 0 : i32
    %368 = arith.addi %367, %c0_i32_233 : i32
    %369 = arith.index_cast %368 : i32 to index
    %370 = memref.load %arg5[%369] : memref<288xf32, #tpu.memory_space<smem>>
    %c3_234 = arith.constant 3 : index
    %c128_235 = arith.constant 128 : index
    %c0_236 = arith.constant 0 : index
    %371 = vector.load %arg8[%c3_234, %c128_235, %c0_236] : memref<4x384x384xf32, #tpu.memory_space<vmem>>, vector<1x128x128xf32>
    %372 = vector.shape_cast %371 : vector<1x128x128xf32> to vector<128x128xf32>
    %373 = vector.broadcast %370 : f32 to vector<128x128xf32>
    %374 = arith.mulf %373, %372 : vector<128x128xf32>
    %375 = arith.addf %363, %374 : vector<128x128xf32>
    %c4_i32_237 = arith.constant 4 : i32
    %376 = arith.muli %arg1, %c4_i32_237 : i32
    %c3_i32_238 = arith.constant 3 : i32
    %377 = arith.addi %376, %c3_i32_238 : i32
    %c9_i32_239 = arith.constant 9 : i32
    %378 = arith.muli %377, %c9_i32_239 : i32
    %c3_i32_240 = arith.constant 3 : i32
    %379 = arith.addi %378, %c3_i32_240 : i32
    %c1_i32_241 = arith.constant 1 : i32
    %380 = arith.addi %379, %c1_i32_241 : i32
    %381 = arith.index_cast %380 : i32 to index
    %382 = memref.load %arg5[%381] : memref<288xf32, #tpu.memory_space<smem>>
    %c3_242 = arith.constant 3 : index
    %c128_243 = arith.constant 128 : index
    %c128_244 = arith.constant 128 : index
    %383 = vector.load %arg8[%c3_242, %c128_243, %c128_244] : memref<4x384x384xf32, #tpu.memory_space<vmem>>, vector<1x128x128xf32>
    %384 = vector.shape_cast %383 : vector<1x128x128xf32> to vector<128x128xf32>
    %385 = vector.broadcast %382 : f32 to vector<128x128xf32>
    %386 = arith.mulf %385, %384 : vector<128x128xf32>
    %387 = arith.addf %375, %386 : vector<128x128xf32>
    %c4_i32_245 = arith.constant 4 : i32
    %388 = arith.muli %arg1, %c4_i32_245 : i32
    %c3_i32_246 = arith.constant 3 : i32
    %389 = arith.addi %388, %c3_i32_246 : i32
    %c9_i32_247 = arith.constant 9 : i32
    %390 = arith.muli %389, %c9_i32_247 : i32
    %c3_i32_248 = arith.constant 3 : i32
    %391 = arith.addi %390, %c3_i32_248 : i32
    %c2_i32_249 = arith.constant 2 : i32
    %392 = arith.addi %391, %c2_i32_249 : i32
    %393 = arith.index_cast %392 : i32 to index
    %394 = memref.load %arg5[%393] : memref<288xf32, #tpu.memory_space<smem>>
    %c3_250 = arith.constant 3 : index
    %c128_251 = arith.constant 128 : index
    %c256_252 = arith.constant 256 : index
    %395 = vector.load %arg8[%c3_250, %c128_251, %c256_252] : memref<4x384x384xf32, #tpu.memory_space<vmem>>, vector<1x128x128xf32>
    %396 = vector.shape_cast %395 : vector<1x128x128xf32> to vector<128x128xf32>
    %397 = vector.broadcast %394 : f32 to vector<128x128xf32>
    %398 = arith.mulf %397, %396 : vector<128x128xf32>
    %399 = arith.addf %387, %398 : vector<128x128xf32>
    %c4_i32_253 = arith.constant 4 : i32
    %400 = arith.muli %arg1, %c4_i32_253 : i32
    %c3_i32_254 = arith.constant 3 : i32
    %401 = arith.addi %400, %c3_i32_254 : i32
    %c9_i32_255 = arith.constant 9 : i32
    %402 = arith.muli %401, %c9_i32_255 : i32
    %c6_i32_256 = arith.constant 6 : i32
    %403 = arith.addi %402, %c6_i32_256 : i32
    %c0_i32_257 = arith.constant 0 : i32
    %404 = arith.addi %403, %c0_i32_257 : i32
    %405 = arith.index_cast %404 : i32 to index
    %406 = memref.load %arg5[%405] : memref<288xf32, #tpu.memory_space<smem>>
    %c3_258 = arith.constant 3 : index
    %c256_259 = arith.constant 256 : index
    %c0_260 = arith.constant 0 : index
    %407 = vector.load %arg8[%c3_258, %c256_259, %c0_260] : memref<4x384x384xf32, #tpu.memory_space<vmem>>, vector<1x128x128xf32>
    %408 = vector.shape_cast %407 : vector<1x128x128xf32> to vector<128x128xf32>
    %409 = vector.broadcast %406 : f32 to vector<128x128xf32>
    %410 = arith.mulf %409, %408 : vector<128x128xf32>
    %411 = arith.addf %399, %410 : vector<128x128xf32>
    %c4_i32_261 = arith.constant 4 : i32
    %412 = arith.muli %arg1, %c4_i32_261 : i32
    %c3_i32_262 = arith.constant 3 : i32
    %413 = arith.addi %412, %c3_i32_262 : i32
    %c9_i32_263 = arith.constant 9 : i32
    %414 = arith.muli %413, %c9_i32_263 : i32
    %c6_i32_264 = arith.constant 6 : i32
    %415 = arith.addi %414, %c6_i32_264 : i32
    %c1_i32_265 = arith.constant 1 : i32
    %416 = arith.addi %415, %c1_i32_265 : i32
    %417 = arith.index_cast %416 : i32 to index
    %418 = memref.load %arg5[%417] : memref<288xf32, #tpu.memory_space<smem>>
    %c3_266 = arith.constant 3 : index
    %c256_267 = arith.constant 256 : index
    %c128_268 = arith.constant 128 : index
    %419 = vector.load %arg8[%c3_266, %c256_267, %c128_268] : memref<4x384x384xf32, #tpu.memory_space<vmem>>, vector<1x128x128xf32>
    %420 = vector.shape_cast %419 : vector<1x128x128xf32> to vector<128x128xf32>
    %421 = vector.broadcast %418 : f32 to vector<128x128xf32>
    %422 = arith.mulf %421, %420 : vector<128x128xf32>
    %423 = arith.addf %411, %422 : vector<128x128xf32>
    %c4_i32_269 = arith.constant 4 : i32
    %424 = arith.muli %arg1, %c4_i32_269 : i32
    %c3_i32_270 = arith.constant 3 : i32
    %425 = arith.addi %424, %c3_i32_270 : i32
    %c9_i32_271 = arith.constant 9 : i32
    %426 = arith.muli %425, %c9_i32_271 : i32
    %c6_i32_272 = arith.constant 6 : i32
    %427 = arith.addi %426, %c6_i32_272 : i32
    %c2_i32_273 = arith.constant 2 : i32
    %428 = arith.addi %427, %c2_i32_273 : i32
    %429 = arith.index_cast %428 : i32 to index
    %430 = memref.load %arg5[%429] : memref<288xf32, #tpu.memory_space<smem>>
    %c3_274 = arith.constant 3 : index
    %c256_275 = arith.constant 256 : index
    %c256_276 = arith.constant 256 : index
    %431 = vector.load %arg8[%c3_274, %c256_275, %c256_276] : memref<4x384x384xf32, #tpu.memory_space<vmem>>, vector<1x128x128xf32>
    %432 = vector.shape_cast %431 : vector<1x128x128xf32> to vector<128x128xf32>
    %433 = vector.broadcast %430 : f32 to vector<128x128xf32>
    %434 = arith.mulf %433, %432 : vector<128x128xf32>
    %435 = arith.addf %423, %434 : vector<128x128xf32>
    %436 = arith.index_cast %arg1 : i32 to index
    %437 = memref.load %arg6[%436] : memref<8xf32, #tpu.memory_space<smem>>
    %438 = vector.broadcast %437 : f32 to vector<128x128xf32>
    %439 = arith.addf %435, %438 : vector<128x128xf32>
    %cst_277 = arith.constant 0.000000e+00 : f32
    %440 = vector.broadcast %cst_277 : f32 to vector<128x128xf32>
    %441 = arith.maximumf %439, %440 : vector<128x128xf32>
    %c0_278 = arith.constant 0 : index
    %c0_279 = arith.constant 0 : index
    %c0_280 = arith.constant 0 : index
    %c0_281 = arith.constant 0 : index
    %442 = vector.load %arg7[%c0_278, %c0_279, %c0_280, %c0_281] : memref<1x1x128x128xf32, #tpu.memory_space<vmem>>, vector<1x1x128x128xf32>
    %443 = vector.shape_cast %442 : vector<1x1x128x128xf32> to vector<128x128xf32>
    %444 = vector.shape_cast %441 : vector<128x128xf32> to vector<1x1x128x128xf32>
    tpu.vector_store %arg7[%c0_278, %c0_279, %c0_280, %c0_281], %444 {strides = array<i32>} : memref<1x1x128x128xf32, #tpu.memory_space<vmem>>, vector<1x1x128x128xf32>,
    return
  }
  func.func @transform_0(%arg0: i32, %arg1: i32) -> (i32, i32, i32, i32) {
    %c0_i32 = arith.constant 0 : i32
    %c0_i32_0 = arith.constant 0 : i32
    %c0_i32_1 = arith.constant 0 : i32
    %c0_i32_2 = arith.constant 0 : i32
    return %arg0, %c0_i32, %c0_i32_0, %c0_i32_1 : i32, i32, i32, i32
  }
  func.func @transform_1(%arg0: i32, %arg1: i32) -> (i32, i32) {
    %c0_i32 = arith.constant 0 : i32
    %c0_i32_0 = arith.constant 0 : i32
    %c0_i32_1 = arith.constant 0 : i32
    return %c0_i32, %c0_i32_0 : i32, i32
  }
  func.func @transform_2(%arg0: i32, %arg1: i32) -> (i32, i32) {
    %c0_i32 = arith.constant 0 : i32
    %c0_i32_0 = arith.constant 0 : i32
    %c0_i32_1 = arith.constant 0 : i32
    return %c0_i32, %c0_i32_0 : i32, i32
  }
  func.func @transform_3(%arg0: i32, %arg1: i32) -> i32 {
    %c0_i32 = arith.constant 0 : i32
    %c0_i32_0 = arith.constant 0 : i32
    return %c0_i32 : i32
  }
  func.func @transform_4(%arg0: i32, %arg1: i32) -> i32 {
    %c0_i32 = arith.constant 0 : i32
    %c0_i32_0 = arith.constant 0 : i32
    return %c0_i32 : i32
  }
  func.func @transform_5(%arg0: i32, %arg1: i32) -> (i32, i32, i32, i32) {
    %c0_i32 = arith.constant 0 : i32
    %c0_i32_0 = arith.constant 0 : i32
    %c0_i32_1 = arith.constant 0 : i32
    return %arg0, %arg1, %c0_i32, %c0_i32_0 : i32, i32, i32, i32
  }
}

</mosaic_0001>

<bundles_post_ra>
// kernel: tpu_custom_call.1
= control target key start
LH: loop header
LB: loop body
LE: loop exit
PB: predicated region body
PF: predicated region fallthrough
CT: control target
= control target key end

     0   :  { %10 = vsyncpa [#allocation4], 0  ;;  %s11291_s0 = inlined_call_operand.vmem [shape: f32[2,4,64,64], index: 0, kind: input, shape index: {}]   ;;  %s11292_s1 = inlined_call_operand.vmem [shape: f32[384,64], index: 1, kind: input, shape index: {}]   ;;  %s11293_s2 = inlined_call_operand.hbm [shape: f32[64,384], index: 2, kind: input, shape index: {}]   ;;  %s11294_s3 = inlined_call_operand.vmem [shape: f32[288], index: 3, kind: input, shape index: {}]   ;;  %s11295_s4 = inlined_call_operand.vmem [shape: f32[8], index: 4, kind: input, shape index: {}]   ;;  %s11296_s5 = inlined_call_operand.hbm [shape: f32[2,8,128,128], index: 5, kind: output, shape index: {}]  }
   0x1   :  { %11 = vsyncpa [#allocation6], 0 }
   0x2   :  { %12 = vsyncpa [#allocation9], 0 }
   0x3   :  { %13 = vsyncpa [#allocation5], 0 }
   0x4   :  { %15 = vsyncpa [#allocation5 + $0x1], 0  ;;  %s8660_s18 = smov 0   ;;  %s8662_s19 = smov 0  }
   0x5   :  { %s8664_s20 = smov 0   ;;  %s8666_s21 = smov 0  }
   0x6   :  { %s8668_s22 = smov 0   ;;  %s8670_s23 = smov 0  }
   0x7   :  { %s8672_s24 = smov 0   ;;  %s8674_s25 = smov 0  }
   0x8 LB: > { %11309 = sst [smem:[#allocation15_spill]] %s8611_s23  ;;  %s6733_s26 = sadd.s32 4294967295, %s8619_s25   ;;  %s8619_s25 = sphi %s8674_s25, %s21_s25   ;;  %s8615_s24 = sphi %s8672_s24, %s11330_s24   ;;  %s8611_s23 = sphi %s8670_s23, %s11329_s23   ;;  %s8607_s22 = sphi %s8668_s22, %s11328_s22   ;;  %s8603_s21 = sphi %s8666_s21, %s11327_s21   ;;  %s8599_s20 = sphi %s8664_s20, %s11333_s20   ;;  %s8595_s19 = sphi %s8662_s19, %s11332_s19   ;;  %s8591_s18 = sphi %s8660_s18, %s11331_s18  }
   0x9   : > { %11310 = sst [smem:[#allocation16_spill]] %s8615_s24  ;;  %s6734_s27 = sadd.s32 4294967294, %s8619_s25  }
   0xa   : > { %s30_s28 = sadd.s32 1, %s8611_s23  ;;  %s33_s29 = sadd.s32 1, %s8615_s24 }
   0xb   : > { %p31_p0 = scmp.ge.s32.totalorder %s30_s28, 8  ;;  %s152_s30 = sadd.s32 1, %s8599_s20 }
   0xc   : > { %p162_p1 = scmp.ne.s32.totalorder %s8599_s20, %s8595_s19  ;;  %p163_p2 = scmp.eq.s32.totalorder %s6733_s26, 15 }
   0xd   : > { %s11335_s28 = smov (%p31_p0, %s30_s28), 0  ;;  %s11337_s29 = smov (!%p31_p0, %s33_s29), %s8615_s24 }
   0xe   : > { %11311 = sst [smem:[#allocation17_spill]] %s11335_s28  ;;  %s148_s6 = ssub.s32 %s8611_s23, %s11335_s28 }
   0xf   : > { %p8712_p3 = por %p163_p2, %p162_p1  ;;  %p35_p4 = scmp.ge.s32.totalorder %s11337_s29, 2 }
  0x10   : > { %p168_p5 = scmp.ne.s32.totalorder %s8595_s19, %s8591_s18  ;;  %p169_p6 = scmp.eq.s32.totalorder %s6734_s27, 15 }
  0x11   : > { %s11312_s7 = scalar_select %p8712_p3, 1, 0 }
  0x12   : > { %p6735_p7 = scmp.ge.s32.totalorder %s8619_s25, 1  ;;  %s11339_s29 = smov (%p35_p4, %s11337_s29), 0 }
  0x13   : > { %11313 = sst [smem:[#allocation18_spill]] %s11339_s29  ;;  %p8721_p8 = por %p169_p6, %p168_p5 }
  0x14   : > { %p176_p9 = scmp.lt.s32.totalorder %s8619_s25, 17  ;;  %s147_s9 = ssub.s32 %s8615_s24, %s11339_s29 }
  0x15   : > { %s11314_s8 = scalar_select %p8721_p8, 1, 0 }
  0x16   : > { %s149_s10 = sor.u32 %s148_s6, %s147_s9  ;;  %p8728_p10 = pnand %p6735_p7, %p176_p9 }
  0x17   : > { %p150_p11 = scmp.eq.s32.totalorder %s149_s10, 0  ;;  %p8732_p12 = scmp.eq.s32.totalorder %s6733_s26, 0 }
  0x18   : > { %s11315_s11 = scalar_select %p8728_p10, 1, 0 }
  0x19   : > { %s11316_s12 = scalar_select %p8732_p12, 1, 0 }
  0x1a   : > { %p8250_p13 = pneg %p8728_p10  ;;  %s8621_s14 = smov [#allocation3]  }
  0x1b   : > { %s8739_s13 = scalar_select %p150_p11, %s8599_s20, %s152_s30  }
  0x1c   : > { %s191_s15 = sshll.u32 %s8621_s14, 4  ;;  %p8743_p0 = pnand %p8732_p12, %p8250_p13  ;;  %s192_s15 = int_to_ptr.vmem [resolvable:$true] %s191_s15 }
  0x1d   : > { %s8455_s27 = scalar_lea.hbm %s11293_s2, 3072 }
  0x1e   : > { %p8456_p1 = scmp.ne.s32.totalorder %s11293_s2, %s8455_s27  ;;  %p8457_p2 = pneg %p8743_p0 }
  0x1f   : > { %p8462_p6 = scmp.lt.u32.totalorder %s8455_s27, %s11293_s2 }
  0x20   : > { %p8458_p4 = pnand %p8457_p2, %p8456_p1 }
  0x22   : > { %p8459_p5 = pneg %p8458_p4 }
  0x24   : > { %p8464_p7 = pnand %p8462_p6, %p8459_p5 }
  0x26   : > { %8467 = shalt.err (!%p8464_p7)
}
  0x27   : > { %s8468_s14 = scalar_lea.vmem %s192_s15, 3072  ;;  %p8476_p8 = scmp.lt.s32.totalorder %s192_s15, %s192_s15 }
  0x28   : > { %p8469_p9 = scmp.ne.s32.totalorder %s192_s15, %s8468_s14  ;;  %p8477_p3 = scmp.lt.s32.totalorder %s8468_s14, %s8468_s14 }
  0x2a   : > { %p8471_p11 = pnand %p8469_p9, %p8457_p2  ;;  %p8478_p12 = por %p8477_p3, %p8476_p8 }
  0x2c   : > { %p8472_p13 = pneg %p8471_p11 }
  0x2e   : > { %p8479_p10 = pnand %p8478_p12, %p8472_p13 }
  0x30   : > { %8482 = shalt.err (!%p8479_p10)
}
  0x31   : > { %s8622_s17 = smov 384   ;;  %s8623_s26 = smov 24  }
  0x32   : > { %8253 = dma.hbm_to_vmem [thread:$0]  (!%p8743_p0), %s11293_s2, 3072, %s192_s15, [#allocation4], %s8622_s17, %s8622_s17, %s8623_s26  }
  0x33   : > { %s205_s10 = sshll.u32 %s11294_s3, 4  ;;  %s216_s14 = sshll.u32 %s11295_s4, 4  ;;  %s206_s10 = int_to_ptr.vmem [resolvable:$true] %s205_s10  ;;  %s217_s14 = int_to_ptr.vmem [resolvable:$true] %s216_s14 }
  0x34   : > { %s8483_s24 = scalar_lea.vmem %s206_s10, 48  ;;  %s8490_s23 = scalar_lea.vmem %s206_s10, 64 }
  0x35   : > { %p8484_p3 = scmp.ne.s32.totalorder %s206_s10, %s8483_s24  ;;  %p8491_p12 = scmp.lt.s32.totalorder %s206_s10, %s206_s10 }
  0x36   : > { %p8492_p1 = scmp.lt.s32.totalorder %s8490_s23, %s8483_s24 }
  0x37   : > { %p8486_p8 = pnand %p8484_p3, %p8457_p2 }
  0x38   : > { %p8493_p4 = por %p8492_p1, %p8491_p12 }
  0x39   : > { %p8487_p10 = pneg %p8486_p8 }
  0x3b   : > { %p8494_p5 = pnand %p8493_p4, %p8487_p10 }
  0x3d   : > { %8497 = shalt.err (!%p8494_p5)
}
  0x3e   : > { %s8624_s15 = smov [#allocation7]   ;;  %s8498_s28 = scalar_lea.vmem %s217_s14, 16 }
  0x3f   : > { %8256 = dma.vmem_to_smem (!%p8743_p0), %s206_s10, 48, %s8624_s15, [#allocation6]  }
  0x40   : > { %p8499_p6 = scmp.ne.s32.totalorder %s217_s14, %s8498_s28  ;;  %p8506_p11 = scmp.lt.s32.totalorder %s217_s14, %s217_s14 }
  0x41   : > { %p8507_p13 = scmp.lt.s32.totalorder %s8498_s28, %s8498_s28 }
  0x42   : > { %p8501_p7 = pnand %p8499_p6, %p8457_p2 }
  0x43   : > { %p8508_p3 = por %p8507_p13, %p8506_p11 }
  0x44   : > { %p8502_p9 = pneg %p8501_p7 }
  0x46   : > { %p8509_p8 = pnand %p8508_p3, %p8502_p9 }
  0x48   : > { %8512 = shalt.err (!%p8509_p8)
}
  0x49   : > { %s8625_s23 = smov [#allocation8]   ;;  %p11318_p10 = scmp.ne.s32.totalorder %s11315_s11, 0 }
  0x4a   : > { %8259 = dma.vmem_to_smem (!%p8743_p0), %s217_s14, 16, %s8625_s23, [#allocation9]  }
  0x4b   : > { %237 = sbr.rel (%p11318_p10) target bundleno = 2174 (0x87e), region = 40  ;;  %p11319_p12 = scmp.ne.s32.totalorder (!%p11318_p10), %s11316_s12, 0 }
  0x52   : > { %8574 = dma.done.wait (%p11319_p12), [#allocation4], 3072  }
  0x53   : > { %8576 = vsyncadd (%p11319_p12), [#allocation4], 4294964224 }
  0x54   : > { %8578 = dma.done.wait (%p11319_p12), [#allocation6], 48  }
  0x55   : > { %8580 = vsyncadd (%p11319_p12), [#allocation6], 4294967248 }
  0x56   : > { %8582 = dma.done.wait (%p11319_p12), [#allocation9], 16  }
  0x57   : > { %8584 = vsyncadd (%p11319_p12), [#allocation9], 4294967280 }
  0x58   : > { %251 = sfence }
  0x59   : > { %s271_s24 = sand.u32 1, %s8595_s19   ;;  %p274_p0 = scmp.lt.s32.totalorder %s8607_s22, 1 }
  0x5a   : > { %s6744_s29 = sshll.u32 %s271_s24, 7  ;;  %p6747_p2 = scmp.ne.s32.totalorder %s8603_s21, 0 }
  0x5b   : > { %s275_s11 = scalar_select %p274_p0, %s8607_s22, 1 }
  0x5c   : > { %s8809_s6 = scalar_lea.vmem [#allocation10], %s6744_s29  ;;  %282 = sbr.rel (%p6747_p2) target bundleno = 1844 (0x734), region = 56 }
  0x5d   : > { %s7227_s16 = sshll.u32 %s275_s11, 8 }
  0x5e   : > { %s8807_s27 = scalar_lea.vmem %s11291_s0, %s7227_s16 }
  0x63   : > { %v332_v0 = vld [vmem:[#allocation3 + $0x8] sm:$0xff]  ;;  %v335_v1 = vld [vmem:[#allocation3 + $0x20] sm:$0xff]  ;;  %v334_v4 = vld [vmem:[#allocation3 + $0x18] sm:$0xff]  ;;  %v11305_v7 = vmov 0.0   ;;  %vm363_vm0 = vcmask 523264  }
  0x64   : > { %v331_v2 = vld [vmem:[#allocation3] sm:$0xff]  ;;  %v8812_v3 = vpack.c.bf16 %v335_v1, %v332_v0  ;;  %v338_v5 = vld [vmem:[#allocation3 + $0x38] sm:$0xff]  ;;  %v341_v6 = vld [vmem:[#allocation3 + $0x50] sm:$0xff]  ;;  %452 = vmatprep.mubr.f32.mxu1 %v11305_v7 }
  0x65   : > { %v8815_v8 = vpack.c.bf16 %v334_v4, %v331_v2  ;;  %v8817_v9 = vpack.c.bf16 %v341_v6, %v338_v5  ;;  %v337_v10 = vld [vmem:[#allocation3 + $0x30] sm:$0xff]  ;;  %v340_v11 = vld [vmem:[#allocation3 + $0x48] sm:$0xff]  ;;  %v347_v13 = vld [vmem:[#allocation3 + $0x80] sm:$0xff] }
  0x66   : > { %v344_v12 = vld [vmem:[#allocation3 + $0x68] sm:$0xff]  ;;  %7981 = vmatprep.subr.bf16.mxu1 %v8812_v3  ;;  %v8821_v14 = vpack.c.bf16 %v340_v11, %v337_v10  ;;  %v343_v16 = vld [vmem:[#allocation3 + $0x60] sm:$0xff]  ;;  %v346_v17 = vld [vmem:[#allocation3 + $0x78] sm:$0xff] }
  0x67   : > { %7983 = vmatpush1.bf16.msra.mxu1 %v8815_v8  ;;  %v8824_v15 = vpack.c.bf16 %v347_v13, %v344_v12  ;;  %v350_v18 = vld [vmem:[#allocation3 + $0x98] sm:$0xff]  ;;  %v353_v19 = vld [vmem:[#allocation3 + $0xb0] sm:$0xff]  ;;  %v8827_v20 = vpack.c.bf16 %v346_v17, %v343_v16  ;;  %v352_v23 = vld [vmem:[#allocation3 + $0xa8] sm:$0xff] }
  0x68   : > { %7985 = vmatprep.subr.bf16.mxu1 %v8817_v9  ;;  %v8830_v21 = vpack.c.bf16 %v353_v19, %v350_v18  ;;  %v349_v22 = vld [vmem:[#allocation3 + $0x90] sm:$0xff]  ;;  %v336_v25 = vld [vmem:[#allocation3 + $0x28] sm:$0xff]  ;;  %v339_v28 = vld [vmem:[#allocation3 + $0x40] sm:$0xff] }
  0x69   : > { %v333_v24 = vld [vmem:[#allocation3 + $0x10] sm:$0xff]  ;;  %v8833_v26 = vpack.c.bf16 %v352_v23, %v349_v22  ;;  %v342_v29 = vld [vmem:[#allocation3 + $0x58] sm:$0xff]  ;;  %v355_v30 = vld [vmem:[%s8807_s27] sm:$0xff] }
  0x6a   : > { %v8836_v27 = vpack.c.bf16 %v336_v25, %v333_v24  ;;  %v8841_v31 = vpack.c.bf16 %v342_v29, %v339_v28  ;;  %v345_v32 = vld [vmem:[#allocation3 + $0x70] sm:$0xff]  ;;  %v348_v33 = vld [vmem:[#allocation3 + $0x88] sm:$0xff]  ;;  %v351_v36 = vld [vmem:[#allocation3 + $0xa0] sm:$0xff] }
  0x6b   : > { %7987 = vmatpush1.bf16.msra.mxu1 %v8821_v14  ;;  %v356_v34 = vld [vmem:[%s8807_s27 + $0x8] sm:$0xff]  ;;  %v8848_v35 = vpack.c.bf16 %v348_v33, %v345_v32  ;;  %v354_v37 = vld [vmem:[#allocation3 + $0xb8] sm:$0xff]  ;;  %v357_v38 = vld [vmem:[%s8807_s27 + $0x10] sm:$0xff] }
  0x6c   : > { %7989 = vmatprep.subr.bf16.mxu1 %v8824_v15  ;;  %v8855_v39 = vpack.c.bf16 %v354_v37, %v351_v36  ;;  %v358_v40 = vld [vmem:[%s8807_s27 + $0x18] sm:$0xff]  ;;  %v359_v41 = vld [vmem:[%s8807_s27 + $0x20] sm:$0xff]  ;;  %v360_v42 = vld [vmem:[%s8807_s27 + $0x28] sm:$0xff] }
  0x6d   : > { %v361_v43 = vld [vmem:[%s8807_s27 + $0x30] sm:$0xff]  ;;  %v362_v44 = vld [vmem:[%s8807_s27 + $0x38] sm:$0xff]  ;;  %v8888_v45 = vld [vmem:[%s11292_s1] sm:$0xff] }
  0x6e   : > { %7560 = vmatprep.mubr.msk.f32.mxu0 %vm363_vm0, %v8888_v45  ;;  %v8898_v18 = vld [vmem:[%s11292_s1 + $0x8] sm:$0xff]  ;;  %v8906_v24 = vld [vmem:[%s11292_s1 + $0x10] sm:$0xff]  ;;  %v8923_v32 = vld [vmem:[%s11292_s1 + $0x20] sm:$0xff] }
  0x6f   : > { %7991 = vmatpush1.bf16.msra.mxu1 %v8827_v20  ;;  %v8937_v33 = vld [vmem:[%s11292_s1 + $0x28] sm:$0xff]  ;;  %v290_v36 = vld [vmem:[%s11292_s1 + $0x38] sm:$0xff]  ;;  %v291_v37 = vld [vmem:[%s11292_s1 + $0x40] sm:$0xff] }
  0x70   : > { %7993 = vmatprep.subr.bf16.mxu1 %v8830_v21 }
  0x73   : > { %7995 = vmatpush1.bf16.msra.mxu1 %v8833_v26 }
  0x74   : > { %7997 = vmatprep.subr.bf16.mxu1 %v8836_v27 }
  0x76   : > { %6748 = vmatmul.mubr.msk.f32.vlgmr.msra.gmra.mrb[0].mxu1 %vm363_vm0, %v355_v30 }
  0x77   : > { %458 = vmatprep.mubr.f32.mxu1 %v11305_v7  ;;  %7999 = vmatpush3.bf16.msra.mxu1 %v8836_v27 }
  0x78   : > { %8001 = vmatprep.subr.bf16.mxu1 %v8841_v31 }
  0x7a   : > { %6749 = vmatmul.mubr.msk.f32.gmra.mrb[2].mxu1 %vm363_vm0, %v356_v34 }
  0x7b   : > { %464 = vmatprep.mubr.f32.mxu1 %v11305_v7  ;;  %8003 = vmatpush3.bf16.msra.mxu1 %v8841_v31 }
  0x7c   : > { %8005 = vmatprep.subr.bf16.mxu1 %v8848_v35 }
  0x7e   : > { %6750 = vmatmul.mubr.msk.f32.gmra.mrb[4].mxu1 %vm363_vm0, %v357_v38 }
  0x7f   : > { %470 = vmatprep.mubr.f32.mxu1 %v11305_v7  ;;  %8007 = vmatpush3.bf16.msra.mxu1 %v8848_v35 }
  0x80   : > { %8009 = vmatprep.subr.bf16.mxu1 %v8855_v39 }
  0x82   : > { %6751 = vmatmul.mubr.msk.f32.gmra.mrb[6].mxu1 %vm363_vm0, %v358_v40 }
  0x83   : > { %476 = vmatprep.mubr.f32.mxu1 %v11305_v7  ;;  %8011 = vmatpush3.bf16.msra.mxu1 %v8855_v39 }
  0x86   : > { %6752 = vmatmul.mubr.msk.f32.gmra.mrb[8].mxu1 %vm363_vm0, %v359_v41 }
  0x87   : > { %482 = vmatprep.mubr.f32.mxu1 %v11305_v7 }
  0x8a   : > { %6753 = vmatmul.mubr.msk.f32.gmra.mrb[10].mxu1 %vm363_vm0, %v360_v42 }
  0x8b   : > { %488 = vmatprep.mubr.f32.mxu1 %v11305_v7 }
  0x8e   : > { %6754 = vmatmul.mubr.msk.f32.gmra.mrb[12].mxu1 %vm363_vm0, %v361_v43 }
  0x8f   : > { %494 = vmatprep.mubr.f32.mxu1 %v11305_v7 }
  0x92   : > { %6755 = vmatmul.mubr.msk.f32.gmra.mrb[14].mxu1 %vm363_vm0, %v362_v44 }
  0x93   : > { %7532 = vmatprep.mubr.msk.f32.mxu1 %vm363_vm0, %v355_v30  ;;  %v8914_v30 = vld [vmem:[%s11292_s1 + $0x18] sm:$0xff] }
  0x96   : > { %7533 = vmatmul.mubr.msk.f32.vlgmr.msra.gmra.mrb[16].mxu1 %vm363_vm0, %v356_v34  ;;  %v289_v34 = vld [vmem:[%s11292_s1 + $0x30] sm:$0xff] }
  0x97   : > { %7535 = vmatprep.mubr.msk.f32.mxu1 %vm363_vm0, %v357_v38  ;;  %v292_v38 = vld [vmem:[%s11292_s1 + $0x48] sm:$0xff] }
  0x9a   : > { %7536 = vmatmul.mubr.msk.f32.gmra.mrb[18].mxu1 %vm363_vm0, %v358_v40  ;;  %v293_v40 = vld [vmem:[%s11292_s1 + $0x50] sm:$0xff] }
  0x9b   : > { %7538 = vmatprep.mubr.msk.f32.mxu1 %vm363_vm0, %v359_v41  ;;  %v294_v41 = vld [vmem:[%s11292_s1 + $0x58] sm:$0xff] }
  0x9e   : > { %7539 = vmatmul.mubr.msk.f32.gmra.mrb[20].mxu1 %vm363_vm0, %v360_v42  ;;  %v295_v42 = vld [vmem:[%s11292_s1 + $0x60] sm:$0xff] }
  0x9f   : > { %7541 = vmatprep.mubr.msk.f32.mxu1 %vm363_vm0, %v361_v43  ;;  %v296_v43 = vld [vmem:[%s11292_s1 + $0x68] sm:$0xff] }
  0xa2   : > { %7542 = vmatmul.mubr.msk.f32.gmra.mrb[22].mxu1 %vm363_vm0, %v362_v44  ;;  %v297_v44 = vld [vmem:[%s11292_s1 + $0x70] sm:$0xff] }
  0xa3   : > { %814 = vmatprep.mubr.f32.mxu1 %v11305_v7 }
 0x149   : > { %v454_v46 = vpop.f32.mrb[0].mxu1 }
 0x14a   : > { %v456_v47 = vpop.f32.mrb[1].mxu1 }
 0x14d   : > { %v460_v48 = vpop.f32.mrb[2].mxu1 }
 0x14e   : > { %v8014_v49 = vpack.c.bf16 %v460_v48, %v454_v46  ;;  %v462_v50 = vpop.f32.mrb[3].mxu1  ;;  %v298_v46 = vld [vmem:[%s11292_s1 + $0x78] sm:$0xff]  ;;  %v300_v48 = vld [vmem:[%s11292_s1 + $0x88] sm:$0xff] }
 0x14f   : > { %v8012_v51 = vpack.c.bf16 %v462_v50, %v456_v47  ;;  %v299_v47 = vld [vmem:[%s11292_s1 + $0x80] sm:$0xff]  ;;  %v302_v50 = vld [vmem:[%s11292_s1 + $0x98] sm:$0xff] }
 0x151   : > { %v466_v52 = vpop.f32.mrb[4].mxu1  ;;  %8013 = vmatprep.subr.bf16.mxu1 %v8012_v51  ;;  %v303_v51 = vld [vmem:[%s11292_s1 + $0xa0] sm:$0xff] }
 0x152   : > { %v468_v53 = vpop.f32.mrb[5].mxu1  ;;  %8015 = vmatpush1.bf16.msra.mxu1 %v8014_v49  ;;  %v301_v49 = vld [vmem:[%s11292_s1 + $0x90] sm:$0xff] }
 0x155   : > { %v472_v54 = vpop.f32.mrb[6].mxu1 }
 0x156   : > { %v8018_v55 = vpack.c.bf16 %v472_v54, %v466_v52  ;;  %v474_v56 = vpop.f32.mrb[7].mxu1  ;;  %v304_v52 = vld [vmem:[%s11292_s1 + $0xa8] sm:$0xff]  ;;  %v306_v54 = vld [vmem:[%s11292_s1 + $0xb8] sm:$0xff] }
 0x157   : > { %v8016_v57 = vpack.c.bf16 %v474_v56, %v468_v53  ;;  %v305_v53 = vld [vmem:[%s11292_s1 + $0xb0] sm:$0xff]  ;;  %v308_v56 = vld [vmem:[%s11292_s1 + $0xc8] sm:$0xff] }
 0x159   : > { %v478_v58 = vpop.f32.mrb[8].mxu1  ;;  %8017 = vmatprep.subr.bf16.mxu1 %v8016_v57  ;;  %v309_v57 = vld [vmem:[%s11292_s1 + $0xd0] sm:$0xff] }
 0x15a   : > { %v480_v59 = vpop.f32.mrb[9].mxu1  ;;  %8019 = vmatpush1.bf16.msra.mxu1 %v8018_v55  ;;  %v307_v55 = vld [vmem:[%s11292_s1 + $0xc0] sm:$0xff] }
 0x15d   : > { %v484_v60 = vpop.f32.mrb[10].mxu1 }
 0x15e   : > { %v8022_v61 = vpack.c.bf16 %v484_v60, %v478_v58  ;;  %v486_v62 = vpop.f32.mrb[11].mxu1  ;;  %v9062_v58 = vld [vmem:[%s11292_s1 + $0xd8] sm:$0xff]  ;;  %v9078_v60 = vld [vmem:[%s11292_s1 + $0xe8] sm:$0xff] }
 0x15f   : > { %v8020_v63 = vpack.c.bf16 %v486_v62, %v480_v59  ;;  %v9068_v59 = vld [vmem:[%s11292_s1 + $0xe0] sm:$0xff]  ;;  %v9094_v62 = vld [vmem:[%s11292_s1 + $0xf8] sm:$0xff] }
 0x161   : > { %v490_v0 = vpop.f32.mrb[12].mxu1  ;;  %8021 = vmatprep.subr.bf16.mxu1 %v8020_v63  ;;  %v9100_v63 = vld [vmem:[%s11292_s1 + $0x100] sm:$0xff] }
 0x162   : > { %v492_v1 = vpop.f32.mrb[13].mxu1  ;;  %8023 = vmatpush1.bf16.msra.mxu1 %v8022_v61  ;;  %v9084_v61 = vld [vmem:[%s11292_s1 + $0xf0] sm:$0xff] }
 0x165   : > { %v496_v2 = vpop.f32.mrb[14].mxu1 }
 0x166   : > { %v8026_v4 = vpack.c.bf16 %v496_v2, %v490_v0  ;;  %v498_v5 = vpop.f32.mrb[15].mxu1  ;;  %v9110_v0 = vld [vmem:[%s11292_s1 + $0x108] sm:$0xff]  ;;  %v9126_v2 = vld [vmem:[%s11292_s1 + $0x118] sm:$0xff] }
 0x167   : > { %v8024_v6 = vpack.c.bf16 %v498_v5, %v492_v1  ;;  %v9116_v1 = vld [vmem:[%s11292_s1 + $0x110] sm:$0xff]  ;;  %v9142_v5 = vld [vmem:[%s11292_s1 + $0x128] sm:$0xff] }
 0x169   : > { %v7534_v10 = vpop.f32.mrb[16].mxu1  ;;  %8025 = vmatprep.subr.bf16.mxu1 %v8024_v6  ;;  %v9148_v6 = vld [vmem:[%s11292_s1 + $0x130] sm:$0xff] }
 0x16a   : > { %v567_v11 = vpop.f32.mrb[17].mxu1  ;;  %8027 = vmatpush1.bf16.msra.mxu1 %v8026_v4  ;;  %v9132_v4 = vld [vmem:[%s11292_s1 + $0x120] sm:$0xff] }
 0x16b   : > { %v8028_v12 = vpack.c.bf16 %v7534_v10, %v567_v11  ;;  %v9158_v10 = vld [vmem:[%s11292_s1 + $0x138] sm:$0xff]  ;;  %v9164_v11 = vld [vmem:[%s11292_s1 + $0x140] sm:$0xff] }
 0x16d   : > { %v7537_v13 = vpop.f32.mrb[18].mxu1  ;;  %8029 = vmatprep.subr.bf16.mxu0 %v8028_v12  ;;  %6764 = vmatmul.mubr.msk.f32.vlgmr.msra.gmra.mrb[24].mxu1 %vm363_vm0, %v8888_v45 }
 0x16e   : > { %v577_v16 = vpop.f32.mrb[19].mxu1  ;;  %8031 = vmatpush3.bf16.msra.mxu0 %v8028_v12  ;;  %820 = vmatprep.mubr.f32.mxu1 %v11305_v7  ;;  %v9174_v12 = vld [vmem:[%s11292_s1 + $0x148] sm:$0xff] }
 0x16f   : > { %v8032_v17 = vpack.c.bf16 %v7537_v13, %v577_v16  ;;  %v9180_v13 = vld [vmem:[%s11292_s1 + $0x150] sm:$0xff]  ;;  %v9190_v16 = vld [vmem:[%s11292_s1 + $0x158] sm:$0xff] }
 0x171   : > { %v7540_v19 = vpop.f32.mrb[20].mxu1  ;;  %8033 = vmatprep.subr.bf16.mxu0 %v8032_v17  ;;  %6765 = vmatmul.mubr.msk.f32.gmra.mrb[26].mxu1 %vm363_vm0, %v8898_v18 }
 0x172   : > { %v587_v22 = vpop.f32.mrb[21].mxu1  ;;  %8035 = vmatpush3.bf16.msra.mxu0 %v8032_v17  ;;  %826 = vmatprep.mubr.f32.mxu1 %v11305_v7  ;;  %v9196_v17 = vld [vmem:[%s11292_s1 + $0x160] sm:$0xff] }
 0x173   : > { %v8036_v23 = vpack.c.bf16 %v7540_v19, %v587_v22  ;;  %v9206_v19 = vld [vmem:[%s11292_s1 + $0x168] sm:$0xff]  ;;  %v9212_v22 = vld [vmem:[%s11292_s1 + $0x170] sm:$0xff] }
 0x175   : > { %v7543_v25 = vpop.f32.mrb[22].mxu1  ;;  %8037 = vmatprep.subr.bf16.mxu0 %v8036_v23  ;;  %6766 = vmatmul.mubr.msk.f32.gmra.mrb[28].mxu1 %vm363_vm0, %v8906_v24 }
 0x176   : > { %v597_v28 = vpop.f32.mrb[23].mxu1  ;;  %8039 = vmatpush3.bf16.msra.mxu0 %v8036_v23  ;;  %832 = vmatprep.mubr.f32.mxu1 %v11305_v7  ;;  %v9222_v23 = vld [vmem:[%s11292_s1 + $0x178] sm:$0xff] }
 0x177   : > { %v8040_v29 = vpack.c.bf16 %v7543_v25, %v597_v28  ;;  %v6860_v25 = vld [vmem:[%s8807_s27 + $0x40] sm:$0xff]  ;;  %v6861_v28 = vld [vmem:[%s8807_s27 + $0x48] sm:$0xff] }
 0x179   : > { %8041 = vmatprep.subr.bf16.mxu0 %v8040_v29  ;;  %6767 = vmatmul.mubr.msk.f32.gmra.mrb[30].mxu1 %vm363_vm0, %v8914_v30 }
 0x17a   : > { %8043 = vmatpush3.bf16.msra.mxu0 %v8040_v29  ;;  %838 = vmatprep.mubr.f32.mxu1 %v11305_v7  ;;  %v6862_v29 = vld [vmem:[%s8807_s27 + $0x50] sm:$0xff] }
 0x17b   : > { %8045 = vmatprep.subr.bf16.mxu0 %v8812_v3 }
 0x17d   : > { %7561 = vmatmul.mubr.msk.f32.vlgmr.msra.gmra.mrb[0].mxu0 %vm363_vm0, %v8898_v18  ;;  %6768 = vmatmul.mubr.msk.f32.gmra.mrb[32].mxu1 %vm363_vm0, %v8923_v32 }
 0x17e   : > { %7563 = vmatprep.mubr.msk.f32.mxu0 %vm363_vm0, %v8906_v24  ;;  %8047 = vmatpush1.bf16.msra.mxu0 %v8815_v8 }
 0x17f   : > { %8049 = vmatprep.subr.bf16.mxu0 %v8817_v9  ;;  %844 = vmatprep.mubr.f32.mxu1 %v11305_v7 }
 0x181   : > { %7564 = vmatmul.mubr.msk.f32.gmra.mrb[2].mxu0 %vm363_vm0, %v8914_v30  ;;  %6769 = vmatmul.mubr.msk.f32.gmra.mrb[34].mxu1 %vm363_vm0, %v8937_v33 }
 0x182   : > { %7566 = vmatprep.mubr.msk.f32.mxu0 %vm363_vm0, %v8923_v32  ;;  %8051 = vmatpush1.bf16.msra.mxu0 %v8821_v14 }
 0x183   : > { %8053 = vmatprep.subr.bf16.mxu0 %v8824_v15  ;;  %850 = vmatprep.mubr.f32.mxu1 %v11305_v7 }
 0x185   : > { %7567 = vmatmul.mubr.msk.f32.gmra.mrb[4].mxu0 %vm363_vm0, %v8937_v33  ;;  %6770 = vmatmul.mubr.msk.f32.gmra.mrb[36].mxu1 %vm363_vm0, %v289_v34 }
 0x186   : > { %7569 = vmatprep.mubr.msk.f32.mxu0 %vm363_vm0, %v289_v34  ;;  %8055 = vmatpush1.bf16.msra.mxu0 %v8827_v20  ;;  %v6863_v34 = vld [vmem:[%s8807_s27 + $0x58] sm:$0xff] }
 0x187   : > { %8057 = vmatprep.subr.bf16.mxu0 %v8830_v21  ;;  %856 = vmatprep.mubr.f32.mxu1 %v11305_v7 }
 0x189   : > { %7570 = vmatmul.mubr.msk.f32.gmra.mrb[6].mxu0 %vm363_vm0, %v290_v36  ;;  %6771 = vmatmul.mubr.msk.f32.gmra.mrb[38].mxu1 %vm363_vm0, %v290_v36  ;;  %v6864_v36 = vld [vmem:[%s8807_s27 + $0x60] sm:$0xff] }
 0x18a   : > { %7572 = vmatprep.mubr.msk.f32.mxu0 %vm363_vm0, %v291_v37  ;;  %8059 = vmatpush1.bf16.msra.mxu0 %v8833_v26 }
 0x18b   : > { %8061 = vmatprep.subr.bf16.mxu0 %v8836_v27  ;;  %862 = vmatprep.mubr.f32.mxu1 %v11305_v7 }
 0x18d   : > { %7573 = vmatmul.mubr.msk.f32.gmra.mrb[8].mxu0 %vm363_vm0, %v292_v38  ;;  %6772 = vmatmul.mubr.msk.f32.gmra.mrb[40].mxu1 %vm363_vm0, %v291_v37  ;;  %v6865_v37 = vld [vmem:[%s8807_s27 + $0x68] sm:$0xff] }
 0x18e   : > { %7575 = vmatprep.mubr.msk.f32.mxu0 %vm363_vm0, %v293_v40  ;;  %868 = vmatprep.mubr.f32.mxu1 %v11305_v7 }
 0x191   : > { %7576 = vmatmul.mubr.msk.f32.gmra.mrb[10].mxu0 %vm363_vm0, %v294_v41  ;;  %6773 = vmatmul.mubr.msk.f32.gmra.mrb[42].mxu1 %vm363_vm0, %v292_v38  ;;  %v6866_v38 = vld [vmem:[%s8807_s27 + $0x70] sm:$0xff] }
 0x192   : > { %7578 = vmatprep.mubr.msk.f32.mxu0 %vm363_vm0, %v295_v42  ;;  %874 = vmatprep.mubr.f32.mxu1 %v11305_v7 }
 0x195   : > { %7579 = vmatmul.mubr.msk.f32.gmra.mrb[12].mxu0 %vm363_vm0, %v296_v43  ;;  %6774 = vmatmul.mubr.msk.f32.gmra.mrb[44].mxu1 %vm363_vm0, %v293_v40  ;;  %v6867_v40 = vld [vmem:[%s8807_s27 + $0x78] sm:$0xff] }
 0x196   : > { %7581 = vmatprep.mubr.msk.f32.mxu0 %vm363_vm0, %v297_v44  ;;  %880 = vmatprep.mubr.f32.mxu1 %v11305_v7 }
 0x199   : > { %7582 = vmatmul.mubr.msk.f32.gmra.mrb[14].mxu0 %vm363_vm0, %v298_v46  ;;  %6775 = vmatmul.mubr.msk.f32.gmra.mrb[46].mxu1 %vm363_vm0, %v294_v41 }
 0x19a   : > { %7584 = vmatprep.mubr.msk.f32.mxu0 %vm363_vm0, %v299_v47  ;;  %886 = vmatprep.mubr.f32.mxu1 %v11305_v7 }
 0x19d   : > { %7585 = vmatmul.mubr.msk.f32.gmra.mrb[16].mxu0 %vm363_vm0, %v300_v48  ;;  %6776 = vmatmul.mubr.msk.f32.gmra.mrb[48].mxu1 %vm363_vm0, %v295_v42 }
 0x19e   : > { %7587 = vmatprep.mubr.msk.f32.mxu0 %vm363_vm0, %v301_v49  ;;  %892 = vmatprep.mubr.f32.mxu1 %v11305_v7 }
 0x1a1   : > { %7588 = vmatmul.mubr.msk.f32.gmra.mrb[18].mxu0 %vm363_vm0, %v302_v50  ;;  %6777 = vmatmul.mubr.msk.f32.gmra.mrb[50].mxu1 %vm363_vm0, %v296_v43 }
 0x1a2   : > { %7590 = vmatprep.mubr.msk.f32.mxu0 %vm363_vm0, %v303_v51  ;;  %898 = vmatprep.mubr.f32.mxu1 %v11305_v7 }
 0x1a5   : > { %7591 = vmatmul.mubr.msk.f32.gmra.mrb[20].mxu0 %vm363_vm0, %v304_v52  ;;  %6778 = vmatmul.mubr.msk.f32.gmra.mrb[52].mxu1 %vm363_vm0, %v297_v44 }
 0x1a6   : > { %7593 = vmatprep.mubr.msk.f32.mxu0 %vm363_vm0, %v305_v53  ;;  %904 = vmatprep.mubr.f32.mxu1 %v11305_v7 }
 0x1a9   : > { %7594 = vmatmul.mubr.msk.f32.gmra.mrb[22].mxu0 %vm363_vm0, %v306_v54  ;;  %6779 = vmatmul.mubr.msk.f32.gmra.mrb[54].mxu1 %vm363_vm0, %v298_v46 }
 0x1aa   : > { %7596 = vmatprep.mubr.msk.f32.mxu0 %vm363_vm0, %v307_v55  ;;  %910 = vmatprep.mubr.f32.mxu1 %v11305_v7 }
 0x1ad   : > { %7597 = vmatmul.mubr.msk.f32.gmra.mrb[24].mxu0 %vm363_vm0, %v308_v56  ;;  %6780 = vmatmul.mubr.msk.f32.gmra.mrb[56].mxu1 %vm363_vm0, %v299_v47 }
 0x1ae   : > { %7599 = vmatprep.mubr.msk.f32.mxu0 %vm363_vm0, %v309_v57  ;;  %916 = vmatprep.mubr.f32.mxu1 %v11305_v7 }
 0x1b1   : > { %7600 = vmatmul.mubr.msk.f32.gmra.mrb[26].mxu0 %vm363_vm0, %v9062_v58  ;;  %6781 = vmatmul.mubr.msk.f32.gmra.mrb[58].mxu1 %vm363_vm0, %v300_v48 }
 0x1b2   : > { %7602 = vmatprep.mubr.msk.f32.mxu0 %vm363_vm0, %v9068_v59  ;;  %922 = vmatprep.mubr.f32.mxu1 %v11305_v7 }
 0x1b5   : > { %7603 = vmatmul.mubr.msk.f32.gmra.mrb[28].mxu0 %vm363_vm0, %v9078_v60  ;;  %6782 = vmatmul.mubr.msk.f32.gmra.mrb[60].mxu1 %vm363_vm0, %v301_v49 }
 0x1b6   : > { %7605 = vmatprep.mubr.msk.f32.mxu0 %vm363_vm0, %v9084_v61  ;;  %928 = vmatprep.mubr.f32.mxu1 %v11305_v7 }
 0x1b9   : > { %7606 = vmatmul.mubr.msk.f32.gmra.mrb[30].mxu0 %vm363_vm0, %v9094_v62  ;;  %6783 = vmatmul.mubr.msk.f32.gmra.mrb[62].mxu1 %vm363_vm0, %v302_v50 }
 0x1ba   : > { %7608 = vmatprep.mubr.msk.f32.mxu0 %vm363_vm0, %v9100_v63  ;;  %934 = vmatprep.mubr.f32.mxu1 %v11305_v7 }
 0x1bd   : > { %7609 = vmatmul.mubr.msk.f32.gmra.mrb[32].mxu0 %vm363_vm0, %v9110_v0  ;;  %6784 = vmatmul.mubr.msk.f32.gmra.mrb[64].mxu1 %vm363_vm0, %v303_v51 }
 0x1be   : > { %7611 = vmatprep.mubr.msk.f32.mxu0 %vm363_vm0, %v9116_v1  ;;  %940 = vmatprep.mubr.f32.mxu1 %v11305_v7 }
 0x1c1   : > { %7612 = vmatmul.mubr.msk.f32.gmra.mrb[34].mxu0 %vm363_vm0, %v9126_v2  ;;  %6785 = vmatmul.mubr.msk.f32.gmra.mrb[66].mxu1 %vm363_vm0, %v304_v52 }
 0x1c2   : > { %7614 = vmatprep.mubr.msk.f32.mxu0 %vm363_vm0, %v9132_v4  ;;  %946 = vmatprep.mubr.f32.mxu1 %v11305_v7 }
 0x1c5   : > { %7615 = vmatmul.mubr.msk.f32.gmra.mrb[36].mxu0 %vm363_vm0, %v9142_v5  ;;  %6786 = vmatmul.mubr.msk.f32.gmra.mrb[68].mxu1 %vm363_vm0, %v305_v53 }
 0x1c6   : > { %7617 = vmatprep.mubr.msk.f32.mxu0 %vm363_vm0, %v9148_v6  ;;  %952 = vmatprep.mubr.f32.mxu1 %v11305_v7 }
 0x1c9   : > { %7618 = vmatmul.mubr.msk.f32.gmra.mrb[38].mxu0 %vm363_vm0, %v9158_v10  ;;  %6787 = vmatmul.mubr.msk.f32.gmra.mrb[70].mxu1 %vm363_vm0, %v306_v54 }
 0x1ca   : > { %7620 = vmatprep.mubr.msk.f32.mxu0 %vm363_vm0, %v9164_v11  ;;  %958 = vmatprep.mubr.f32.mxu1 %v11305_v7 }
 0x1cd   : > { %7621 = vmatmul.mubr.msk.f32.gmra.mrb[40].mxu0 %vm363_vm0, %v9174_v12  ;;  %6788 = vmatmul.mubr.msk.f32.gmra.mrb[72].mxu1 %vm363_vm0, %v307_v55 }
 0x1ce   : > { %7623 = vmatprep.mubr.msk.f32.mxu0 %vm363_vm0, %v9180_v13  ;;  %964 = vmatprep.mubr.f32.mxu1 %v11305_v7 }
 0x1d1   : > { %7624 = vmatmul.mubr.msk.f32.gmra.mrb[42].mxu0 %vm363_vm0, %v9190_v16  ;;  %6789 = vmatmul.mubr.msk.f32.gmra.mrb[74].mxu1 %vm363_vm0, %v308_v56 }
 0x1d2   : > { %7626 = vmatprep.mubr.msk.f32.mxu0 %vm363_vm0, %v9196_v17  ;;  %970 = vmatprep.mubr.f32.mxu1 %v11305_v7 }
 0x1d5   : > { %7627 = vmatmul.mubr.msk.f32.gmra.mrb[44].mxu0 %vm363_vm0, %v9206_v19  ;;  %6790 = vmatmul.mubr.msk.f32.gmra.mrb[76].mxu1 %vm363_vm0, %v309_v57 }
 0x1d6   : > { %7629 = vmatprep.mubr.msk.f32.mxu0 %vm363_vm0, %v9212_v22  ;;  %976 = vmatprep.mubr.f32.mxu1 %v11305_v7 }
 0x1d9   : > { %7630 = vmatmul.mubr.msk.f32.gmra.mrb[46].mxu0 %vm363_vm0, %v9222_v23  ;;  %6791 = vmatmul.mubr.msk.f32.gmra.mrb[78].mxu1 %vm363_vm0, %v9062_v58 }
 0x1da   : > { %1649 = vmatprep.mubr.f32.mxu0 %v11305_v7  ;;  %982 = vmatprep.mubr.f32.mxu1 %v11305_v7 }
 0x1dd   : > { %6868 = vmatmul.mubr.msk.f32.vlgmr.msra.gmra.mrb[48].mxu0 %vm363_vm0, %v6860_v25  ;;  %6792 = vmatmul.mubr.msk.f32.gmra.mrb[80].mxu1 %vm363_vm0, %v9068_v59 }
 0x1de   : > { %1655 = vmatprep.mubr.f32.mxu0 %v11305_v7  ;;  %8063 = vmatpush3.bf16.msra.mxu0 %v8836_v27 }
 0x1df   : > { %8065 = vmatprep.subr.bf16.mxu0 %v8841_v31  ;;  %988 = vmatprep.mubr.f32.mxu1 %v11305_v7 }
 0x1e1   : > { %6869 = vmatmul.mubr.msk.f32.gmra.mrb[50].mxu0 %vm363_vm0, %v6861_v28  ;;  %6793 = vmatmul.mubr.msk.f32.gmra.mrb[82].mxu1 %vm363_vm0, %v9078_v60 }
 0x1e2   : > { %1661 = vmatprep.mubr.f32.mxu0 %v11305_v7  ;;  %8067 = vmatpush3.bf16.msra.mxu0 %v8841_v31 }
 0x1e3   : > { %8069 = vmatprep.subr.bf16.mxu0 %v8848_v35  ;;  %994 = vmatprep.mubr.f32.mxu1 %v11305_v7 }
 0x1e5   : > { %6870 = vmatmul.mubr.msk.f32.gmra.mrb[52].mxu0 %vm363_vm0, %v6862_v29  ;;  %6794 = vmatmul.mubr.msk.f32.gmra.mrb[84].mxu1 %vm363_vm0, %v9084_v61 }
 0x1e6   : > { %1667 = vmatprep.mubr.f32.mxu0 %v11305_v7  ;;  %8071 = vmatpush3.bf16.msra.mxu0 %v8848_v35 }
 0x1e7   : > { %8073 = vmatprep.subr.bf16.mxu0 %v8855_v39  ;;  %1000 = vmatprep.mubr.f32.mxu1 %v11305_v7 }
 0x1e9   : > { %6871 = vmatmul.mubr.msk.f32.gmra.mrb[54].mxu0 %vm363_vm0, %v6863_v34  ;;  %6795 = vmatmul.mubr.msk.f32.gmra.mrb[86].mxu1 %vm363_vm0, %v9094_v62 }
 0x1ea   : > { %1673 = vmatprep.mubr.f32.mxu0 %v11305_v7  ;;  %8075 = vmatpush3.bf16.msra.mxu0 %v8855_v39 }
 0x1eb   : > { %1006 = vmatprep.mubr.f32.mxu1 %v11305_v7 }
 0x1ed   : > { %6872 = vmatmul.mubr.msk.f32.gmra.mrb[56].mxu0 %vm363_vm0, %v6864_v36  ;;  %6796 = vmatmul.mubr.msk.f32.gmra.mrb[88].mxu1 %vm363_vm0, %v9100_v63 }
 0x1ee   : > { %1679 = vmatprep.mubr.f32.mxu0 %v11305_v7  ;;  %1012 = vmatprep.mubr.f32.mxu1 %v11305_v7 }
 0x1f1   : > { %6873 = vmatmul.mubr.msk.f32.gmra.mrb[58].mxu0 %vm363_vm0, %v6865_v37  ;;  %6797 = vmatmul.mubr.msk.f32.gmra.mrb[90].mxu1 %vm363_vm0, %v9110_v0 }
 0x1f2   : > { %1685 = vmatprep.mubr.f32.mxu0 %v11305_v7  ;;  %1018 = vmatprep.mubr.f32.mxu1 %v11305_v7 }
 0x1f5   : > { %6874 = vmatmul.mubr.msk.f32.gmra.mrb[60].mxu0 %vm363_vm0, %v6866_v38  ;;  %6798 = vmatmul.mubr.msk.f32.gmra.mrb[92].mxu1 %vm363_vm0, %v9116_v1 }
 0x1f6   : > { %1691 = vmatprep.mubr.f32.mxu0 %v11305_v7  ;;  %1024 = vmatprep.mubr.f32.mxu1 %v11305_v7 }
 0x1f9   : > { %6875 = vmatmul.mubr.msk.f32.gmra.mrb[62].mxu0 %vm363_vm0, %v6867_v40  ;;  %6799 = vmatmul.mubr.msk.f32.gmra.mrb[94].mxu1 %vm363_vm0, %v9126_v2 }
 0x1fa   : > { %7648 = vmatprep.mubr.msk.f32.mxu0 %vm363_vm0, %v6860_v25  ;;  %1030 = vmatprep.mubr.f32.mxu1 %v11305_v7 }
 0x1fd   : > { %7649 = vmatmul.mubr.msk.f32.vlgmr.msra.gmra.mrb[64].mxu0 %vm363_vm0, %v6861_v28  ;;  %6800 = vmatmul.mubr.msk.f32.gmra.mrb[96].mxu1 %vm363_vm0, %v9132_v4 }
 0x1fe   : > { %7651 = vmatprep.mubr.msk.f32.mxu0 %vm363_vm0, %v6862_v29  ;;  %1036 = vmatprep.mubr.f32.mxu1 %v11305_v7 }
 0x201   : > { %7652 = vmatmul.mubr.msk.f32.gmra.mrb[66].mxu0 %vm363_vm0, %v6863_v34  ;;  %6801 = vmatmul.mubr.msk.f32.gmra.mrb[98].mxu1 %vm363_vm0, %v9142_v5 }
 0x202   : > { %7654 = vmatprep.mubr.msk.f32.mxu0 %vm363_vm0, %v6864_v36  ;;  %1042 = vmatprep.mubr.f32.mxu1 %v11305_v7 }
 0x205   : > { %7655 = vmatmul.mubr.msk.f32.gmra.mrb[68].mxu0 %vm363_vm0, %v6865_v37  ;;  %6802 = vmatmul.mubr.msk.f32.gmra.mrb[100].mxu1 %vm363_vm0, %v9148_v6 }
 0x206   : > { %7657 = vmatprep.mubr.msk.f32.mxu0 %vm363_vm0, %v6866_v38  ;;  %1048 = vmatprep.mubr.f32.mxu1 %v11305_v7 }
 0x209   : > { %7658 = vmatmul.mubr.msk.f32.gmra.mrb[70].mxu0 %vm363_vm0, %v6867_v40  ;;  %6803 = vmatmul.mubr.msk.f32.gmra.mrb[102].mxu1 %vm363_vm0, %v9158_v10 }
 0x20a   : > { %1054 = vmatprep.mubr.f32.mxu1 %v11305_v7  ;;  %1867 = vmatprep.mubr.f32.mxu0 %v11305_v7 }
 0x20d   : > { %6804 = vmatmul.mubr.msk.f32.gmra.mrb[104].mxu1 %vm363_vm0, %v9164_v11 }
 0x20e   : > { %1060 = vmatprep.mubr.f32.mxu1 %v11305_v7 }
 0x211   : > { %6805 = vmatmul.mubr.msk.f32.gmra.mrb[106].mxu1 %vm363_vm0, %v9174_v12 }
 0x212   : > { %1066 = vmatprep.mubr.f32.mxu1 %v11305_v7 }
 0x215   : > { %6806 = vmatmul.mubr.msk.f32.gmra.mrb[108].mxu1 %vm363_vm0, %v9180_v13 }
 0x216   : > { %1072 = vmatprep.mubr.f32.mxu1 %v11305_v7 }
 0x219   : > { %6807 = vmatmul.mubr.msk.f32.gmra.mrb[110].mxu1 %vm363_vm0, %v9190_v16 }
 0x21a   : > { %1078 = vmatprep.mubr.f32.mxu1 %v11305_v7 }
 0x21d   : > { %6808 = vmatmul.mubr.msk.f32.gmra.mrb[112].mxu1 %vm363_vm0, %v9196_v17 }
 0x21e   : > { %1084 = vmatprep.mubr.f32.mxu1 %v11305_v7 }
 0x221   : > { %6809 = vmatmul.mubr.msk.f32.gmra.mrb[114].mxu1 %vm363_vm0, %v9206_v19 }
 0x222   : > { %1090 = vmatprep.mubr.f32.mxu1 %v11305_v7 }
 0x225   : > { %6810 = vmatmul.mubr.msk.f32.gmra.mrb[116].mxu1 %vm363_vm0, %v9212_v22 }
 0x226   : > { %1096 = vmatprep.mubr.f32.mxu1 %v11305_v7 }
 0x229   : > { %6811 = vmatmul.mubr.msk.f32.gmra.mrb[118].mxu1 %vm363_vm0, %v9222_v23 }
 0x22a   : > { %7676 = vmatprep.mubr.msk.f32.mxu1 %vm363_vm0, %v8888_v45 }
 0x240   : > { %v816_v60 = vpop.f32.mrb[24].mxu1 }
 0x241   : > { %1408 = vst [vmem:[#allocation2] sm:$0xff] %v816_v60  ;;  %v818_v62 = vpop.f32.mrb[25].mxu1 }
 0x242   : > { %1409 = vst [vmem:[#allocation2 + $0x8] sm:$0xff] %v818_v62 }
 0x244   : > { %v822_v0 = vpop.f32.mrb[26].mxu1 }
 0x245   : > { %1411 = vst [vmem:[#allocation2 + $0x18] sm:$0xff] %v822_v0  ;;  %v824_v2 = vpop.f32.mrb[27].mxu1 }
 0x246   : > { %1412 = vst [vmem:[#allocation2 + $0x20] sm:$0xff] %v824_v2 }
 0x248   : > { %v828_v5 = vpop.f32.mrb[28].mxu1 }
 0x249   : > { %1414 = vst [vmem:[#allocation2 + $0x30] sm:$0xff] %v828_v5  ;;  %v830_v10 = vpop.f32.mrb[29].mxu1 }
 0x24a   : > { %1415 = vst [vmem:[#allocation2 + $0x38] sm:$0xff] %v830_v10 }
 0x24c   : > { %v834_v12 = vpop.f32.mrb[30].mxu1 }
 0x24d   : > { %1417 = vst [vmem:[#allocation2 + $0x48] sm:$0xff] %v834_v12  ;;  %v836_v16 = vpop.f32.mrb[31].mxu1 }
 0x24e   : > { %1418 = vst [vmem:[#allocation2 + $0x50] sm:$0xff] %v836_v16 }
 0x250   : > { %v7562_v41 = vpop.f32.mrb[0].mxu0  ;;  %v840_v19 = vpop.f32.mrb[32].mxu1 }
 0x251   : > { %1413 = vst [vmem:[#allocation2 + $0x28] sm:$0xff] %v7562_v41  ;;  %v1169_v42 = vpop.f32.mrb[1].mxu0  ;;  %1420 = vst [vmem:[#allocation2 + $0x60] sm:$0xff] %v840_v19  ;;  %v842_v23 = vpop.f32.mrb[33].mxu1 }
 0x252   : > { %1410 = vst [vmem:[#allocation2 + $0x10] sm:$0xff] %v1169_v42  ;;  %1421 = vst [vmem:[#allocation2 + $0x68] sm:$0xff] %v842_v23 }
 0x254   : > { %v7565_v43 = vpop.f32.mrb[2].mxu0  ;;  %v846_v28 = vpop.f32.mrb[34].mxu1 }
 0x255   : > { %1419 = vst [vmem:[#allocation2 + $0x58] sm:$0xff] %v7565_v43  ;;  %v1179_v44 = vpop.f32.mrb[3].mxu0  ;;  %1423 = vst [vmem:[#allocation2 + $0x78] sm:$0xff] %v846_v28  ;;  %v848_v34 = vpop.f32.mrb[35].mxu1 }
 0x256   : > { %1416 = vst [vmem:[#allocation2 + $0x40] sm:$0xff] %v1179_v44  ;;  %1424 = vst [vmem:[#allocation2 + $0x80] sm:$0xff] %v848_v34 }
 0x258   : > { %v7568_v46 = vpop.f32.mrb[4].mxu0  ;;  %v852_v37 = vpop.f32.mrb[36].mxu1 }
 0x259   : > { %1425 = vst [vmem:[#allocation2 + $0x88] sm:$0xff] %v7568_v46  ;;  %v1189_v47 = vpop.f32.mrb[5].mxu0  ;;  %1426 = vst [vmem:[#allocation2 + $0x90] sm:$0xff] %v852_v37  ;;  %v854_v40 = vpop.f32.mrb[37].mxu1 }
 0x25a   : > { %1422 = vst [vmem:[#allocation2 + $0x70] sm:$0xff] %v1189_v47  ;;  %1427 = vst [vmem:[#allocation2 + $0x98] sm:$0xff] %v854_v40 }
 0x25c   : > { %v7571_v48 = vpop.f32.mrb[6].mxu0  ;;  %v858_v42 = vpop.f32.mrb[38].mxu1 }
 0x25d   : > { %1431 = vst [vmem:[#allocation2 + $0xb8] sm:$0xff] %v7571_v48  ;;  %v1199_v49 = vpop.f32.mrb[7].mxu0  ;;  %1429 = vst [vmem:[#allocation2 + $0xa8] sm:$0xff] %v858_v42  ;;  %v860_v44 = vpop.f32.mrb[39].mxu1 }
 0x25e   : > { %1428 = vst [vmem:[#allocation2 + $0xa0] sm:$0xff] %v1199_v49  ;;  %1430 = vst [vmem:[#allocation2 + $0xb0] sm:$0xff] %v860_v44 }
 0x260   : > { %v7574_v50 = vpop.f32.mrb[8].mxu0  ;;  %v864_v47 = vpop.f32.mrb[40].mxu1 }
 0x261   : > { %1437 = vst [vmem:[#allocation2 + $0xe8] sm:$0xff] %v7574_v50  ;;  %v1209_v51 = vpop.f32.mrb[9].mxu0  ;;  %1432 = vst [vmem:[#allocation2 + $0xc0] sm:$0xff] %v864_v47  ;;  %v866_v49 = vpop.f32.mrb[41].mxu1 }
 0x262   : > { %1434 = vst [vmem:[#allocation2 + $0xd0] sm:$0xff] %v1209_v51  ;;  %1433 = vst [vmem:[#allocation2 + $0xc8] sm:$0xff] %v866_v49 }
 0x264   : > { %v7577_v45 = vpop.f32.mrb[10].mxu0  ;;  %v870_v51 = vpop.f32.mrb[42].mxu1 }
 0x265   : > { %1443 = vst [vmem:[#allocation2 + $0x118] sm:$0xff] %v7577_v45  ;;  %v1219_v52 = vpop.f32.mrb[11].mxu0  ;;  %1435 = vst [vmem:[#allocation2 + $0xd8] sm:$0xff] %v870_v51 }
 0x266   : > { %1440 = vst [vmem:[#allocation2 + $0x100] sm:$0xff] %v1219_v52  ;;  %v872_v52 = vpop.f32.mrb[43].mxu1 }
 0x267   : > { %1436 = vst [vmem:[#allocation2 + $0xe0] sm:$0xff] %v872_v52 }
 0x268   : > { %v7580_v53 = vpop.f32.mrb[12].mxu0 }
 0x269   : > { %1449 = vst [vmem:[#allocation2 + $0x148] sm:$0xff] %v7580_v53  ;;  %v1229_v54 = vpop.f32.mrb[13].mxu0 }
 0x26a   : > { %1446 = vst [vmem:[#allocation2 + $0x130] sm:$0xff] %v1229_v54  ;;  %v876_v54 = vpop.f32.mrb[44].mxu1 }
 0x26b   : > { %1438 = vst [vmem:[#allocation2 + $0xf0] sm:$0xff] %v876_v54 }
 0x26c   : > { %v7583_v55 = vpop.f32.mrb[14].mxu0 }
 0x26d   : > { %1455 = vst [vmem:[#allocation2 + $0x178] sm:$0xff] %v7583_v55  ;;  %v1239_v56 = vpop.f32.mrb[15].mxu0 }
 0x26e   : > { %1452 = vst [vmem:[#allocation2 + $0x160] sm:$0xff] %v1239_v56  ;;  %v878_v56 = vpop.f32.mrb[45].mxu1 }
 0x26f   : > { %1439 = vst [vmem:[#allocation2 + $0xf8] sm:$0xff] %v878_v56 }
 0x270   : > { %v7586_v57 = vpop.f32.mrb[16].mxu0 }
 0x271   : > { %1461 = vst [vmem:[#allocation2 + $0x1a8] sm:$0xff] %v7586_v57  ;;  %v1249_v58 = vpop.f32.mrb[17].mxu0 }
 0x272   : > { %1458 = vst [vmem:[#allocation2 + $0x190] sm:$0xff] %v1249_v58  ;;  %v882_v58 = vpop.f32.mrb[46].mxu1 }
 0x273   : > { %1441 = vst [vmem:[#allocation2 + $0x108] sm:$0xff] %v882_v58  ;;  %v884_v60 = vpop.f32.mrb[47].mxu1 }
 0x274   : > { %v7589_v59 = vpop.f32.mrb[18].mxu0  ;;  %1442 = vst [vmem:[#allocation2 + $0x110] sm:$0xff] %v884_v60  ;;  %v888_v62 = vpop.f32.mrb[48].mxu1 }
 0x275   : > { %1467 = vst [vmem:[#allocation2 + $0x1d8] sm:$0xff] %v7589_v59  ;;  %v1259_v61 = vpop.f32.mrb[19].mxu0  ;;  %1444 = vst [vmem:[#allocation2 + $0x120] sm:$0xff] %v888_v62  ;;  %v890_v0 = vpop.f32.mrb[49].mxu1 }
 0x276   : > { %1464 = vst [vmem:[#allocation2 + $0x1c0] sm:$0xff] %v1259_v61  ;;  %1445 = vst [vmem:[#allocation2 + $0x128] sm:$0xff] %v890_v0  ;;  %v894_v2 = vpop.f32.mrb[50].mxu1 }
 0x277   : > { %1447 = vst [vmem:[#allocation2 + $0x138] sm:$0xff] %v894_v2  ;;  %v896_v5 = vpop.f32.mrb[51].mxu1 }
 0x278   : > { %v7592_v63 = vpop.f32.mrb[20].mxu0  ;;  %1448 = vst [vmem:[#allocation2 + $0x140] sm:$0xff] %v896_v5  ;;  %v900_v10 = vpop.f32.mrb[52].mxu1 }
 0x279   : > { %1473 = vst [vmem:[#allocation2 + $0x208] sm:$0xff] %v7592_v63  ;;  %v1269_v1 = vpop.f32.mrb[21].mxu0  ;;  %1450 = vst [vmem:[#allocation2 + $0x150] sm:$0xff] %v900_v10  ;;  %v902_v12 = vpop.f32.mrb[53].mxu1 }
 0x27a   : > { %1470 = vst [vmem:[#allocation2 + $0x1f0] sm:$0xff] %v1269_v1  ;;  %1451 = vst [vmem:[#allocation2 + $0x158] sm:$0xff] %v902_v12 }
 0x27c   : > { %v7595_v4 = vpop.f32.mrb[22].mxu0  ;;  %v906_v16 = vpop.f32.mrb[54].mxu1 }
 0x27d   : > { %1479 = vst [vmem:[#allocation2 + $0x238] sm:$0xff] %v7595_v4  ;;  %v1279_v6 = vpop.f32.mrb[23].mxu0  ;;  %1453 = vst [vmem:[#allocation2 + $0x168] sm:$0xff] %v906_v16  ;;  %v908_v19 = vpop.f32.mrb[55].mxu1  ;;  %v9334_v16 = vld [vmem:[%s11292_s1] sm:$0xff] }
 0x27e   : > { %1476 = vst [vmem:[#allocation2 + $0x220] sm:$0xff] %v1279_v6  ;;  %1454 = vst [vmem:[#allocation2 + $0x170] sm:$0xff] %v908_v19 }
 0x280   : > { %v7598_v11 = vpop.f32.mrb[24].mxu0  ;;  %v912_v23 = vpop.f32.mrb[56].mxu1 }
 0x281   : > { %1485 = vst [vmem:[#allocation2 + $0x268] sm:$0xff] %v7598_v11  ;;  %v1289_v13 = vpop.f32.mrb[25].mxu0  ;;  %1456 = vst [vmem:[#allocation2 + $0x180] sm:$0xff] %v912_v23 }
 0x282   : > { %1482 = vst [vmem:[#allocation2 + $0x250] sm:$0xff] %v1289_v13 }
 0x284   : > { %v7601_v17 = vpop.f32.mrb[26].mxu0 }
 0x285   : > { %1491 = vst [vmem:[#allocation2 + $0x298] sm:$0xff] %v7601_v17  ;;  %v1299_v22 = vpop.f32.mrb[27].mxu0 }
 0x286   : > { %1488 = vst [vmem:[#allocation2 + $0x280] sm:$0xff] %v1299_v22 }
 0x288   : > { %v7604_v25 = vpop.f32.mrb[28].mxu0 }
 0x289   : > { %1497 = vst [vmem:[#allocation2 + $0x2c8] sm:$0xff] %v7604_v25  ;;  %v1309_v29 = vpop.f32.mrb[29].mxu0 }
 0x28a   : > { %1494 = vst [vmem:[#allocation2 + $0x2b0] sm:$0xff] %v1309_v29  ;;  %v914_v29 = vpop.f32.mrb[57].mxu1 }
 0x28b   : > { %1457 = vst [vmem:[#allocation2 + $0x188] sm:$0xff] %v914_v29  ;;  %v918_v37 = vpop.f32.mrb[58].mxu1 }
 0x28c   : > { %v7607_v36 = vpop.f32.mrb[30].mxu0  ;;  %1459 = vst [vmem:[#allocation2 + $0x198] sm:$0xff] %v918_v37  ;;  %v920_v40 = vpop.f32.mrb[59].mxu1 }
 0x28d   : > { %1503 = vst [vmem:[#allocation2 + $0x2f8] sm:$0xff] %v7607_v36  ;;  %v1319_v38 = vpop.f32.mrb[31].mxu0  ;;  %1460 = vst [vmem:[#allocation2 + $0x1a0] sm:$0xff] %v920_v40  ;;  %v924_v42 = vpop.f32.mrb[60].mxu1 }
 0x28e   : > { %1500 = vst [vmem:[#allocation2 + $0x2e0] sm:$0xff] %v1319_v38  ;;  %1462 = vst [vmem:[#allocation2 + $0x1b0] sm:$0xff] %v924_v42 }
 0x290   : > { %v7610_v41 = vpop.f32.mrb[32].mxu0 }
 0x291   : > { %1509 = vst [vmem:[#allocation2 + $0x328] sm:$0xff] %v7610_v41  ;;  %v1329_v43 = vpop.f32.mrb[33].mxu0 }
 0x292   : > { %1506 = vst [vmem:[#allocation2 + $0x310] sm:$0xff] %v1329_v43 }
 0x294   : > { %v7613_v46 = vpop.f32.mrb[34].mxu0 }
 0x295   : > { %1515 = vst [vmem:[#allocation2 + $0x358] sm:$0xff] %v7613_v46  ;;  %v1339_v48 = vpop.f32.mrb[35].mxu0  ;;  %v926_v46 = vpop.f32.mrb[61].mxu1 }
 0x296   : > { %1512 = vst [vmem:[#allocation2 + $0x340] sm:$0xff] %v1339_v48  ;;  %1463 = vst [vmem:[#allocation2 + $0x1b8] sm:$0xff] %v926_v46  ;;  %v930_v49 = vpop.f32.mrb[62].mxu1 }
 0x297   : > { %1465 = vst [vmem:[#allocation2 + $0x1c8] sm:$0xff] %v930_v49  ;;  %v932_v51 = vpop.f32.mrb[63].mxu1  ;;  %v8347_v49 = vld [vmem:[%s11292_s1 + $0x20] sm:$0xff] }
 0x298   : > { %v7616_v50 = vpop.f32.mrb[36].mxu0  ;;  %1466 = vst [vmem:[#allocation2 + $0x1d0] sm:$0xff] %v932_v51  ;;  %v936_v52 = vpop.f32.mrb[64].mxu1 }
 0x299   : > { %1521 = vst [vmem:[#allocation2 + $0x388] sm:$0xff] %v7616_v50  ;;  %v1349_v45 = vpop.f32.mrb[37].mxu0  ;;  %1468 = vst [vmem:[#allocation2 + $0x1e0] sm:$0xff] %v936_v52 }
 0x29a   : > { %1518 = vst [vmem:[#allocation2 + $0x370] sm:$0xff] %v1349_v45 }
 0x29c   : > { %v7619_v53 = vpop.f32.mrb[38].mxu0 }
 0x29d   : > { %1527 = vst [vmem:[#allocation2 + $0x3b8] sm:$0xff] %v7619_v53  ;;  %v1359_v55 = vpop.f32.mrb[39].mxu0 }
 0x29e   : > { %1524 = vst [vmem:[#allocation2 + $0x3a0] sm:$0xff] %v1359_v55  ;;  %v938_v55 = vpop.f32.mrb[65].mxu1 }
 0x29f   : > { %1469 = vst [vmem:[#allocation2 + $0x1e8] sm:$0xff] %v938_v55  ;;  %v942_v58 = vpop.f32.mrb[66].mxu1 }
 0x2a0   : > { %v7622_v57 = vpop.f32.mrb[40].mxu0  ;;  %1471 = vst [vmem:[#allocation2 + $0x1f8] sm:$0xff] %v942_v58  ;;  %v944_v60 = vpop.f32.mrb[67].mxu1 }
 0x2a1   : > { %1533 = vst [vmem:[#allocation2 + $0x3e8] sm:$0xff] %v7622_v57  ;;  %v1369_v59 = vpop.f32.mrb[41].mxu0  ;;  %1472 = vst [vmem:[#allocation2 + $0x200] sm:$0xff] %v944_v60  ;;  %v948_v62 = vpop.f32.mrb[68].mxu1 }
 0x2a2   : > { %1530 = vst [vmem:[#allocation2 + $0x3d0] sm:$0xff] %v1369_v59  ;;  %1474 = vst [vmem:[#allocation2 + $0x210] sm:$0xff] %v948_v62 }
 0x2a4   : > { %v7625_v61 = vpop.f32.mrb[42].mxu0 }
 0x2a5   : > { %1539 = vst [vmem:[#allocation2 + $0x418] sm:$0xff] %v7625_v61  ;;  %v1379_v63 = vpop.f32.mrb[43].mxu0 }
 0x2a6   : > { %1536 = vst [vmem:[#allocation2 + $0x400] sm:$0xff] %v1379_v63 }
 0x2a8   : > { %v7628_v1 = vpop.f32.mrb[44].mxu0 }
 0x2a9   : > { %1545 = vst [vmem:[#allocation2 + $0x448] sm:$0xff] %v7628_v1  ;;  %v1389_v4 = vpop.f32.mrb[45].mxu0  ;;  %v950_v1 = vpop.f32.mrb[69].mxu1 }
 0x2aa   : > { %1542 = vst [vmem:[#allocation2 + $0x430] sm:$0xff] %v1389_v4  ;;  %1475 = vst [vmem:[#allocation2 + $0x218] sm:$0xff] %v950_v1  ;;  %v954_v5 = vpop.f32.mrb[70].mxu1  ;;  %v8353_v1 = vld [vmem:[%s11292_s1 + $0x50] sm:$0xff] }
 0x2ab   : > { %1477 = vst [vmem:[#allocation2 + $0x228] sm:$0xff] %v954_v5  ;;  %v956_v10 = vpop.f32.mrb[71].mxu1 }
 0x2ac   : > { %v7631_v6 = vpop.f32.mrb[46].mxu0  ;;  %1478 = vst [vmem:[#allocation2 + $0x230] sm:$0xff] %v956_v10 }
 0x2ad   : > { %1551 = vst [vmem:[#allocation2 + $0x478] sm:$0xff] %v7631_v6  ;;  %v1399_v11 = vpop.f32.mrb[47].mxu0 }
 0x2ae   : > { %1548 = vst [vmem:[#allocation2 + $0x460] sm:$0xff] %v1399_v11 }
 0x2b0   : > { %v1651_v13 = vpop.f32.mrb[48].mxu0 }
 0x2b1   : > { %v1653_v17 = vpop.f32.mrb[49].mxu0 }
 0x2b4   : > { %v1657_v22 = vpop.f32.mrb[50].mxu0 }
 0x2b5   : > { %v8078_v25 = vpack.c.bf16 %v1657_v22, %v1651_v13  ;;  %v1659_v28 = vpop.f32.mrb[51].mxu0  ;;  %v960_v13 = vpop.f32.mrb[72].mxu1 }
 0x2b6   : > { %v8076_v34 = vpack.c.bf16 %v1659_v28, %v1653_v17  ;;  %1480 = vst [vmem:[#allocation2 + $0x240] sm:$0xff] %v960_v13  ;;  %v962_v19 = vpop.f32.mrb[73].mxu1 }
 0x2b7   : > { %1481 = vst [vmem:[#allocation2 + $0x248] sm:$0xff] %v962_v19  ;;  %v8356_v19 = vld [vmem:[%s11292_s1 + $0x68] sm:$0xff] }
 0x2b8   : > { %v1663_v36 = vpop.f32.mrb[52].mxu0  ;;  %8077 = vmatprep.subr.bf16.mxu0 %v8076_v34 }
 0x2b9   : > { %v1665_v38 = vpop.f32.mrb[53].mxu0  ;;  %8079 = vmatpush1.bf16.msra.mxu0 %v8078_v25  ;;  %v966_v25 = vpop.f32.mrb[74].mxu1 }
 0x2ba   : > { %1483 = vst [vmem:[#allocation2 + $0x258] sm:$0xff] %v966_v25  ;;  %v968_v29 = vpop.f32.mrb[75].mxu1 }
 0x2bb   : > { %1484 = vst [vmem:[#allocation2 + $0x260] sm:$0xff] %v968_v29  ;;  %v972_v37 = vpop.f32.mrb[76].mxu1 }
 0x2bc   : > { %v1669_v41 = vpop.f32.mrb[54].mxu0  ;;  %1486 = vst [vmem:[#allocation2 + $0x270] sm:$0xff] %v972_v37  ;;  %v974_v40 = vpop.f32.mrb[77].mxu1  ;;  %v8359_v37 = vld [vmem:[%s11292_s1 + $0x80] sm:$0xff] }
 0x2bd   : > { %v8082_v43 = vpack.c.bf16 %v1669_v41, %v1663_v36  ;;  %v1671_v44 = vpop.f32.mrb[55].mxu0  ;;  %1487 = vst [vmem:[#allocation2 + $0x278] sm:$0xff] %v974_v40  ;;  %v978_v41 = vpop.f32.mrb[78].mxu1 }
 0x2be   : > { %v8080_v47 = vpack.c.bf16 %v1671_v44, %v1665_v38  ;;  %1489 = vst [vmem:[#allocation2 + $0x288] sm:$0xff] %v978_v41  ;;  %v980_v42 = vpop.f32.mrb[79].mxu1  ;;  %v8360_v41 = vld [vmem:[%s11292_s1 + $0x88] sm:$0xff] }
 0x2bf   : > { %1490 = vst [vmem:[#allocation2 + $0x290] sm:$0xff] %v980_v42 }
 0x2c0   : > { %v1675_v48 = vpop.f32.mrb[56].mxu0  ;;  %8081 = vmatprep.subr.bf16.mxu0 %v8080_v47  ;;  %v9371_v47 = vld [vmem:[%s11292_s1 + $0x18] sm:$0xff] }
 0x2c1   : > { %v1677_v50 = vpop.f32.mrb[57].mxu0  ;;  %8083 = vmatpush1.bf16.msra.mxu0 %v8082_v43  ;;  %v984_v43 = vpop.f32.mrb[80].mxu1 }
 0x2c2   : > { %1492 = vst [vmem:[#allocation2 + $0x2a0] sm:$0xff] %v984_v43  ;;  %v986_v44 = vpop.f32.mrb[81].mxu1  ;;  %v8361_v43 = vld [vmem:[%s11292_s1 + $0x90] sm:$0xff] }
 0x2c3   : > { %1493 = vst [vmem:[#allocation2 + $0x2a8] sm:$0xff] %v986_v44  ;;  %v990_v46 = vpop.f32.mrb[82].mxu1 }
 0x2c4   : > { %v1681_v45 = vpop.f32.mrb[58].mxu0  ;;  %1495 = vst [vmem:[#allocation2 + $0x2b8] sm:$0xff] %v990_v46 }
 0x2c5   : > { %v8086_v53 = vpack.c.bf16 %v1681_v45, %v1675_v48  ;;  %v1683_v54 = vpop.f32.mrb[59].mxu0 }
 0x2c6   : > { %v8084_v56 = vpack.c.bf16 %v1683_v54, %v1677_v50 }
 0x2c8   : > { %v1687_v57 = vpop.f32.mrb[60].mxu0  ;;  %8085 = vmatprep.subr.bf16.mxu0 %v8084_v56 }
 0x2c9   : > { %v1689_v59 = vpop.f32.mrb[61].mxu0  ;;  %8087 = vmatpush1.bf16.msra.mxu0 %v8086_v53  ;;  %v8349_v53 = vld [vmem:[%s11292_s1 + $0x30] sm:$0xff] }
 0x2cc   : > { %v1693_v61 = vpop.f32.mrb[62].mxu0 }
 0x2cd   : > { %v8090_v63 = vpack.c.bf16 %v1693_v61, %v1687_v57  ;;  %v1695_v0 = vpop.f32.mrb[63].mxu0  ;;  %v8350_v57 = vld [vmem:[%s11292_s1 + $0x38] sm:$0xff] }
 0x2ce   : > { %v8088_v2 = vpack.c.bf16 %v1695_v0, %v1689_v59  ;;  %v8351_v59 = vld [vmem:[%s11292_s1 + $0x40] sm:$0xff] }
 0x2d0   : > { %v7650_v4 = vpop.f32.mrb[64].mxu0  ;;  %8089 = vmatprep.subr.bf16.mxu0 %v8088_v2 }
 0x2d1   : > { %v1764_v6 = vpop.f32.mrb[65].mxu0  ;;  %8091 = vmatpush1.bf16.msra.mxu0 %v8090_v63  ;;  %v8352_v63 = vld [vmem:[%s11292_s1 + $0x48] sm:$0xff] }
 0x2d2   : > { %v8092_v11 = vpack.c.bf16 %v7650_v4, %v1764_v6  ;;  %v8354_v6 = vld [vmem:[%s11292_s1 + $0x58] sm:$0xff] }
 0x2d4   : > { %v7653_v12 = vpop.f32.mrb[66].mxu0  ;;  %8093 = vmatprep.subr.bf16.mxu1 %v8092_v11  ;;  %6884 = vmatmul.mubr.msk.f32.vlgmr.msra.gmra.mrb[72].mxu0 %vm363_vm0, %v9334_v16 }
 0x2d5   : > { %v1774_v17 = vpop.f32.mrb[67].mxu0  ;;  %8095 = vmatpush3.bf16.msra.mxu1 %v8092_v11  ;;  %1873 = vmatprep.mubr.f32.mxu0 %v11305_v7  ;;  %v8355_v11 = vld [vmem:[%s11292_s1 + $0x60] sm:$0xff] }
 0x2d6   : > { %v8096_v22 = vpack.c.bf16 %v7653_v12, %v1774_v17 }
 0x2d8   : > { %v7656_v23 = vpop.f32.mrb[68].mxu0  ;;  %8097 = vmatprep.subr.bf16.mxu1 %v8096_v22  ;;  %6885 = vmatmul.mubr.msk.f32.gmra.mrb[74].mxu0 %vm363_vm0, %v8898_v18 }
 0x2d9   : > { %v1784_v28 = vpop.f32.mrb[69].mxu0  ;;  %8099 = vmatpush3.bf16.msra.mxu1 %v8096_v22  ;;  %1879 = vmatprep.mubr.f32.mxu0 %v11305_v7 }
 0x2da   : > { %v8100_v34 = vpack.c.bf16 %v7656_v23, %v1784_v28  ;;  %v8357_v23 = vld [vmem:[%s11292_s1 + $0x70] sm:$0xff] }
 0x2dc   : > { %v7659_v36 = vpop.f32.mrb[70].mxu0  ;;  %8101 = vmatprep.subr.bf16.mxu1 %v8100_v34  ;;  %6886 = vmatmul.mubr.msk.f32.gmra.mrb[76].mxu0 %vm363_vm0, %v8906_v24  ;;  %v9352_v24 = vld [vmem:[%s11292_s1 + $0x8] sm:$0xff] }
 0x2dd   : > { %v1794_v38 = vpop.f32.mrb[71].mxu0  ;;  %8103 = vmatpush3.bf16.msra.mxu1 %v8100_v34  ;;  %1885 = vmatprep.mubr.f32.mxu0 %v11305_v7  ;;  %v8358_v34 = vld [vmem:[%s11292_s1 + $0x78] sm:$0xff] }
 0x2de   : > { %v8104_v18 = vpack.c.bf16 %v7659_v36, %v1794_v38 }
 0x2e0   : > { %8105 = vmatprep.subr.bf16.mxu1 %v8104_v18  ;;  %6887 = vmatmul.mubr.msk.f32.gmra.mrb[78].mxu0 %vm363_vm0, %v8914_v30  ;;  %v9361_v30 = vld [vmem:[%s11292_s1 + $0x10] sm:$0xff] }
 0x2e1   : > { %8107 = vmatpush3.bf16.msra.mxu1 %v8104_v18  ;;  %1891 = vmatprep.mubr.f32.mxu0 %v11305_v7 }
 0x2e2   : > { %8109 = vmatprep.subr.bf16.mxu1 %v8812_v3 }
 0x2e4   : > { %7677 = vmatmul.mubr.msk.f32.vlgmr.msra.gmra.mrb[120].mxu1 %vm363_vm0, %v9352_v24  ;;  %6888 = vmatmul.mubr.msk.f32.gmra.mrb[80].mxu0 %vm363_vm0, %v8923_v32  ;;  %v992_v32 = vpop.f32.mrb[83].mxu1 }
 0x2e5   : > { %7679 = vmatprep.mubr.msk.f32.mxu1 %vm363_vm0, %v9361_v30  ;;  %8111 = vmatpush1.bf16.msra.mxu1 %v8815_v8  ;;  %1496 = vst [vmem:[#allocation2 + $0x2c0] sm:$0xff] %v992_v32  ;;  %v996_v48 = vpop.f32.mrb[84].mxu1 }
 0x2e6   : > { %8113 = vmatprep.subr.bf16.mxu1 %v8817_v9  ;;  %1897 = vmatprep.mubr.f32.mxu0 %v11305_v7  ;;  %1498 = vst [vmem:[#allocation2 + $0x2d0] sm:$0xff] %v996_v48  ;;  %v998_v50 = vpop.f32.mrb[85].mxu1  ;;  %v8362_v48 = vld [vmem:[%s11292_s1 + $0x98] sm:$0xff] }
 0x2e7   : > { %1499 = vst [vmem:[#allocation2 + $0x2d8] sm:$0xff] %v998_v50  ;;  %v1002_v51 = vpop.f32.mrb[86].mxu1  ;;  %v8363_v50 = vld [vmem:[%s11292_s1 + $0xa0] sm:$0xff] }
 0x2e8   : > { %7680 = vmatmul.mubr.msk.f32.gmra.mrb[122].mxu1 %vm363_vm0, %v9371_v47  ;;  %6889 = vmatmul.mubr.msk.f32.gmra.mrb[82].mxu0 %vm363_vm0, %v8937_v33  ;;  %1501 = vst [vmem:[#allocation2 + $0x2e8] sm:$0xff] %v1002_v51  ;;  %v1004_v45 = vpop.f32.mrb[87].mxu1  ;;  %v8348_v33 = vld [vmem:[%s11292_s1 + $0x28] sm:$0xff] }
 0x2e9   : > { %7682 = vmatprep.mubr.msk.f32.mxu1 %vm363_vm0, %v8347_v49  ;;  %8115 = vmatpush1.bf16.msra.mxu1 %v8821_v14  ;;  %1502 = vst [vmem:[#allocation2 + $0x2f0] sm:$0xff] %v1004_v45  ;;  %v1008_v52 = vpop.f32.mrb[88].mxu1 }
 0x2ea   : > { %8117 = vmatprep.subr.bf16.mxu1 %v8824_v15  ;;  %1903 = vmatprep.mubr.f32.mxu0 %v11305_v7  ;;  %1504 = vst [vmem:[#allocation2 + $0x300] sm:$0xff] %v1008_v52  ;;  %v1010_v54 = vpop.f32.mrb[89].mxu1  ;;  %v8364_v52 = vld [vmem:[%s11292_s1 + $0xa8] sm:$0xff] }
 0x2eb   : > { %1505 = vst [vmem:[#allocation2 + $0x308] sm:$0xff] %v1010_v54  ;;  %v1014_v55 = vpop.f32.mrb[90].mxu1  ;;  %v8366_v54 = vld [vmem:[%s11292_s1 + $0xb8] sm:$0xff] }
 0x2ec   : > { %7683 = vmatmul.mubr.msk.f32.gmra.mrb[124].mxu1 %vm363_vm0, %v8348_v33  ;;  %6890 = vmatmul.mubr.msk.f32.gmra.mrb[84].mxu0 %vm363_vm0, %v8349_v53  ;;  %1507 = vst [vmem:[#allocation2 + $0x318] sm:$0xff] %v1014_v55  ;;  %v1016_v56 = vpop.f32.mrb[91].mxu1  ;;  %v8367_v55 = vld [vmem:[%s11292_s1 + $0xc0] sm:$0xff] }
 0x2ed   : > { %7685 = vmatprep.mubr.msk.f32.mxu1 %vm363_vm0, %v8349_v53  ;;  %8119 = vmatpush1.bf16.msra.mxu1 %v8827_v20  ;;  %1508 = vst [vmem:[#allocation2 + $0x320] sm:$0xff] %v1016_v56  ;;  %v1020_v58 = vpop.f32.mrb[92].mxu1  ;;  %v8365_v53 = vld [vmem:[%s11292_s1 + $0xb0] sm:$0xff]  ;;  %v8368_v56 = vld [vmem:[%s11292_s1 + $0xc8] sm:$0xff] }
 0x2ee   : > { %8121 = vmatprep.subr.bf16.mxu1 %v8830_v21  ;;  %1909 = vmatprep.mubr.f32.mxu0 %v11305_v7  ;;  %1510 = vst [vmem:[#allocation2 + $0x330] sm:$0xff] %v1020_v58  ;;  %v1022_v60 = vpop.f32.mrb[93].mxu1  ;;  %v8370_v58 = vld [vmem:[%s11292_s1 + $0xd8] sm:$0xff] }
 0x2ef   : > { %1511 = vst [vmem:[#allocation2 + $0x338] sm:$0xff] %v1022_v60  ;;  %v1026_v61 = vpop.f32.mrb[94].mxu1  ;;  %v9514_v60 = vld [vmem:[%s11292_s1 + $0xe8] sm:$0xff] }
 0x2f0   : > { %7686 = vmatmul.mubr.msk.f32.gmra.mrb[126].mxu1 %vm363_vm0, %v8350_v57  ;;  %6891 = vmatmul.mubr.msk.f32.gmra.mrb[86].mxu0 %vm363_vm0, %v8350_v57  ;;  %1513 = vst [vmem:[#allocation2 + $0x348] sm:$0xff] %v1026_v61  ;;  %v1028_v62 = vpop.f32.mrb[95].mxu1  ;;  %v8369_v57 = vld [vmem:[%s11292_s1 + $0xd0] sm:$0xff] }
 0x2f1   : > { %7688 = vmatprep.mubr.msk.f32.mxu1 %vm363_vm0, %v8351_v59  ;;  %8123 = vmatpush1.bf16.msra.mxu1 %v8833_v26  ;;  %1514 = vst [vmem:[#allocation2 + $0x350] sm:$0xff] %v1028_v62  ;;  %v1032_v0 = vpop.f32.mrb[96].mxu1  ;;  %v9522_v61 = vld [vmem:[%s11292_s1 + $0xf0] sm:$0xff]  ;;  %v9530_v62 = vld [vmem:[%s11292_s1 + $0xf8] sm:$0xff] }
 0x2f2   : > { %8125 = vmatprep.subr.bf16.mxu1 %v8836_v27  ;;  %1915 = vmatprep.mubr.f32.mxu0 %v11305_v7  ;;  %1516 = vst [vmem:[#allocation2 + $0x360] sm:$0xff] %v1032_v0  ;;  %v1034_v2 = vpop.f32.mrb[97].mxu1  ;;  %v9546_v0 = vld [vmem:[%s11292_s1 + $0x108] sm:$0xff] }
 0x2f3   : > { %1517 = vst [vmem:[#allocation2 + $0x368] sm:$0xff] %v1034_v2  ;;  %v1038_v4 = vpop.f32.mrb[98].mxu1  ;;  %v9562_v2 = vld [vmem:[%s11292_s1 + $0x118] sm:$0xff] }
 0x2f4   : > { %7689 = vmatmul.mubr.msk.f32.gmra.mrb[128].mxu1 %vm363_vm0, %v8352_v63  ;;  %6892 = vmatmul.mubr.msk.f32.gmra.mrb[88].mxu0 %vm363_vm0, %v8351_v59  ;;  %1519 = vst [vmem:[#allocation2 + $0x378] sm:$0xff] %v1038_v4  ;;  %v1040_v5 = vpop.f32.mrb[99].mxu1  ;;  %v9506_v59 = vld [vmem:[%s11292_s1 + $0xe0] sm:$0xff] }
 0x2f5   : > { %7691 = vmatprep.mubr.msk.f32.mxu1 %vm363_vm0, %v8353_v1  ;;  %1921 = vmatprep.mubr.f32.mxu0 %v11305_v7  ;;  %1520 = vst [vmem:[#allocation2 + $0x380] sm:$0xff] %v1040_v5  ;;  %v1044_v10 = vpop.f32.mrb[100].mxu1  ;;  %v9570_v4 = vld [vmem:[%s11292_s1 + $0x120] sm:$0xff]  ;;  %v9578_v5 = vld [vmem:[%s11292_s1 + $0x128] sm:$0xff] }
 0x2f6   : > { %1522 = vst [vmem:[#allocation2 + $0x390] sm:$0xff] %v1044_v10  ;;  %v1046_v12 = vpop.f32.mrb[101].mxu1  ;;  %v9594_v10 = vld [vmem:[%s11292_s1 + $0x138] sm:$0xff] }
 0x2f7   : > { %1523 = vst [vmem:[#allocation2 + $0x398] sm:$0xff] %v1046_v12  ;;  %v1050_v13 = vpop.f32.mrb[102].mxu1  ;;  %v9610_v12 = vld [vmem:[%s11292_s1 + $0x148] sm:$0xff] }
 0x2f8   : > { %7692 = vmatmul.mubr.msk.f32.gmra.mrb[130].mxu1 %vm363_vm0, %v8354_v6  ;;  %6893 = vmatmul.mubr.msk.f32.gmra.mrb[90].mxu0 %vm363_vm0, %v8352_v63  ;;  %1525 = vst [vmem:[#allocation2 + $0x3a8] sm:$0xff] %v1050_v13  ;;  %v1052_v17 = vpop.f32.mrb[103].mxu1  ;;  %v9538_v63 = vld [vmem:[%s11292_s1 + $0x100] sm:$0xff]  ;;  %v9618_v13 = vld [vmem:[%s11292_s1 + $0x150] sm:$0xff] }
 0x2f9   : > { %7694 = vmatprep.mubr.msk.f32.mxu1 %vm363_vm0, %v8355_v11  ;;  %1927 = vmatprep.mubr.f32.mxu0 %v11305_v7  ;;  %1526 = vst [vmem:[#allocation2 + $0x3b0] sm:$0xff] %v1052_v17  ;;  %v1056_v22 = vpop.f32.mrb[104].mxu1  ;;  %v9626_v17 = vld [vmem:[%s11292_s1 + $0x158] sm:$0xff] }
 0x2fa   : > { %1528 = vst [vmem:[#allocation2 + $0x3c0] sm:$0xff] %v1056_v22  ;;  %v1058_v25 = vpop.f32.mrb[105].mxu1  ;;  %v9642_v22 = vld [vmem:[%s11292_s1 + $0x168] sm:$0xff] }
 0x2fb   : > { %1529 = vst [vmem:[#allocation2 + $0x3c8] sm:$0xff] %v1058_v25  ;;  %v1062_v28 = vpop.f32.mrb[106].mxu1  ;;  %v9658_v25 = vld [vmem:[%s11292_s1 + $0x178] sm:$0xff] }
 0x2fc   : > { %7695 = vmatmul.mubr.msk.f32.gmra.mrb[132].mxu1 %vm363_vm0, %v8356_v19  ;;  %6894 = vmatmul.mubr.msk.f32.gmra.mrb[92].mxu0 %vm363_vm0, %v8353_v1  ;;  %1531 = vst [vmem:[#allocation2 + $0x3d8] sm:$0xff] %v1062_v28  ;;  %v1064_v29 = vpop.f32.mrb[107].mxu1  ;;  %v9554_v1 = vld [vmem:[%s11292_s1 + $0x110] sm:$0xff]  ;;  %v6980_v28 = vld [vmem:[%s8807_s27 + $0x80] sm:$0xff] }
 0x2fd   : > { %7697 = vmatprep.mubr.msk.f32.mxu1 %vm363_vm0, %v8357_v23  ;;  %1933 = vmatprep.mubr.f32.mxu0 %v11305_v7  ;;  %1532 = vst [vmem:[#allocation2 + $0x3e0] sm:$0xff] %v1064_v29  ;;  %v1068_v36 = vpop.f32.mrb[108].mxu1  ;;  %v6981_v29 = vld [vmem:[%s8807_s27 + $0x88] sm:$0xff] }
 0x2fe   : > { %1534 = vst [vmem:[#allocation2 + $0x3f0] sm:$0xff] %v1068_v36  ;;  %v1070_v38 = vpop.f32.mrb[109].mxu1  ;;  %v6983_v36 = vld [vmem:[%s8807_s27 + $0x98] sm:$0xff] }
 0x2ff   : > { %1535 = vst [vmem:[#allocation2 + $0x3f8] sm:$0xff] %v1070_v38  ;;  %v1074_v40 = vpop.f32.mrb[110].mxu1  ;;  %v6985_v38 = vld [vmem:[%s8807_s27 + $0xa8] sm:$0xff] }
 0x300   : > { %7698 = vmatmul.mubr.msk.f32.gmra.mrb[134].mxu1 %vm363_vm0, %v8358_v34  ;;  %6895 = vmatmul.mubr.msk.f32.gmra.mrb[94].mxu0 %vm363_vm0, %v8354_v6  ;;  %1537 = vst [vmem:[#allocation2 + $0x408] sm:$0xff] %v1074_v40  ;;  %v1076_v18 = vpop.f32.mrb[111].mxu1  ;;  %v9586_v6 = vld [vmem:[%s11292_s1 + $0x130] sm:$0xff] }
 0x301   : > { %7700 = vmatprep.mubr.msk.f32.mxu1 %vm363_vm0, %v8359_v37  ;;  %1939 = vmatprep.mubr.f32.mxu0 %v11305_v7  ;;  %1538 = vst [vmem:[#allocation2 + $0x410] sm:$0xff] %v1076_v18  ;;  %v1080_v42 = vpop.f32.mrb[112].mxu1  ;;  %v6986_v40 = vld [vmem:[%s8807_s27 + $0xb0] sm:$0xff]  ;;  %v6987_v18 = vld [vmem:[%s8807_s27 + $0xb8] sm:$0xff] }
 0x302   : > { %1540 = vst [vmem:[#allocation2 + $0x420] sm:$0xff] %v1080_v42  ;;  %v1082_v44 = vpop.f32.mrb[113].mxu1 }
 0x303   : > { %1541 = vst [vmem:[#allocation2 + $0x428] sm:$0xff] %v1082_v44  ;;  %v1086_v46 = vpop.f32.mrb[114].mxu1 }
 0x304   : > { %7701 = vmatmul.mubr.msk.f32.gmra.mrb[136].mxu1 %vm363_vm0, %v8360_v41  ;;  %6896 = vmatmul.mubr.msk.f32.gmra.mrb[96].mxu0 %vm363_vm0, %v8355_v11  ;;  %1543 = vst [vmem:[#allocation2 + $0x438] sm:$0xff] %v1086_v46  ;;  %v1088_v32 = vpop.f32.mrb[115].mxu1  ;;  %v9602_v11 = vld [vmem:[%s11292_s1 + $0x140] sm:$0xff] }
 0x305   : > { %7703 = vmatprep.mubr.msk.f32.mxu1 %vm363_vm0, %v8361_v43  ;;  %1945 = vmatprep.mubr.f32.mxu0 %v11305_v7  ;;  %1544 = vst [vmem:[#allocation2 + $0x440] sm:$0xff] %v1088_v32  ;;  %v1092_v49 = vpop.f32.mrb[116].mxu1 }
 0x306   : > { %1546 = vst [vmem:[#allocation2 + $0x450] sm:$0xff] %v1092_v49  ;;  %v1094_v51 = vpop.f32.mrb[117].mxu1 }
 0x307   : > { %1547 = vst [vmem:[#allocation2 + $0x458] sm:$0xff] %v1094_v51  ;;  %v1098_v45 = vpop.f32.mrb[118].mxu1 }
 0x308   : > { %7704 = vmatmul.mubr.msk.f32.gmra.mrb[138].mxu1 %vm363_vm0, %v8362_v48  ;;  %6897 = vmatmul.mubr.msk.f32.gmra.mrb[98].mxu0 %vm363_vm0, %v8356_v19  ;;  %1549 = vst [vmem:[#allocation2 + $0x468] sm:$0xff] %v1098_v45  ;;  %v1100_v33 = vpop.f32.mrb[119].mxu1  ;;  %v9634_v19 = vld [vmem:[%s11292_s1 + $0x160] sm:$0xff] }
 0x309   : > { %7706 = vmatprep.mubr.msk.f32.mxu1 %vm363_vm0, %v8363_v50  ;;  %1951 = vmatprep.mubr.f32.mxu0 %v11305_v7  ;;  %1550 = vst [vmem:[#allocation2 + $0x470] sm:$0xff] %v1100_v33 }
 0x30c   : > { %7707 = vmatmul.mubr.msk.f32.gmra.mrb[140].mxu1 %vm363_vm0, %v8364_v52  ;;  %6898 = vmatmul.mubr.msk.f32.gmra.mrb[100].mxu0 %vm363_vm0, %v8357_v23  ;;  %v9650_v23 = vld [vmem:[%s11292_s1 + $0x170] sm:$0xff] }
 0x30d   : > { %7709 = vmatprep.mubr.msk.f32.mxu1 %vm363_vm0, %v8365_v53  ;;  %1957 = vmatprep.mubr.f32.mxu0 %v11305_v7 }
 0x310   : > { %7710 = vmatmul.mubr.msk.f32.gmra.mrb[142].mxu1 %vm363_vm0, %v8366_v54  ;;  %6899 = vmatmul.mubr.msk.f32.gmra.mrb[102].mxu0 %vm363_vm0, %v8358_v34  ;;  %v6982_v34 = vld [vmem:[%s8807_s27 + $0x90] sm:$0xff] }
 0x311   : > { %7712 = vmatprep.mubr.msk.f32.mxu1 %vm363_vm0, %v8367_v55  ;;  %1963 = vmatprep.mubr.f32.mxu0 %v11305_v7 }
 0x314   : > { %7713 = vmatmul.mubr.msk.f32.gmra.mrb[144].mxu1 %vm363_vm0, %v8368_v56  ;;  %6900 = vmatmul.mubr.msk.f32.gmra.mrb[104].mxu0 %vm363_vm0, %v8359_v37  ;;  %v6984_v37 = vld [vmem:[%s8807_s27 + $0xa0] sm:$0xff] }
 0x315   : > { %7715 = vmatprep.mubr.msk.f32.mxu1 %vm363_vm0, %v8369_v57  ;;  %1969 = vmatprep.mubr.f32.mxu0 %v11305_v7 }
 0x318   : > { %7716 = vmatmul.mubr.msk.f32.gmra.mrb[146].mxu1 %vm363_vm0, %v8370_v58  ;;  %6901 = vmatmul.mubr.msk.f32.gmra.mrb[106].mxu0 %vm363_vm0, %v8360_v41 }
 0x319   : > { %7718 = vmatprep.mubr.msk.f32.mxu1 %vm363_vm0, %v9506_v59  ;;  %1975 = vmatprep.mubr.f32.mxu0 %v11305_v7 }
 0x31c   : > { %7719 = vmatmul.mubr.msk.f32.gmra.mrb[148].mxu1 %vm363_vm0, %v9514_v60  ;;  %6902 = vmatmul.mubr.msk.f32.gmra.mrb[108].mxu0 %vm363_vm0, %v8361_v43 }
 0x31d   : > { %7721 = vmatprep.mubr.msk.f32.mxu1 %vm363_vm0, %v9522_v61  ;;  %1981 = vmatprep.mubr.f32.mxu0 %v11305_v7 }
 0x320   : > { %7722 = vmatmul.mubr.msk.f32.gmra.mrb[150].mxu1 %vm363_vm0, %v9530_v62  ;;  %6903 = vmatmul.mubr.msk.f32.gmra.mrb[110].mxu0 %vm363_vm0, %v8362_v48 }
 0x321   : > { %7724 = vmatprep.mubr.msk.f32.mxu1 %vm363_vm0, %v9538_v63  ;;  %1987 = vmatprep.mubr.f32.mxu0 %v11305_v7 }
 0x324   : > { %7725 = vmatmul.mubr.msk.f32.gmra.mrb[152].mxu1 %vm363_vm0, %v9546_v0  ;;  %6904 = vmatmul.mubr.msk.f32.gmra.mrb[112].mxu0 %vm363_vm0, %v8363_v50 }
 0x325   : > { %7727 = vmatprep.mubr.msk.f32.mxu1 %vm363_vm0, %v9554_v1  ;;  %1993 = vmatprep.mubr.f32.mxu0 %v11305_v7 }
 0x328   : > { %7728 = vmatmul.mubr.msk.f32.gmra.mrb[154].mxu1 %vm363_vm0, %v9562_v2  ;;  %6905 = vmatmul.mubr.msk.f32.gmra.mrb[114].mxu0 %vm363_vm0, %v8364_v52 }
 0x329   : > { %7730 = vmatprep.mubr.msk.f32.mxu1 %vm363_vm0, %v9570_v4  ;;  %1999 = vmatprep.mubr.f32.mxu0 %v11305_v7 }
 0x32c   : > { %7731 = vmatmul.mubr.msk.f32.gmra.mrb[156].mxu1 %vm363_vm0, %v9578_v5  ;;  %6906 = vmatmul.mubr.msk.f32.gmra.mrb[116].mxu0 %vm363_vm0, %v8365_v53 }
 0x32d   : > { %7733 = vmatprep.mubr.msk.f32.mxu1 %vm363_vm0, %v9586_v6  ;;  %2005 = vmatprep.mubr.f32.mxu0 %v11305_v7 }
 0x330   : > { %7734 = vmatmul.mubr.msk.f32.gmra.mrb[158].mxu1 %vm363_vm0, %v9594_v10  ;;  %6907 = vmatmul.mubr.msk.f32.gmra.mrb[118].mxu0 %vm363_vm0, %v8366_v54 }
 0x331   : > { %7736 = vmatprep.mubr.msk.f32.mxu1 %vm363_vm0, %v9602_v11  ;;  %2011 = vmatprep.mubr.f32.mxu0 %v11305_v7 }
 0x334   : > { %7737 = vmatmul.mubr.msk.f32.gmra.mrb[160].mxu1 %vm363_vm0, %v9610_v12  ;;  %6908 = vmatmul.mubr.msk.f32.gmra.mrb[120].mxu0 %vm363_vm0, %v8367_v55 }
 0x335   : > { %7739 = vmatprep.mubr.msk.f32.mxu1 %vm363_vm0, %v9618_v13  ;;  %2017 = vmatprep.mubr.f32.mxu0 %v11305_v7 }
 0x338   : > { %7740 = vmatmul.mubr.msk.f32.gmra.mrb[162].mxu1 %vm363_vm0, %v9626_v17  ;;  %6909 = vmatmul.mubr.msk.f32.gmra.mrb[122].mxu0 %vm363_vm0, %v8368_v56 }
 0x339   : > { %7742 = vmatprep.mubr.msk.f32.mxu1 %vm363_vm0, %v9634_v19  ;;  %2023 = vmatprep.mubr.f32.mxu0 %v11305_v7 }
 0x33c   : > { %7743 = vmatmul.mubr.msk.f32.gmra.mrb[164].mxu1 %vm363_vm0, %v9642_v22  ;;  %6910 = vmatmul.mubr.msk.f32.gmra.mrb[124].mxu0 %vm363_vm0, %v8369_v57 }
 0x33d   : > { %7745 = vmatprep.mubr.msk.f32.mxu1 %vm363_vm0, %v9650_v23  ;;  %2029 = vmatprep.mubr.f32.mxu0 %v11305_v7 }
 0x340   : > { %7746 = vmatmul.mubr.msk.f32.gmra.mrb[166].mxu1 %vm363_vm0, %v9658_v25  ;;  %6911 = vmatmul.mubr.msk.f32.gmra.mrb[126].mxu0 %vm363_vm0, %v8370_v58 }
 0x341   : > { %2703 = vmatprep.mubr.f32.mxu1 %v11305_v7  ;;  %2035 = vmatprep.mubr.f32.mxu0 %v11305_v7 }
 0x344   : > { %6988 = vmatmul.mubr.msk.f32.vlgmr.msra.gmra.mrb[168].mxu1 %vm363_vm0, %v6980_v28  ;;  %6912 = vmatmul.mubr.msk.f32.gmra.mrb[128].mxu0 %vm363_vm0, %v9506_v59 }
 0x345   : > { %2709 = vmatprep.mubr.f32.mxu1 %v11305_v7  ;;  %8127 = vmatpush3.bf16.msra.mxu1 %v8836_v27 }
 0x346   : > { %8129 = vmatprep.subr.bf16.mxu1 %v8841_v31  ;;  %2041 = vmatprep.mubr.f32.mxu0 %v11305_v7 }
 0x348   : > { %6989 = vmatmul.mubr.msk.f32.gmra.mrb[170].mxu1 %vm363_vm0, %v6981_v29  ;;  %6913 = vmatmul.mubr.msk.f32.gmra.mrb[130].mxu0 %vm363_vm0, %v9514_v60 }
 0x349   : > { %2715 = vmatprep.mubr.f32.mxu1 %v11305_v7  ;;  %8131 = vmatpush3.bf16.msra.mxu1 %v8841_v31 }
 0x34a   : > { %8133 = vmatprep.subr.bf16.mxu1 %v8848_v35  ;;  %2047 = vmatprep.mubr.f32.mxu0 %v11305_v7 }
 0x34c   : > { %6990 = vmatmul.mubr.msk.f32.gmra.mrb[172].mxu1 %vm363_vm0, %v6982_v34  ;;  %6914 = vmatmul.mubr.msk.f32.gmra.mrb[132].mxu0 %vm363_vm0, %v9522_v61 }
 0x34d   : > { %2721 = vmatprep.mubr.f32.mxu1 %v11305_v7  ;;  %8135 = vmatpush3.bf16.msra.mxu1 %v8848_v35 }
 0x34e   : > { %8137 = vmatprep.subr.bf16.mxu1 %v8855_v39  ;;  %2053 = vmatprep.mubr.f32.mxu0 %v11305_v7 }
 0x350   : > { %6991 = vmatmul.mubr.msk.f32.gmra.mrb[174].mxu1 %vm363_vm0, %v6983_v36  ;;  %6915 = vmatmul.mubr.msk.f32.gmra.mrb[134].mxu0 %vm363_vm0, %v9530_v62 }
 0x351   : > { %2727 = vmatprep.mubr.f32.mxu1 %v11305_v7  ;;  %8139 = vmatpush3.bf16.msra.mxu1 %v8855_v39 }
 0x352   : > { %2059 = vmatprep.mubr.f32.mxu0 %v11305_v7 }
 0x354   : > { %6992 = vmatmul.mubr.msk.f32.gmra.mrb[176].mxu1 %vm363_vm0, %v6984_v37  ;;  %6916 = vmatmul.mubr.msk.f32.gmra.mrb[136].mxu0 %vm363_vm0, %v9538_v63 }
 0x355   : > { %2733 = vmatprep.mubr.f32.mxu1 %v11305_v7  ;;  %2065 = vmatprep.mubr.f32.mxu0 %v11305_v7 }
 0x358   : > { %6993 = vmatmul.mubr.msk.f32.gmra.mrb[178].mxu1 %vm363_vm0, %v6985_v38  ;;  %6917 = vmatmul.mubr.msk.f32.gmra.mrb[138].mxu0 %vm363_vm0, %v9546_v0 }
 0x359   : > { %2739 = vmatprep.mubr.f32.mxu1 %v11305_v7  ;;  %2071 = vmatprep.mubr.f32.mxu0 %v11305_v7 }
 0x35c   : > { %6994 = vmatmul.mubr.msk.f32.gmra.mrb[180].mxu1 %vm363_vm0, %v6986_v40  ;;  %6918 = vmatmul.mubr.msk.f32.gmra.mrb[140].mxu0 %vm363_vm0, %v9554_v1 }
 0x35d   : > { %2745 = vmatprep.mubr.f32.mxu1 %v11305_v7  ;;  %2077 = vmatprep.mubr.f32.mxu0 %v11305_v7 }
 0x360   : > { %6995 = vmatmul.mubr.msk.f32.gmra.mrb[182].mxu1 %vm363_vm0, %v6987_v18  ;;  %6919 = vmatmul.mubr.msk.f32.gmra.mrb[142].mxu0 %vm363_vm0, %v9562_v2 }
 0x361   : > { %7764 = vmatprep.mubr.msk.f32.mxu1 %vm363_vm0, %v6980_v28  ;;  %2083 = vmatprep.mubr.f32.mxu0 %v11305_v7 }
 0x364   : > { %7765 = vmatmul.mubr.msk.f32.vlgmr.msra.gmra.mrb[184].mxu1 %vm363_vm0, %v6981_v29  ;;  %6920 = vmatmul.mubr.msk.f32.gmra.mrb[144].mxu0 %vm363_vm0, %v9570_v4 }
 0x365   : > { %7767 = vmatprep.mubr.msk.f32.mxu1 %vm363_vm0, %v6982_v34  ;;  %2089 = vmatprep.mubr.f32.mxu0 %v11305_v7 }
 0x368   : > { %7768 = vmatmul.mubr.msk.f32.gmra.mrb[186].mxu1 %vm363_vm0, %v6983_v36  ;;  %6921 = vmatmul.mubr.msk.f32.gmra.mrb[146].mxu0 %vm363_vm0, %v9578_v5 }
 0x369   : > { %7770 = vmatprep.mubr.msk.f32.mxu1 %vm363_vm0, %v6984_v37  ;;  %2095 = vmatprep.mubr.f32.mxu0 %v11305_v7 }
 0x36c   : > { %7771 = vmatmul.mubr.msk.f32.gmra.mrb[188].mxu1 %vm363_vm0, %v6985_v38  ;;  %6922 = vmatmul.mubr.msk.f32.gmra.mrb[148].mxu0 %vm363_vm0, %v9586_v6 }
 0x36d   : > { %7773 = vmatprep.mubr.msk.f32.mxu1 %vm363_vm0, %v6986_v40  ;;  %2101 = vmatprep.mubr.f32.mxu0 %v11305_v7 }
 0x370   : > { %7774 = vmatmul.mubr.msk.f32.gmra.mrb[190].mxu1 %vm363_vm0, %v6987_v18  ;;  %6923 = vmatmul.mubr.msk.f32.gmra.mrb[150].mxu0 %vm363_vm0, %v9594_v10 }
 0x371   : > { %2107 = vmatprep.mubr.f32.mxu0 %v11305_v7  ;;  %2921 = vmatprep.mubr.f32.mxu1 %v11305_v7 }
 0x374   : > { %6924 = vmatmul.mubr.msk.f32.gmra.mrb[152].mxu0 %vm363_vm0, %v9602_v11 }
 0x375   : > { %2113 = vmatprep.mubr.f32.mxu0 %v11305_v7 }
 0x378   : > { %6925 = vmatmul.mubr.msk.f32.gmra.mrb[154].mxu0 %vm363_vm0, %v9610_v12 }
 0x379   : > { %2119 = vmatprep.mubr.f32.mxu0 %v11305_v7 }
 0x37c   : > { %6926 = vmatmul.mubr.msk.f32.gmra.mrb[156].mxu0 %vm363_vm0, %v9618_v13 }
 0x37d   : > { %2125 = vmatprep.mubr.f32.mxu0 %v11305_v7 }
 0x380   : > { %6927 = vmatmul.mubr.msk.f32.gmra.mrb[158].mxu0 %vm363_vm0, %v9626_v17 }
 0x381   : > { %2131 = vmatprep.mubr.f32.mxu0 %v11305_v7 }
 0x384   : > { %6928 = vmatmul.mubr.msk.f32.gmra.mrb[160].mxu0 %vm363_vm0, %v9634_v19 }
 0x385   : > { %2137 = vmatprep.mubr.f32.mxu0 %v11305_v7 }
 0x388   : > { %6929 = vmatmul.mubr.msk.f32.gmra.mrb[162].mxu0 %vm363_vm0, %v9642_v22 }
 0x389   : > { %2143 = vmatprep.mubr.f32.mxu0 %v11305_v7 }
 0x38c   : > { %6930 = vmatmul.mubr.msk.f32.gmra.mrb[164].mxu0 %vm363_vm0, %v9650_v23 }
 0x38d   : > { %2149 = vmatprep.mubr.f32.mxu0 %v11305_v7 }
 0x390   : > { %6931 = vmatmul.mubr.msk.f32.gmra.mrb[166].mxu0 %vm363_vm0, %v9658_v25 }
 0x391   : > { %7792 = vmatprep.mubr.msk.f32.mxu0 %vm363_vm0, %v9334_v16 }
 0x3a7   : > { %v1869_v59 = vpop.f32.mrb[72].mxu0 }
 0x3a8   : > { %2462 = vst [vmem:[#allocation2 + $0x480] sm:$0xff] %v1869_v59  ;;  %v1871_v60 = vpop.f32.mrb[73].mxu0 }
 0x3a9   : > { %2463 = vst [vmem:[#allocation2 + $0x488] sm:$0xff] %v1871_v60 }
 0x3ab   : > { %v1875_v63 = vpop.f32.mrb[74].mxu0 }
 0x3ac   : > { %2465 = vst [vmem:[#allocation2 + $0x498] sm:$0xff] %v1875_v63  ;;  %v1877_v0 = vpop.f32.mrb[75].mxu0 }
 0x3ad   : > { %2466 = vst [vmem:[#allocation2 + $0x4a0] sm:$0xff] %v1877_v0 }
 0x3af   : > { %v1881_v4 = vpop.f32.mrb[76].mxu0 }
 0x3b0   : > { %2468 = vst [vmem:[#allocation2 + $0x4b0] sm:$0xff] %v1881_v4  ;;  %v1883_v5 = vpop.f32.mrb[77].mxu0 }
 0x3b1   : > { %2469 = vst [vmem:[#allocation2 + $0x4b8] sm:$0xff] %v1883_v5 }
 0x3b3   : > { %v1887_v11 = vpop.f32.mrb[78].mxu0 }
 0x3b4   : > { %2471 = vst [vmem:[#allocation2 + $0x4c8] sm:$0xff] %v1887_v11  ;;  %v1889_v12 = vpop.f32.mrb[79].mxu0 }
 0x3b5   : > { %2472 = vst [vmem:[#allocation2 + $0x4d0] sm:$0xff] %v1889_v12 }
 0x3b7   : > { %v7678_v41 = vpop.f32.mrb[120].mxu1  ;;  %v1893_v19 = vpop.f32.mrb[80].mxu0 }
 0x3b8   : > { %2467 = vst [vmem:[#allocation2 + $0x4a8] sm:$0xff] %v7678_v41  ;;  %v2222_v42 = vpop.f32.mrb[121].mxu1  ;;  %2474 = vst [vmem:[#allocation2 + $0x4e0] sm:$0xff] %v1893_v19  ;;  %v1895_v22 = vpop.f32.mrb[81].mxu0 }
 0x3b9   : > { %2464 = vst [vmem:[#allocation2 + $0x490] sm:$0xff] %v2222_v42  ;;  %2475 = vst [vmem:[#allocation2 + $0x4e8] sm:$0xff] %v1895_v22 }
 0x3bb   : > { %v7681_v43 = vpop.f32.mrb[122].mxu1  ;;  %v1899_v28 = vpop.f32.mrb[82].mxu0 }
 0x3bc   : > { %2473 = vst [vmem:[#allocation2 + $0x4d8] sm:$0xff] %v7681_v43  ;;  %v2232_v44 = vpop.f32.mrb[123].mxu1  ;;  %2477 = vst [vmem:[#allocation2 + $0x4f8] sm:$0xff] %v1899_v28  ;;  %v1901_v29 = vpop.f32.mrb[83].mxu0 }
 0x3bd   : > { %2470 = vst [vmem:[#allocation2 + $0x4c0] sm:$0xff] %v2232_v44  ;;  %2478 = vst [vmem:[#allocation2 + $0x500] sm:$0xff] %v1901_v29 }
 0x3bf   : > { %v7684_v46 = vpop.f32.mrb[124].mxu1  ;;  %v1905_v37 = vpop.f32.mrb[84].mxu0 }
 0x3c0   : > { %2479 = vst [vmem:[#allocation2 + $0x508] sm:$0xff] %v7684_v46  ;;  %v2242_v32 = vpop.f32.mrb[125].mxu1  ;;  %2480 = vst [vmem:[#allocation2 + $0x510] sm:$0xff] %v1905_v37  ;;  %v1907_v38 = vpop.f32.mrb[85].mxu0 }
 0x3c1   : > { %2476 = vst [vmem:[#allocation2 + $0x4f0] sm:$0xff] %v2242_v32  ;;  %2481 = vst [vmem:[#allocation2 + $0x518] sm:$0xff] %v1907_v38 }
 0x3c3   : > { %v7687_v48 = vpop.f32.mrb[126].mxu1  ;;  %v1911_v41 = vpop.f32.mrb[86].mxu0 }
 0x3c4   : > { %2485 = vst [vmem:[#allocation2 + $0x538] sm:$0xff] %v7687_v48  ;;  %v2252_v49 = vpop.f32.mrb[127].mxu1  ;;  %2483 = vst [vmem:[#allocation2 + $0x528] sm:$0xff] %v1911_v41  ;;  %v1913_v42 = vpop.f32.mrb[87].mxu0 }
 0x3c5   : > { %2482 = vst [vmem:[#allocation2 + $0x520] sm:$0xff] %v2252_v49  ;;  %2484 = vst [vmem:[#allocation2 + $0x530] sm:$0xff] %v1913_v42 }
 0x3c7   : > { %v7690_v50 = vpop.f32.mrb[128].mxu1  ;;  %v1917_v46 = vpop.f32.mrb[88].mxu0 }
 0x3c8   : > { %2491 = vst [vmem:[#allocation2 + $0x568] sm:$0xff] %v7690_v50  ;;  %v2262_v51 = vpop.f32.mrb[129].mxu1  ;;  %2486 = vst [vmem:[#allocation2 + $0x540] sm:$0xff] %v1917_v46  ;;  %v1919_v32 = vpop.f32.mrb[89].mxu0 }
 0x3c9   : > { %2488 = vst [vmem:[#allocation2 + $0x550] sm:$0xff] %v2262_v51  ;;  %2487 = vst [vmem:[#allocation2 + $0x548] sm:$0xff] %v1919_v32 }
 0x3cb   : > { %v7693_v16 = vpop.f32.mrb[130].mxu1  ;;  %v1923_v50 = vpop.f32.mrb[90].mxu0 }
 0x3cc   : > { %2497 = vst [vmem:[#allocation2 + $0x598] sm:$0xff] %v7693_v16  ;;  %v2272_v45 = vpop.f32.mrb[131].mxu1  ;;  %2489 = vst [vmem:[#allocation2 + $0x558] sm:$0xff] %v1923_v50  ;;  %v1925_v51 = vpop.f32.mrb[91].mxu0 }
 0x3cd   : > { %2494 = vst [vmem:[#allocation2 + $0x580] sm:$0xff] %v2272_v45  ;;  %2490 = vst [vmem:[#allocation2 + $0x560] sm:$0xff] %v1925_v51 }
 0x3cf   : > { %v7696_v33 = vpop.f32.mrb[132].mxu1 }
 0x3d0   : > { %2503 = vst [vmem:[#allocation2 + $0x5c8] sm:$0xff] %v7696_v33  ;;  %v2282_v52 = vpop.f32.mrb[133].mxu1  ;;  %v1929_v33 = vpop.f32.mrb[92].mxu0 }
 0x3d1   : > { %2500 = vst [vmem:[#allocation2 + $0x5b0] sm:$0xff] %v2282_v52  ;;  %2492 = vst [vmem:[#allocation2 + $0x570] sm:$0xff] %v1929_v33  ;;  %v1931_v52 = vpop.f32.mrb[93].mxu0 }
 0x3d2   : > { %2493 = vst [vmem:[#allocation2 + $0x578] sm:$0xff] %v1931_v52 }
 0x3d3   : > { %v7699_v53 = vpop.f32.mrb[134].mxu1 }
 0x3d4   : > { %2509 = vst [vmem:[#allocation2 + $0x5f8] sm:$0xff] %v7699_v53  ;;  %v2292_v54 = vpop.f32.mrb[135].mxu1 }
 0x3d5   : > { %2506 = vst [vmem:[#allocation2 + $0x5e0] sm:$0xff] %v2292_v54 }
 0x3d7   : > { %v7702_v55 = vpop.f32.mrb[136].mxu1 }
 0x3d8   : > { %2515 = vst [vmem:[#allocation2 + $0x628] sm:$0xff] %v7702_v55  ;;  %v2302_v56 = vpop.f32.mrb[137].mxu1  ;;  %v1935_v55 = vpop.f32.mrb[94].mxu0 }
 0x3d9   : > { %2512 = vst [vmem:[#allocation2 + $0x610] sm:$0xff] %v2302_v56  ;;  %2495 = vst [vmem:[#allocation2 + $0x588] sm:$0xff] %v1935_v55  ;;  %v1937_v56 = vpop.f32.mrb[95].mxu0 }
 0x3da   : > { %2496 = vst [vmem:[#allocation2 + $0x590] sm:$0xff] %v1937_v56  ;;  %v1941_v59 = vpop.f32.mrb[96].mxu0 }
 0x3db   : > { %v7705_v57 = vpop.f32.mrb[138].mxu1  ;;  %2498 = vst [vmem:[#allocation2 + $0x5a0] sm:$0xff] %v1941_v59  ;;  %v1943_v60 = vpop.f32.mrb[97].mxu0 }
 0x3dc   : > { %2521 = vst [vmem:[#allocation2 + $0x658] sm:$0xff] %v7705_v57  ;;  %v2312_v58 = vpop.f32.mrb[139].mxu1  ;;  %2499 = vst [vmem:[#allocation2 + $0x5a8] sm:$0xff] %v1943_v60  ;;  %v1947_v63 = vpop.f32.mrb[98].mxu0 }
 0x3dd   : > { %2518 = vst [vmem:[#allocation2 + $0x640] sm:$0xff] %v2312_v58  ;;  %2501 = vst [vmem:[#allocation2 + $0x5b8] sm:$0xff] %v1947_v63  ;;  %v1949_v0 = vpop.f32.mrb[99].mxu0 }
 0x3de   : > { %2502 = vst [vmem:[#allocation2 + $0x5c0] sm:$0xff] %v1949_v0 }
 0x3df   : > { %v7708_v61 = vpop.f32.mrb[140].mxu1  ;;  %v1953_v4 = vpop.f32.mrb[100].mxu0 }
 0x3e0   : > { %2527 = vst [vmem:[#allocation2 + $0x688] sm:$0xff] %v7708_v61  ;;  %v2322_v62 = vpop.f32.mrb[141].mxu1  ;;  %2504 = vst [vmem:[#allocation2 + $0x5d0] sm:$0xff] %v1953_v4  ;;  %v1955_v5 = vpop.f32.mrb[101].mxu0  ;;  %v9768_v4 = vld [vmem:[%s11292_s1] sm:$0xff] }
 0x3e1   : > { %2524 = vst [vmem:[#allocation2 + $0x670] sm:$0xff] %v2322_v62  ;;  %2505 = vst [vmem:[#allocation2 + $0x5d8] sm:$0xff] %v1955_v5 }
 0x3e3   : > { %v7711_v1 = vpop.f32.mrb[142].mxu1  ;;  %v1959_v11 = vpop.f32.mrb[102].mxu0 }
 0x3e4   : > { %2533 = vst [vmem:[#allocation2 + $0x6b8] sm:$0xff] %v7711_v1  ;;  %v2332_v2 = vpop.f32.mrb[143].mxu1  ;;  %2507 = vst [vmem:[#allocation2 + $0x5e8] sm:$0xff] %v1959_v11  ;;  %v1961_v12 = vpop.f32.mrb[103].mxu0 }
 0x3e5   : > { %2530 = vst [vmem:[#allocation2 + $0x6a0] sm:$0xff] %v2332_v2  ;;  %2508 = vst [vmem:[#allocation2 + $0x5f0] sm:$0xff] %v1961_v12 }
 0x3e7   : > { %v7714_v6 = vpop.f32.mrb[144].mxu1 }
 0x3e8   : > { %2539 = vst [vmem:[#allocation2 + $0x6e8] sm:$0xff] %v7714_v6  ;;  %v2342_v10 = vpop.f32.mrb[145].mxu1 }
 0x3e9   : > { %2536 = vst [vmem:[#allocation2 + $0x6d0] sm:$0xff] %v2342_v10 }
 0x3eb   : > { %v7717_v13 = vpop.f32.mrb[146].mxu1 }
 0x3ec   : > { %2545 = vst [vmem:[#allocation2 + $0x718] sm:$0xff] %v7717_v13  ;;  %v2352_v17 = vpop.f32.mrb[147].mxu1 }
 0x3ed   : > { %2542 = vst [vmem:[#allocation2 + $0x700] sm:$0xff] %v2352_v17 }
 0x3ef   : > { %v7720_v23 = vpop.f32.mrb[148].mxu1 }
 0x3f0   : > { %2551 = vst [vmem:[#allocation2 + $0x748] sm:$0xff] %v7720_v23  ;;  %v2362_v25 = vpop.f32.mrb[149].mxu1  ;;  %v1965_v23 = vpop.f32.mrb[104].mxu0 }
 0x3f1   : > { %2548 = vst [vmem:[#allocation2 + $0x730] sm:$0xff] %v2362_v25  ;;  %2510 = vst [vmem:[#allocation2 + $0x600] sm:$0xff] %v1965_v23  ;;  %v1967_v25 = vpop.f32.mrb[105].mxu0 }
 0x3f2   : > { %2511 = vst [vmem:[#allocation2 + $0x608] sm:$0xff] %v1967_v25 }
 0x3f3   : > { %v7723_v34 = vpop.f32.mrb[150].mxu1 }
 0x3f4   : > { %2557 = vst [vmem:[#allocation2 + $0x778] sm:$0xff] %v7723_v34  ;;  %v2372_v36 = vpop.f32.mrb[151].mxu1  ;;  %v1971_v34 = vpop.f32.mrb[106].mxu0 }
 0x3f5   : > { %2554 = vst [vmem:[#allocation2 + $0x760] sm:$0xff] %v2372_v36  ;;  %2513 = vst [vmem:[#allocation2 + $0x618] sm:$0xff] %v1971_v34  ;;  %v1973_v36 = vpop.f32.mrb[107].mxu0 }
 0x3f6   : > { %2514 = vst [vmem:[#allocation2 + $0x620] sm:$0xff] %v1973_v36  ;;  %v1977_v41 = vpop.f32.mrb[108].mxu0  ;;  %v9786_v36 = vld [vmem:[%s11292_s1 + $0x8] sm:$0xff] }
 0x3f7   : > { %v7726_v40 = vpop.f32.mrb[152].mxu1  ;;  %2516 = vst [vmem:[#allocation2 + $0x630] sm:$0xff] %v1977_v41  ;;  %v1979_v42 = vpop.f32.mrb[109].mxu0  ;;  %v9810_v41 = vld [vmem:[%s11292_s1 + $0x18] sm:$0xff] }
 0x3f8   : > { %2563 = vst [vmem:[#allocation2 + $0x7a8] sm:$0xff] %v7726_v40  ;;  %v2382_v18 = vpop.f32.mrb[153].mxu1  ;;  %2517 = vst [vmem:[#allocation2 + $0x638] sm:$0xff] %v1979_v42  ;;  %v1983_v46 = vpop.f32.mrb[110].mxu0 }
 0x3f9   : > { %2560 = vst [vmem:[#allocation2 + $0x790] sm:$0xff] %v2382_v18  ;;  %2519 = vst [vmem:[#allocation2 + $0x648] sm:$0xff] %v1983_v46  ;;  %v1985_v32 = vpop.f32.mrb[111].mxu0 }
 0x3fa   : > { %2520 = vst [vmem:[#allocation2 + $0x650] sm:$0xff] %v1985_v32  ;;  %v9831_v32 = vld [vmem:[%s11292_s1 + $0x30] sm:$0xff] }
 0x3fb   : > { %v7729_v43 = vpop.f32.mrb[154].mxu1 }
 0x3fc   : > { %2569 = vst [vmem:[#allocation2 + $0x7d8] sm:$0xff] %v7729_v43  ;;  %v2392_v44 = vpop.f32.mrb[155].mxu1 }
 0x3fd   : > { %2566 = vst [vmem:[#allocation2 + $0x7c0] sm:$0xff] %v2392_v44 }
 0x3ff   : > { %v7732_v48 = vpop.f32.mrb[156].mxu1 }
 0x400   : > { %2575 = vst [vmem:[#allocation2 + $0x808] sm:$0xff] %v7732_v48  ;;  %v2402_v49 = vpop.f32.mrb[157].mxu1 }
 0x401   : > { %2572 = vst [vmem:[#allocation2 + $0x7f0] sm:$0xff] %v2402_v49 }
 0x403   : > { %v7735_v16 = vpop.f32.mrb[158].mxu1 }
 0x404   : > { %2581 = vst [vmem:[#allocation2 + $0x838] sm:$0xff] %v7735_v16  ;;  %v2412_v45 = vpop.f32.mrb[159].mxu1  ;;  %v1989_v16 = vpop.f32.mrb[112].mxu0 }
 0x405   : > { %2578 = vst [vmem:[#allocation2 + $0x820] sm:$0xff] %v2412_v45  ;;  %2522 = vst [vmem:[#allocation2 + $0x660] sm:$0xff] %v1989_v16  ;;  %v1991_v45 = vpop.f32.mrb[113].mxu0 }
 0x406   : > { %2523 = vst [vmem:[#allocation2 + $0x668] sm:$0xff] %v1991_v45  ;;  %v9862_v45 = vld [vmem:[%s11292_s1 + $0x48] sm:$0xff] }
 0x407   : > { %v7738_v53 = vpop.f32.mrb[160].mxu1 }
 0x408   : > { %2587 = vst [vmem:[#allocation2 + $0x868] sm:$0xff] %v7738_v53  ;;  %v2422_v54 = vpop.f32.mrb[161].mxu1  ;;  %v1995_v53 = vpop.f32.mrb[114].mxu0 }
 0x409   : > { %2584 = vst [vmem:[#allocation2 + $0x850] sm:$0xff] %v2422_v54  ;;  %2525 = vst [vmem:[#allocation2 + $0x678] sm:$0xff] %v1995_v53  ;;  %v1997_v54 = vpop.f32.mrb[115].mxu0 }
 0x40a   : > { %2526 = vst [vmem:[#allocation2 + $0x680] sm:$0xff] %v1997_v54  ;;  %v2001_v59 = vpop.f32.mrb[116].mxu0 }
 0x40b   : > { %v7741_v57 = vpop.f32.mrb[162].mxu1  ;;  %2528 = vst [vmem:[#allocation2 + $0x690] sm:$0xff] %v2001_v59  ;;  %v2003_v60 = vpop.f32.mrb[117].mxu0 }
 0x40c   : > { %2593 = vst [vmem:[#allocation2 + $0x898] sm:$0xff] %v7741_v57  ;;  %v2432_v58 = vpop.f32.mrb[163].mxu1  ;;  %2529 = vst [vmem:[#allocation2 + $0x698] sm:$0xff] %v2003_v60  ;;  %v2007_v0 = vpop.f32.mrb[118].mxu0 }
 0x40d   : > { %2590 = vst [vmem:[#allocation2 + $0x880] sm:$0xff] %v2432_v58  ;;  %2531 = vst [vmem:[#allocation2 + $0x6a8] sm:$0xff] %v2007_v0 }
 0x40f   : > { %v7744_v61 = vpop.f32.mrb[164].mxu1 }
 0x410   : > { %2599 = vst [vmem:[#allocation2 + $0x8c8] sm:$0xff] %v7744_v61  ;;  %v2442_v62 = vpop.f32.mrb[165].mxu1 }
 0x411   : > { %2596 = vst [vmem:[#allocation2 + $0x8b0] sm:$0xff] %v2442_v62 }
 0x413   : > { %v7747_v1 = vpop.f32.mrb[166].mxu1 }
 0x414   : > { %2605 = vst [vmem:[#allocation2 + $0x8f8] sm:$0xff] %v7747_v1  ;;  %v2452_v2 = vpop.f32.mrb[167].mxu1  ;;  %v2009_v1 = vpop.f32.mrb[119].mxu0 }
 0x415   : > { %2602 = vst [vmem:[#allocation2 + $0x8e0] sm:$0xff] %v2452_v2  ;;  %2532 = vst [vmem:[#allocation2 + $0x6b0] sm:$0xff] %v2009_v1 }
 0x417   : > { %v2705_v6 = vpop.f32.mrb[168].mxu1 }
 0x418   : > { %v2707_v10 = vpop.f32.mrb[169].mxu1 }
 0x41b   : > { %v2711_v13 = vpop.f32.mrb[170].mxu1 }
 0x41c   : > { %v8142_v17 = vpack.c.bf16 %v2711_v13, %v2705_v6  ;;  %v2713_v19 = vpop.f32.mrb[171].mxu1 }
 0x41d   : > { %v8140_v22 = vpack.c.bf16 %v2713_v19, %v2707_v10  ;;  %v2013_v10 = vpop.f32.mrb[120].mxu0 }
 0x41e   : > { %2534 = vst [vmem:[#allocation2 + $0x6c0] sm:$0xff] %v2013_v10  ;;  %v2015_v11 = vpop.f32.mrb[121].mxu0  ;;  %v9922_v10 = vld [vmem:[%s11292_s1 + $0x80] sm:$0xff] }
 0x41f   : > { %v2717_v28 = vpop.f32.mrb[172].mxu1  ;;  %8141 = vmatprep.subr.bf16.mxu1 %v8140_v22  ;;  %2535 = vst [vmem:[#allocation2 + $0x6c8] sm:$0xff] %v2015_v11  ;;  %v2019_v19 = vpop.f32.mrb[122].mxu0 }
 0x420   : > { %v2719_v29 = vpop.f32.mrb[173].mxu1  ;;  %8143 = vmatpush1.bf16.msra.mxu1 %v8142_v17  ;;  %2537 = vst [vmem:[#allocation2 + $0x6d8] sm:$0xff] %v2019_v19  ;;  %v2021_v22 = vpop.f32.mrb[123].mxu0 }
 0x421   : > { %2538 = vst [vmem:[#allocation2 + $0x6e0] sm:$0xff] %v2021_v22  ;;  %v9939_v22 = vld [vmem:[%s11292_s1 + $0x90] sm:$0xff] }
 0x423   : > { %v2723_v37 = vpop.f32.mrb[174].mxu1 }
 0x424   : > { %v8146_v38 = vpack.c.bf16 %v2723_v37, %v2717_v28  ;;  %v2725_v40 = vpop.f32.mrb[175].mxu1 }
 0x425   : > { %v8144_v18 = vpack.c.bf16 %v2725_v40, %v2719_v29 }
 0x427   : > { %v2729_v43 = vpop.f32.mrb[176].mxu1  ;;  %8145 = vmatprep.subr.bf16.mxu1 %v8144_v18 }
 0x428   : > { %v2731_v44 = vpop.f32.mrb[177].mxu1  ;;  %8147 = vmatpush1.bf16.msra.mxu1 %v8146_v38 }
 0x42b   : > { %v2735_v48 = vpop.f32.mrb[178].mxu1 }
 0x42c   : > { %v8150_v49 = vpack.c.bf16 %v2735_v48, %v2729_v43  ;;  %v2737_v50 = vpop.f32.mrb[179].mxu1 }
 0x42d   : > { %v8148_v51 = vpack.c.bf16 %v2737_v50, %v2731_v44 }
 0x42f   : > { %v2741_v33 = vpop.f32.mrb[180].mxu1  ;;  %8149 = vmatprep.subr.bf16.mxu1 %v8148_v51 }
 0x430   : > { %v2743_v52 = vpop.f32.mrb[181].mxu1  ;;  %8151 = vmatpush1.bf16.msra.mxu1 %v8150_v49  ;;  %v9843_v49 = vld [vmem:[%s11292_s1 + $0x38] sm:$0xff] }
 0x433   : > { %v2747_v55 = vpop.f32.mrb[182].mxu1 }
 0x434   : > { %v8154_v56 = vpack.c.bf16 %v2747_v55, %v2741_v33  ;;  %v2749_v57 = vpop.f32.mrb[183].mxu1  ;;  %v9871_v33 = vld [vmem:[%s11292_s1 + $0x50] sm:$0xff]  ;;  %v9879_v55 = vld [vmem:[%s11292_s1 + $0x58] sm:$0xff] }
 0x435   : > { %v8152_v58 = vpack.c.bf16 %v2749_v57, %v2743_v52  ;;  %v9888_v57 = vld [vmem:[%s11292_s1 + $0x60] sm:$0xff] }
 0x437   : > { %v7766_v61 = vpop.f32.mrb[184].mxu1  ;;  %8153 = vmatprep.subr.bf16.mxu1 %v8152_v58 }
 0x438   : > { %v2818_v62 = vpop.f32.mrb[185].mxu1  ;;  %8155 = vmatpush1.bf16.msra.mxu1 %v8154_v56 }
 0x439   : > { %v8156_v63 = vpack.c.bf16 %v7766_v61, %v2818_v62  ;;  %v9896_v61 = vld [vmem:[%s11292_s1 + $0x68] sm:$0xff] }
 0x43b   : > { %8157 = vmatprep.subr.bf16.mxu0 %v8156_v63  ;;  %v7769_v2 = vpop.f32.mrb[186].mxu1  ;;  %7004 = vmatmul.mubr.msk.f32.vlgmr.msra.gmra.mrb[192].mxu1 %vm363_vm0, %v9768_v4 }
 0x43c   : > { %8159 = vmatpush3.bf16.msra.mxu0 %v8156_v63  ;;  %v2828_v5 = vpop.f32.mrb[187].mxu1  ;;  %2927 = vmatprep.mubr.f32.mxu1 %v11305_v7  ;;  %v9905_v63 = vld [vmem:[%s11292_s1 + $0x70] sm:$0xff] }
 0x43d   : > { %v8160_v6 = vpack.c.bf16 %v7769_v2, %v2828_v5  ;;  %v9913_v5 = vld [vmem:[%s11292_s1 + $0x78] sm:$0xff] }
 0x43f   : > { %8161 = vmatprep.subr.bf16.mxu0 %v8160_v6  ;;  %v7772_v12 = vpop.f32.mrb[188].mxu1  ;;  %7005 = vmatmul.mubr.msk.f32.gmra.mrb[194].mxu1 %vm363_vm0, %v9352_v24  ;;  %v2025_v24 = vpop.f32.mrb[124].mxu0 }
 0x440   : > { %8163 = vmatpush3.bf16.msra.mxu0 %v8160_v6  ;;  %v2838_v13 = vpop.f32.mrb[189].mxu1  ;;  %2933 = vmatprep.mubr.f32.mxu1 %v11305_v7  ;;  %2540 = vst [vmem:[#allocation2 + $0x6f0] sm:$0xff] %v2025_v24  ;;  %v2027_v29 = vpop.f32.mrb[125].mxu0  ;;  %v9947_v24 = vld [vmem:[%s11292_s1 + $0x98] sm:$0xff] }
 0x441   : > { %v8164_v17 = vpack.c.bf16 %v7772_v12, %v2838_v13  ;;  %2541 = vst [vmem:[#allocation2 + $0x6f8] sm:$0xff] %v2027_v29  ;;  %v2031_v34 = vpop.f32.mrb[126].mxu0 }
 0x442   : > { %2543 = vst [vmem:[#allocation2 + $0x708] sm:$0xff] %v2031_v34  ;;  %v9956_v34 = vld [vmem:[%s11292_s1 + $0xa0] sm:$0xff] }
 0x443   : > { %v7775_v23 = vpop.f32.mrb[190].mxu1  ;;  %8165 = vmatprep.subr.bf16.mxu0 %v8164_v17  ;;  %7006 = vmatmul.mubr.msk.f32.gmra.mrb[196].mxu1 %vm363_vm0, %v9361_v30  ;;  %v2033_v30 = vpop.f32.mrb[127].mxu0 }
 0x444   : > { %v2848_v25 = vpop.f32.mrb[191].mxu1  ;;  %8167 = vmatpush3.bf16.msra.mxu0 %v8164_v17  ;;  %2939 = vmatprep.mubr.f32.mxu1 %v11305_v7  ;;  %2544 = vst [vmem:[#allocation2 + $0x710] sm:$0xff] %v2033_v30  ;;  %v2037_v37 = vpop.f32.mrb[128].mxu0  ;;  %v9930_v17 = vld [vmem:[%s11292_s1 + $0x88] sm:$0xff] }
 0x445   : > { %v8168_v28 = vpack.c.bf16 %v7775_v23, %v2848_v25  ;;  %2546 = vst [vmem:[#allocation2 + $0x720] sm:$0xff] %v2037_v37  ;;  %v2039_v38 = vpop.f32.mrb[129].mxu0 }
 0x446   : > { %2547 = vst [vmem:[#allocation2 + $0x728] sm:$0xff] %v2039_v38  ;;  %v2043_v40 = vpop.f32.mrb[130].mxu0 }
 0x447   : > { %8169 = vmatprep.subr.bf16.mxu0 %v8168_v28  ;;  %7007 = vmatmul.mubr.msk.f32.gmra.mrb[198].mxu1 %vm363_vm0, %v9371_v47  ;;  %v9793_v47 = vld [vmem:[%s11292_s1 + $0x20] sm:$0xff]  ;;  %2549 = vst [vmem:[#allocation2 + $0x738] sm:$0xff] %v2043_v40  ;;  %v2045_v18 = vpop.f32.mrb[131].mxu0  ;;  %v9964_v40 = vld [vmem:[%s11292_s1 + $0xa8] sm:$0xff] }
 0x448   : > { %8171 = vmatpush3.bf16.msra.mxu0 %v8168_v28  ;;  %2945 = vmatprep.mubr.f32.mxu1 %v11305_v7  ;;  %2550 = vst [vmem:[#allocation2 + $0x740] sm:$0xff] %v2045_v18  ;;  %v9973_v18 = vld [vmem:[%s11292_s1 + $0xb0] sm:$0xff] }
 0x449   : > { %8173 = vmatprep.subr.bf16.mxu0 %v8812_v3  ;;  %v9800_v3 = vld [vmem:[%s11292_s1 + $0x10] sm:$0xff] }
 0x44b   : > { %7793 = vmatmul.mubr.msk.f32.vlgmr.msra.gmra.mrb[168].mxu0 %vm363_vm0, %v9786_v36  ;;  %7008 = vmatmul.mubr.msk.f32.gmra.mrb[200].mxu1 %vm363_vm0, %v9793_v47 }
 0x44c   : > { %7795 = vmatprep.mubr.msk.f32.mxu0 %vm363_vm0, %v9800_v3  ;;  %8175 = vmatpush1.bf16.msra.mxu0 %v8815_v8  ;;  %v2049_v8 = vpop.f32.mrb[132].mxu0 }
 0x44d   : > { %8177 = vmatprep.subr.bf16.mxu0 %v8817_v9  ;;  %2951 = vmatprep.mubr.f32.mxu1 %v11305_v7  ;;  %v9817_v9 = vld [vmem:[%s11292_s1 + $0x28] sm:$0xff]  ;;  %2552 = vst [vmem:[#allocation2 + $0x750] sm:$0xff] %v2049_v8  ;;  %v2051_v42 = vpop.f32.mrb[133].mxu0  ;;  %v9981_v8 = vld [vmem:[%s11292_s1 + $0xb8] sm:$0xff] }
 0x44e   : > { %2553 = vst [vmem:[#allocation2 + $0x758] sm:$0xff] %v2051_v42  ;;  %v2055_v43 = vpop.f32.mrb[134].mxu0  ;;  %v9990_v42 = vld [vmem:[%s11292_s1 + $0xc0] sm:$0xff] }
 0x44f   : > { %7796 = vmatmul.mubr.msk.f32.gmra.mrb[170].mxu0 %vm363_vm0, %v9810_v41  ;;  %7009 = vmatmul.mubr.msk.f32.gmra.mrb[202].mxu1 %vm363_vm0, %v9817_v9  ;;  %2555 = vst [vmem:[#allocation2 + $0x768] sm:$0xff] %v2055_v43  ;;  %v2057_v44 = vpop.f32.mrb[135].mxu0  ;;  %v9998_v43 = vld [vmem:[%s11292_s1 + $0xc8] sm:$0xff] }
 0x450   : > { %7798 = vmatprep.mubr.msk.f32.mxu0 %vm363_vm0, %v9793_v47  ;;  %8179 = vmatpush1.bf16.msra.mxu0 %v8821_v14  ;;  %2556 = vst [vmem:[#allocation2 + $0x770] sm:$0xff] %v2057_v44  ;;  %v2061_v46 = vpop.f32.mrb[136].mxu0  ;;  %v10007_v44 = vld [vmem:[%s11292_s1 + $0xd0] sm:$0xff] }
 0x451   : > { %8181 = vmatprep.subr.bf16.mxu0 %v8824_v15  ;;  %2957 = vmatprep.mubr.f32.mxu1 %v11305_v7  ;;  %2558 = vst [vmem:[#allocation2 + $0x780] sm:$0xff] %v2061_v46  ;;  %v2063_v14 = vpop.f32.mrb[137].mxu0  ;;  %v10015_v46 = vld [vmem:[%s11292_s1 + $0xd8] sm:$0xff] }
 0x452   : > { %2559 = vst [vmem:[#allocation2 + $0x788] sm:$0xff] %v2063_v14  ;;  %v2067_v15 = vpop.f32.mrb[138].mxu0  ;;  %v10024_v14 = vld [vmem:[%s11292_s1 + $0xe0] sm:$0xff] }
 0x453   : > { %7799 = vmatmul.mubr.msk.f32.gmra.mrb[172].mxu0 %vm363_vm0, %v9817_v9  ;;  %7010 = vmatmul.mubr.msk.f32.gmra.mrb[204].mxu1 %vm363_vm0, %v9831_v32  ;;  %2561 = vst [vmem:[#allocation2 + $0x798] sm:$0xff] %v2067_v15  ;;  %v2069_v48 = vpop.f32.mrb[139].mxu0  ;;  %v10032_v15 = vld [vmem:[%s11292_s1 + $0xe8] sm:$0xff] }
 0x454   : > { %7801 = vmatprep.mubr.msk.f32.mxu0 %vm363_vm0, %v9831_v32  ;;  %8183 = vmatpush1.bf16.msra.mxu0 %v8827_v20  ;;  %2562 = vst [vmem:[#allocation2 + $0x7a0] sm:$0xff] %v2069_v48  ;;  %v2073_v20 = vpop.f32.mrb[140].mxu0  ;;  %v10041_v48 = vld [vmem:[%s11292_s1 + $0xf0] sm:$0xff] }
 0x455   : > { %8185 = vmatprep.subr.bf16.mxu0 %v8830_v21  ;;  %2963 = vmatprep.mubr.f32.mxu1 %v11305_v7  ;;  %v9852_v21 = vld [vmem:[%s11292_s1 + $0x40] sm:$0xff]  ;;  %2564 = vst [vmem:[#allocation2 + $0x7b0] sm:$0xff] %v2073_v20  ;;  %v2075_v50 = vpop.f32.mrb[141].mxu0  ;;  %v10049_v20 = vld [vmem:[%s11292_s1 + $0xf8] sm:$0xff] }
 0x456   : > { %2565 = vst [vmem:[#allocation2 + $0x7b8] sm:$0xff] %v2075_v50  ;;  %v2079_v51 = vpop.f32.mrb[142].mxu0  ;;  %v10058_v50 = vld [vmem:[%s11292_s1 + $0x100] sm:$0xff] }
 0x457   : > { %7802 = vmatmul.mubr.msk.f32.gmra.mrb[174].mxu0 %vm363_vm0, %v9843_v49  ;;  %7011 = vmatmul.mubr.msk.f32.gmra.mrb[206].mxu1 %vm363_vm0, %v9843_v49  ;;  %2567 = vst [vmem:[#allocation2 + $0x7c8] sm:$0xff] %v2079_v51  ;;  %v2081_v16 = vpop.f32.mrb[143].mxu0  ;;  %v10066_v51 = vld [vmem:[%s11292_s1 + $0x108] sm:$0xff] }
 0x458   : > { %7804 = vmatprep.mubr.msk.f32.mxu0 %vm363_vm0, %v9852_v21  ;;  %8187 = vmatpush1.bf16.msra.mxu0 %v8833_v26  ;;  %2568 = vst [vmem:[#allocation2 + $0x7d0] sm:$0xff] %v2081_v16  ;;  %v2085_v26 = vpop.f32.mrb[144].mxu0  ;;  %v10075_v16 = vld [vmem:[%s11292_s1 + $0x110] sm:$0xff] }
 0x459   : > { %8189 = vmatprep.subr.bf16.mxu0 %v8836_v27  ;;  %2969 = vmatprep.mubr.f32.mxu1 %v11305_v7  ;;  %2570 = vst [vmem:[#allocation2 + $0x7e0] sm:$0xff] %v2085_v26  ;;  %v2087_v52 = vpop.f32.mrb[145].mxu0  ;;  %v10083_v26 = vld [vmem:[%s11292_s1 + $0x118] sm:$0xff] }
 0x45a   : > { %2571 = vst [vmem:[#allocation2 + $0x7e8] sm:$0xff] %v2087_v52  ;;  %v2091_v53 = vpop.f32.mrb[146].mxu0  ;;  %v10092_v52 = vld [vmem:[%s11292_s1 + $0x120] sm:$0xff] }
 0x45b   : > { %7805 = vmatmul.mubr.msk.f32.gmra.mrb[176].mxu0 %vm363_vm0, %v9862_v45  ;;  %7012 = vmatmul.mubr.msk.f32.gmra.mrb[208].mxu1 %vm363_vm0, %v9852_v21  ;;  %2573 = vst [vmem:[#allocation2 + $0x7f8] sm:$0xff] %v2091_v53  ;;  %v2093_v54 = vpop.f32.mrb[147].mxu0  ;;  %v10100_v53 = vld [vmem:[%s11292_s1 + $0x128] sm:$0xff] }
 0x45c   : > { %7807 = vmatprep.mubr.msk.f32.mxu0 %vm363_vm0, %v9871_v33  ;;  %2975 = vmatprep.mubr.f32.mxu1 %v11305_v7  ;;  %2574 = vst [vmem:[#allocation2 + $0x800] sm:$0xff] %v2093_v54  ;;  %v2097_v56 = vpop.f32.mrb[148].mxu0  ;;  %v10109_v54 = vld [vmem:[%s11292_s1 + $0x130] sm:$0xff] }
 0x45d   : > { %2576 = vst [vmem:[#allocation2 + $0x810] sm:$0xff] %v2097_v56  ;;  %v2099_v58 = vpop.f32.mrb[149].mxu0  ;;  %v10117_v56 = vld [vmem:[%s11292_s1 + $0x138] sm:$0xff] }
 0x45e   : > { %2577 = vst [vmem:[#allocation2 + $0x818] sm:$0xff] %v2099_v58  ;;  %v2103_v59 = vpop.f32.mrb[150].mxu0  ;;  %v10126_v58 = vld [vmem:[%s11292_s1 + $0x140] sm:$0xff] }
 0x45f   : > { %7808 = vmatmul.mubr.msk.f32.gmra.mrb[178].mxu0 %vm363_vm0, %v9879_v55  ;;  %7013 = vmatmul.mubr.msk.f32.gmra.mrb[210].mxu1 %vm363_vm0, %v9862_v45  ;;  %2579 = vst [vmem:[#allocation2 + $0x828] sm:$0xff] %v2103_v59  ;;  %v2105_v60 = vpop.f32.mrb[151].mxu0  ;;  %v10134_v59 = vld [vmem:[%s11292_s1 + $0x148] sm:$0xff] }
 0x460   : > { %7810 = vmatprep.mubr.msk.f32.mxu0 %vm363_vm0, %v9888_v57  ;;  %2981 = vmatprep.mubr.f32.mxu1 %v11305_v7  ;;  %2580 = vst [vmem:[#allocation2 + $0x830] sm:$0xff] %v2105_v60  ;;  %v2109_v62 = vpop.f32.mrb[152].mxu0  ;;  %v10143_v60 = vld [vmem:[%s11292_s1 + $0x150] sm:$0xff] }
 0x461   : > { %2582 = vst [vmem:[#allocation2 + $0x840] sm:$0xff] %v2109_v62  ;;  %v2111_v0 = vpop.f32.mrb[153].mxu0  ;;  %v10151_v62 = vld [vmem:[%s11292_s1 + $0x158] sm:$0xff] }
 0x462   : > { %2583 = vst [vmem:[#allocation2 + $0x848] sm:$0xff] %v2111_v0  ;;  %v2115_v1 = vpop.f32.mrb[154].mxu0  ;;  %v10160_v0 = vld [vmem:[%s11292_s1 + $0x160] sm:$0xff] }
 0x463   : > { %7811 = vmatmul.mubr.msk.f32.gmra.mrb[180].mxu0 %vm363_vm0, %v9896_v61  ;;  %7014 = vmatmul.mubr.msk.f32.gmra.mrb[212].mxu1 %vm363_vm0, %v9871_v33  ;;  %2585 = vst [vmem:[#allocation2 + $0x858] sm:$0xff] %v2115_v1  ;;  %v2117_v2 = vpop.f32.mrb[155].mxu0  ;;  %v10168_v1 = vld [vmem:[%s11292_s1 + $0x168] sm:$0xff] }
 0x464   : > { %7813 = vmatprep.mubr.msk.f32.mxu0 %vm363_vm0, %v9905_v63  ;;  %2987 = vmatprep.mubr.f32.mxu1 %v11305_v7  ;;  %2586 = vst [vmem:[#allocation2 + $0x860] sm:$0xff] %v2117_v2  ;;  %v2121_v6 = vpop.f32.mrb[156].mxu0  ;;  %v10177_v2 = vld [vmem:[%s11292_s1 + $0x170] sm:$0xff] }
 0x465   : > { %2588 = vst [vmem:[#allocation2 + $0x870] sm:$0xff] %v2121_v6  ;;  %v2123_v11 = vpop.f32.mrb[157].mxu0  ;;  %11320 = vst [vmem:[#allocation19_spill] sm:$0xff] %v10177_v2  ;;  %v10185_v6 = vld [vmem:[%s11292_s1 + $0x178] sm:$0xff] }
 0x466   : > { %2589 = vst [vmem:[#allocation2 + $0x878] sm:$0xff] %v2123_v11  ;;  %v2127_v12 = vpop.f32.mrb[158].mxu0  ;;  %11321 = vst [vmem:[#allocation20_spill] sm:$0xff] %v10185_v6  ;;  %v7100_v11 = vld [vmem:[%s8807_s27 + $0xc0] sm:$0xff] }
 0x467   : > { %7814 = vmatmul.mubr.msk.f32.gmra.mrb[182].mxu0 %vm363_vm0, %v9913_v5  ;;  %7015 = vmatmul.mubr.msk.f32.gmra.mrb[214].mxu1 %vm363_vm0, %v9879_v55  ;;  %2591 = vst [vmem:[#allocation2 + $0x888] sm:$0xff] %v2127_v12  ;;  %v2129_v13 = vpop.f32.mrb[159].mxu0  ;;  %v7101_v12 = vld [vmem:[%s8807_s27 + $0xc8] sm:$0xff] }
 0x468   : > { %7816 = vmatprep.mubr.msk.f32.mxu0 %vm363_vm0, %v9922_v10  ;;  %2993 = vmatprep.mubr.f32.mxu1 %v11305_v7  ;;  %2592 = vst [vmem:[#allocation2 + $0x890] sm:$0xff] %v2129_v13  ;;  %v2133_v19 = vpop.f32.mrb[160].mxu0  ;;  %v7102_v13 = vld [vmem:[%s8807_s27 + $0xd0] sm:$0xff] }
 0x469   : > { %2594 = vst [vmem:[#allocation2 + $0x8a0] sm:$0xff] %v2133_v19  ;;  %v2135_v23 = vpop.f32.mrb[161].mxu0  ;;  %v7107_v19 = vld [vmem:[%s8807_s27 + $0xf8] sm:$0xff] }
 0x46a   : > { %2595 = vst [vmem:[#allocation2 + $0x8a8] sm:$0xff] %v2135_v23  ;;  %v2139_v25 = vpop.f32.mrb[162].mxu0 }
 0x46b   : > { %7817 = vmatmul.mubr.msk.f32.gmra.mrb[184].mxu0 %vm363_vm0, %v9930_v17  ;;  %7016 = vmatmul.mubr.msk.f32.gmra.mrb[216].mxu1 %vm363_vm0, %v9888_v57  ;;  %2597 = vst [vmem:[#allocation2 + $0x8b8] sm:$0xff] %v2139_v25  ;;  %v2141_v28 = vpop.f32.mrb[163].mxu0 }
 0x46c   : > { %7819 = vmatprep.mubr.msk.f32.mxu0 %vm363_vm0, %v9939_v22  ;;  %2999 = vmatprep.mubr.f32.mxu1 %v11305_v7  ;;  %2598 = vst [vmem:[#allocation2 + $0x8c0] sm:$0xff] %v2141_v28  ;;  %v2145_v29 = vpop.f32.mrb[164].mxu0 }
 0x46d   : > { %2600 = vst [vmem:[#allocation2 + $0x8d0] sm:$0xff] %v2145_v29  ;;  %v2147_v30 = vpop.f32.mrb[165].mxu0 }
 0x46e   : > { %2601 = vst [vmem:[#allocation2 + $0x8d8] sm:$0xff] %v2147_v30  ;;  %v2151_v37 = vpop.f32.mrb[166].mxu0 }
 0x46f   : > { %7820 = vmatmul.mubr.msk.f32.gmra.mrb[186].mxu0 %vm363_vm0, %v9947_v24  ;;  %7017 = vmatmul.mubr.msk.f32.gmra.mrb[218].mxu1 %vm363_vm0, %v9896_v61  ;;  %2603 = vst [vmem:[#allocation2 + $0x8e8] sm:$0xff] %v2151_v37  ;;  %v2153_v38 = vpop.f32.mrb[167].mxu0 }
 0x470   : > { %7822 = vmatprep.mubr.msk.f32.mxu0 %vm363_vm0, %v9956_v34  ;;  %3005 = vmatprep.mubr.f32.mxu1 %v11305_v7  ;;  %2604 = vst [vmem:[#allocation2 + $0x8f0] sm:$0xff] %v2153_v38 }
 0x473   : > { %7823 = vmatmul.mubr.msk.f32.gmra.mrb[188].mxu0 %vm363_vm0, %v9964_v40  ;;  %7018 = vmatmul.mubr.msk.f32.gmra.mrb[220].mxu1 %vm363_vm0, %v9905_v63 }
 0x474   : > { %7825 = vmatprep.mubr.msk.f32.mxu0 %vm363_vm0, %v9973_v18  ;;  %3011 = vmatprep.mubr.f32.mxu1 %v11305_v7 }
 0x477   : > { %7826 = vmatmul.mubr.msk.f32.gmra.mrb[190].mxu0 %vm363_vm0, %v9981_v8  ;;  %7019 = vmatmul.mubr.msk.f32.gmra.mrb[222].mxu1 %vm363_vm0, %v9913_v5 }
 0x478   : > { %7828 = vmatprep.mubr.msk.f32.mxu0 %vm363_vm0, %v9990_v42  ;;  %3017 = vmatprep.mubr.f32.mxu1 %v11305_v7 }
 0x47b   : > { %7829 = vmatmul.mubr.msk.f32.gmra.mrb[192].mxu0 %vm363_vm0, %v9998_v43  ;;  %7020 = vmatmul.mubr.msk.f32.gmra.mrb[224].mxu1 %vm363_vm0, %v9922_v10 }
 0x47c   : > { %7831 = vmatprep.mubr.msk.f32.mxu0 %vm363_vm0, %v10007_v44  ;;  %3023 = vmatprep.mubr.f32.mxu1 %v11305_v7 }
 0x47f   : > { %7832 = vmatmul.mubr.msk.f32.gmra.mrb[194].mxu0 %vm363_vm0, %v10015_v46  ;;  %7021 = vmatmul.mubr.msk.f32.gmra.mrb[226].mxu1 %vm363_vm0, %v9930_v17 }
 0x480   : > { %7834 = vmatprep.mubr.msk.f32.mxu0 %vm363_vm0, %v10024_v14  ;;  %3029 = vmatprep.mubr.f32.mxu1 %v11305_v7 }
 0x483   : > { %7835 = vmatmul.mubr.msk.f32.gmra.mrb[196].mxu0 %vm363_vm0, %v10032_v15  ;;  %7022 = vmatmul.mubr.msk.f32.gmra.mrb[228].mxu1 %vm363_vm0, %v9939_v22 }
 0x484   : > { %7837 = vmatprep.mubr.msk.f32.mxu0 %vm363_vm0, %v10041_v48  ;;  %3035 = vmatprep.mubr.f32.mxu1 %v11305_v7 }
 0x487   : > { %7838 = vmatmul.mubr.msk.f32.gmra.mrb[198].mxu0 %vm363_vm0, %v10049_v20  ;;  %7023 = vmatmul.mubr.msk.f32.gmra.mrb[230].mxu1 %vm363_vm0, %v9947_v24 }
 0x488   : > { %7840 = vmatprep.mubr.msk.f32.mxu0 %vm363_vm0, %v10058_v50  ;;  %3041 = vmatprep.mubr.f32.mxu1 %v11305_v7 }
 0x48b   : > { %7841 = vmatmul.mubr.msk.f32.gmra.mrb[200].mxu0 %vm363_vm0, %v10066_v51  ;;  %7024 = vmatmul.mubr.msk.f32.gmra.mrb[232].mxu1 %vm363_vm0, %v9956_v34 }
 0x48c   : > { %7843 = vmatprep.mubr.msk.f32.mxu0 %vm363_vm0, %v10075_v16  ;;  %3047 = vmatprep.mubr.f32.mxu1 %v11305_v7 }
 0x48f   : > { %7844 = vmatmul.mubr.msk.f32.gmra.mrb[202].mxu0 %vm363_vm0, %v10083_v26  ;;  %7025 = vmatmul.mubr.msk.f32.gmra.mrb[234].mxu1 %vm363_vm0, %v9964_v40 }
 0x490   : > { %7846 = vmatprep.mubr.msk.f32.mxu0 %vm363_vm0, %v10092_v52  ;;  %3053 = vmatprep.mubr.f32.mxu1 %v11305_v7 }
 0x493   : > { %7847 = vmatmul.mubr.msk.f32.gmra.mrb[204].mxu0 %vm363_vm0, %v10100_v53  ;;  %7026 = vmatmul.mubr.msk.f32.gmra.mrb[236].mxu1 %vm363_vm0, %v9973_v18 }
 0x494   : > { %7849 = vmatprep.mubr.msk.f32.mxu0 %vm363_vm0, %v10109_v54  ;;  %3059 = vmatprep.mubr.f32.mxu1 %v11305_v7 }
 0x497   : > { %7850 = vmatmul.mubr.msk.f32.gmra.mrb[206].mxu0 %vm363_vm0, %v10117_v56  ;;  %7027 = vmatmul.mubr.msk.f32.gmra.mrb[238].mxu1 %vm363_vm0, %v9981_v8 }
 0x498   : > { %7852 = vmatprep.mubr.msk.f32.mxu0 %vm363_vm0, %v10126_v58  ;;  %3065 = vmatprep.mubr.f32.mxu1 %v11305_v7 }
 0x49b   : > { %7853 = vmatmul.mubr.msk.f32.gmra.mrb[208].mxu0 %vm363_vm0, %v10134_v59  ;;  %7028 = vmatmul.mubr.msk.f32.gmra.mrb[240].mxu1 %vm363_vm0, %v9990_v42 }
 0x49c   : > { %7855 = vmatprep.mubr.msk.f32.mxu0 %vm363_vm0, %v10143_v60  ;;  %3071 = vmatprep.mubr.f32.mxu1 %v11305_v7 }
 0x49f   : > { %7856 = vmatmul.mubr.msk.f32.gmra.mrb[210].mxu0 %vm363_vm0, %v10151_v62  ;;  %7029 = vmatmul.mubr.msk.f32.gmra.mrb[242].mxu1 %vm363_vm0, %v9998_v43 }
 0x4a0   : > { %7858 = vmatprep.mubr.msk.f32.mxu0 %vm363_vm0, %v10160_v0  ;;  %3077 = vmatprep.mubr.f32.mxu1 %v11305_v7 }
 0x4a3   : > { %7859 = vmatmul.mubr.msk.f32.gmra.mrb[212].mxu0 %vm363_vm0, %v10168_v1  ;;  %7030 = vmatmul.mubr.msk.f32.gmra.mrb[244].mxu1 %vm363_vm0, %v10007_v44 }
 0x4a4   : > { %7861 = vmatprep.mubr.msk.f32.mxu0 %vm363_vm0, %v10177_v2  ;;  %3083 = vmatprep.mubr.f32.mxu1 %v11305_v7 }
 0x4a7   : > { %7862 = vmatmul.mubr.msk.f32.gmra.mrb[214].mxu0 %vm363_vm0, %v10185_v6  ;;  %7031 = vmatmul.mubr.msk.f32.gmra.mrb[246].mxu1 %vm363_vm0, %v10015_v46 }
 0x4a8   : > { %3757 = vmatprep.mubr.f32.mxu0 %v11305_v7  ;;  %3089 = vmatprep.mubr.f32.mxu1 %v11305_v7 }
 0x4ab   : > { %7108 = vmatmul.mubr.msk.f32.vlgmr.msra.gmra.mrb[216].mxu0 %vm363_vm0, %v7100_v11  ;;  %7032 = vmatmul.mubr.msk.f32.gmra.mrb[248].mxu1 %vm363_vm0, %v10024_v14 }
 0x4ac   : > { %3763 = vmatprep.mubr.f32.mxu0 %v11305_v7  ;;  %8191 = vmatpush3.bf16.msra.mxu0 %v8836_v27  ;;  %v7103_v27 = vld [vmem:[%s8807_s27 + $0xd8] sm:$0xff] }
 0x4ad   : > { %8193 = vmatprep.subr.bf16.mxu0 %v8841_v31  ;;  %3095 = vmatprep.mubr.f32.mxu1 %v11305_v7 }
 0x4af   : > { %7109 = vmatmul.mubr.msk.f32.gmra.mrb[218].mxu0 %vm363_vm0, %v7101_v12  ;;  %7033 = vmatmul.mubr.msk.f32.gmra.mrb[250].mxu1 %vm363_vm0, %v10032_v15 }
 0x4b0   : > { %3769 = vmatprep.mubr.f32.mxu0 %v11305_v7  ;;  %8195 = vmatpush3.bf16.msra.mxu0 %v8841_v31  ;;  %v7104_v31 = vld [vmem:[%s8807_s27 + $0xe0] sm:$0xff] }
 0x4b1   : > { %8197 = vmatprep.subr.bf16.mxu0 %v8848_v35  ;;  %3101 = vmatprep.mubr.f32.mxu1 %v11305_v7 }
 0x4b3   : > { %7110 = vmatmul.mubr.msk.f32.gmra.mrb[220].mxu0 %vm363_vm0, %v7102_v13  ;;  %7034 = vmatmul.mubr.msk.f32.gmra.mrb[252].mxu1 %vm363_vm0, %v10041_v48 }
 0x4b4   : > { %3775 = vmatprep.mubr.f32.mxu0 %v11305_v7  ;;  %8199 = vmatpush3.bf16.msra.mxu0 %v8848_v35  ;;  %v7105_v35 = vld [vmem:[%s8807_s27 + $0xe8] sm:$0xff] }
 0x4b5   : > { %8201 = vmatprep.subr.bf16.mxu0 %v8855_v39  ;;  %3107 = vmatprep.mubr.f32.mxu1 %v11305_v7 }
 0x4b7   : > { %7111 = vmatmul.mubr.msk.f32.gmra.mrb[222].mxu0 %vm363_vm0, %v7103_v27  ;;  %7035 = vmatmul.mubr.msk.f32.gmra.mrb[254].mxu1 %vm363_vm0, %v10049_v20 }
 0x4b8   : > { %3781 = vmatprep.mubr.f32.mxu0 %v11305_v7  ;;  %8203 = vmatpush3.bf16.msra.mxu0 %v8855_v39  ;;  %v7106_v39 = vld [vmem:[%s8807_s27 + $0xf0] sm:$0xff] }
 0x4b9   : > { %3113 = vmatprep.mubr.f32.mxu1 %v11305_v7 }
 0x4bb   : > { %7112 = vmatmul.mubr.msk.f32.gmra.mrb[224].mxu0 %vm363_vm0, %v7104_v31  ;;  %7036 = vmatmul.mubr.msk.f32.gmra.mrb[0].mxu1 %vm363_vm0, %v10058_v50 }
 0x4bc   : > { %3787 = vmatprep.mubr.f32.mxu0 %v11305_v7  ;;  %3119 = vmatprep.mubr.f32.mxu1 %v11305_v7 }
 0x4bf   : > { %7113 = vmatmul.mubr.msk.f32.gmra.mrb[226].mxu0 %vm363_vm0, %v7105_v35  ;;  %7037 = vmatmul.mubr.msk.f32.gmra.mrb[2].mxu1 %vm363_vm0, %v10066_v51 }
 0x4c0   : > { %3793 = vmatprep.mubr.f32.mxu0 %v11305_v7  ;;  %3125 = vmatprep.mubr.f32.mxu1 %v11305_v7 }
 0x4c3   : > { %7114 = vmatmul.mubr.msk.f32.gmra.mrb[228].mxu0 %vm363_vm0, %v7106_v39  ;;  %7038 = vmatmul.mubr.msk.f32.gmra.mrb[4].mxu1 %vm363_vm0, %v10075_v16 }
 0x4c4   : > { %3799 = vmatprep.mubr.f32.mxu0 %v11305_v7  ;;  %3131 = vmatprep.mubr.f32.mxu1 %v11305_v7 }
 0x4c7   : > { %7115 = vmatmul.mubr.msk.f32.gmra.mrb[230].mxu0 %vm363_vm0, %v7107_v19  ;;  %7039 = vmatmul.mubr.msk.f32.gmra.mrb[6].mxu1 %vm363_vm0, %v10083_v26 }
 0x4c8   : > { %7880 = vmatprep.mubr.msk.f32.mxu0 %vm363_vm0, %v7100_v11  ;;  %3137 = vmatprep.mubr.f32.mxu1 %v11305_v7 }
 0x4cb   : > { %7881 = vmatmul.mubr.msk.f32.vlgmr.msra.gmra.mrb[232].mxu0 %vm363_vm0, %v7101_v12  ;;  %7040 = vmatmul.mubr.msk.f32.gmra.mrb[8].mxu1 %vm363_vm0, %v10092_v52 }
 0x4cc   : > { %7883 = vmatprep.mubr.msk.f32.mxu0 %vm363_vm0, %v7102_v13  ;;  %3143 = vmatprep.mubr.f32.mxu1 %v11305_v7 }
 0x4cf   : > { %7884 = vmatmul.mubr.msk.f32.gmra.mrb[234].mxu0 %vm363_vm0, %v7103_v27  ;;  %7041 = vmatmul.mubr.msk.f32.gmra.mrb[10].mxu1 %vm363_vm0, %v10100_v53 }
 0x4d0   : > { %7886 = vmatprep.mubr.msk.f32.mxu0 %vm363_vm0, %v7104_v31  ;;  %3149 = vmatprep.mubr.f32.mxu1 %v11305_v7 }
 0x4d3   : > { %7887 = vmatmul.mubr.msk.f32.gmra.mrb[236].mxu0 %vm363_vm0, %v7105_v35  ;;  %7042 = vmatmul.mubr.msk.f32.gmra.mrb[12].mxu1 %vm363_vm0, %v10109_v54 }
 0x4d4   : > { %7889 = vmatprep.mubr.msk.f32.mxu0 %vm363_vm0, %v7106_v39  ;;  %3155 = vmatprep.mubr.f32.mxu1 %v11305_v7 }
 0x4d7   : > { %7890 = vmatmul.mubr.msk.f32.gmra.mrb[238].mxu0 %vm363_vm0, %v7107_v19  ;;  %7043 = vmatmul.mubr.msk.f32.gmra.mrb[14].mxu1 %vm363_vm0, %v10117_v56 }
 0x4d8   : > { %3975 = vmatprep.mubr.f32.mxu0 %v11305_v7  ;;  %3161 = vmatprep.mubr.f32.mxu1 %v11305_v7 }
 0x4db   : > { %7044 = vmatmul.mubr.msk.f32.gmra.mrb[16].mxu1 %vm363_vm0, %v10126_v58 }
 0x4dc   : > { %3167 = vmatprep.mubr.f32.mxu1 %v11305_v7 }
 0x4df   : > { %7045 = vmatmul.mubr.msk.f32.gmra.mrb[18].mxu1 %vm363_vm0, %v10134_v59 }
 0x4e0   : > { %3173 = vmatprep.mubr.f32.mxu1 %v11305_v7 }
 0x4e3   : > { %7046 = vmatmul.mubr.msk.f32.gmra.mrb[20].mxu1 %vm363_vm0, %v10143_v60 }
 0x4e4   : > { %3179 = vmatprep.mubr.f32.mxu1 %v11305_v7 }
 0x4e7   : > { %7047 = vmatmul.mubr.msk.f32.gmra.mrb[22].mxu1 %vm363_vm0, %v10151_v62 }
 0x4e8   : > { %3185 = vmatprep.mubr.f32.mxu1 %v11305_v7 }
 0x4eb   : > { %7048 = vmatmul.mubr.msk.f32.gmra.mrb[24].mxu1 %vm363_vm0, %v10160_v0 }
 0x4ec   : > { %3191 = vmatprep.mubr.f32.mxu1 %v11305_v7 }
 0x4ef   : > { %7049 = vmatmul.mubr.msk.f32.gmra.mrb[26].mxu1 %vm363_vm0, %v10168_v1 }
 0x4f0   : > { %3197 = vmatprep.mubr.f32.mxu1 %v11305_v7 }
 0x4f3   : > { %7050 = vmatmul.mubr.msk.f32.gmra.mrb[28].mxu1 %vm363_vm0, %v10177_v2 }
 0x4f4   : > { %3203 = vmatprep.mubr.f32.mxu1 %v11305_v7 }
 0x4f7   : > { %7051 = vmatmul.mubr.msk.f32.gmra.mrb[30].mxu1 %vm363_vm0, %v10185_v6 }
 0x4f8   : > { %7908 = vmatprep.mubr.msk.f32.mxu1 %vm363_vm0, %v9768_v4 }
 0x51e   : > { %v7794_v23 = vpop.f32.mrb[168].mxu0 }
 0x51f   : > { %3521 = vst [vmem:[#allocation2 + $0x928] sm:$0xff] %v7794_v23  ;;  %v3276_v25 = vpop.f32.mrb[169].mxu0 }
 0x520   : > { %3518 = vst [vmem:[#allocation2 + $0x910] sm:$0xff] %v3276_v25 }
 0x522   : > { %v7797_v28 = vpop.f32.mrb[170].mxu0 }
 0x523   : > { %3527 = vst [vmem:[#allocation2 + $0x958] sm:$0xff] %v7797_v28  ;;  %v3286_v29 = vpop.f32.mrb[171].mxu0 }
 0x524   : > { %3524 = vst [vmem:[#allocation2 + $0x940] sm:$0xff] %v3286_v29 }
 0x526   : > { %v7800_v30 = vpop.f32.mrb[172].mxu0 }
 0x527   : > { %3533 = vst [vmem:[#allocation2 + $0x988] sm:$0xff] %v7800_v30  ;;  %v3296_v37 = vpop.f32.mrb[173].mxu0 }
 0x528   : > { %3530 = vst [vmem:[#allocation2 + $0x970] sm:$0xff] %v3296_v37 }
 0x52a   : > { %v7803_v38 = vpop.f32.mrb[174].mxu0 }
 0x52b   : > { %3539 = vst [vmem:[#allocation2 + $0x9b8] sm:$0xff] %v7803_v38  ;;  %v3306_v11 = vpop.f32.mrb[175].mxu0 }
 0x52c   : > { %3536 = vst [vmem:[#allocation2 + $0x9a0] sm:$0xff] %v3306_v11 }
 0x52e   : > { %v7806_v12 = vpop.f32.mrb[176].mxu0 }
 0x52f   : > { %3545 = vst [vmem:[#allocation2 + $0x9e8] sm:$0xff] %v7806_v12  ;;  %v3316_v13 = vpop.f32.mrb[177].mxu0 }
 0x530   : > { %3542 = vst [vmem:[#allocation2 + $0x9d0] sm:$0xff] %v3316_v13 }
 0x532   : > { %v7809_v27 = vpop.f32.mrb[178].mxu0 }
 0x533   : > { %3551 = vst [vmem:[#allocation2 + $0xa18] sm:$0xff] %v7809_v27  ;;  %v3326_v31 = vpop.f32.mrb[179].mxu0 }
 0x534   : > { %3548 = vst [vmem:[#allocation2 + $0xa00] sm:$0xff] %v3326_v31 }
 0x536   : > { %v7812_v35 = vpop.f32.mrb[180].mxu0 }
 0x537   : > { %3557 = vst [vmem:[#allocation2 + $0xa48] sm:$0xff] %v7812_v35  ;;  %v3336_v39 = vpop.f32.mrb[181].mxu0 }
 0x538   : > { %3554 = vst [vmem:[#allocation2 + $0xa30] sm:$0xff] %v3336_v39 }
 0x53a   : > { %v7815_v19 = vpop.f32.mrb[182].mxu0 }
 0x53b   : > { %3563 = vst [vmem:[#allocation2 + $0xa78] sm:$0xff] %v7815_v19  ;;  %v3346_v23 = vpop.f32.mrb[183].mxu0 }
 0x53c   : > { %3560 = vst [vmem:[#allocation2 + $0xa60] sm:$0xff] %v3346_v23 }
 0x53e   : > { %v7818_v25 = vpop.f32.mrb[184].mxu0 }
 0x53f   : > { %3569 = vst [vmem:[#allocation2 + $0xaa8] sm:$0xff] %v7818_v25  ;;  %v3356_v28 = vpop.f32.mrb[185].mxu0 }
 0x540   : > { %3566 = vst [vmem:[#allocation2 + $0xa90] sm:$0xff] %v3356_v28 }
 0x542   : > { %v7821_v29 = vpop.f32.mrb[186].mxu0 }
 0x543   : > { %3575 = vst [vmem:[#allocation2 + $0xad8] sm:$0xff] %v7821_v29  ;;  %v3366_v30 = vpop.f32.mrb[187].mxu0 }
 0x544   : > { %3572 = vst [vmem:[#allocation2 + $0xac0] sm:$0xff] %v3366_v30 }
 0x546   : > { %v7824_v37 = vpop.f32.mrb[188].mxu0 }
 0x547   : > { %3581 = vst [vmem:[#allocation2 + $0xb08] sm:$0xff] %v7824_v37  ;;  %v3376_v38 = vpop.f32.mrb[189].mxu0 }
 0x548   : > { %3578 = vst [vmem:[#allocation2 + $0xaf0] sm:$0xff] %v3376_v38 }
 0x54a   : > { %v7827_v11 = vpop.f32.mrb[190].mxu0 }
 0x54b   : > { %3587 = vst [vmem:[#allocation2 + $0xb38] sm:$0xff] %v7827_v11  ;;  %v3386_v12 = vpop.f32.mrb[191].mxu0 }
 0x54c   : > { %3584 = vst [vmem:[#allocation2 + $0xb20] sm:$0xff] %v3386_v12 }
 0x54e   : > { %v7830_v13 = vpop.f32.mrb[192].mxu0 }
 0x54f   : > { %3593 = vst [vmem:[#allocation2 + $0xb68] sm:$0xff] %v7830_v13  ;;  %v3396_v27 = vpop.f32.mrb[193].mxu0 }
 0x550   : > { %3590 = vst [vmem:[#allocation2 + $0xb50] sm:$0xff] %v3396_v27 }
 0x552   : > { %v7833_v31 = vpop.f32.mrb[194].mxu0 }
 0x553   : > { %3599 = vst [vmem:[#allocation2 + $0xb98] sm:$0xff] %v7833_v31  ;;  %v3406_v35 = vpop.f32.mrb[195].mxu0 }
 0x554   : > { %3596 = vst [vmem:[#allocation2 + $0xb80] sm:$0xff] %v3406_v35 }
 0x556   : > { %v7836_v39 = vpop.f32.mrb[196].mxu0 }
 0x557   : > { %3605 = vst [vmem:[#allocation2 + $0xbc8] sm:$0xff] %v7836_v39  ;;  %v3416_v19 = vpop.f32.mrb[197].mxu0 }
 0x558   : > { %3602 = vst [vmem:[#allocation2 + $0xbb0] sm:$0xff] %v3416_v19 }
 0x55a   : > { %v7839_v23 = vpop.f32.mrb[198].mxu0 }
 0x55b   : > { %3611 = vst [vmem:[#allocation2 + $0xbf8] sm:$0xff] %v7839_v23  ;;  %v3426_v25 = vpop.f32.mrb[199].mxu0 }
 0x55c   : > { %3608 = vst [vmem:[#allocation2 + $0xbe0] sm:$0xff] %v3426_v25 }
 0x55e   : > { %v7842_v28 = vpop.f32.mrb[200].mxu0 }
 0x55f   : > { %3617 = vst [vmem:[#allocation2 + $0xc28] sm:$0xff] %v7842_v28  ;;  %v3436_v29 = vpop.f32.mrb[201].mxu0 }
 0x560   : > { %3614 = vst [vmem:[#allocation2 + $0xc10] sm:$0xff] %v3436_v29 }
 0x562   : > { %v7845_v30 = vpop.f32.mrb[202].mxu0 }
 0x563   : > { %3623 = vst [vmem:[#allocation2 + $0xc58] sm:$0xff] %v7845_v30  ;;  %v3446_v37 = vpop.f32.mrb[203].mxu0 }
 0x564   : > { %3620 = vst [vmem:[#allocation2 + $0xc40] sm:$0xff] %v3446_v37 }
 0x566   : > { %v7848_v38 = vpop.f32.mrb[204].mxu0 }
 0x567   : > { %3629 = vst [vmem:[#allocation2 + $0xc88] sm:$0xff] %v7848_v38  ;;  %v3456_v11 = vpop.f32.mrb[205].mxu0 }
 0x568   : > { %3626 = vst [vmem:[#allocation2 + $0xc70] sm:$0xff] %v3456_v11 }
 0x56a   : > { %v7851_v12 = vpop.f32.mrb[206].mxu0 }
 0x56b   : > { %3635 = vst [vmem:[#allocation2 + $0xcb8] sm:$0xff] %v7851_v12  ;;  %v3466_v13 = vpop.f32.mrb[207].mxu0 }
 0x56c   : > { %3632 = vst [vmem:[#allocation2 + $0xca0] sm:$0xff] %v3466_v13 }
 0x56e   : > { %v7854_v27 = vpop.f32.mrb[208].mxu0 }
 0x56f   : > { %3641 = vst [vmem:[#allocation2 + $0xce8] sm:$0xff] %v7854_v27  ;;  %v3476_v31 = vpop.f32.mrb[209].mxu0 }
 0x570   : > { %3638 = vst [vmem:[#allocation2 + $0xcd0] sm:$0xff] %v3476_v31 }
 0x572   : > { %v7857_v35 = vpop.f32.mrb[210].mxu0 }
 0x573   : > { %3647 = vst [vmem:[#allocation2 + $0xd18] sm:$0xff] %v7857_v35  ;;  %v3486_v39 = vpop.f32.mrb[211].mxu0 }
 0x574   : > { %3644 = vst [vmem:[#allocation2 + $0xd00] sm:$0xff] %v3486_v39 }
 0x576   : > { %v7860_v19 = vpop.f32.mrb[212].mxu0 }
 0x577   : > { %3653 = vst [vmem:[#allocation2 + $0xd48] sm:$0xff] %v7860_v19  ;;  %v3496_v23 = vpop.f32.mrb[213].mxu0 }
 0x578   : > { %3650 = vst [vmem:[#allocation2 + $0xd30] sm:$0xff] %v3496_v23 }
 0x57a   : > { %v7863_v25 = vpop.f32.mrb[214].mxu0 }
 0x57b   : > { %3659 = vst [vmem:[#allocation2 + $0xd78] sm:$0xff] %v7863_v25  ;;  %v3506_v28 = vpop.f32.mrb[215].mxu0 }
 0x57c   : > { %3656 = vst [vmem:[#allocation2 + $0xd60] sm:$0xff] %v3506_v28  ;;  %v2923_v28 = vpop.f32.mrb[192].mxu1 }
 0x57d   : > { %3516 = vst [vmem:[#allocation2 + $0x900] sm:$0xff] %v2923_v28 }
 0x57e   : > { %v3759_v29 = vpop.f32.mrb[216].mxu0 }
 0x57f   : > { %v3761_v30 = vpop.f32.mrb[217].mxu0 }
 0x582   : > { %v3765_v37 = vpop.f32.mrb[218].mxu0 }
 0x583   : > { %v8206_v38 = vpack.c.bf16 %v3765_v37, %v3759_v29  ;;  %v3767_v11 = vpop.f32.mrb[219].mxu0  ;;  %v2925_v29 = vpop.f32.mrb[193].mxu1 }
 0x584   : > { %v8204_v12 = vpack.c.bf16 %v3767_v11, %v3761_v30  ;;  %3517 = vst [vmem:[#allocation2 + $0x908] sm:$0xff] %v2925_v29 }
 0x586   : > { %8205 = vmatprep.subr.bf16.mxu0 %v8204_v12  ;;  %v3771_v13 = vpop.f32.mrb[220].mxu0 }
 0x587   : > { %8207 = vmatpush1.bf16.msra.mxu0 %v8206_v38  ;;  %v3773_v27 = vpop.f32.mrb[221].mxu0  ;;  %v2929_v38 = vpop.f32.mrb[194].mxu1 }
 0x588   : > { %3519 = vst [vmem:[#allocation2 + $0x918] sm:$0xff] %v2929_v38  ;;  %v2931_v12 = vpop.f32.mrb[195].mxu1 }
 0x589   : > { %3520 = vst [vmem:[#allocation2 + $0x920] sm:$0xff] %v2931_v12 }
 0x58a   : > { %v3777_v31 = vpop.f32.mrb[222].mxu0 }
 0x58b   : > { %v8210_v35 = vpack.c.bf16 %v3777_v31, %v3771_v13  ;;  %v3779_v39 = vpop.f32.mrb[223].mxu0 }
 0x58c   : > { %v8208_v19 = vpack.c.bf16 %v3779_v39, %v3773_v27  ;;  %v2935_v27 = vpop.f32.mrb[196].mxu1 }
 0x58d   : > { %3522 = vst [vmem:[#allocation2 + $0x930] sm:$0xff] %v2935_v27  ;;  %v2937_v39 = vpop.f32.mrb[197].mxu1 }
 0x58e   : > { %8209 = vmatprep.subr.bf16.mxu0 %v8208_v19  ;;  %v3783_v23 = vpop.f32.mrb[224].mxu0  ;;  %3523 = vst [vmem:[#allocation2 + $0x938] sm:$0xff] %v2937_v39 }
 0x58f   : > { %8211 = vmatpush1.bf16.msra.mxu0 %v8210_v35  ;;  %v3785_v25 = vpop.f32.mrb[225].mxu0 }
 0x592   : > { %v3789_v7 = vpop.f32.mrb[226].mxu0 }
 0x593   : > { %v8214_v6 = vpack.c.bf16 %v3789_v7, %v3783_v23  ;;  %v3791_v2 = vpop.f32.mrb[227].mxu0 }
 0x594   : > { %v8212_v37 = vpack.c.bf16 %v3791_v2, %v3785_v25  ;;  %v2941_v2 = vpop.f32.mrb[198].mxu1 }
 0x595   : > { %3525 = vst [vmem:[#allocation2 + $0x948] sm:$0xff] %v2941_v2  ;;  %v2943_v25 = vpop.f32.mrb[199].mxu1 }
 0x596   : > { %8213 = vmatprep.subr.bf16.mxu0 %v8212_v37  ;;  %v3795_v30 = vpop.f32.mrb[228].mxu0  ;;  %3526 = vst [vmem:[#allocation2 + $0x950] sm:$0xff] %v2943_v25  ;;  %v2947_v29 = vpop.f32.mrb[200].mxu1 }
 0x597   : > { %8215 = vmatpush1.bf16.msra.mxu0 %v8214_v6  ;;  %v3797_v11 = vpop.f32.mrb[229].mxu0  ;;  %3528 = vst [vmem:[#allocation2 + $0x960] sm:$0xff] %v2947_v29  ;;  %v2949_v38 = vpop.f32.mrb[201].mxu1 }
 0x598   : > { %3529 = vst [vmem:[#allocation2 + $0x968] sm:$0xff] %v2949_v38 }
 0x59a   : > { %v3801_v13 = vpop.f32.mrb[230].mxu0 }
 0x59b   : > { %v8218_v31 = vpack.c.bf16 %v3801_v13, %v3795_v30  ;;  %v3803_v35 = vpop.f32.mrb[231].mxu0  ;;  %v11322_v30 = vmov 0.0   ;;  %v2953_v13 = vpop.f32.mrb[202].mxu1 }
 0x59c   : > { %v8216_v7 = vpack.c.bf16 %v3803_v35, %v3797_v11  ;;  %3531 = vst [vmem:[#allocation2 + $0x978] sm:$0xff] %v2953_v13 }
 0x59e   : > { %8217 = vmatprep.subr.bf16.mxu0 %v8216_v7  ;;  %v7882_v19 = vpop.f32.mrb[232].mxu0 }
 0x59f   : > { %8219 = vmatpush1.bf16.msra.mxu0 %v8218_v31  ;;  %v3872_v23 = vpop.f32.mrb[233].mxu0 }
 0x5a0   : > { %v8220_v6 = vpack.c.bf16 %v7882_v19, %v3872_v23 }
 0x5a2   : > { %8221 = vmatprep.subr.bf16.mxu1 %v8220_v6  ;;  %v7885_v28 = vpop.f32.mrb[234].mxu0  ;;  %7124 = vmatmul.mubr.msk.f32.vlgmr.msra.gmra.mrb[240].mxu0 %vm363_vm0, %v9768_v4  ;;  %v2955_v4 = vpop.f32.mrb[203].mxu1 }
 0x5a3   : > { %8223 = vmatpush3.bf16.msra.mxu1 %v8220_v6  ;;  %v3882_v37 = vpop.f32.mrb[235].mxu0  ;;  %3981 = vmatprep.mubr.f32.mxu0 %v11322_v30  ;;  %3532 = vst [vmem:[#allocation2 + $0x980] sm:$0xff] %v2955_v4  ;;  %v2959_v39 = vpop.f32.mrb[204].mxu1 }
 0x5a4   : > { %v8224_v11 = vpack.c.bf16 %v7885_v28, %v3882_v37  ;;  %3534 = vst [vmem:[#allocation2 + $0x990] sm:$0xff] %v2959_v39  ;;  %v2961_v19 = vpop.f32.mrb[205].mxu1 }
 0x5a5   : > { %3535 = vst [vmem:[#allocation2 + $0x998] sm:$0xff] %v2961_v19  ;;  %v2965_v23 = vpop.f32.mrb[206].mxu1 }
 0x5a6   : > { %8225 = vmatprep.subr.bf16.mxu1 %v8224_v11  ;;  %v7888_v12 = vpop.f32.mrb[236].mxu0  ;;  %7125 = vmatmul.mubr.msk.f32.gmra.mrb[242].mxu0 %vm363_vm0, %v9786_v36  ;;  %3537 = vst [vmem:[#allocation2 + $0x9a8] sm:$0xff] %v2965_v23  ;;  %v2967_v25 = vpop.f32.mrb[207].mxu1 }
 0x5a7   : > { %8227 = vmatpush3.bf16.msra.mxu1 %v8224_v11  ;;  %v3892_v27 = vpop.f32.mrb[237].mxu0  ;;  %3987 = vmatprep.mubr.f32.mxu0 %v11322_v30  ;;  %3538 = vst [vmem:[#allocation2 + $0x9b0] sm:$0xff] %v2967_v25  ;;  %v2971_v6 = vpop.f32.mrb[208].mxu1 }
 0x5a8   : > { %v8228_v31 = vpack.c.bf16 %v7888_v12, %v3892_v27  ;;  %3540 = vst [vmem:[#allocation2 + $0x9c0] sm:$0xff] %v2971_v6  ;;  %v2973_v28 = vpop.f32.mrb[209].mxu1 }
 0x5a9   : > { %3541 = vst [vmem:[#allocation2 + $0x9c8] sm:$0xff] %v2973_v28  ;;  %v2977_v29 = vpop.f32.mrb[210].mxu1  ;;  %v8441_v28 = vld [vmem:[%s11292_s1 + $0x110] sm:$0xff] }
 0x5aa   : > { %8229 = vmatprep.subr.bf16.mxu1 %v8228_v31  ;;  %7126 = vmatmul.mubr.msk.f32.gmra.mrb[244].mxu0 %vm363_vm0, %v9800_v3  ;;  %v7891_v35 = vpop.f32.mrb[238].mxu0  ;;  %3543 = vst [vmem:[#allocation2 + $0x9d8] sm:$0xff] %v2977_v29 }
 0x5ab   : > { %8231 = vmatpush3.bf16.msra.mxu1 %v8228_v31  ;;  %3993 = vmatprep.mubr.f32.mxu0 %v11322_v30  ;;  %v3902_v7 = vpop.f32.mrb[239].mxu0 }
 0x5ac   : > { %v8232_v2 = vpack.c.bf16 %v7891_v35, %v3902_v7 }
 0x5ae   : > { %7127 = vmatmul.mubr.msk.f32.gmra.mrb[246].mxu0 %vm363_vm0, %v9810_v41  ;;  %8233 = vmatprep.subr.bf16.mxu1 %v8232_v2 }
 0x5af   : > { %3999 = vmatprep.mubr.f32.mxu0 %v11322_v30  ;;  %8235 = vmatpush3.bf16.msra.mxu1 %v8232_v2 }
 0x5b2   : > { %7128 = vmatmul.mubr.msk.f32.gmra.mrb[248].mxu0 %vm363_vm0, %v9793_v47  ;;  %7909 = vmatmul.mubr.msk.f32.vlgmr.msra.gmra.mrb[32].mxu1 %vm363_vm0, %v9786_v36  ;;  %v2979_v36 = vpop.f32.mrb[211].mxu1 }
 0x5b3   : > { %4005 = vmatprep.mubr.f32.mxu0 %v11322_v30  ;;  %7911 = vmatprep.mubr.msk.f32.mxu1 %vm363_vm0, %v9800_v3  ;;  %3544 = vst [vmem:[#allocation2 + $0x9e0] sm:$0xff] %v2979_v36  ;;  %v2983_v3 = vpop.f32.mrb[212].mxu1 }
 0x5b4   : > { %3546 = vst [vmem:[#allocation2 + $0x9f0] sm:$0xff] %v2983_v3  ;;  %v8442_v3 = vld [vmem:[%s11292_s1 + $0x118] sm:$0xff] }
 0x5b6   : > { %7129 = vmatmul.mubr.msk.f32.gmra.mrb[250].mxu0 %vm363_vm0, %v9817_v9  ;;  %7912 = vmatmul.mubr.msk.f32.gmra.mrb[34].mxu1 %vm363_vm0, %v9810_v41  ;;  %v2985_v41 = vpop.f32.mrb[213].mxu1 }
 0x5b7   : > { %4011 = vmatprep.mubr.f32.mxu0 %v11322_v30  ;;  %7914 = vmatprep.mubr.msk.f32.mxu1 %vm363_vm0, %v9793_v47  ;;  %3547 = vst [vmem:[#allocation2 + $0x9f8] sm:$0xff] %v2985_v41  ;;  %v2989_v47 = vpop.f32.mrb[214].mxu1 }
 0x5b8   : > { %3549 = vst [vmem:[#allocation2 + $0xa08] sm:$0xff] %v2989_v47 }
 0x5ba   : > { %7130 = vmatmul.mubr.msk.f32.gmra.mrb[252].mxu0 %vm363_vm0, %v9831_v32  ;;  %7915 = vmatmul.mubr.msk.f32.gmra.mrb[36].mxu1 %vm363_vm0, %v9817_v9  ;;  %v2991_v9 = vpop.f32.mrb[215].mxu1 }
 0x5bb   : > { %4017 = vmatprep.mubr.f32.mxu0 %v11322_v30  ;;  %7917 = vmatprep.mubr.msk.f32.mxu1 %vm363_vm0, %v9831_v32  ;;  %3550 = vst [vmem:[#allocation2 + $0xa10] sm:$0xff] %v2991_v9  ;;  %v2995_v32 = vpop.f32.mrb[216].mxu1  ;;  %v8443_v9 = vld [vmem:[%s11292_s1 + $0x120] sm:$0xff] }
 0x5bc   : > { %3552 = vst [vmem:[#allocation2 + $0xa20] sm:$0xff] %v2995_v32 }
 0x5be   : > { %7131 = vmatmul.mubr.msk.f32.gmra.mrb[254].mxu0 %vm363_vm0, %v9843_v49  ;;  %7918 = vmatmul.mubr.msk.f32.gmra.mrb[38].mxu1 %vm363_vm0, %v9843_v49  ;;  %v2997_v49 = vpop.f32.mrb[217].mxu1 }
 0x5bf   : > { %4023 = vmatprep.mubr.f32.mxu0 %v11322_v30  ;;  %7920 = vmatprep.mubr.msk.f32.mxu1 %vm363_vm0, %v9852_v21  ;;  %3553 = vst [vmem:[#allocation2 + $0xa28] sm:$0xff] %v2997_v49  ;;  %v3001_v37 = vpop.f32.mrb[218].mxu1 }
 0x5c0   : > { %3555 = vst [vmem:[#allocation2 + $0xa38] sm:$0xff] %v3001_v37  ;;  %v8444_v37 = vld [vmem:[%s11292_s1 + $0x128] sm:$0xff] }
 0x5c2   : > { %7132 = vmatmul.mubr.msk.f32.gmra.mrb[0].mxu0 %vm363_vm0, %v9852_v21  ;;  %7921 = vmatmul.mubr.msk.f32.gmra.mrb[40].mxu1 %vm363_vm0, %v9862_v45  ;;  %v3003_v21 = vpop.f32.mrb[219].mxu1 }
 0x5c3   : > { %4029 = vmatprep.mubr.f32.mxu0 %v11322_v30  ;;  %7923 = vmatprep.mubr.msk.f32.mxu1 %vm363_vm0, %v9871_v33  ;;  %3556 = vst [vmem:[#allocation2 + $0xa40] sm:$0xff] %v3003_v21  ;;  %v3007_v38 = vpop.f32.mrb[220].mxu1 }
 0x5c4   : > { %3558 = vst [vmem:[#allocation2 + $0xa50] sm:$0xff] %v3007_v38 }
 0x5c6   : > { %7133 = vmatmul.mubr.msk.f32.gmra.mrb[2].mxu0 %vm363_vm0, %v9862_v45  ;;  %7924 = vmatmul.mubr.msk.f32.gmra.mrb[42].mxu1 %vm363_vm0, %v9879_v55  ;;  %v3009_v45 = vpop.f32.mrb[221].mxu1 }
 0x5c7   : > { %4035 = vmatprep.mubr.f32.mxu0 %v11322_v30  ;;  %7926 = vmatprep.mubr.msk.f32.mxu1 %vm363_vm0, %v9888_v57  ;;  %3559 = vst [vmem:[#allocation2 + $0xa58] sm:$0xff] %v3009_v45  ;;  %v3013_v11 = vpop.f32.mrb[222].mxu1  ;;  %v8445_v45 = vld [vmem:[%s11292_s1 + $0x130] sm:$0xff] }
 0x5c8   : > { %3561 = vst [vmem:[#allocation2 + $0xa68] sm:$0xff] %v3013_v11 }
 0x5ca   : > { %7134 = vmatmul.mubr.msk.f32.gmra.mrb[4].mxu0 %vm363_vm0, %v9871_v33  ;;  %7927 = vmatmul.mubr.msk.f32.gmra.mrb[44].mxu1 %vm363_vm0, %v9896_v61  ;;  %v3015_v33 = vpop.f32.mrb[223].mxu1 }
 0x5cb   : > { %4041 = vmatprep.mubr.f32.mxu0 %v11322_v30  ;;  %7929 = vmatprep.mubr.msk.f32.mxu1 %vm363_vm0, %v9905_v63  ;;  %3562 = vst [vmem:[#allocation2 + $0xa70] sm:$0xff] %v3015_v33  ;;  %v3019_v12 = vpop.f32.mrb[224].mxu1 }
 0x5cc   : > { %3564 = vst [vmem:[#allocation2 + $0xa80] sm:$0xff] %v3019_v12  ;;  %v8446_v12 = vld [vmem:[%s11292_s1 + $0x138] sm:$0xff] }
 0x5ce   : > { %7135 = vmatmul.mubr.msk.f32.gmra.mrb[6].mxu0 %vm363_vm0, %v9879_v55  ;;  %7930 = vmatmul.mubr.msk.f32.gmra.mrb[46].mxu1 %vm363_vm0, %v9913_v5  ;;  %v3021_v55 = vpop.f32.mrb[225].mxu1 }
 0x5cf   : > { %4047 = vmatprep.mubr.f32.mxu0 %v11322_v30  ;;  %7932 = vmatprep.mubr.msk.f32.mxu1 %vm363_vm0, %v9922_v10  ;;  %3565 = vst [vmem:[#allocation2 + $0xa88] sm:$0xff] %v3021_v55  ;;  %v3025_v13 = vpop.f32.mrb[226].mxu1 }
 0x5d0   : > { %3567 = vst [vmem:[#allocation2 + $0xa98] sm:$0xff] %v3025_v13 }
 0x5d2   : > { %7136 = vmatmul.mubr.msk.f32.gmra.mrb[8].mxu0 %vm363_vm0, %v9888_v57  ;;  %7933 = vmatmul.mubr.msk.f32.gmra.mrb[48].mxu1 %vm363_vm0, %v9930_v17  ;;  %v3027_v57 = vpop.f32.mrb[227].mxu1 }
 0x5d3   : > { %4053 = vmatprep.mubr.f32.mxu0 %v11322_v30  ;;  %7935 = vmatprep.mubr.msk.f32.mxu1 %vm363_vm0, %v9939_v22  ;;  %3568 = vst [vmem:[#allocation2 + $0xaa0] sm:$0xff] %v3027_v57  ;;  %v3031_v27 = vpop.f32.mrb[228].mxu1  ;;  %v8447_v57 = vld [vmem:[%s11292_s1 + $0x140] sm:$0xff] }
 0x5d4   : > { %3570 = vst [vmem:[#allocation2 + $0xab0] sm:$0xff] %v3031_v27 }
 0x5d6   : > { %7137 = vmatmul.mubr.msk.f32.gmra.mrb[10].mxu0 %vm363_vm0, %v9896_v61  ;;  %7936 = vmatmul.mubr.msk.f32.gmra.mrb[50].mxu1 %vm363_vm0, %v9947_v24  ;;  %v3033_v61 = vpop.f32.mrb[229].mxu1 }
 0x5d7   : > { %4059 = vmatprep.mubr.f32.mxu0 %v11322_v30  ;;  %7938 = vmatprep.mubr.msk.f32.mxu1 %vm363_vm0, %v9956_v34  ;;  %3571 = vst [vmem:[#allocation2 + $0xab8] sm:$0xff] %v3033_v61  ;;  %v3037_v4 = vpop.f32.mrb[230].mxu1 }
 0x5d8   : > { %3573 = vst [vmem:[#allocation2 + $0xac8] sm:$0xff] %v3037_v4  ;;  %v8448_v4 = vld [vmem:[%s11292_s1 + $0x148] sm:$0xff] }
 0x5da   : > { %7138 = vmatmul.mubr.msk.f32.gmra.mrb[12].mxu0 %vm363_vm0, %v9905_v63  ;;  %7939 = vmatmul.mubr.msk.f32.gmra.mrb[52].mxu1 %vm363_vm0, %v9964_v40  ;;  %v3039_v63 = vpop.f32.mrb[231].mxu1 }
 0x5db   : > { %4065 = vmatprep.mubr.f32.mxu0 %v11322_v30  ;;  %7941 = vmatprep.mubr.msk.f32.mxu1 %vm363_vm0, %v9973_v18  ;;  %3574 = vst [vmem:[#allocation2 + $0xad0] sm:$0xff] %v3039_v63  ;;  %v3043_v31 = vpop.f32.mrb[232].mxu1 }
 0x5dc   : > { %3576 = vst [vmem:[#allocation2 + $0xae0] sm:$0xff] %v3043_v31  ;;  %v3045_v35 = vpop.f32.mrb[233].mxu1 }
 0x5dd   : > { %3577 = vst [vmem:[#allocation2 + $0xae8] sm:$0xff] %v3045_v35  ;;  %v8449_v35 = vld [vmem:[%s11292_s1 + $0x150] sm:$0xff] }
 0x5de   : > { %7139 = vmatmul.mubr.msk.f32.gmra.mrb[14].mxu0 %vm363_vm0, %v9913_v5  ;;  %7942 = vmatmul.mubr.msk.f32.gmra.mrb[54].mxu1 %vm363_vm0, %v9981_v8  ;;  %v3049_v5 = vpop.f32.mrb[234].mxu1 }
 0x5df   : > { %4071 = vmatprep.mubr.f32.mxu0 %v11322_v30  ;;  %7944 = vmatprep.mubr.msk.f32.mxu1 %vm363_vm0, %v9990_v42  ;;  %3579 = vst [vmem:[#allocation2 + $0xaf8] sm:$0xff] %v3049_v5  ;;  %v3051_v39 = vpop.f32.mrb[235].mxu1 }
 0x5e0   : > { %3580 = vst [vmem:[#allocation2 + $0xb00] sm:$0xff] %v3051_v39  ;;  %v3055_v7 = vpop.f32.mrb[236].mxu1 }
 0x5e1   : > { %3582 = vst [vmem:[#allocation2 + $0xb10] sm:$0xff] %v3055_v7  ;;  %v3057_v19 = vpop.f32.mrb[237].mxu1  ;;  %v8450_v7 = vld [vmem:[%s11292_s1 + $0x158] sm:$0xff] }
 0x5e2   : > { %7140 = vmatmul.mubr.msk.f32.gmra.mrb[16].mxu0 %vm363_vm0, %v9922_v10  ;;  %7945 = vmatmul.mubr.msk.f32.gmra.mrb[56].mxu1 %vm363_vm0, %v9998_v43  ;;  %3583 = vst [vmem:[#allocation2 + $0xb18] sm:$0xff] %v3057_v19  ;;  %v3061_v10 = vpop.f32.mrb[238].mxu1 }
 0x5e3   : > { %4077 = vmatprep.mubr.f32.mxu0 %v11322_v30  ;;  %7947 = vmatprep.mubr.msk.f32.mxu1 %vm363_vm0, %v10007_v44  ;;  %3585 = vst [vmem:[#allocation2 + $0xb28] sm:$0xff] %v3061_v10  ;;  %v3063_v2 = vpop.f32.mrb[239].mxu1 }
 0x5e4   : > { %3586 = vst [vmem:[#allocation2 + $0xb30] sm:$0xff] %v3063_v2  ;;  %v3067_v23 = vpop.f32.mrb[240].mxu1  ;;  %v8451_v2 = vld [vmem:[%s11292_s1 + $0x160] sm:$0xff] }
 0x5e5   : > { %3588 = vst [vmem:[#allocation2 + $0xb40] sm:$0xff] %v3067_v23  ;;  %v8452_v23 = vld [vmem:[%s11292_s1 + $0x168] sm:$0xff] }
 0x5e6   : > { %7141 = vmatmul.mubr.msk.f32.gmra.mrb[18].mxu0 %vm363_vm0, %v9930_v17  ;;  %7948 = vmatmul.mubr.msk.f32.gmra.mrb[58].mxu1 %vm363_vm0, %v10015_v46  ;;  %v3069_v17 = vpop.f32.mrb[241].mxu1 }
 0x5e7   : > { %4083 = vmatprep.mubr.f32.mxu0 %v11322_v30  ;;  %7950 = vmatprep.mubr.msk.f32.mxu1 %vm363_vm0, %v10024_v14  ;;  %3589 = vst [vmem:[#allocation2 + $0xb48] sm:$0xff] %v3069_v17  ;;  %v8453_v17 = vld [vmem:[%s11292_s1 + $0x170] sm:$0xff] }
 0x5ea   : > { %7142 = vmatmul.mubr.msk.f32.gmra.mrb[20].mxu0 %vm363_vm0, %v9939_v22  ;;  %7951 = vmatmul.mubr.msk.f32.gmra.mrb[60].mxu1 %vm363_vm0, %v10032_v15  ;;  %v3073_v22 = vpop.f32.mrb[242].mxu1 }
 0x5eb   : > { %4089 = vmatprep.mubr.f32.mxu0 %v11322_v30  ;;  %7953 = vmatprep.mubr.msk.f32.mxu1 %vm363_vm0, %v10041_v48  ;;  %3591 = vst [vmem:[#allocation2 + $0xb58] sm:$0xff] %v3073_v22  ;;  %v8454_v22 = vld [vmem:[%s11292_s1 + $0x178] sm:$0xff] }
 0x5ee   : > { %7143 = vmatmul.mubr.msk.f32.gmra.mrb[22].mxu0 %vm363_vm0, %v9947_v24  ;;  %7954 = vmatmul.mubr.msk.f32.gmra.mrb[62].mxu1 %vm363_vm0, %v10049_v20  ;;  %v3075_v24 = vpop.f32.mrb[243].mxu1 }
 0x5ef   : > { %4095 = vmatprep.mubr.f32.mxu0 %v11322_v30  ;;  %7956 = vmatprep.mubr.msk.f32.mxu1 %vm363_vm0, %v10058_v50  ;;  %3592 = vst [vmem:[#allocation2 + $0xb60] sm:$0xff] %v3075_v24 }
 0x5f2   : > { %7144 = vmatmul.mubr.msk.f32.gmra.mrb[24].mxu0 %vm363_vm0, %v9956_v34  ;;  %7957 = vmatmul.mubr.msk.f32.gmra.mrb[64].mxu1 %vm363_vm0, %v10066_v51  ;;  %v3079_v34 = vpop.f32.mrb[244].mxu1 }
 0x5f3   : > { %4101 = vmatprep.mubr.f32.mxu0 %v11322_v30  ;;  %7959 = vmatprep.mubr.msk.f32.mxu1 %vm363_vm0, %v10075_v16  ;;  %3594 = vst [vmem:[#allocation2 + $0xb70] sm:$0xff] %v3079_v34 }
 0x5f6   : > { %7145 = vmatmul.mubr.msk.f32.gmra.mrb[26].mxu0 %vm363_vm0, %v9964_v40  ;;  %7960 = vmatmul.mubr.msk.f32.gmra.mrb[66].mxu1 %vm363_vm0, %v10083_v26  ;;  %v3081_v40 = vpop.f32.mrb[245].mxu1 }
 0x5f7   : > { %4107 = vmatprep.mubr.f32.mxu0 %v11322_v30  ;;  %7962 = vmatprep.mubr.msk.f32.mxu1 %vm363_vm0, %v10092_v52  ;;  %3595 = vst [vmem:[#allocation2 + $0xb78] sm:$0xff] %v3081_v40 }
 0x5fa   : > { %7146 = vmatmul.mubr.msk.f32.gmra.mrb[28].mxu0 %vm363_vm0, %v9973_v18  ;;  %7963 = vmatmul.mubr.msk.f32.gmra.mrb[68].mxu1 %vm363_vm0, %v10100_v53  ;;  %v3085_v18 = vpop.f32.mrb[246].mxu1  ;;  %v11324_v53 = vld [vmem:[#allocation20_spill] sm:$0xff] }
 0x5fb   : > { %4113 = vmatprep.mubr.f32.mxu0 %v11322_v30  ;;  %7965 = vmatprep.mubr.msk.f32.mxu1 %vm363_vm0, %v10109_v54  ;;  %3597 = vst [vmem:[#allocation2 + $0xb88] sm:$0xff] %v3085_v18  ;;  %v3087_v50 = vpop.f32.mrb[247].mxu1 }
 0x5fc   : > { %3598 = vst [vmem:[#allocation2 + $0xb90] sm:$0xff] %v3087_v50 }
 0x5fe   : > { %7147 = vmatmul.mubr.msk.f32.gmra.mrb[30].mxu0 %vm363_vm0, %v9981_v8  ;;  %7966 = vmatmul.mubr.msk.f32.gmra.mrb[70].mxu1 %vm363_vm0, %v10117_v56  ;;  %v3091_v8 = vpop.f32.mrb[248].mxu1 }
 0x5ff   : > { %4119 = vmatprep.mubr.f32.mxu0 %v11322_v30  ;;  %7968 = vmatprep.mubr.msk.f32.mxu1 %vm363_vm0, %v10126_v58  ;;  %3600 = vst [vmem:[#allocation2 + $0xba0] sm:$0xff] %v3091_v8  ;;  %v3093_v51 = vpop.f32.mrb[249].mxu1 }
 0x600   : > { %3601 = vst [vmem:[#allocation2 + $0xba8] sm:$0xff] %v3093_v51 }
 0x602   : > { %7148 = vmatmul.mubr.msk.f32.gmra.mrb[32].mxu0 %vm363_vm0, %v9990_v42  ;;  %7969 = vmatmul.mubr.msk.f32.gmra.mrb[72].mxu1 %vm363_vm0, %v10134_v59  ;;  %v3097_v42 = vpop.f32.mrb[250].mxu1 }
 0x603   : > { %4125 = vmatprep.mubr.f32.mxu0 %v11322_v30  ;;  %7971 = vmatprep.mubr.msk.f32.mxu1 %vm363_vm0, %v10143_v60  ;;  %3603 = vst [vmem:[#allocation2 + $0xbb8] sm:$0xff] %v3097_v42  ;;  %v3099_v16 = vpop.f32.mrb[251].mxu1 }
 0x604   : > { %3604 = vst [vmem:[#allocation2 + $0xbc0] sm:$0xff] %v3099_v16  ;;  %v3103_v26 = vpop.f32.mrb[252].mxu1 }
 0x605   : > { %3606 = vst [vmem:[#allocation2 + $0xbd0] sm:$0xff] %v3103_v26  ;;  %v3105_v52 = vpop.f32.mrb[253].mxu1 }
 0x606   : > { %7149 = vmatmul.mubr.msk.f32.gmra.mrb[34].mxu0 %vm363_vm0, %v9998_v43  ;;  %7972 = vmatmul.mubr.msk.f32.gmra.mrb[74].mxu1 %vm363_vm0, %v10151_v62  ;;  %v11323_v43 = vld [vmem:[#allocation19_spill] sm:$0xff]  ;;  %3607 = vst [vmem:[#allocation2 + $0xbd8] sm:$0xff] %v3105_v52 }
 0x607   : > { %4131 = vmatprep.mubr.f32.mxu0 %v11322_v30  ;;  %7974 = vmatprep.mubr.msk.f32.mxu1 %vm363_vm0, %v10160_v0  ;;  %v8439_v0 = vld [vmem:[%s11292_s1 + $0x100] sm:$0xff] }
 0x60a   : > { %7150 = vmatmul.mubr.msk.f32.gmra.mrb[36].mxu0 %vm363_vm0, %v10007_v44  ;;  %7975 = vmatmul.mubr.msk.f32.gmra.mrb[76].mxu1 %vm363_vm0, %v10168_v1  ;;  %v3109_v44 = vpop.f32.mrb[254].mxu1 }
 0x60b   : > { %4137 = vmatprep.mubr.f32.mxu0 %v11322_v30  ;;  %7977 = vmatprep.mubr.msk.f32.mxu1 %vm363_vm0, %v11323_v43  ;;  %3609 = vst [vmem:[#allocation2 + $0xbe8] sm:$0xff] %v3109_v44  ;;  %v3111_v54 = vpop.f32.mrb[255].mxu1 }
 0x60c   : > { %3610 = vst [vmem:[#allocation2 + $0xbf0] sm:$0xff] %v3111_v54  ;;  %v3115_v56 = vpop.f32.mrb[0].mxu1 }
 0x60d   : > { %3612 = vst [vmem:[#allocation2 + $0xc00] sm:$0xff] %v3115_v56  ;;  %v3117_v58 = vpop.f32.mrb[1].mxu1 }
 0x60e   : > { %7151 = vmatmul.mubr.msk.f32.gmra.mrb[38].mxu0 %vm363_vm0, %v10015_v46  ;;  %7978 = vmatmul.mubr.msk.f32.gmra.mrb[78].mxu1 %vm363_vm0, %v11324_v53  ;;  %3613 = vst [vmem:[#allocation2 + $0xc08] sm:$0xff] %v3117_v58  ;;  %v3121_v46 = vpop.f32.mrb[2].mxu1 }
 0x60f   : > { %4143 = vmatprep.mubr.f32.mxu0 %v11322_v30  ;;  %3615 = vst [vmem:[#allocation2 + $0xc18] sm:$0xff] %v3121_v46  ;;  %v3123_v59 = vpop.f32.mrb[3].mxu1 }
 0x610   : > { %3616 = vst [vmem:[#allocation2 + $0xc20] sm:$0xff] %v3123_v59 }
 0x612   : > { %7152 = vmatmul.mubr.msk.f32.gmra.mrb[40].mxu0 %vm363_vm0, %v10024_v14  ;;  %v3127_v14 = vpop.f32.mrb[4].mxu1 }
 0x613   : > { %4149 = vmatprep.mubr.f32.mxu0 %v11322_v30  ;;  %3618 = vst [vmem:[#allocation2 + $0xc30] sm:$0xff] %v3127_v14  ;;  %v3129_v60 = vpop.f32.mrb[5].mxu1 }
 0x614   : > { %3619 = vst [vmem:[#allocation2 + $0xc38] sm:$0xff] %v3129_v60 }
 0x616   : > { %7153 = vmatmul.mubr.msk.f32.gmra.mrb[42].mxu0 %vm363_vm0, %v10032_v15  ;;  %v3133_v15 = vpop.f32.mrb[6].mxu1 }
 0x617   : > { %4155 = vmatprep.mubr.f32.mxu0 %v11322_v30  ;;  %3621 = vst [vmem:[#allocation2 + $0xc48] sm:$0xff] %v3133_v15  ;;  %v3135_v62 = vpop.f32.mrb[7].mxu1 }
 0x618   : > { %3622 = vst [vmem:[#allocation2 + $0xc50] sm:$0xff] %v3135_v62 }
 0x61a   : > { %7154 = vmatmul.mubr.msk.f32.gmra.mrb[44].mxu0 %vm363_vm0, %v10041_v48  ;;  %v3139_v48 = vpop.f32.mrb[8].mxu1 }
 0x61b   : > { %4161 = vmatprep.mubr.f32.mxu0 %v11322_v30  ;;  %3624 = vst [vmem:[#allocation2 + $0xc60] sm:$0xff] %v3139_v48  ;;  %v3141_v1 = vpop.f32.mrb[9].mxu1 }
 0x61c   : > { %3625 = vst [vmem:[#allocation2 + $0xc68] sm:$0xff] %v3141_v1  ;;  %v3145_v25 = vpop.f32.mrb[10].mxu1 }
 0x61d   : > { %3627 = vst [vmem:[#allocation2 + $0xc78] sm:$0xff] %v3145_v25  ;;  %v3147_v6 = vpop.f32.mrb[11].mxu1 }
 0x61e   : > { %7155 = vmatmul.mubr.msk.f32.gmra.mrb[46].mxu0 %vm363_vm0, %v10049_v20  ;;  %v8440_v20 = vld [vmem:[%s11292_s1 + $0x108] sm:$0xff]  ;;  %3628 = vst [vmem:[#allocation2 + $0xc80] sm:$0xff] %v3147_v6  ;;  %v3151_v29 = vpop.f32.mrb[12].mxu1 }
 0x61f   : > { %4167 = vmatprep.mubr.f32.mxu0 %v11322_v30  ;;  %3630 = vst [vmem:[#allocation2 + $0xc90] sm:$0xff] %v3151_v29  ;;  %v3153_v36 = vpop.f32.mrb[13].mxu1 }
 0x620   : > { %3631 = vst [vmem:[#allocation2 + $0xc98] sm:$0xff] %v3153_v36  ;;  %v3157_v41 = vpop.f32.mrb[14].mxu1 }
 0x621   : > { %3633 = vst [vmem:[#allocation2 + $0xca8] sm:$0xff] %v3157_v41  ;;  %v3159_v47 = vpop.f32.mrb[15].mxu1 }
 0x622   : > { %7156 = vmatmul.mubr.msk.f32.gmra.mrb[48].mxu0 %vm363_vm0, %v8439_v0  ;;  %3634 = vst [vmem:[#allocation2 + $0xcb0] sm:$0xff] %v3159_v47  ;;  %v3163_v32 = vpop.f32.mrb[16].mxu1 }
 0x623   : > { %4173 = vmatprep.mubr.f32.mxu0 %v11322_v30  ;;  %3636 = vst [vmem:[#allocation2 + $0xcc0] sm:$0xff] %v3163_v32  ;;  %v3165_v49 = vpop.f32.mrb[17].mxu1 }
 0x624   : > { %3637 = vst [vmem:[#allocation2 + $0xcc8] sm:$0xff] %v3165_v49  ;;  %v3169_v21 = vpop.f32.mrb[18].mxu1 }
 0x625   : > { %3639 = vst [vmem:[#allocation2 + $0xcd8] sm:$0xff] %v3169_v21  ;;  %v3171_v38 = vpop.f32.mrb[19].mxu1 }
 0x626   : > { %7157 = vmatmul.mubr.msk.f32.gmra.mrb[50].mxu0 %vm363_vm0, %v8440_v20  ;;  %3640 = vst [vmem:[#allocation2 + $0xce0] sm:$0xff] %v3171_v38  ;;  %v3175_v11 = vpop.f32.mrb[20].mxu1 }
 0x627   : > { %4179 = vmatprep.mubr.f32.mxu0 %v11322_v30  ;;  %3642 = vst [vmem:[#allocation2 + $0xcf0] sm:$0xff] %v3175_v11  ;;  %v3177_v33 = vpop.f32.mrb[21].mxu1 }
 0x628   : > { %3643 = vst [vmem:[#allocation2 + $0xcf8] sm:$0xff] %v3177_v33  ;;  %v3181_v55 = vpop.f32.mrb[22].mxu1 }
 0x629   : > { %3645 = vst [vmem:[#allocation2 + $0xd08] sm:$0xff] %v3181_v55  ;;  %v3183_v13 = vpop.f32.mrb[23].mxu1 }
 0x62a   : > { %7158 = vmatmul.mubr.msk.f32.gmra.mrb[52].mxu0 %vm363_vm0, %v8441_v28  ;;  %3646 = vst [vmem:[#allocation2 + $0xd10] sm:$0xff] %v3183_v13  ;;  %v3187_v27 = vpop.f32.mrb[24].mxu1 }
 0x62b   : > { %4185 = vmatprep.mubr.f32.mxu0 %v11322_v30  ;;  %3648 = vst [vmem:[#allocation2 + $0xd20] sm:$0xff] %v3187_v27  ;;  %v3189_v61 = vpop.f32.mrb[25].mxu1 }
 0x62c   : > { %3649 = vst [vmem:[#allocation2 + $0xd28] sm:$0xff] %v3189_v61  ;;  %v3193_v63 = vpop.f32.mrb[26].mxu1 }
 0x62d   : > { %3651 = vst [vmem:[#allocation2 + $0xd38] sm:$0xff] %v3193_v63  ;;  %v3195_v31 = vpop.f32.mrb[27].mxu1 }
 0x62e   : > { %7159 = vmatmul.mubr.msk.f32.gmra.mrb[54].mxu0 %vm363_vm0, %v8442_v3  ;;  %3652 = vst [vmem:[#allocation2 + $0xd40] sm:$0xff] %v3195_v31  ;;  %v3199_v5 = vpop.f32.mrb[28].mxu1 }
 0x62f   : > { %4191 = vmatprep.mubr.f32.mxu0 %v11322_v30  ;;  %3654 = vst [vmem:[#allocation2 + $0xd50] sm:$0xff] %v3199_v5  ;;  %v3201_v39 = vpop.f32.mrb[29].mxu1 }
 0x630   : > { %3655 = vst [vmem:[#allocation2 + $0xd58] sm:$0xff] %v3201_v39  ;;  %v3205_v19 = vpop.f32.mrb[30].mxu1 }
 0x631   : > { %3657 = vst [vmem:[#allocation2 + $0xd68] sm:$0xff] %v3205_v19  ;;  %v3207_v10 = vpop.f32.mrb[31].mxu1 }
 0x632   : > { %7160 = vmatmul.mubr.msk.f32.gmra.mrb[56].mxu0 %vm363_vm0, %v8443_v9  ;;  %3658 = vst [vmem:[#allocation2 + $0xd70] sm:$0xff] %v3207_v10 }
 0x633   : > { %4197 = vmatprep.mubr.f32.mxu0 %v11322_v30 }
 0x636   : > { %7161 = vmatmul.mubr.msk.f32.gmra.mrb[58].mxu0 %vm363_vm0, %v8444_v37 }
 0x637   : > { %4203 = vmatprep.mubr.f32.mxu0 %v11322_v30 }
 0x63a   : > { %7162 = vmatmul.mubr.msk.f32.gmra.mrb[60].mxu0 %vm363_vm0, %v8445_v45 }
 0x63b   : > { %4209 = vmatprep.mubr.f32.mxu0 %v11322_v30 }
 0x63e   : > { %7163 = vmatmul.mubr.msk.f32.gmra.mrb[62].mxu0 %vm363_vm0, %v8446_v12 }
 0x63f   : > { %4215 = vmatprep.mubr.f32.mxu0 %v11322_v30 }
 0x642   : > { %7164 = vmatmul.mubr.msk.f32.gmra.mrb[64].mxu0 %vm363_vm0, %v8447_v57 }
 0x643   : > { %4221 = vmatprep.mubr.f32.mxu0 %v11322_v30 }
 0x646   : > { %7165 = vmatmul.mubr.msk.f32.gmra.mrb[66].mxu0 %vm363_vm0, %v8448_v4 }
 0x647   : > { %4227 = vmatprep.mubr.f32.mxu0 %v11322_v30 }
 0x64a   : > { %7166 = vmatmul.mubr.msk.f32.gmra.mrb[68].mxu0 %vm363_vm0, %v8449_v35 }
 0x64b   : > { %4233 = vmatprep.mubr.f32.mxu0 %v11322_v30 }
 0x64e   : > { %7167 = vmatmul.mubr.msk.f32.gmra.mrb[70].mxu0 %vm363_vm0, %v8450_v7 }
 0x64f   : > { %4239 = vmatprep.mubr.f32.mxu0 %v11322_v30 }
 0x652   : > { %7168 = vmatmul.mubr.msk.f32.gmra.mrb[72].mxu0 %vm363_vm0, %v8451_v2 }
 0x653   : > { %4245 = vmatprep.mubr.f32.mxu0 %v11322_v30 }
 0x656   : > { %7169 = vmatmul.mubr.msk.f32.gmra.mrb[74].mxu0 %vm363_vm0, %v8452_v23 }
 0x657   : > { %4251 = vmatprep.mubr.f32.mxu0 %v11322_v30 }
 0x65a   : > { %7170 = vmatmul.mubr.msk.f32.gmra.mrb[76].mxu0 %vm363_vm0, %v8453_v17 }
 0x65b   : > { %4257 = vmatprep.mubr.f32.mxu0 %v11322_v30 }
 0x65e   : > { %7171 = vmatmul.mubr.msk.f32.gmra.mrb[78].mxu0 %vm363_vm0, %v8454_v22 }
 0x675   : > { %v3977_v24 = vpop.f32.mrb[240].mxu0 }
 0x676   : > { %4570 = vst [vmem:[#allocation2 + $0xd80] sm:$0xff] %v3977_v24  ;;  %v3979_v34 = vpop.f32.mrb[241].mxu0 }
 0x677   : > { %4571 = vst [vmem:[#allocation2 + $0xd88] sm:$0xff] %v3979_v34 }
 0x679   : > { %v3983_v40 = vpop.f32.mrb[242].mxu0 }
 0x67a   : > { %4573 = vst [vmem:[#allocation2 + $0xd98] sm:$0xff] %v3983_v40  ;;  %v3985_v18 = vpop.f32.mrb[243].mxu0 }
 0x67b   : > { %4574 = vst [vmem:[#allocation2 + $0xda0] sm:$0xff] %v3985_v18 }
 0x67d   : > { %v3989_v50 = vpop.f32.mrb[244].mxu0 }
 0x67e   : > { %4576 = vst [vmem:[#allocation2 + $0xdb0] sm:$0xff] %v3989_v50  ;;  %v3991_v8 = vpop.f32.mrb[245].mxu0 }
 0x67f   : > { %4577 = vst [vmem:[#allocation2 + $0xdb8] sm:$0xff] %v3991_v8 }
 0x681   : > { %v3995_v51 = vpop.f32.mrb[246].mxu0 }
 0x682   : > { %4579 = vst [vmem:[#allocation2 + $0xdc8] sm:$0xff] %v3995_v51  ;;  %v3997_v30 = vpop.f32.mrb[247].mxu0 }
 0x683   : > { %4580 = vst [vmem:[#allocation2 + $0xdd0] sm:$0xff] %v3997_v30 }
 0x685   : > { %v4001_v42 = vpop.f32.mrb[248].mxu0  ;;  %v7910_v16 = vpop.f32.mrb[32].mxu1 }
 0x686   : > { %4582 = vst [vmem:[#allocation2 + $0xde0] sm:$0xff] %v4001_v42  ;;  %v4003_v43 = vpop.f32.mrb[249].mxu0  ;;  %4575 = vst [vmem:[#allocation2 + $0xda8] sm:$0xff] %v7910_v16  ;;  %v4330_v26 = vpop.f32.mrb[33].mxu1 }
 0x687   : > { %4583 = vst [vmem:[#allocation2 + $0xde8] sm:$0xff] %v4003_v43  ;;  %4572 = vst [vmem:[#allocation2 + $0xd90] sm:$0xff] %v4330_v26 }
 0x689   : > { %v4007_v52 = vpop.f32.mrb[250].mxu0  ;;  %v7913_v53 = vpop.f32.mrb[34].mxu1 }
 0x68a   : > { %4585 = vst [vmem:[#allocation2 + $0xdf8] sm:$0xff] %v4007_v52  ;;  %v4009_v44 = vpop.f32.mrb[251].mxu0  ;;  %4581 = vst [vmem:[#allocation2 + $0xdd8] sm:$0xff] %v7913_v53  ;;  %v4340_v54 = vpop.f32.mrb[35].mxu1 }
 0x68b   : > { %4586 = vst [vmem:[#allocation2 + $0xe00] sm:$0xff] %v4009_v44  ;;  %4578 = vst [vmem:[#allocation2 + $0xdc0] sm:$0xff] %v4340_v54 }
 0x68d   : > { %v4013_v56 = vpop.f32.mrb[252].mxu0  ;;  %v7916_v58 = vpop.f32.mrb[36].mxu1 }
 0x68e   : > { %4588 = vst [vmem:[#allocation2 + $0xe10] sm:$0xff] %v4013_v56  ;;  %v4015_v46 = vpop.f32.mrb[253].mxu0  ;;  %4587 = vst [vmem:[#allocation2 + $0xe08] sm:$0xff] %v7916_v58  ;;  %v4350_v59 = vpop.f32.mrb[37].mxu1 }
 0x68f   : > { %4589 = vst [vmem:[#allocation2 + $0xe18] sm:$0xff] %v4015_v46  ;;  %4584 = vst [vmem:[#allocation2 + $0xdf0] sm:$0xff] %v4350_v59 }
 0x691   : > { %v4019_v14 = vpop.f32.mrb[254].mxu0  ;;  %v7919_v60 = vpop.f32.mrb[38].mxu1 }
 0x692   : > { %4591 = vst [vmem:[#allocation2 + $0xe28] sm:$0xff] %v4019_v14  ;;  %v4021_v15 = vpop.f32.mrb[255].mxu0  ;;  %4593 = vst [vmem:[#allocation2 + $0xe38] sm:$0xff] %v7919_v60  ;;  %v4360_v62 = vpop.f32.mrb[39].mxu1 }
 0x693   : > { %4592 = vst [vmem:[#allocation2 + $0xe30] sm:$0xff] %v4021_v15  ;;  %4590 = vst [vmem:[#allocation2 + $0xe20] sm:$0xff] %v4360_v62 }
 0x695   : > { %v4025_v0 = vpop.f32.mrb[0].mxu0  ;;  %v7922_v48 = vpop.f32.mrb[40].mxu1 }
 0x696   : > { %4594 = vst [vmem:[#allocation2 + $0xe40] sm:$0xff] %v4025_v0  ;;  %v4027_v1 = vpop.f32.mrb[1].mxu0  ;;  %4599 = vst [vmem:[#allocation2 + $0xe68] sm:$0xff] %v7922_v48  ;;  %v4370_v20 = vpop.f32.mrb[41].mxu1 }
 0x697   : > { %4595 = vst [vmem:[#allocation2 + $0xe48] sm:$0xff] %v4027_v1  ;;  %4596 = vst [vmem:[#allocation2 + $0xe50] sm:$0xff] %v4370_v20 }
 0x699   : > { %v4031_v25 = vpop.f32.mrb[2].mxu0  ;;  %v7925_v6 = vpop.f32.mrb[42].mxu1 }
 0x69a   : > { %4597 = vst [vmem:[#allocation2 + $0xe58] sm:$0xff] %v4031_v25  ;;  %v4033_v28 = vpop.f32.mrb[3].mxu0  ;;  %4605 = vst [vmem:[#allocation2 + $0xe98] sm:$0xff] %v7925_v6  ;;  %v4380_v29 = vpop.f32.mrb[43].mxu1 }
 0x69b   : > { %4598 = vst [vmem:[#allocation2 + $0xe60] sm:$0xff] %v4033_v28  ;;  %4602 = vst [vmem:[#allocation2 + $0xe80] sm:$0xff] %v4380_v29 }
 0x69d   : > { %v4037_v36 = vpop.f32.mrb[4].mxu0  ;;  %v7928_v3 = vpop.f32.mrb[44].mxu1 }
 0x69e   : > { %4600 = vst [vmem:[#allocation2 + $0xe70] sm:$0xff] %v4037_v36  ;;  %v4039_v41 = vpop.f32.mrb[5].mxu0  ;;  %4611 = vst [vmem:[#allocation2 + $0xec8] sm:$0xff] %v7928_v3  ;;  %v4390_v47 = vpop.f32.mrb[45].mxu1 }
 0x69f   : > { %4601 = vst [vmem:[#allocation2 + $0xe78] sm:$0xff] %v4039_v41  ;;  %4608 = vst [vmem:[#allocation2 + $0xeb0] sm:$0xff] %v4390_v47 }
 0x6a1   : > { %v4043_v9 = vpop.f32.mrb[6].mxu0  ;;  %v7931_v32 = vpop.f32.mrb[46].mxu1 }
 0x6a2   : > { %4603 = vst [vmem:[#allocation2 + $0xe88] sm:$0xff] %v4043_v9  ;;  %v4045_v49 = vpop.f32.mrb[7].mxu0  ;;  %4617 = vst [vmem:[#allocation2 + $0xef8] sm:$0xff] %v7931_v32  ;;  %v4400_v37 = vpop.f32.mrb[47].mxu1 }
 0x6a3   : > { %4604 = vst [vmem:[#allocation2 + $0xe90] sm:$0xff] %v4045_v49  ;;  %4614 = vst [vmem:[#allocation2 + $0xee0] sm:$0xff] %v4400_v37 }
 0x6a5   : > { %v4049_v21 = vpop.f32.mrb[8].mxu0  ;;  %v7934_v38 = vpop.f32.mrb[48].mxu1 }
 0x6a6   : > { %4606 = vst [vmem:[#allocation2 + $0xea0] sm:$0xff] %v4049_v21  ;;  %v4051_v45 = vpop.f32.mrb[9].mxu0  ;;  %4623 = vst [vmem:[#allocation2 + $0xf28] sm:$0xff] %v7934_v38  ;;  %v4410_v11 = vpop.f32.mrb[49].mxu1 }
 0x6a7   : > { %4607 = vst [vmem:[#allocation2 + $0xea8] sm:$0xff] %v4051_v45  ;;  %4620 = vst [vmem:[#allocation2 + $0xf10] sm:$0xff] %v4410_v11 }
 0x6a9   : > { %v4055_v33 = vpop.f32.mrb[10].mxu0  ;;  %v7937_v12 = vpop.f32.mrb[50].mxu1 }
 0x6aa   : > { %4609 = vst [vmem:[#allocation2 + $0xeb8] sm:$0xff] %v4055_v33  ;;  %v4057_v55 = vpop.f32.mrb[11].mxu0  ;;  %4629 = vst [vmem:[#allocation2 + $0xf58] sm:$0xff] %v7937_v12  ;;  %v4420_v13 = vpop.f32.mrb[51].mxu1 }
 0x6ab   : > { %4610 = vst [vmem:[#allocation2 + $0xec0] sm:$0xff] %v4057_v55  ;;  %4626 = vst [vmem:[#allocation2 + $0xf40] sm:$0xff] %v4420_v13 }
 0x6ad   : > { %v4061_v57 = vpop.f32.mrb[12].mxu0  ;;  %v7940_v27 = vpop.f32.mrb[52].mxu1 }
 0x6ae   : > { %4612 = vst [vmem:[#allocation2 + $0xed0] sm:$0xff] %v4061_v57  ;;  %v4063_v61 = vpop.f32.mrb[13].mxu0  ;;  %4635 = vst [vmem:[#allocation2 + $0xf88] sm:$0xff] %v7940_v27  ;;  %v4430_v4 = vpop.f32.mrb[53].mxu1 }
 0x6af   : > { %4613 = vst [vmem:[#allocation2 + $0xed8] sm:$0xff] %v4063_v61  ;;  %4632 = vst [vmem:[#allocation2 + $0xf70] sm:$0xff] %v4430_v4 }
 0x6b1   : > { %v4067_v63 = vpop.f32.mrb[14].mxu0  ;;  %v7943_v31 = vpop.f32.mrb[54].mxu1 }
 0x6b2   : > { %4615 = vst [vmem:[#allocation2 + $0xee8] sm:$0xff] %v4067_v63  ;;  %v4069_v35 = vpop.f32.mrb[15].mxu0  ;;  %4641 = vst [vmem:[#allocation2 + $0xfb8] sm:$0xff] %v7943_v31  ;;  %v4440_v5 = vpop.f32.mrb[55].mxu1 }
 0x6b3   : > { %4616 = vst [vmem:[#allocation2 + $0xef0] sm:$0xff] %v4069_v35  ;;  %4638 = vst [vmem:[#allocation2 + $0xfa0] sm:$0xff] %v4440_v5 }
 0x6b5   : > { %v4073_v39 = vpop.f32.mrb[16].mxu0  ;;  %v7946_v7 = vpop.f32.mrb[56].mxu1 }
 0x6b6   : > { %4618 = vst [vmem:[#allocation2 + $0xf00] sm:$0xff] %v4073_v39  ;;  %v4075_v19 = vpop.f32.mrb[17].mxu0  ;;  %4647 = vst [vmem:[#allocation2 + $0xfe8] sm:$0xff] %v7946_v7  ;;  %v4450_v10 = vpop.f32.mrb[57].mxu1 }
 0x6b7   : > { %4619 = vst [vmem:[#allocation2 + $0xf08] sm:$0xff] %v4075_v19  ;;  %4644 = vst [vmem:[#allocation2 + $0xfd0] sm:$0xff] %v4450_v10 }
 0x6b9   : > { %v4079_v2 = vpop.f32.mrb[18].mxu0  ;;  %v7949_v23 = vpop.f32.mrb[58].mxu1 }
 0x6ba   : > { %4621 = vst [vmem:[#allocation2 + $0xf18] sm:$0xff] %v4079_v2  ;;  %v4081_v17 = vpop.f32.mrb[19].mxu0  ;;  %4653 = vst [vmem:[#allocation2 + $0x1018] sm:$0xff] %v7949_v23  ;;  %v4460_v22 = vpop.f32.mrb[59].mxu1 }
 0x6bb   : > { %4622 = vst [vmem:[#allocation2 + $0xf20] sm:$0xff] %v4081_v17  ;;  %4650 = vst [vmem:[#allocation2 + $0x1000] sm:$0xff] %v4460_v22 }
 0x6bd   : > { %v4085_v24 = vpop.f32.mrb[20].mxu0  ;;  %v7952_v34 = vpop.f32.mrb[60].mxu1 }
 0x6be   : > { %4624 = vst [vmem:[#allocation2 + $0xf30] sm:$0xff] %v4085_v24  ;;  %v4087_v40 = vpop.f32.mrb[21].mxu0  ;;  %4659 = vst [vmem:[#allocation2 + $0x1048] sm:$0xff] %v7952_v34  ;;  %v4470_v18 = vpop.f32.mrb[61].mxu1 }
 0x6bf   : > { %4625 = vst [vmem:[#allocation2 + $0xf38] sm:$0xff] %v4087_v40  ;;  %4656 = vst [vmem:[#allocation2 + $0x1030] sm:$0xff] %v4470_v18 }
 0x6c1   : > { %v4091_v50 = vpop.f32.mrb[22].mxu0  ;;  %v7955_v8 = vpop.f32.mrb[62].mxu1 }
 0x6c2   : > { %4627 = vst [vmem:[#allocation2 + $0xf48] sm:$0xff] %v4091_v50  ;;  %v4093_v51 = vpop.f32.mrb[23].mxu0  ;;  %4665 = vst [vmem:[#allocation2 + $0x1078] sm:$0xff] %v7955_v8  ;;  %v4480_v30 = vpop.f32.mrb[63].mxu1 }
 0x6c3   : > { %4628 = vst [vmem:[#allocation2 + $0xf50] sm:$0xff] %v4093_v51  ;;  %4662 = vst [vmem:[#allocation2 + $0x1060] sm:$0xff] %v4480_v30 }
 0x6c5   : > { %v4097_v42 = vpop.f32.mrb[24].mxu0  ;;  %v7958_v16 = vpop.f32.mrb[64].mxu1 }
 0x6c6   : > { %4630 = vst [vmem:[#allocation2 + $0xf60] sm:$0xff] %v4097_v42  ;;  %v4099_v43 = vpop.f32.mrb[25].mxu0  ;;  %4671 = vst [vmem:[#allocation2 + $0x10a8] sm:$0xff] %v7958_v16  ;;  %v4490_v26 = vpop.f32.mrb[65].mxu1 }
 0x6c7   : > { %4631 = vst [vmem:[#allocation2 + $0xf68] sm:$0xff] %v4099_v43  ;;  %4668 = vst [vmem:[#allocation2 + $0x1090] sm:$0xff] %v4490_v26 }
 0x6c9   : > { %v4103_v52 = vpop.f32.mrb[26].mxu0  ;;  %v7961_v53 = vpop.f32.mrb[66].mxu1 }
 0x6ca   : > { %4633 = vst [vmem:[#allocation2 + $0xf78] sm:$0xff] %v4103_v52  ;;  %v4105_v44 = vpop.f32.mrb[27].mxu0  ;;  %4677 = vst [vmem:[#allocation2 + $0x10d8] sm:$0xff] %v7961_v53  ;;  %v4500_v54 = vpop.f32.mrb[67].mxu1 }
 0x6cb   : > { %4634 = vst [vmem:[#allocation2 + $0xf80] sm:$0xff] %v4105_v44  ;;  %4674 = vst [vmem:[#allocation2 + $0x10c0] sm:$0xff] %v4500_v54 }
 0x6cd   : > { %v4109_v56 = vpop.f32.mrb[28].mxu0  ;;  %v7964_v58 = vpop.f32.mrb[68].mxu1 }
 0x6ce   : > { %4636 = vst [vmem:[#allocation2 + $0xf90] sm:$0xff] %v4109_v56  ;;  %v4111_v46 = vpop.f32.mrb[29].mxu0  ;;  %4683 = vst [vmem:[#allocation2 + $0x1108] sm:$0xff] %v7964_v58  ;;  %v4510_v59 = vpop.f32.mrb[69].mxu1 }
 0x6cf   : > { %4637 = vst [vmem:[#allocation2 + $0xf98] sm:$0xff] %v4111_v46  ;;  %4680 = vst [vmem:[#allocation2 + $0x10f0] sm:$0xff] %v4510_v59 }
 0x6d1   : > { %v4115_v14 = vpop.f32.mrb[30].mxu0  ;;  %v7967_v60 = vpop.f32.mrb[70].mxu1 }
 0x6d2   : > { %4639 = vst [vmem:[#allocation2 + $0xfa8] sm:$0xff] %v4115_v14  ;;  %v4117_v15 = vpop.f32.mrb[31].mxu0  ;;  %4689 = vst [vmem:[#allocation2 + $0x1138] sm:$0xff] %v7967_v60  ;;  %v4520_v62 = vpop.f32.mrb[71].mxu1 }
 0x6d3   : > { %4640 = vst [vmem:[#allocation2 + $0xfb0] sm:$0xff] %v4117_v15  ;;  %4686 = vst [vmem:[#allocation2 + $0x1120] sm:$0xff] %v4520_v62 }
 0x6d5   : > { %v4121_v0 = vpop.f32.mrb[32].mxu0  ;;  %v7970_v48 = vpop.f32.mrb[72].mxu1 }
 0x6d6   : > { %4642 = vst [vmem:[#allocation2 + $0xfc0] sm:$0xff] %v4121_v0  ;;  %v4123_v1 = vpop.f32.mrb[33].mxu0  ;;  %4695 = vst [vmem:[#allocation2 + $0x1168] sm:$0xff] %v7970_v48  ;;  %v4530_v20 = vpop.f32.mrb[73].mxu1 }
 0x6d7   : > { %4643 = vst [vmem:[#allocation2 + $0xfc8] sm:$0xff] %v4123_v1  ;;  %4692 = vst [vmem:[#allocation2 + $0x1150] sm:$0xff] %v4530_v20 }
 0x6d9   : > { %v4127_v25 = vpop.f32.mrb[34].mxu0  ;;  %v7973_v6 = vpop.f32.mrb[74].mxu1 }
 0x6da   : > { %4645 = vst [vmem:[#allocation2 + $0xfd8] sm:$0xff] %v4127_v25  ;;  %v4129_v28 = vpop.f32.mrb[35].mxu0  ;;  %4701 = vst [vmem:[#allocation2 + $0x1198] sm:$0xff] %v7973_v6  ;;  %v4540_v29 = vpop.f32.mrb[75].mxu1 }
 0x6db   : > { %4646 = vst [vmem:[#allocation2 + $0xfe0] sm:$0xff] %v4129_v28  ;;  %4698 = vst [vmem:[#allocation2 + $0x1180] sm:$0xff] %v4540_v29 }
 0x6dd   : > { %v4133_v36 = vpop.f32.mrb[36].mxu0  ;;  %v7976_v3 = vpop.f32.mrb[76].mxu1 }
 0x6de   : > { %4648 = vst [vmem:[#allocation2 + $0xff0] sm:$0xff] %v4133_v36  ;;  %v4135_v41 = vpop.f32.mrb[37].mxu0  ;;  %4707 = vst [vmem:[#allocation2 + $0x11c8] sm:$0xff] %v7976_v3  ;;  %v4550_v47 = vpop.f32.mrb[77].mxu1 }
 0x6df   : > { %4649 = vst [vmem:[#allocation2 + $0xff8] sm:$0xff] %v4135_v41  ;;  %4704 = vst [vmem:[#allocation2 + $0x11b0] sm:$0xff] %v4550_v47 }
 0x6e1   : > { %v4139_v9 = vpop.f32.mrb[38].mxu0  ;;  %v7979_v32 = vpop.f32.mrb[78].mxu1 }
 0x6e2   : > { %4651 = vst [vmem:[#allocation2 + $0x1008] sm:$0xff] %v4139_v9  ;;  %v4141_v49 = vpop.f32.mrb[39].mxu0  ;;  %4713 = vst [vmem:[#allocation2 + $0x11f8] sm:$0xff] %v7979_v32  ;;  %v4560_v37 = vpop.f32.mrb[79].mxu1 }
 0x6e3   : > { %4652 = vst [vmem:[#allocation2 + $0x1010] sm:$0xff] %v4141_v49  ;;  %4710 = vst [vmem:[#allocation2 + $0x11e0] sm:$0xff] %v4560_v37 }
 0x6e5   : > { %v4145_v21 = vpop.f32.mrb[40].mxu0 }
 0x6e6   : > { %4654 = vst [vmem:[#allocation2 + $0x1020] sm:$0xff] %v4145_v21  ;;  %v4147_v38 = vpop.f32.mrb[41].mxu0 }
 0x6e7   : > { %4655 = vst [vmem:[#allocation2 + $0x1028] sm:$0xff] %v4147_v38 }
 0x6e9   : > { %v4151_v45 = vpop.f32.mrb[42].mxu0 }
 0x6ea   : > { %4657 = vst [vmem:[#allocation2 + $0x1038] sm:$0xff] %v4151_v45  ;;  %v4153_v11 = vpop.f32.mrb[43].mxu0 }
 0x6eb   : > { %4658 = vst [vmem:[#allocation2 + $0x1040] sm:$0xff] %v4153_v11 }
 0x6ed   : > { %v4157_v33 = vpop.f32.mrb[44].mxu0 }
 0x6ee   : > { %4660 = vst [vmem:[#allocation2 + $0x1050] sm:$0xff] %v4157_v33  ;;  %v4159_v12 = vpop.f32.mrb[45].mxu0 }
 0x6ef   : > { %4661 = vst [vmem:[#allocation2 + $0x1058] sm:$0xff] %v4159_v12 }
 0x6f1   : > { %v4163_v55 = vpop.f32.mrb[46].mxu0 }
 0x6f2   : > { %4663 = vst [vmem:[#allocation2 + $0x1068] sm:$0xff] %v4163_v55  ;;  %v4165_v13 = vpop.f32.mrb[47].mxu0 }
 0x6f3   : > { %4664 = vst [vmem:[#allocation2 + $0x1070] sm:$0xff] %v4165_v13 }
 0x6f5   : > { %v4169_v57 = vpop.f32.mrb[48].mxu0 }
 0x6f6   : > { %4666 = vst [vmem:[#allocation2 + $0x1080] sm:$0xff] %v4169_v57  ;;  %v4171_v27 = vpop.f32.mrb[49].mxu0 }
 0x6f7   : > { %4667 = vst [vmem:[#allocation2 + $0x1088] sm:$0xff] %v4171_v27 }
 0x6f9   : > { %v4175_v61 = vpop.f32.mrb[50].mxu0 }
 0x6fa   : > { %4669 = vst [vmem:[#allocation2 + $0x1098] sm:$0xff] %v4175_v61  ;;  %v4177_v4 = vpop.f32.mrb[51].mxu0 }
 0x6fb   : > { %4670 = vst [vmem:[#allocation2 + $0x10a0] sm:$0xff] %v4177_v4 }
 0x6fd   : > { %v4181_v63 = vpop.f32.mrb[52].mxu0 }
 0x6fe   : > { %4672 = vst [vmem:[#allocation2 + $0x10b0] sm:$0xff] %v4181_v63  ;;  %v4183_v31 = vpop.f32.mrb[53].mxu0 }
 0x6ff   : > { %4673 = vst [vmem:[#allocation2 + $0x10b8] sm:$0xff] %v4183_v31 }
 0x701   : > { %v4187_v35 = vpop.f32.mrb[54].mxu0 }
 0x702   : > { %4675 = vst [vmem:[#allocation2 + $0x10c8] sm:$0xff] %v4187_v35  ;;  %v4189_v5 = vpop.f32.mrb[55].mxu0 }
 0x703   : > { %4676 = vst [vmem:[#allocation2 + $0x10d0] sm:$0xff] %v4189_v5 }
 0x705   : > { %v4193_v39 = vpop.f32.mrb[56].mxu0 }
 0x706   : > { %4678 = vst [vmem:[#allocation2 + $0x10e0] sm:$0xff] %v4193_v39  ;;  %v4195_v7 = vpop.f32.mrb[57].mxu0 }
 0x707   : > { %4679 = vst [vmem:[#allocation2 + $0x10e8] sm:$0xff] %v4195_v7 }
 0x709   : > { %v4199_v19 = vpop.f32.mrb[58].mxu0 }
 0x70a   : > { %4681 = vst [vmem:[#allocation2 + $0x10f8] sm:$0xff] %v4199_v19  ;;  %v4201_v10 = vpop.f32.mrb[59].mxu0 }
 0x70b   : > { %4682 = vst [vmem:[#allocation2 + $0x1100] sm:$0xff] %v4201_v10 }
 0x70d   : > { %v4205_v2 = vpop.f32.mrb[60].mxu0 }
 0x70e   : > { %4684 = vst [vmem:[#allocation2 + $0x1110] sm:$0xff] %v4205_v2  ;;  %v4207_v23 = vpop.f32.mrb[61].mxu0 }
 0x70f   : > { %4685 = vst [vmem:[#allocation2 + $0x1118] sm:$0xff] %v4207_v23 }
 0x711   : > { %v4211_v17 = vpop.f32.mrb[62].mxu0 }
 0x712   : > { %4687 = vst [vmem:[#allocation2 + $0x1128] sm:$0xff] %v4211_v17  ;;  %v4213_v22 = vpop.f32.mrb[63].mxu0 }
 0x713   : > { %4688 = vst [vmem:[#allocation2 + $0x1130] sm:$0xff] %v4213_v22 }
 0x715   : > { %v4217_v24 = vpop.f32.mrb[64].mxu0 }
 0x716   : > { %4690 = vst [vmem:[#allocation2 + $0x1140] sm:$0xff] %v4217_v24  ;;  %v4219_v34 = vpop.f32.mrb[65].mxu0 }
 0x717   : > { %4691 = vst [vmem:[#allocation2 + $0x1148] sm:$0xff] %v4219_v34 }
 0x719   : > { %v4223_v40 = vpop.f32.mrb[66].mxu0 }
 0x71a   : > { %4693 = vst [vmem:[#allocation2 + $0x1158] sm:$0xff] %v4223_v40  ;;  %v4225_v18 = vpop.f32.mrb[67].mxu0 }
 0x71b   : > { %4694 = vst [vmem:[#allocation2 + $0x1160] sm:$0xff] %v4225_v18 }
 0x71d   : > { %v4229_v50 = vpop.f32.mrb[68].mxu0 }
 0x71e   : > { %4696 = vst [vmem:[#allocation2 + $0x1170] sm:$0xff] %v4229_v50  ;;  %v4231_v8 = vpop.f32.mrb[69].mxu0 }
 0x71f   : > { %4697 = vst [vmem:[#allocation2 + $0x1178] sm:$0xff] %v4231_v8 }
 0x721   : > { %v4235_v51 = vpop.f32.mrb[70].mxu0 }
 0x722   : > { %4699 = vst [vmem:[#allocation2 + $0x1188] sm:$0xff] %v4235_v51  ;;  %v4237_v30 = vpop.f32.mrb[71].mxu0 }
 0x723   : > { %4700 = vst [vmem:[#allocation2 + $0x1190] sm:$0xff] %v4237_v30 }
 0x725   : > { %v4241_v42 = vpop.f32.mrb[72].mxu0 }
 0x726   : > { %4702 = vst [vmem:[#allocation2 + $0x11a0] sm:$0xff] %v4241_v42  ;;  %v4243_v16 = vpop.f32.mrb[73].mxu0 }
 0x727   : > { %4703 = vst [vmem:[#allocation2 + $0x11a8] sm:$0xff] %v4243_v16 }
 0x729   : > { %v4247_v43 = vpop.f32.mrb[74].mxu0 }
 0x72a   : > { %4705 = vst [vmem:[#allocation2 + $0x11b8] sm:$0xff] %v4247_v43  ;;  %v4249_v26 = vpop.f32.mrb[75].mxu0 }
 0x72b   : > { %4706 = vst [vmem:[#allocation2 + $0x11c0] sm:$0xff] %v4249_v26 }
 0x72d   : > { %v4253_v52 = vpop.f32.mrb[76].mxu0 }
 0x72e   : > { %4708 = vst [vmem:[#allocation2 + $0x11d0] sm:$0xff] %v4253_v52  ;;  %v4255_v53 = vpop.f32.mrb[77].mxu0 }
 0x72f   : > { %4709 = vst [vmem:[#allocation2 + $0x11d8] sm:$0xff] %v4255_v53 }
 0x731   : > { %v4259_v44 = vpop.f32.mrb[78].mxu0 }
 0x732   : > { %4711 = vst [vmem:[#allocation2 + $0x11e8] sm:$0xff] %v4259_v44  ;;  %v4261_v54 = vpop.f32.mrb[79].mxu0 }
 0x733   : > { %4712 = vst [vmem:[#allocation2 + $0x11f0] sm:$0xff] %v4261_v54 }
 0x734 PF: > { %s10563_s15 = smul.u32 36, %s8603_s21  ;;  %v4716_v56 = vld [vmem:[#allocation2] sm:$0xff]  ;;  %v4717_v58 = vld [vmem:[#allocation2 + $0x18] sm:$0xff]  ;;  %v4718_v46 = vld [vmem:[#allocation2 + $0x30] sm:$0xff]  ;;  %p11325_p4 = scmp.ne.s32.totalorder %s11312_s7, 0 }
 0x735   : > { %v4719_v59 = vld [vmem:[#allocation2 + $0x48] sm:$0xff]  ;;  %v4720_v14 = vld [vmem:[#allocation2 + $0x60] sm:$0xff]  ;;  %v4721_v60 = vld [vmem:[#allocation2 + $0x78] sm:$0xff] }
 0x736   : > { %s4715_s28 = sld [smem:[#allocation7 + %s10563_s15]]  ;;  %s4765_s23 = sadd.s32 1, %s10563_s15  ;;  %v4722_v15 = vld [vmem:[#allocation2 + $0x90] sm:$0xff]  ;;  %v4723_v62 = vld [vmem:[#allocation2 + $0xa8] sm:$0xff]  ;;  %v4724_v0 = vld [vmem:[#allocation2 + $0xc0] sm:$0xff] }
 0x737   : > { %s10567_s29 = sld [smem:[#allocation7 + %s4765_s23]]  ;;  %s4816_s11 = sadd.s32 2, %s10563_s15  ;;  %v4725_v48 = vld [vmem:[#allocation2 + $0xd8] sm:$0xff]  ;;  %v4726_v1 = vld [vmem:[#allocation2 + $0xf0] sm:$0xff]  ;;  %v4727_v20 = vld [vmem:[#allocation2 + $0x108] sm:$0xff] }
 0x738   : > { %s10570_s16 = sld [smem:[#allocation7 + %s4816_s11]]  ;;  %s4867_s17 = sadd.s32 3, %s10563_s15  ;;  %v4728_v25 = vld [vmem:[#allocation2 + $0x120] sm:$0xff]  ;;  %v4729_v6 = vld [vmem:[#allocation2 + $0x138] sm:$0xff]  ;;  %v4730_v29 = vld [vmem:[#allocation2 + $0x150] sm:$0xff] }
 0x739   : > { %s10573_s26 = sld [smem:[#allocation7 + %s4867_s17]]  ;;  %s4918_s12 = sadd.s32 4, %s10563_s15  ;;  %v4731_v36 = vld [vmem:[#allocation2 + $0x168] sm:$0xff]  ;;  %v4768_v45 = vld [vmem:[#allocation2 + $0x20] sm:$0xff]  ;;  %v4769_v11 = vld [vmem:[#allocation2 + $0x38] sm:$0xff] }
 0x73a   : > { %s10576_s9 = sld [smem:[#allocation7 + %s4918_s12]]  ;;  %v4767_v32 = vld [vmem:[#allocation2 + $0x8] sm:$0xff]  ;;  %v4770_v33 = vld [vmem:[#allocation2 + $0x50] sm:$0xff]  ;;  %v4772_v61 = vld [vmem:[#allocation2 + $0x80] sm:$0xff]  ;;  %s4969_s27 = sadd.s32 5, %s10563_s15 }
 0x73b   : > { %v4771_v27 = vld [vmem:[#allocation2 + $0x68] sm:$0xff]  ;;  %v4773_v4 = vld [vmem:[#allocation2 + $0x98] sm:$0xff]  ;;  %v4774_v39 = vld [vmem:[#allocation2 + $0xb0] sm:$0xff]  ;;  %s5020_s30 = sadd.s32 6, %s10563_s15  ;;  %s5071_s10 = sadd.s32 7, %s10563_s15 }
 0x73c   : > { %v4732_v28 = vstv %s4715_s28  ;;  %v4775_v7 = vld [vmem:[#allocation2 + $0xc8] sm:$0xff]  ;;  %v4776_v19 = vld [vmem:[#allocation2 + $0xe0] sm:$0xff]  ;;  %v4777_v10 = vld [vmem:[#allocation2 + $0xf8] sm:$0xff]  ;;  %s5122_s14 = sadd.s32 8, %s10563_s15  ;;  %s10624_s28 = sld [smem:[#allocation7 + %s4969_s27]] }
 0x73d   : > { %v4733_v3 = vmul.f32 %v4732_v28, %v4716_v56  ;;  %v4734_v41 = vmul.f32 %v4732_v28, %v4717_v58  ;;  %v4735_v47 = vmul.f32 %v4732_v28, %v4718_v46  ;;  %v4736_v9 = vmul.f32 %v4732_v28, %v4719_v59  ;;  %v4778_v2 = vld [vmem:[#allocation2 + $0x110] sm:$0xff]  ;;  %v4779_v23 = vld [vmem:[#allocation2 + $0x128] sm:$0xff]  ;;  %v4780_v40 = vld [vmem:[#allocation2 + $0x140] sm:$0xff]  ;;  %s10626_s23 = sld [smem:[#allocation7 + %s5020_s30]]  ;;  %s10671_s11 = sshll.u32 %s8603_s21, 2 }
 0x73e   : > { %v4737_v49 = vmul.f32 %v4732_v28, %v4720_v14  ;;  %v4738_v37 = vmul.f32 %v4732_v28, %v4721_v60  ;;  %v4739_v21 = vmul.f32 %v4732_v28, %v4722_v15  ;;  %v4740_v38 = vmul.f32 %v4732_v28, %v4723_v62  ;;  %v4781_v18 = vld [vmem:[#allocation2 + $0x158] sm:$0xff]  ;;  %v4782_v50 = vld [vmem:[#allocation2 + $0x170] sm:$0xff]  ;;  %s10632_s15 = sld [smem:[#allocation7 + %s5071_s10]] }
 0x73f   : > { %v4741_v12 = vmul.f32 %v4732_v28, %v4724_v0  ;;  %v4742_v55 = vmul.f32 %v4732_v28, %v4725_v48  ;;  %v4743_v13 = vmul.f32 %v4732_v28, %v4726_v1  ;;  %v4744_v57 = vmul.f32 %v4732_v28, %v4727_v20  ;;  %v4818_v60 = vld [vmem:[#allocation2 + $0x10] sm:$0xff]  ;;  %v4819_v1 = vld [vmem:[#allocation2 + $0x28] sm:$0xff]  ;;  %v4820_v20 = vld [vmem:[#allocation2 + $0x40] sm:$0xff] }
 0x740   : > { %v4745_v63 = vmul.f32 %v4732_v28, %v4728_v25  ;;  %v4746_v31 = vmul.f32 %v4732_v28, %v4729_v6  ;;  %v4747_v35 = vmul.f32 %v4732_v28, %v4730_v29  ;;  %v4748_v5 = vmul.f32 %v4732_v28, %v4731_v36  ;;  %v4821_v25 = vld [vmem:[#allocation2 + $0x58] sm:$0xff] }
 0x741   : > { %v4783_v17 = vstv %s10567_s29  ;;  %v10580_v22 = vstv %s10570_s16  ;;  %v10583_v24 = vstv %s10573_s26  ;;  %v10586_v34 = vstv %s10576_s9  ;;  %s10634_s29 = sld [smem:[#allocation7 + %s5122_s14]]  ;;  %s5174_s16 = sadd.s32 1, %s10671_s11 }
 0x742   : > { %v4784_v8 = vmul.f32 %v4783_v17, %v4767_v32  ;;  %v4785_v51 = vmul.f32 %v4783_v17, %v4768_v45  ;;  %v4786_v30 = vmul.f32 %v4783_v17, %v4769_v11  ;;  %v4787_v42 = vmul.f32 %v4783_v17, %v4770_v33  ;;  %v4822_v32 = vld [vmem:[#allocation2 + $0x70] sm:$0xff]  ;;  %v4823_v45 = vld [vmem:[#allocation2 + $0x88] sm:$0xff]  ;;  %v4824_v11 = vld [vmem:[#allocation2 + $0xa0] sm:$0xff]  ;;  %s10682_s17 = smul.u32 9, %s5174_s16 }
 0x743   : > { %v4788_v16 = vmul.f32 %v4783_v17, %v4771_v27  ;;  %v4789_v43 = vmul.f32 %v4783_v17, %v4772_v61  ;;  %v4790_v26 = vmul.f32 %v4783_v17, %v4773_v4  ;;  %v4791_v52 = vmul.f32 %v4783_v17, %v4774_v39  ;;  %v4825_v39 = vld [vmem:[#allocation2 + $0xb8] sm:$0xff] }
 0x744   : > { %v4792_v53 = vmul.f32 %v4783_v17, %v4775_v7  ;;  %v4793_v44 = vmul.f32 %v4783_v17, %v4776_v19  ;;  %v4794_v54 = vmul.f32 %v4783_v17, %v4777_v10  ;;  %v4795_v56 = vmul.f32 %v4783_v17, %v4778_v2  ;;  %v4826_v7 = vld [vmem:[#allocation2 + $0xd0] sm:$0xff]  ;;  %v4828_v10 = vld [vmem:[#allocation2 + $0x100] sm:$0xff]  ;;  %v4829_v2 = vld [vmem:[#allocation2 + $0x118] sm:$0xff]  ;;  %s5227_s26 = sadd.s32 1, %s10682_s17  ;;  %s5278_s12 = sadd.s32 2, %s10682_s17 }
 0x745   : > { %v4796_v58 = vmul.f32 %v4783_v17, %v4779_v23  ;;  %v4797_v46 = vmul.f32 %v4783_v17, %v4780_v40  ;;  %v4798_v59 = vmul.f32 %v4783_v17, %v4781_v18  ;;  %v4799_v14 = vmul.f32 %v4783_v17, %v4782_v50  ;;  %s5329_s9 = sadd.s32 3, %s10682_s17  ;;  %s10700_s27 = sld [smem:[#allocation7 + %s10682_s17]] }
 0x746   : > { %v4800_v15 = vadd.f32 %v4784_v8, %v4733_v3  ;;  %v4801_v62 = vadd.f32 %v4785_v51, %v4734_v41  ;;  %v4802_v0 = vadd.f32 %v4786_v30, %v4735_v47  ;;  %v4803_v48 = vadd.f32 %v4787_v42, %v4736_v9  ;;  %v4827_v3 = vld [vmem:[#allocation2 + $0xe8] sm:$0xff]  ;;  %v4869_v42 = vld [vmem:[#allocation2 + $0x180] sm:$0xff]  ;;  %s10702_s30 = sld [smem:[#allocation7 + %s5227_s26]] }
 0x747   : > { %v4804_v6 = vadd.f32 %v4788_v16, %v4737_v49  ;;  %v4805_v28 = vadd.f32 %v4789_v43, %v4738_v37  ;;  %v4806_v29 = vadd.f32 %v4790_v26, %v4739_v21  ;;  %v4807_v36 = vadd.f32 %v4791_v52, %v4740_v38  ;;  %v4830_v49 = vld [vmem:[#allocation2 + $0x130] sm:$0xff]  ;;  %v4831_v37 = vld [vmem:[#allocation2 + $0x148] sm:$0xff]  ;;  %v4832_v21 = vld [vmem:[#allocation2 + $0x160] sm:$0xff]  ;;  %s10708_s10 = sld [smem:[#allocation7 + %s5278_s12]] }
 0x748   : > { %v4808_v33 = vadd.f32 %v4792_v53, %v4741_v12  ;;  %v4809_v27 = vadd.f32 %v4793_v44, %v4742_v55  ;;  %v4810_v61 = vadd.f32 %v4794_v54, %v4743_v13  ;;  %v4811_v4 = vadd.f32 %v4795_v56, %v4744_v57  ;;  %v4833_v38 = vld [vmem:[#allocation2 + $0x178] sm:$0xff]  ;;  %v4871_v44 = vld [vmem:[#allocation2 + $0x1b0] sm:$0xff]  ;;  %v4872_v54 = vld [vmem:[#allocation2 + $0x1c8] sm:$0xff]  ;;  %s10710_s14 = sld [smem:[#allocation7 + %s5329_s9]] }
 0x749   : > { %v4812_v41 = vadd.f32 %v4796_v58, %v4745_v63  ;;  %v4813_v47 = vadd.f32 %v4797_v46, %v4746_v31  ;;  %v4814_v9 = vadd.f32 %v4798_v59, %v4747_v35  ;;  %v4815_v19 = vadd.f32 %v4799_v14, %v4748_v5  ;;  %v4870_v53 = vld [vmem:[#allocation2 + $0x198] sm:$0xff]  ;;  %v4873_v14 = vld [vmem:[#allocation2 + $0x1e0] sm:$0xff] }
 0x74a   : > { %v4835_v23 = vmul.f32 %v10580_v22, %v4818_v60  ;;  %v4836_v12 = vmul.f32 %v10580_v22, %v4819_v1  ;;  %v4837_v55 = vmul.f32 %v10580_v22, %v4820_v20  ;;  %v4838_v13 = vmul.f32 %v10580_v22, %v4821_v25  ;;  %v4874_v60 = vld [vmem:[#allocation2 + $0x1f8] sm:$0xff]  ;;  %v4875_v1 = vld [vmem:[#allocation2 + $0x210] sm:$0xff] }
 0x74b   : > { %v4839_v57 = vmul.f32 %v10580_v22, %v4822_v32  ;;  %v4840_v63 = vmul.f32 %v10580_v22, %v4823_v45  ;;  %v4841_v31 = vmul.f32 %v10580_v22, %v4824_v11  ;;  %v4842_v35 = vmul.f32 %v10580_v22, %v4825_v39  ;;  %v4877_v11 = vld [vmem:[#allocation2 + $0x240] sm:$0xff] }
 0x74c   : > { %v4843_v5 = vmul.f32 %v10580_v22, %v4826_v7  ;;  %v4844_v17 = vmul.f32 %v10580_v22, %v4827_v3  ;;  %v4845_v40 = vmul.f32 %v10580_v22, %v4828_v10  ;;  %v4846_v18 = vmul.f32 %v10580_v22, %v4829_v2  ;;  %v4879_v7 = vld [vmem:[#allocation2 + $0x270] sm:$0xff]  ;;  %v4880_v3 = vld [vmem:[#allocation2 + $0x288] sm:$0xff] }
 0x74d   : > { %v4847_v50 = vmul.f32 %v10580_v22, %v4830_v49  ;;  %v4848_v8 = vmul.f32 %v10580_v22, %v4831_v37  ;;  %v4849_v51 = vmul.f32 %v10580_v22, %v4832_v21  ;;  %v4850_v30 = vmul.f32 %v10580_v22, %v4833_v38  ;;  %v4876_v22 = vld [vmem:[#allocation2 + $0x228] sm:$0xff] }
 0x74e   : > { %v4851_v16 = vadd.f32 %v4835_v23, %v4800_v15  ;;  %v4852_v43 = vadd.f32 %v4836_v12, %v4801_v62  ;;  %v4853_v26 = vadd.f32 %v4837_v55, %v4802_v0  ;;  %v4854_v52 = vadd.f32 %v4838_v13, %v4803_v48  ;;  %v4878_v15 = vld [vmem:[#allocation2 + $0x258] sm:$0xff]  ;;  %v4920_v55 = vld [vmem:[#allocation2 + $0x188] sm:$0xff] }
 0x74f   : > { %v4855_v56 = vadd.f32 %v4839_v57, %v4804_v6  ;;  %v4856_v58 = vadd.f32 %v4840_v63, %v4805_v28  ;;  %v4857_v46 = vadd.f32 %v4841_v31, %v4806_v29  ;;  %v4858_v59 = vadd.f32 %v4842_v35, %v4807_v36  ;;  %v4881_v6 = vld [vmem:[#allocation2 + $0x2a0] sm:$0xff]  ;;  %v4882_v28 = vld [vmem:[#allocation2 + $0x2b8] sm:$0xff]  ;;  %v4883_v29 = vld [vmem:[#allocation2 + $0x2d0] sm:$0xff] }
 0x750   : > { %v4859_v20 = vadd.f32 %v4843_v5, %v4808_v33  ;;  %v4860_v25 = vadd.f32 %v4844_v17, %v4809_v27  ;;  %v4861_v32 = vadd.f32 %v4845_v40, %v4810_v61  ;;  %v4862_v45 = vadd.f32 %v4846_v18, %v4811_v4  ;;  %v4884_v36 = vld [vmem:[#allocation2 + $0x2e8] sm:$0xff]  ;;  %v4921_v35 = vld [vmem:[#allocation2 + $0x1a0] sm:$0xff]  ;;  %v4922_v5 = vld [vmem:[#allocation2 + $0x1b8] sm:$0xff] }
 0x751   : > { %v4863_v62 = vadd.f32 %v4847_v50, %v4812_v41  ;;  %v4864_v0 = vadd.f32 %v4848_v8, %v4813_v47  ;;  %v4865_v48 = vadd.f32 %v4849_v51, %v4814_v9  ;;  %v4866_v39 = vadd.f32 %v4850_v30, %v4815_v19  ;;  %v4923_v17 = vld [vmem:[#allocation2 + $0x1d0] sm:$0xff]  ;;  %v4924_v51 = vld [vmem:[#allocation2 + $0x1e8] sm:$0xff]  ;;  %v4925_v30 = vld [vmem:[#allocation2 + $0x200] sm:$0xff] }
 0x752   : > { %v4886_v10 = vmul.f32 %v10583_v24, %v4869_v42  ;;  %v4887_v33 = vmul.f32 %v10583_v24, %v4870_v53  ;;  %v4888_v27 = vmul.f32 %v10583_v24, %v4871_v44  ;;  %v4889_v61 = vmul.f32 %v10583_v24, %v4872_v54  ;;  %v4926_v42 = vld [vmem:[#allocation2 + $0x218] sm:$0xff]  ;;  %v4929_v44 = vld [vmem:[#allocation2 + $0x260] sm:$0xff] }
 0x753   : > { %v4890_v4 = vmul.f32 %v10583_v24, %v4873_v14  ;;  %v4891_v41 = vmul.f32 %v10583_v24, %v4874_v60  ;;  %v4892_v47 = vmul.f32 %v10583_v24, %v4875_v1  ;;  %v4893_v9 = vmul.f32 %v10583_v24, %v4876_v22  ;;  %v4934_v22 = vld [vmem:[#allocation2 + $0x2d8] sm:$0xff] }
 0x754   : > { %v4894_v19 = vmul.f32 %v10583_v24, %v4877_v11  ;;  %v4895_v2 = vmul.f32 %v10583_v24, %v4878_v15  ;;  %v4896_v49 = vmul.f32 %v10583_v24, %v4879_v7  ;;  %v4897_v37 = vmul.f32 %v10583_v24, %v4880_v3 }
 0x755   : > { %v4898_v21 = vmul.f32 %v10583_v24, %v4881_v6  ;;  %v4899_v38 = vmul.f32 %v10583_v24, %v4882_v28  ;;  %v4900_v23 = vmul.f32 %v10583_v24, %v4883_v29  ;;  %v4901_v12 = vmul.f32 %v10583_v24, %v4884_v36 }
 0x756   : > { %v4902_v13 = vadd.f32 %v4886_v10, %v4851_v16  ;;  %v4903_v57 = vadd.f32 %v4887_v33, %v4852_v43  ;;  %v4904_v63 = vadd.f32 %v4888_v27, %v4853_v26  ;;  %v4905_v31 = vadd.f32 %v4889_v61, %v4854_v52  ;;  %v4927_v26 = vld [vmem:[#allocation2 + $0x230] sm:$0xff]  ;;  %v4928_v52 = vld [vmem:[#allocation2 + $0x248] sm:$0xff] }
 0x757   : > { %v4906_v40 = vadd.f32 %v4890_v4, %v4855_v56  ;;  %v4907_v18 = vadd.f32 %v4891_v41, %v4856_v58  ;;  %v4908_v50 = vadd.f32 %v4892_v47, %v4857_v46  ;;  %v4909_v8 = vadd.f32 %v4893_v9, %v4858_v59  ;;  %v4930_v56 = vld [vmem:[#allocation2 + $0x278] sm:$0xff]  ;;  %v4931_v58 = vld [vmem:[#allocation2 + $0x290] sm:$0xff]  ;;  %v4932_v46 = vld [vmem:[#allocation2 + $0x2a8] sm:$0xff] }
 0x758   : > { %v4910_v24 = vadd.f32 %v4894_v19, %v4859_v20  ;;  %v4911_v16 = vadd.f32 %v4895_v2, %v4860_v25  ;;  %v4912_v43 = vadd.f32 %v4896_v49, %v4861_v32  ;;  %v4913_v53 = vadd.f32 %v4897_v37, %v4862_v45  ;;  %v4933_v59 = vld [vmem:[#allocation2 + $0x2c0] sm:$0xff]  ;;  %v4935_v20 = vld [vmem:[#allocation2 + $0x2f0] sm:$0xff]  ;;  %v4972_v49 = vld [vmem:[#allocation2 + $0x1a8] sm:$0xff] }
 0x759   : > { %v4914_v54 = vadd.f32 %v4898_v21, %v4863_v62  ;;  %v4915_v14 = vadd.f32 %v4899_v38, %v4864_v0  ;;  %v4916_v60 = vadd.f32 %v4900_v23, %v4865_v48  ;;  %v4917_v1 = vadd.f32 %v4901_v12, %v4866_v39  ;;  %v4971_v41 = vld [vmem:[#allocation2 + $0x190] sm:$0xff]  ;;  %v4973_v37 = vld [vmem:[#allocation2 + $0x1c0] sm:$0xff]  ;;  %v4974_v21 = vld [vmem:[#allocation2 + $0x1d8] sm:$0xff] }
 0x75a   : > { %v4937_v25 = vmul.f32 %v10586_v34, %v4920_v55  ;;  %v4938_v32 = vmul.f32 %v10586_v34, %v4921_v35  ;;  %v4939_v45 = vmul.f32 %v10586_v34, %v4922_v5  ;;  %v4940_v11 = vmul.f32 %v10586_v34, %v4923_v17  ;;  %v4978_v17 = vld [vmem:[#allocation2 + $0x238] sm:$0xff] }
 0x75b   : > { %v4941_v15 = vmul.f32 %v10586_v34, %v4924_v51  ;;  %v4942_v62 = vmul.f32 %v10586_v34, %v4925_v30  ;;  %v4943_v0 = vmul.f32 %v10586_v34, %v4926_v42  ;;  %v4944_v48 = vmul.f32 %v10586_v34, %v4927_v26  ;;  %v4983_v51 = vld [vmem:[#allocation2 + $0x2b0] sm:$0xff]  ;;  %v4986_v26 = vld [vmem:[#allocation2 + $0x2f8] sm:$0xff] }
 0x75c   : > { %v4945_v39 = vmul.f32 %v10586_v34, %v4928_v52  ;;  %v4946_v7 = vmul.f32 %v10586_v34, %v4929_v44  ;;  %v4947_v3 = vmul.f32 %v10586_v34, %v4930_v56  ;;  %v4948_v6 = vmul.f32 %v10586_v34, %v4931_v58 }
 0x75d   : > { %v4949_v28 = vmul.f32 %v10586_v34, %v4932_v46  ;;  %v4950_v29 = vmul.f32 %v10586_v34, %v4933_v59  ;;  %v4951_v36 = vmul.f32 %v10586_v34, %v4934_v22  ;;  %v4952_v10 = vmul.f32 %v10586_v34, %v4935_v20  ;;  %v4975_v34 = vld [vmem:[#allocation2 + $0x1f0] sm:$0xff] }
 0x75e   : > { %v4953_v33 = vadd.f32 %v4937_v25, %v4902_v13  ;;  %v4954_v27 = vadd.f32 %v4938_v32, %v4903_v57  ;;  %v4955_v61 = vadd.f32 %v4939_v45, %v4904_v63  ;;  %v4956_v4 = vadd.f32 %v4940_v11, %v4905_v31  ;;  %v4976_v13 = vld [vmem:[#allocation2 + $0x208] sm:$0xff]  ;;  %v4977_v57 = vld [vmem:[#allocation2 + $0x220] sm:$0xff] }
 0x75f   : > { %v4957_v47 = vadd.f32 %v4941_v15, %v4906_v40  ;;  %v4958_v9 = vadd.f32 %v4942_v62, %v4907_v18  ;;  %v4959_v19 = vadd.f32 %v4943_v0, %v4908_v50  ;;  %v4960_v2 = vadd.f32 %v4944_v48, %v4909_v8  ;;  %v4979_v40 = vld [vmem:[#allocation2 + $0x250] sm:$0xff]  ;;  %v4980_v18 = vld [vmem:[#allocation2 + $0x268] sm:$0xff]  ;;  %v4981_v50 = vld [vmem:[#allocation2 + $0x280] sm:$0xff] }
 0x760   : > { %v4961_v38 = vadd.f32 %v4945_v39, %v4910_v24  ;;  %v4962_v23 = vadd.f32 %v4946_v7, %v4911_v16  ;;  %v4963_v12 = vadd.f32 %v4947_v3, %v4912_v43  ;;  %v4964_v55 = vadd.f32 %v4948_v6, %v4913_v53  ;;  %v4982_v8 = vld [vmem:[#allocation2 + $0x298] sm:$0xff]  ;;  %v4984_v43 = vld [vmem:[#allocation2 + $0x2c8] sm:$0xff]  ;;  %v4985_v53 = vld [vmem:[#allocation2 + $0x2e0] sm:$0xff] }
 0x761   : > { %v4965_v63 = vadd.f32 %v4949_v28, %v4914_v54  ;;  %v4966_v31 = vadd.f32 %v4950_v29, %v4915_v14  ;;  %v4967_v35 = vadd.f32 %v4951_v36, %v4916_v60  ;;  %v4968_v5 = vadd.f32 %v4952_v10, %v4917_v1  ;;  %v5022_v15 = vld [vmem:[#allocation2 + $0x300] sm:$0xff]  ;;  %v5023_v7 = vld [vmem:[#allocation2 + $0x318] sm:$0xff]  ;;  %v5024_v3 = vld [vmem:[#allocation2 + $0x330] sm:$0xff] }
 0x762   : > { %v4987_v30 = vstv %s10624_s28  ;;  %v10650_v42 = vstv %s10626_s23  ;;  %v10653_v24 = vstv %s10632_s15  ;;  %v10656_v16 = vstv %s10634_s29  ;;  %v5025_v6 = vld [vmem:[#allocation2 + $0x348] sm:$0xff]  ;;  %s5380_s28 = sadd.s32 4, %s10682_s17  ;;  %s5431_s23 = sadd.s32 5, %s10682_s17 }
 0x763   : > { %v4988_v52 = vmul.f32 %v4987_v30, %v4971_v41  ;;  %v4989_v44 = vmul.f32 %v4987_v30, %v4972_v49  ;;  %v4990_v54 = vmul.f32 %v4987_v30, %v4973_v37  ;;  %v4991_v14 = vmul.f32 %v4987_v30, %v4974_v21  ;;  %v5026_v41 = vld [vmem:[#allocation2 + $0x360] sm:$0xff]  ;;  %v5027_v49 = vld [vmem:[#allocation2 + $0x378] sm:$0xff]  ;;  %v5028_v37 = vld [vmem:[#allocation2 + $0x390] sm:$0xff]  ;;  %s5482_s15 = sadd.s32 6, %s10682_s17  ;;  %s5533_s29 = sadd.s32 7, %s10682_s17 }
 0x764   : > { %v4992_v60 = vmul.f32 %v4987_v30, %v4975_v34  ;;  %v4993_v1 = vmul.f32 %v4987_v30, %v4976_v13  ;;  %v4994_v56 = vmul.f32 %v4987_v30, %v4977_v57  ;;  %v4995_v58 = vmul.f32 %v4987_v30, %v4978_v17  ;;  %v5029_v17 = vld [vmem:[#allocation2 + $0x3a8] sm:$0xff]  ;;  %s10770_s16 = sld [smem:[#allocation7 + %s5380_s28]] }
 0x765   : > { %v4996_v46 = vmul.f32 %v4987_v30, %v4979_v40  ;;  %v4997_v59 = vmul.f32 %v4987_v30, %v4980_v18  ;;  %v4998_v22 = vmul.f32 %v4987_v30, %v4981_v50  ;;  %v4999_v20 = vmul.f32 %v4987_v30, %v4982_v8  ;;  %v5030_v40 = vld [vmem:[#allocation2 + $0x3c0] sm:$0xff]  ;;  %v5032_v50 = vld [vmem:[#allocation2 + $0x3f0] sm:$0xff]  ;;  %v5033_v8 = vld [vmem:[#allocation2 + $0x408] sm:$0xff]  ;;  %s10772_s26 = sld [smem:[#allocation7 + %s5431_s23]] }
 0x766   : > { %v5000_v25 = vmul.f32 %v4987_v30, %v4983_v51  ;;  %v5001_v32 = vmul.f32 %v4987_v30, %v4984_v43  ;;  %v5002_v45 = vmul.f32 %v4987_v30, %v4985_v53  ;;  %v5003_v11 = vmul.f32 %v4987_v30, %v4986_v26  ;;  %s10778_s12 = sld [smem:[#allocation7 + %s5482_s15]] }
 0x767   : > { %v5004_v62 = vadd.f32 %v4988_v52, %v4953_v33  ;;  %v5005_v0 = vadd.f32 %v4989_v44, %v4954_v27  ;;  %v5006_v48 = vadd.f32 %v4990_v54, %v4955_v61  ;;  %v5007_v39 = vadd.f32 %v4991_v14, %v4956_v4  ;;  %v5031_v33 = vld [vmem:[#allocation2 + $0x3d8] sm:$0xff]  ;;  %v5073_v14 = vld [vmem:[#allocation2 + $0x308] sm:$0xff]  ;;  %s10780_s9 = sld [smem:[#allocation7 + %s5533_s29]] }
 0x768   : > { %v5008_v28 = vadd.f32 %v4992_v60, %v4957_v47  ;;  %v5009_v29 = vadd.f32 %v4993_v1, %v4958_v9  ;;  %v5010_v36 = vadd.f32 %v4994_v56, %v4959_v19  ;;  %v5011_v10 = vadd.f32 %v4995_v58, %v4960_v2  ;;  %v5034_v47 = vld [vmem:[#allocation2 + $0x420] sm:$0xff]  ;;  %v5035_v9 = vld [vmem:[#allocation2 + $0x438] sm:$0xff]  ;;  %v5036_v19 = vld [vmem:[#allocation2 + $0x450] sm:$0xff] }
 0x769   : > { %v5012_v21 = vadd.f32 %v4996_v46, %v4961_v38  ;;  %v5013_v34 = vadd.f32 %v4997_v59, %v4962_v23  ;;  %v5014_v13 = vadd.f32 %v4998_v22, %v4963_v12  ;;  %v5015_v57 = vadd.f32 %v4999_v20, %v4964_v55  ;;  %v5037_v2 = vld [vmem:[#allocation2 + $0x468] sm:$0xff]  ;;  %v5074_v46 = vld [vmem:[#allocation2 + $0x320] sm:$0xff]  ;;  %v5075_v59 = vld [vmem:[#allocation2 + $0x338] sm:$0xff] }
 0x76a   : > { %v5016_v27 = vadd.f32 %v5000_v25, %v4965_v63  ;;  %v5017_v61 = vadd.f32 %v5001_v32, %v4966_v31  ;;  %v5018_v4 = vadd.f32 %v5002_v45, %v4967_v35  ;;  %v5019_v18 = vadd.f32 %v5003_v11, %v4968_v5  ;;  %v5076_v22 = vld [vmem:[#allocation2 + $0x350] sm:$0xff]  ;;  %v5077_v11 = vld [vmem:[#allocation2 + $0x368] sm:$0xff] }
 0x76b   : > { %v5039_v51 = vmul.f32 %v10650_v42, %v5022_v15  ;;  %v5040_v38 = vmul.f32 %v10650_v42, %v5023_v7  ;;  %v5041_v23 = vmul.f32 %v10650_v42, %v5024_v3  ;;  %v5042_v12 = vmul.f32 %v10650_v42, %v5025_v6  ;;  %v5078_v15 = vld [vmem:[#allocation2 + $0x380] sm:$0xff]  ;;  %v5079_v7 = vld [vmem:[#allocation2 + $0x398] sm:$0xff] }
 0x76c   : > { %v5043_v55 = vmul.f32 %v10650_v42, %v5026_v41  ;;  %v5044_v63 = vmul.f32 %v10650_v42, %v5027_v49  ;;  %v5045_v31 = vmul.f32 %v10650_v42, %v5028_v37  ;;  %v5046_v35 = vmul.f32 %v10650_v42, %v5029_v17  ;;  %v5080_v49 = vld [vmem:[#allocation2 + $0x3b0] sm:$0xff] }
 0x76d   : > { %v5047_v5 = vmul.f32 %v10650_v42, %v5030_v40  ;;  %v5048_v30 = vmul.f32 %v10650_v42, %v5031_v33  ;;  %v5049_v43 = vmul.f32 %v10650_v42, %v5032_v50  ;;  %v5050_v53 = vmul.f32 %v10650_v42, %v5033_v8  ;;  %v5083_v40 = vld [vmem:[#allocation2 + $0x3f8] sm:$0xff]  ;;  %v5088_v33 = vld [vmem:[#allocation2 + $0x470] sm:$0xff] }
 0x76e   : > { %v5051_v26 = vmul.f32 %v10650_v42, %v5034_v47  ;;  %v5052_v52 = vmul.f32 %v10650_v42, %v5035_v9  ;;  %v5053_v44 = vmul.f32 %v10650_v42, %v5036_v19  ;;  %v5054_v54 = vmul.f32 %v10650_v42, %v5037_v2 }
 0x76f   : > { %v5055_v60 = vadd.f32 %v5039_v51, %v5004_v62  ;;  %v5056_v1 = vadd.f32 %v5040_v38, %v5005_v0  ;;  %v5057_v56 = vadd.f32 %v5041_v23, %v5006_v48  ;;  %v5058_v58 = vadd.f32 %v5042_v12, %v5007_v39  ;;  %v5081_v62 = vld [vmem:[#allocation2 + $0x3c8] sm:$0xff]  ;;  %v5082_v0 = vld [vmem:[#allocation2 + $0x3e0] sm:$0xff]  ;;  %v5124_v23 = vld [vmem:[#allocation2 + $0x310] sm:$0xff] }
 0x770   : > { %v5059_v20 = vadd.f32 %v5043_v55, %v5008_v28  ;;  %v5060_v25 = vadd.f32 %v5044_v63, %v5009_v29  ;;  %v5061_v32 = vadd.f32 %v5045_v31, %v5010_v36  ;;  %v5062_v45 = vadd.f32 %v5046_v35, %v5011_v10  ;;  %v5084_v28 = vld [vmem:[#allocation2 + $0x410] sm:$0xff]  ;;  %v5085_v29 = vld [vmem:[#allocation2 + $0x428] sm:$0xff]  ;;  %v5086_v36 = vld [vmem:[#allocation2 + $0x440] sm:$0xff] }
 0x771   : > { %v5063_v3 = vadd.f32 %v5047_v5, %v5012_v21  ;;  %v5064_v6 = vadd.f32 %v5048_v30, %v5013_v34  ;;  %v5065_v42 = vadd.f32 %v5049_v43, %v5014_v13  ;;  %v5066_v41 = vadd.f32 %v5050_v53, %v5015_v57  ;;  %v5087_v10 = vld [vmem:[#allocation2 + $0x458] sm:$0xff]  ;;  %v5125_v35 = vld [vmem:[#allocation2 + $0x328] sm:$0xff]  ;;  %v5126_v5 = vld [vmem:[#allocation2 + $0x340] sm:$0xff] }
 0x772   : > { %v5067_v48 = vadd.f32 %v5051_v26, %v5016_v27  ;;  %v5068_v39 = vadd.f32 %v5052_v52, %v5017_v61  ;;  %v5069_v37 = vadd.f32 %v5053_v44, %v5018_v4  ;;  %v5070_v17 = vadd.f32 %v5054_v54, %v5019_v18  ;;  %v5127_v30 = vld [vmem:[#allocation2 + $0x358] sm:$0xff]  ;;  %v5128_v44 = vld [vmem:[#allocation2 + $0x370] sm:$0xff]  ;;  %v5129_v54 = vld [vmem:[#allocation2 + $0x388] sm:$0xff] }
 0x773   : > { %v5090_v50 = vmul.f32 %v10653_v24, %v5073_v14  ;;  %v5091_v21 = vmul.f32 %v10653_v24, %v5074_v46  ;;  %v5092_v34 = vmul.f32 %v10653_v24, %v5075_v59  ;;  %v5093_v13 = vmul.f32 %v10653_v24, %v5076_v22  ;;  %v5130_v14 = vld [vmem:[#allocation2 + $0x3a0] sm:$0xff]  ;;  %v5133_v59 = vld [vmem:[#allocation2 + $0x3e8] sm:$0xff] }
 0x774   : > { %v5094_v57 = vmul.f32 %v10653_v24, %v5077_v11  ;;  %v5095_v27 = vmul.f32 %v10653_v24, %v5078_v15  ;;  %v5096_v61 = vmul.f32 %v10653_v24, %v5079_v7  ;;  %v5097_v4 = vmul.f32 %v10653_v24, %v5080_v49  ;;  %v5137_v7 = vld [vmem:[#allocation2 + $0x448] sm:$0xff]  ;;  %v5138_v49 = vld [vmem:[#allocation2 + $0x460] sm:$0xff] }
 0x775   : > { %v5098_v18 = vmul.f32 %v10653_v24, %v5081_v62  ;;  %v5099_v8 = vmul.f32 %v10653_v24, %v5082_v0  ;;  %v5100_v47 = vmul.f32 %v10653_v24, %v5083_v40  ;;  %v5101_v9 = vmul.f32 %v10653_v24, %v5084_v28 }
 0x776   : > { %v5102_v19 = vmul.f32 %v10653_v24, %v5085_v29  ;;  %v5103_v2 = vmul.f32 %v10653_v24, %v5086_v36  ;;  %v5104_v51 = vmul.f32 %v10653_v24, %v5087_v10  ;;  %v5105_v38 = vmul.f32 %v10653_v24, %v5088_v33 }
 0x777   : > { %v5106_v12 = vadd.f32 %v5090_v50, %v5055_v60  ;;  %v5107_v55 = vadd.f32 %v5091_v21, %v5056_v1  ;;  %v5108_v63 = vadd.f32 %v5092_v34, %v5057_v56  ;;  %v5109_v31 = vadd.f32 %v5093_v13, %v5058_v58  ;;  %v5131_v56 = vld [vmem:[#allocation2 + $0x3b8] sm:$0xff]  ;;  %v5132_v58 = vld [vmem:[#allocation2 + $0x3d0] sm:$0xff] }
 0x778   : > { %v5110_v43 = vadd.f32 %v5094_v57, %v5059_v20  ;;  %v5111_v53 = vadd.f32 %v5095_v27, %v5060_v25  ;;  %v5112_v26 = vadd.f32 %v5096_v61, %v5061_v32  ;;  %v5113_v52 = vadd.f32 %v5097_v4, %v5062_v45  ;;  %v5134_v25 = vld [vmem:[#allocation2 + $0x400] sm:$0xff]  ;;  %v5135_v32 = vld [vmem:[#allocation2 + $0x418] sm:$0xff]  ;;  %v5136_v45 = vld [vmem:[#allocation2 + $0x430] sm:$0xff] }
 0x779   : > { %v5114_v24 = vadd.f32 %v5098_v18, %v5063_v3  ;;  %v5115_v60 = vadd.f32 %v5099_v8, %v5064_v6  ;;  %v5116_v46 = vadd.f32 %v5100_v47, %v5065_v42  ;;  %v5117_v1 = vadd.f32 %v5101_v9, %v5066_v41  ;;  %v5139_v3 = vld [vmem:[#allocation2 + $0x478] sm:$0xff]  ;;  %v5178_v27 = vld [vmem:[#allocation2 + $0x480] sm:$0xff]  ;;  %v5180_v9 = vld [vmem:[#allocation2 + $0x4b0] sm:$0xff] }
 0x77a   : > { %v5118_v22 = vadd.f32 %v5102_v19, %v5067_v48  ;;  %v5119_v11 = vadd.f32 %v5103_v2, %v5068_v39  ;;  %v5120_v15 = vadd.f32 %v5104_v51, %v5069_v37  ;;  %v5121_v20 = vadd.f32 %v5105_v38, %v5070_v17  ;;  %v5179_v47 = vld [vmem:[#allocation2 + $0x498] sm:$0xff]  ;;  %v5181_v19 = vld [vmem:[#allocation2 + $0x4c8] sm:$0xff] }
 0x77b   : > { %v5141_v6 = vmul.f32 %v10656_v16, %v5124_v23  ;;  %v5142_v42 = vmul.f32 %v10656_v16, %v5125_v35  ;;  %v5143_v41 = vmul.f32 %v10656_v16, %v5126_v5  ;;  %v5144_v62 = vmul.f32 %v10656_v16, %v5127_v30  ;;  %v5185_v30 = vld [vmem:[#allocation2 + $0x528] sm:$0xff] }
 0x77c   : > { %v5145_v0 = vmul.f32 %v10656_v16, %v5128_v44  ;;  %v5146_v48 = vmul.f32 %v10656_v16, %v5129_v54  ;;  %v5147_v39 = vmul.f32 %v10656_v16, %v5130_v14  ;;  %v5148_v37 = vmul.f32 %v10656_v16, %v5131_v56  ;;  %v5190_v44 = vld [vmem:[#allocation2 + $0x5a0] sm:$0xff]  ;;  %v5193_v56 = vld [vmem:[#allocation2 + $0x5e8] sm:$0xff] }
 0x77d   : > { %v5149_v17 = vmul.f32 %v10656_v16, %v5132_v58  ;;  %v5150_v40 = vmul.f32 %v10656_v16, %v5133_v59  ;;  %v5151_v28 = vmul.f32 %v10656_v16, %v5134_v25  ;;  %v5152_v29 = vmul.f32 %v10656_v16, %v5135_v32 }
 0x77e   : > { %v5153_v36 = vmul.f32 %v10656_v16, %v5136_v45  ;;  %v5154_v10 = vmul.f32 %v10656_v16, %v5137_v7  ;;  %v5155_v33 = vmul.f32 %v10656_v16, %v5138_v49  ;;  %v5156_v50 = vmul.f32 %v10656_v16, %v5139_v3  ;;  %v5182_v16 = vld [vmem:[#allocation2 + $0x4e0] sm:$0xff] }
 0x77f   : > { %v5157_v21 = vadd.f32 %v5141_v6, %v5106_v12  ;;  %v5158_v34 = vadd.f32 %v5142_v42, %v5107_v55  ;;  %v5159_v13 = vadd.f32 %v5143_v41, %v5108_v63  ;;  %v5160_v57 = vadd.f32 %v5144_v62, %v5109_v31  ;;  %v5183_v12 = vld [vmem:[#allocation2 + $0x4f8] sm:$0xff]  ;;  %v5184_v55 = vld [vmem:[#allocation2 + $0x510] sm:$0xff] }
 0x780   : > { %v5161_v61 = vadd.f32 %v5145_v0, %v5110_v43  ;;  %v5162_v4 = vadd.f32 %v5146_v48, %v5111_v53  ;;  %v5163_v18 = vadd.f32 %v5147_v39, %v5112_v26  ;;  %v5164_v8 = vadd.f32 %v5148_v37, %v5113_v52  ;;  %v5186_v43 = vld [vmem:[#allocation2 + $0x540] sm:$0xff]  ;;  %v5187_v53 = vld [vmem:[#allocation2 + $0x558] sm:$0xff]  ;;  %v5188_v26 = vld [vmem:[#allocation2 + $0x570] sm:$0xff] }
 0x781   : > { %v5165_v2 = vadd.f32 %v5149_v17, %v5114_v24  ;;  %v5166_v51 = vadd.f32 %v5150_v40, %v5115_v60  ;;  %v5167_v38 = vadd.f32 %v5151_v28, %v5116_v46  ;;  %v5168_v23 = vadd.f32 %v5152_v29, %v5117_v1  ;;  %v5189_v52 = vld [vmem:[#allocation2 + $0x588] sm:$0xff]  ;;  %v5191_v46 = vld [vmem:[#allocation2 + $0x5b8] sm:$0xff]  ;;  %v5192_v1 = vld [vmem:[#allocation2 + $0x5d0] sm:$0xff] }
 0x782   : > { %v5169_v63 = vadd.f32 %v5153_v36, %v5118_v22  ;;  %v5170_v31 = vadd.f32 %v5154_v10, %v5119_v11  ;;  %v5171_v35 = vadd.f32 %v5155_v33, %v5120_v15  ;;  %v5172_v5 = vadd.f32 %v5156_v50, %v5121_v20  ;;  %v5229_v0 = vld [vmem:[#allocation2 + $0x488] sm:$0xff]  ;;  %v5230_v40 = vld [vmem:[#allocation2 + $0x4a0] sm:$0xff]  ;;  %v5231_v28 = vld [vmem:[#allocation2 + $0x4b8] sm:$0xff] }
 0x783   : > { %v5194_v54 = vstv %s10700_s27  ;;  %v10726_v14 = vstv %s10702_s30  ;;  %v10729_v24 = vstv %s10708_s10  ;;  %v10732_v60 = vstv %s10710_s14  ;;  %v5232_v29 = vld [vmem:[#allocation2 + $0x4d0] sm:$0xff]  ;;  %s5635_s27 = sadd.s32 2, %s10671_s11  ;;  %s5584_s10 = sadd.s32 8, %s10682_s17 }
 0x784   : > { %v5195_v58 = vmul.f32 %v5194_v54, %v5178_v27  ;;  %v5196_v59 = vmul.f32 %v5194_v54, %v5179_v47  ;;  %v5197_v22 = vmul.f32 %v5194_v54, %v5180_v9  ;;  %v5198_v11 = vmul.f32 %v5194_v54, %v5181_v19  ;;  %v5233_v27 = vld [vmem:[#allocation2 + $0x4e8] sm:$0xff]  ;;  %v5234_v47 = vld [vmem:[#allocation2 + $0x500] sm:$0xff]  ;;  %v5235_v9 = vld [vmem:[#allocation2 + $0x518] sm:$0xff]  ;;  %s10829_s30 = smul.u32 9, %s5635_s27  ;;  %s10842_s17 = sld [smem:[#allocation7 + %s5584_s10]] }
 0x785   : > { %v5199_v15 = vmul.f32 %v5194_v54, %v5182_v16  ;;  %v5200_v20 = vmul.f32 %v5194_v54, %v5183_v12  ;;  %v5201_v25 = vmul.f32 %v5194_v54, %v5184_v55  ;;  %v5202_v32 = vmul.f32 %v5194_v54, %v5185_v30  ;;  %v5236_v30 = vld [vmem:[#allocation2 + $0x530] sm:$0xff] }
 0x786   : > { %v5203_v45 = vmul.f32 %v5194_v54, %v5186_v43  ;;  %v5204_v7 = vmul.f32 %v5194_v54, %v5187_v53  ;;  %v5205_v49 = vmul.f32 %v5194_v54, %v5188_v26  ;;  %v5206_v3 = vmul.f32 %v5194_v54, %v5189_v52  ;;  %v5237_v43 = vld [vmem:[#allocation2 + $0x548] sm:$0xff]  ;;  %v5239_v26 = vld [vmem:[#allocation2 + $0x578] sm:$0xff]  ;;  %v5240_v52 = vld [vmem:[#allocation2 + $0x590] sm:$0xff]  ;;  %s5688_s14 = sadd.s32 1, %s10829_s30  ;;  %s5739_s28 = sadd.s32 2, %s10829_s30 }
 0x787   : > { %v5207_v6 = vmul.f32 %v5194_v54, %v5190_v44  ;;  %v5208_v42 = vmul.f32 %v5194_v54, %v5191_v46  ;;  %v5209_v41 = vmul.f32 %v5194_v54, %v5192_v1  ;;  %v5210_v62 = vmul.f32 %v5194_v54, %v5193_v56  ;;  %s10845_s23 = sld [smem:[#allocation7 + %s10829_s30]] }
 0x788   : > { %v5211_v48 = vadd.f32 %v5195_v58, %v5157_v21  ;;  %v5212_v39 = vadd.f32 %v5196_v59, %v5158_v34  ;;  %v5213_v37 = vadd.f32 %v5197_v22, %v5159_v13  ;;  %v5214_v17 = vadd.f32 %v5198_v11, %v5160_v57  ;;  %v5238_v21 = vld [vmem:[#allocation2 + $0x560] sm:$0xff]  ;;  %v5280_v11 = vld [vmem:[#allocation2 + $0x490] sm:$0xff]  ;;  %s10851_s15 = sld [smem:[#allocation7 + %s5688_s14]] }
 0x789   : > { %v5215_v36 = vadd.f32 %v5199_v15, %v5161_v61  ;;  %v5216_v10 = vadd.f32 %v5200_v20, %v5162_v4  ;;  %v5217_v33 = vadd.f32 %v5201_v25, %v5163_v18  ;;  %v5218_v50 = vadd.f32 %v5202_v32, %v5164_v8  ;;  %v5241_v61 = vld [vmem:[#allocation2 + $0x5a8] sm:$0xff]  ;;  %v5242_v4 = vld [vmem:[#allocation2 + $0x5c0] sm:$0xff]  ;;  %v5243_v18 = vld [vmem:[#allocation2 + $0x5d8] sm:$0xff]  ;;  %s10853_s29 = sld [smem:[#allocation7 + %s5739_s28]] }
 0x78a   : > { %v5219_v19 = vadd.f32 %v5203_v45, %v5165_v2  ;;  %v5220_v16 = vadd.f32 %v5204_v7, %v5166_v51  ;;  %v5221_v12 = vadd.f32 %v5205_v49, %v5167_v38  ;;  %v5222_v55 = vadd.f32 %v5206_v3, %v5168_v23  ;;  %v5244_v8 = vld [vmem:[#allocation2 + $0x5f0] sm:$0xff]  ;;  %v5281_v45 = vld [vmem:[#allocation2 + $0x4a8] sm:$0xff]  ;;  %v5282_v7 = vld [vmem:[#allocation2 + $0x4c0] sm:$0xff] }
 0x78b   : > { %v5223_v34 = vadd.f32 %v5207_v6, %v5169_v63  ;;  %v5224_v13 = vadd.f32 %v5208_v42, %v5170_v31  ;;  %v5225_v57 = vadd.f32 %v5209_v41, %v5171_v35  ;;  %v5226_v53 = vadd.f32 %v5210_v62, %v5172_v5  ;;  %v5283_v49 = vld [vmem:[#allocation2 + $0x4d8] sm:$0xff]  ;;  %v5284_v62 = vld [vmem:[#allocation2 + $0x4f0] sm:$0xff] }
 0x78c   : > { %v5246_v44 = vmul.f32 %v10726_v14, %v5229_v0  ;;  %v5247_v2 = vmul.f32 %v10726_v14, %v5230_v40  ;;  %v5248_v51 = vmul.f32 %v10726_v14, %v5231_v28  ;;  %v5249_v38 = vmul.f32 %v10726_v14, %v5232_v29  ;;  %v5285_v0 = vld [vmem:[#allocation2 + $0x508] sm:$0xff]  ;;  %v5286_v40 = vld [vmem:[#allocation2 + $0x520] sm:$0xff] }
 0x78d   : > { %v5250_v23 = vmul.f32 %v10726_v14, %v5233_v27  ;;  %v5251_v63 = vmul.f32 %v10726_v14, %v5234_v47  ;;  %v5252_v31 = vmul.f32 %v10726_v14, %v5235_v9  ;;  %v5253_v35 = vmul.f32 %v10726_v14, %v5236_v30  ;;  %v5288_v9 = vld [vmem:[#allocation2 + $0x550] sm:$0xff] }
 0x78e   : > { %v5254_v5 = vmul.f32 %v10726_v14, %v5237_v43  ;;  %v5255_v54 = vmul.f32 %v10726_v14, %v5238_v21  ;;  %v5256_v46 = vmul.f32 %v10726_v14, %v5239_v26  ;;  %v5257_v1 = vmul.f32 %v10726_v14, %v5240_v52  ;;  %v5290_v43 = vld [vmem:[#allocation2 + $0x580] sm:$0xff]  ;;  %v5291_v21 = vld [vmem:[#allocation2 + $0x598] sm:$0xff] }
 0x78f   : > { %v5258_v56 = vmul.f32 %v10726_v14, %v5241_v61  ;;  %v5259_v58 = vmul.f32 %v10726_v14, %v5242_v4  ;;  %v5260_v59 = vmul.f32 %v10726_v14, %v5243_v18  ;;  %v5261_v22 = vmul.f32 %v10726_v14, %v5244_v8  ;;  %v5287_v14 = vld [vmem:[#allocation2 + $0x538] sm:$0xff] }
 0x790   : > { %v5262_v15 = vadd.f32 %v5246_v44, %v5211_v48  ;;  %v5263_v20 = vadd.f32 %v5247_v2, %v5212_v39  ;;  %v5264_v25 = vadd.f32 %v5248_v51, %v5213_v37  ;;  %v5265_v32 = vadd.f32 %v5249_v38, %v5214_v17  ;;  %v5289_v48 = vld [vmem:[#allocation2 + $0x568] sm:$0xff]  ;;  %v5331_v51 = vld [vmem:[#allocation2 + $0x600] sm:$0xff] }
 0x791   : > { %v5266_v3 = vadd.f32 %v5250_v23, %v5215_v36  ;;  %v5267_v6 = vadd.f32 %v5251_v63, %v5216_v10  ;;  %v5268_v42 = vadd.f32 %v5252_v31, %v5217_v33  ;;  %v5269_v41 = vadd.f32 %v5253_v35, %v5218_v50  ;;  %v5292_v36 = vld [vmem:[#allocation2 + $0x5b0] sm:$0xff]  ;;  %v5293_v10 = vld [vmem:[#allocation2 + $0x5c8] sm:$0xff]  ;;  %v5294_v33 = vld [vmem:[#allocation2 + $0x5e0] sm:$0xff] }
 0x792   : > { %v5270_v28 = vadd.f32 %v5254_v5, %v5219_v19  ;;  %v5271_v29 = vadd.f32 %v5255_v54, %v5220_v16  ;;  %v5272_v27 = vadd.f32 %v5256_v46, %v5221_v12  ;;  %v5273_v47 = vadd.f32 %v5257_v1, %v5222_v55  ;;  %v5295_v50 = vld [vmem:[#allocation2 + $0x5f8] sm:$0xff]  ;;  %v5333_v5 = vld [vmem:[#allocation2 + $0x630] sm:$0xff]  ;;  %v5334_v54 = vld [vmem:[#allocation2 + $0x648] sm:$0xff] }
 0x793   : > { %v5274_v39 = vadd.f32 %v5258_v56, %v5223_v34  ;;  %v5275_v37 = vadd.f32 %v5259_v58, %v5224_v13  ;;  %v5276_v17 = vadd.f32 %v5260_v59, %v5225_v57  ;;  %v5277_v30 = vadd.f32 %v5261_v22, %v5226_v53  ;;  %v5332_v35 = vld [vmem:[#allocation2 + $0x618] sm:$0xff]  ;;  %v5335_v59 = vld [vmem:[#allocation2 + $0x660] sm:$0xff] }
 0x794   : > { %v5297_v26 = vmul.f32 %v10729_v24, %v5280_v11  ;;  %v5298_v19 = vmul.f32 %v10729_v24, %v5281_v45  ;;  %v5299_v16 = vmul.f32 %v10729_v24, %v5282_v7  ;;  %v5300_v12 = vmul.f32 %v10729_v24, %v5283_v49  ;;  %v5336_v22 = vld [vmem:[#allocation2 + $0x678] sm:$0xff]  ;;  %v5337_v11 = vld [vmem:[#allocation2 + $0x690] sm:$0xff] }
 0x795   : > { %v5301_v55 = vmul.f32 %v10729_v24, %v5284_v62  ;;  %v5302_v34 = vmul.f32 %v10729_v24, %v5285_v0  ;;  %v5303_v13 = vmul.f32 %v10729_v24, %v5286_v40  ;;  %v5304_v57 = vmul.f32 %v10729_v24, %v5287_v14  ;;  %v5340_v7 = vld [vmem:[#allocation2 + $0x6d8] sm:$0xff]  ;;  %v5345_v14 = vld [vmem:[#allocation2 + $0x750] sm:$0xff] }
 0x796   : > { %v5305_v53 = vmul.f32 %v10729_v24, %v5288_v9  ;;  %v5306_v52 = vmul.f32 %v10729_v24, %v5289_v48  ;;  %v5307_v61 = vmul.f32 %v10729_v24, %v5290_v43  ;;  %v5308_v4 = vmul.f32 %v10729_v24, %v5291_v21 }
 0x797   : > { %v5309_v18 = vmul.f32 %v10729_v24, %v5292_v36  ;;  %v5310_v8 = vmul.f32 %v10729_v24, %v5293_v10  ;;  %v5311_v44 = vmul.f32 %v10729_v24, %v5294_v33  ;;  %v5312_v2 = vmul.f32 %v10729_v24, %v5295_v50 }
 0x798   : > { %v5313_v38 = vadd.f32 %v5297_v26, %v5262_v15  ;;  %v5314_v23 = vadd.f32 %v5298_v19, %v5263_v20  ;;  %v5315_v63 = vadd.f32 %v5299_v16, %v5264_v25  ;;  %v5316_v31 = vadd.f32 %v5300_v12, %v5265_v32  ;;  %v5338_v25 = vld [vmem:[#allocation2 + $0x6a8] sm:$0xff]  ;;  %v5339_v32 = vld [vmem:[#allocation2 + $0x6c0] sm:$0xff] }
 0x799   : > { %v5317_v46 = vadd.f32 %v5301_v55, %v5266_v3  ;;  %v5318_v1 = vadd.f32 %v5302_v34, %v5267_v6  ;;  %v5319_v56 = vadd.f32 %v5303_v13, %v5268_v42  ;;  %v5320_v58 = vadd.f32 %v5304_v57, %v5269_v41  ;;  %v5341_v3 = vld [vmem:[#allocation2 + $0x6f0] sm:$0xff]  ;;  %v5342_v6 = vld [vmem:[#allocation2 + $0x708] sm:$0xff]  ;;  %v5343_v42 = vld [vmem:[#allocation2 + $0x720] sm:$0xff] }
 0x79a   : > { %v5321_v24 = vadd.f32 %v5305_v53, %v5270_v28  ;;  %v5322_v15 = vadd.f32 %v5306_v52, %v5271_v29  ;;  %v5323_v20 = vadd.f32 %v5307_v61, %v5272_v27  ;;  %v5324_v45 = vadd.f32 %v5308_v4, %v5273_v47  ;;  %v5344_v41 = vld [vmem:[#allocation2 + $0x738] sm:$0xff]  ;;  %v5346_v28 = vld [vmem:[#allocation2 + $0x768] sm:$0xff]  ;;  %v5383_v61 = vld [vmem:[#allocation2 + $0x620] sm:$0xff] }
 0x79b   : > { %v5325_v49 = vadd.f32 %v5309_v18, %v5274_v39  ;;  %v5326_v62 = vadd.f32 %v5310_v8, %v5275_v37  ;;  %v5327_v0 = vadd.f32 %v5311_v44, %v5276_v17  ;;  %v5328_v40 = vadd.f32 %v5312_v2, %v5277_v30  ;;  %v5382_v34 = vld [vmem:[#allocation2 + $0x608] sm:$0xff]  ;;  %v5384_v4 = vld [vmem:[#allocation2 + $0x638] sm:$0xff]  ;;  %v5385_v18 = vld [vmem:[#allocation2 + $0x650] sm:$0xff] }
 0x79c   : > { %v5348_v29 = vmul.f32 %v10732_v60, %v5331_v51  ;;  %v5349_v27 = vmul.f32 %v10732_v60, %v5332_v35  ;;  %v5350_v47 = vmul.f32 %v10732_v60, %v5333_v5  ;;  %v5351_v9 = vmul.f32 %v10732_v60, %v5334_v54  ;;  %v5389_v54 = vld [vmem:[#allocation2 + $0x6b0] sm:$0xff] }
 0x79d   : > { %v5352_v48 = vmul.f32 %v10732_v60, %v5335_v59  ;;  %v5353_v39 = vmul.f32 %v10732_v60, %v5336_v22  ;;  %v5354_v37 = vmul.f32 %v10732_v60, %v5337_v11  ;;  %v5355_v17 = vmul.f32 %v10732_v60, %v5338_v25  ;;  %v5394_v59 = vld [vmem:[#allocation2 + $0x728] sm:$0xff]  ;;  %v5397_v25 = vld [vmem:[#allocation2 + $0x770] sm:$0xff] }
 0x79e   : > { %v5356_v30 = vmul.f32 %v10732_v60, %v5339_v32  ;;  %v5357_v43 = vmul.f32 %v10732_v60, %v5340_v7  ;;  %v5358_v21 = vmul.f32 %v10732_v60, %v5341_v3  ;;  %v5359_v36 = vmul.f32 %v10732_v60, %v5342_v6 }
 0x79f   : > { %v5360_v10 = vmul.f32 %v10732_v60, %v5343_v42  ;;  %v5361_v33 = vmul.f32 %v10732_v60, %v5344_v41  ;;  %v5362_v50 = vmul.f32 %v10732_v60, %v5345_v14  ;;  %v5363_v26 = vmul.f32 %v10732_v60, %v5346_v28  ;;  %v5386_v60 = vld [vmem:[#allocation2 + $0x668] sm:$0xff] }
 0x7a0   : > { %v5364_v19 = vadd.f32 %v5348_v29, %v5313_v38  ;;  %v5365_v16 = vadd.f32 %v5349_v27, %v5314_v23  ;;  %v5366_v12 = vadd.f32 %v5350_v47, %v5315_v63  ;;  %v5367_v55 = vadd.f32 %v5351_v9, %v5316_v31  ;;  %v5387_v38 = vld [vmem:[#allocation2 + $0x680] sm:$0xff]  ;;  %v5388_v23 = vld [vmem:[#allocation2 + $0x698] sm:$0xff] }
 0x7a1   : > { %v5368_v13 = vadd.f32 %v5352_v48, %v5317_v46  ;;  %v5369_v57 = vadd.f32 %v5353_v39, %v5318_v1  ;;  %v5370_v53 = vadd.f32 %v5354_v37, %v5319_v56  ;;  %v5371_v52 = vadd.f32 %v5355_v17, %v5320_v58  ;;  %v5390_v46 = vld [vmem:[#allocation2 + $0x6c8] sm:$0xff]  ;;  %v5391_v1 = vld [vmem:[#allocation2 + $0x6e0] sm:$0xff]  ;;  %v5392_v56 = vld [vmem:[#allocation2 + $0x6f8] sm:$0xff] }
 0x7a2   : > { %v5372_v8 = vadd.f32 %v5356_v30, %v5321_v24  ;;  %v5373_v44 = vadd.f32 %v5357_v43, %v5322_v15  ;;  %v5374_v2 = vadd.f32 %v5358_v21, %v5323_v20  ;;  %v5375_v51 = vadd.f32 %v5359_v36, %v5324_v45  ;;  %v5393_v58 = vld [vmem:[#allocation2 + $0x710] sm:$0xff]  ;;  %v5395_v20 = vld [vmem:[#allocation2 + $0x740] sm:$0xff]  ;;  %v5396_v45 = vld [vmem:[#allocation2 + $0x758] sm:$0xff] }
 0x7a3   : > { %v5376_v63 = vadd.f32 %v5360_v10, %v5325_v49  ;;  %v5377_v31 = vadd.f32 %v5361_v33, %v5326_v62  ;;  %v5378_v35 = vadd.f32 %v5362_v50, %v5327_v0  ;;  %v5379_v5 = vadd.f32 %v5363_v26, %v5328_v40  ;;  %v5433_v48 = vld [vmem:[#allocation2 + $0x610] sm:$0xff]  ;;  %v5434_v43 = vld [vmem:[#allocation2 + $0x628] sm:$0xff]  ;;  %v5435_v21 = vld [vmem:[#allocation2 + $0x640] sm:$0xff] }
 0x7a4   : > { %v5398_v22 = vstv %s10770_s16  ;;  %v10796_v11 = vstv %s10772_s26  ;;  %v10799_v24 = vstv %s10778_s12  ;;  %v10802_v15 = vstv %s10780_s9  ;;  %v5436_v36 = vld [vmem:[#allocation2 + $0x658] sm:$0xff]  ;;  %s5790_s16 = sadd.s32 3, %s10829_s30  ;;  %s5841_s26 = sadd.s32 4, %s10829_s30 }
 0x7a5   : > { %v5399_v32 = vmul.f32 %v5398_v22, %v5382_v34  ;;  %v5400_v7 = vmul.f32 %v5398_v22, %v5383_v61  ;;  %v5401_v49 = vmul.f32 %v5398_v22, %v5384_v4  ;;  %v5402_v62 = vmul.f32 %v5398_v22, %v5385_v18  ;;  %v5437_v34 = vld [vmem:[#allocation2 + $0x670] sm:$0xff]  ;;  %v5438_v61 = vld [vmem:[#allocation2 + $0x688] sm:$0xff]  ;;  %v5439_v4 = vld [vmem:[#allocation2 + $0x6a0] sm:$0xff]  ;;  %s5892_s12 = sadd.s32 5, %s10829_s30  ;;  %s5943_s9 = sadd.s32 6, %s10829_s30 }
 0x7a6   : > { %v5403_v0 = vmul.f32 %v5398_v22, %v5386_v60  ;;  %v5404_v40 = vmul.f32 %v5398_v22, %v5387_v38  ;;  %v5405_v3 = vmul.f32 %v5398_v22, %v5388_v23  ;;  %v5406_v6 = vmul.f32 %v5398_v22, %v5389_v54  ;;  %v5440_v54 = vld [vmem:[#allocation2 + $0x6b8] sm:$0xff]  ;;  %s10913_s27 = sld [smem:[#allocation7 + %s5790_s16]] }
 0x7a7   : > { %v5407_v42 = vmul.f32 %v5398_v22, %v5390_v46  ;;  %v5408_v41 = vmul.f32 %v5398_v22, %v5391_v1  ;;  %v5409_v14 = vmul.f32 %v5398_v22, %v5392_v56  ;;  %v5410_v28 = vmul.f32 %v5398_v22, %v5393_v58  ;;  %v5441_v46 = vld [vmem:[#allocation2 + $0x6d0] sm:$0xff]  ;;  %v5443_v56 = vld [vmem:[#allocation2 + $0x700] sm:$0xff]  ;;  %v5444_v58 = vld [vmem:[#allocation2 + $0x718] sm:$0xff]  ;;  %s10915_s10 = sld [smem:[#allocation7 + %s5841_s26]] }
 0x7a8   : > { %v5411_v29 = vmul.f32 %v5398_v22, %v5394_v59  ;;  %v5412_v27 = vmul.f32 %v5398_v22, %v5395_v20  ;;  %v5413_v47 = vmul.f32 %v5398_v22, %v5396_v45  ;;  %v5414_v9 = vmul.f32 %v5398_v22, %v5397_v25  ;;  %s10921_s14 = sld [smem:[#allocation7 + %s5892_s12]] }
 0x7a9   : > { %v5415_v39 = vadd.f32 %v5399_v32, %v5364_v19  ;;  %v5416_v37 = vadd.f32 %v5400_v7, %v5365_v16  ;;  %v5417_v17 = vadd.f32 %v5401_v49, %v5366_v12  ;;  %v5418_v30 = vadd.f32 %v5402_v62, %v5367_v55  ;;  %v5442_v19 = vld [vmem:[#allocation2 + $0x6e8] sm:$0xff]  ;;  %v5484_v62 = vld [vmem:[#allocation2 + $0x780] sm:$0xff]  ;;  %s10923_s28 = sld [smem:[#allocation7 + %s5943_s9]] }
 0x7aa   : > { %v5419_v10 = vadd.f32 %v5403_v0, %v5368_v13  ;;  %v5420_v33 = vadd.f32 %v5404_v40, %v5369_v57  ;;  %v5421_v50 = vadd.f32 %v5405_v3, %v5370_v53  ;;  %v5422_v26 = vadd.f32 %v5406_v6, %v5371_v52  ;;  %v5445_v13 = vld [vmem:[#allocation2 + $0x730] sm:$0xff]  ;;  %v5446_v57 = vld [vmem:[#allocation2 + $0x748] sm:$0xff]  ;;  %v5447_v53 = vld [vmem:[#allocation2 + $0x760] sm:$0xff] }
 0x7ab   : > { %v5423_v18 = vadd.f32 %v5407_v42, %v5372_v8  ;;  %v5424_v60 = vadd.f32 %v5408_v41, %v5373_v44  ;;  %v5425_v38 = vadd.f32 %v5409_v14, %v5374_v2  ;;  %v5426_v23 = vadd.f32 %v5410_v28, %v5375_v51  ;;  %v5448_v52 = vld [vmem:[#allocation2 + $0x778] sm:$0xff]  ;;  %v5486_v41 = vld [vmem:[#allocation2 + $0x7b0] sm:$0xff]  ;;  %v5487_v14 = vld [vmem:[#allocation2 + $0x7c8] sm:$0xff] }
 0x7ac   : > { %v5427_v16 = vadd.f32 %v5411_v29, %v5376_v63  ;;  %v5428_v12 = vadd.f32 %v5412_v27, %v5377_v31  ;;  %v5429_v55 = vadd.f32 %v5413_v47, %v5378_v35  ;;  %v5430_v1 = vadd.f32 %v5414_v9, %v5379_v5  ;;  %v5485_v42 = vld [vmem:[#allocation2 + $0x798] sm:$0xff]  ;;  %v5488_v9 = vld [vmem:[#allocation2 + $0x7e0] sm:$0xff] }
 0x7ad   : > { %v5450_v59 = vmul.f32 %v10796_v11, %v5433_v48  ;;  %v5451_v8 = vmul.f32 %v10796_v11, %v5434_v43  ;;  %v5452_v44 = vmul.f32 %v10796_v11, %v5435_v21  ;;  %v5453_v2 = vmul.f32 %v10796_v11, %v5436_v36  ;;  %v5489_v48 = vld [vmem:[#allocation2 + $0x7f8] sm:$0xff]  ;;  %v5490_v43 = vld [vmem:[#allocation2 + $0x810] sm:$0xff] }
 0x7ae   : > { %v5454_v51 = vmul.f32 %v10796_v11, %v5437_v34  ;;  %v5455_v63 = vmul.f32 %v10796_v11, %v5438_v61  ;;  %v5456_v31 = vmul.f32 %v10796_v11, %v5439_v4  ;;  %v5457_v35 = vmul.f32 %v10796_v11, %v5440_v54  ;;  %v5491_v61 = vld [vmem:[#allocation2 + $0x828] sm:$0xff] }
 0x7af   : > { %v5458_v5 = vmul.f32 %v10796_v11, %v5441_v46  ;;  %v5459_v22 = vmul.f32 %v10796_v11, %v5442_v19  ;;  %v5460_v20 = vmul.f32 %v10796_v11, %v5443_v56  ;;  %v5461_v45 = vmul.f32 %v10796_v11, %v5444_v58  ;;  %v5494_v46 = vld [vmem:[#allocation2 + $0x870] sm:$0xff]  ;;  %v5499_v19 = vld [vmem:[#allocation2 + $0x8e8] sm:$0xff] }
 0x7b0   : > { %v5462_v25 = vmul.f32 %v10796_v11, %v5445_v13  ;;  %v5463_v32 = vmul.f32 %v10796_v11, %v5446_v57  ;;  %v5464_v7 = vmul.f32 %v10796_v11, %v5447_v53  ;;  %v5465_v49 = vmul.f32 %v10796_v11, %v5448_v52 }
 0x7b1   : > { %v5466_v0 = vadd.f32 %v5450_v59, %v5415_v39  ;;  %v5467_v40 = vadd.f32 %v5451_v8, %v5416_v37  ;;  %v5468_v3 = vadd.f32 %v5452_v44, %v5417_v17  ;;  %v5469_v6 = vadd.f32 %v5453_v2, %v5418_v30  ;;  %v5492_v39 = vld [vmem:[#allocation2 + $0x840] sm:$0xff]  ;;  %v5493_v37 = vld [vmem:[#allocation2 + $0x858] sm:$0xff]  ;;  %v5535_v44 = vld [vmem:[#allocation2 + $0x788] sm:$0xff] }
 0x7b2   : > { %v5470_v28 = vadd.f32 %v5454_v51, %v5419_v10  ;;  %v5471_v29 = vadd.f32 %v5455_v63, %v5420_v33  ;;  %v5472_v27 = vadd.f32 %v5456_v31, %v5421_v50  ;;  %v5473_v47 = vadd.f32 %v5457_v35, %v5422_v26  ;;  %v5495_v10 = vld [vmem:[#allocation2 + $0x888] sm:$0xff]  ;;  %v5496_v33 = vld [vmem:[#allocation2 + $0x8a0] sm:$0xff]  ;;  %v5497_v50 = vld [vmem:[#allocation2 + $0x8b8] sm:$0xff] }
 0x7b3   : > { %v5474_v21 = vadd.f32 %v5458_v5, %v5423_v18  ;;  %v5475_v36 = vadd.f32 %v5459_v22, %v5424_v60  ;;  %v5476_v34 = vadd.f32 %v5460_v20, %v5425_v38  ;;  %v5477_v11 = vadd.f32 %v5461_v45, %v5426_v23  ;;  %v5498_v26 = vld [vmem:[#allocation2 + $0x8d0] sm:$0xff]  ;;  %v5536_v35 = vld [vmem:[#allocation2 + $0x7a0] sm:$0xff]  ;;  %v5537_v5 = vld [vmem:[#allocation2 + $0x7b8] sm:$0xff] }
 0x7b4   : > { %v5478_v17 = vadd.f32 %v5462_v25, %v5427_v16  ;;  %v5479_v30 = vadd.f32 %v5463_v32, %v5428_v12  ;;  %v5480_v4 = vadd.f32 %v5464_v7, %v5429_v55  ;;  %v5481_v54 = vadd.f32 %v5465_v49, %v5430_v1  ;;  %v5538_v22 = vld [vmem:[#allocation2 + $0x7d0] sm:$0xff]  ;;  %v5539_v7 = vld [vmem:[#allocation2 + $0x7e8] sm:$0xff]  ;;  %v5540_v49 = vld [vmem:[#allocation2 + $0x800] sm:$0xff] }
 0x7b5   : > { %v5501_v56 = vmul.f32 %v10799_v24, %v5484_v62  ;;  %v5502_v18 = vmul.f32 %v10799_v24, %v5485_v42  ;;  %v5503_v60 = vmul.f32 %v10799_v24, %v5486_v41  ;;  %v5504_v38 = vmul.f32 %v10799_v24, %v5487_v14  ;;  %v5541_v62 = vld [vmem:[#allocation2 + $0x818] sm:$0xff]  ;;  %v5544_v41 = vld [vmem:[#allocation2 + $0x860] sm:$0xff] }
 0x7b6   : > { %v5505_v23 = vmul.f32 %v10799_v24, %v5488_v9  ;;  %v5506_v16 = vmul.f32 %v10799_v24, %v5489_v48  ;;  %v5507_v12 = vmul.f32 %v10799_v24, %v5490_v43  ;;  %v5508_v55 = vmul.f32 %v10799_v24, %v5491_v61  ;;  %v5548_v43 = vld [vmem:[#allocation2 + $0x8c0] sm:$0xff]  ;;  %v5549_v61 = vld [vmem:[#allocation2 + $0x8d8] sm:$0xff] }
 0x7b7   : > { %v5509_v1 = vmul.f32 %v10799_v24, %v5492_v39  ;;  %v5510_v58 = vmul.f32 %v10799_v24, %v5493_v37  ;;  %v5511_v13 = vmul.f32 %v10799_v24, %v5494_v46  ;;  %v5512_v57 = vmul.f32 %v10799_v24, %v5495_v10 }
 0x7b8   : > { %v5513_v53 = vmul.f32 %v10799_v24, %v5496_v33  ;;  %v5514_v52 = vmul.f32 %v10799_v24, %v5497_v50  ;;  %v5515_v59 = vmul.f32 %v10799_v24, %v5498_v26  ;;  %v5516_v8 = vmul.f32 %v10799_v24, %v5499_v19 }
 0x7b9   : > { %v5517_v2 = vadd.f32 %v5501_v56, %v5466_v0  ;;  %v5518_v51 = vadd.f32 %v5502_v18, %v5467_v40  ;;  %v5519_v63 = vadd.f32 %v5503_v60, %v5468_v3  ;;  %v5520_v31 = vadd.f32 %v5504_v38, %v5469_v6  ;;  %v5542_v3 = vld [vmem:[#allocation2 + $0x830] sm:$0xff]  ;;  %v5543_v6 = vld [vmem:[#allocation2 + $0x848] sm:$0xff] }
 0x7ba   : > { %v5521_v20 = vadd.f32 %v5505_v23, %v5470_v28  ;;  %v5522_v45 = vadd.f32 %v5506_v16, %v5471_v29  ;;  %v5523_v25 = vadd.f32 %v5507_v12, %v5472_v27  ;;  %v5524_v32 = vadd.f32 %v5508_v55, %v5473_v47  ;;  %v5545_v29 = vld [vmem:[#allocation2 + $0x878] sm:$0xff]  ;;  %v5546_v27 = vld [vmem:[#allocation2 + $0x890] sm:$0xff]  ;;  %v5547_v47 = vld [vmem:[#allocation2 + $0x8a8] sm:$0xff] }
 0x7bb   : > { %v5525_v24 = vadd.f32 %v5509_v1, %v5474_v21  ;;  %v5526_v0 = vadd.f32 %v5510_v58, %v5475_v36  ;;  %v5527_v42 = vadd.f32 %v5511_v13, %v5476_v34  ;;  %v5528_v40 = vadd.f32 %v5512_v57, %v5477_v11  ;;  %v5550_v21 = vld [vmem:[#allocation2 + $0x8f0] sm:$0xff]  ;;  %v5587_v13 = vld [vmem:[#allocation2 + $0x7a8] sm:$0xff]  ;;  %v5588_v57 = vld [vmem:[#allocation2 + $0x7c0] sm:$0xff] }
 0x7bc   : > { %v5529_v14 = vadd.f32 %v5513_v53, %v5478_v17  ;;  %v5530_v9 = vadd.f32 %v5514_v52, %v5479_v30  ;;  %v5531_v48 = vadd.f32 %v5515_v59, %v5480_v4  ;;  %v5532_v28 = vadd.f32 %v5516_v8, %v5481_v54  ;;  %v5586_v16 = vld [vmem:[#allocation2 + $0x790] sm:$0xff]  ;;  %v5589_v53 = vld [vmem:[#allocation2 + $0x7d8] sm:$0xff] }
 0x7bd   : > { %v5552_v36 = vmul.f32 %v10802_v15, %v5535_v44  ;;  %v5553_v34 = vmul.f32 %v10802_v15, %v5536_v35  ;;  %v5554_v11 = vmul.f32 %v10802_v15, %v5537_v5  ;;  %v5555_v39 = vmul.f32 %v10802_v15, %v5538_v22  ;;  %v5593_v22 = vld [vmem:[#allocation2 + $0x838] sm:$0xff] }
 0x7be   : > { %v5556_v37 = vmul.f32 %v10802_v15, %v5539_v7  ;;  %v5557_v17 = vmul.f32 %v10802_v15, %v5540_v49  ;;  %v5558_v30 = vmul.f32 %v10802_v15, %v5541_v62  ;;  %v5559_v4 = vmul.f32 %v10802_v15, %v5542_v3  ;;  %v5598_v7 = vld [vmem:[#allocation2 + $0x8b0] sm:$0xff]  ;;  %v5601_v3 = vld [vmem:[#allocation2 + $0x8f8] sm:$0xff] }
 0x7bf   : > { %v5560_v54 = vmul.f32 %v10802_v15, %v5543_v6  ;;  %v5561_v46 = vmul.f32 %v10802_v15, %v5544_v41  ;;  %v5562_v10 = vmul.f32 %v10802_v15, %v5545_v29  ;;  %v5563_v33 = vmul.f32 %v10802_v15, %v5546_v27 }
 0x7c0   : > { %v5564_v50 = vmul.f32 %v10802_v15, %v5547_v47  ;;  %v5565_v26 = vmul.f32 %v10802_v15, %v5548_v43  ;;  %v5566_v19 = vmul.f32 %v10802_v15, %v5549_v61  ;;  %v5567_v56 = vmul.f32 %v10802_v15, %v5550_v21  ;;  %v5590_v15 = vld [vmem:[#allocation2 + $0x7f0] sm:$0xff] }
 0x7c1   : > { %v5568_v18 = vadd.f32 %v5552_v36, %v5517_v2  ;;  %v5569_v60 = vadd.f32 %v5553_v34, %v5518_v51  ;;  %v5570_v38 = vadd.f32 %v5554_v11, %v5519_v63  ;;  %v5571_v23 = vadd.f32 %v5555_v39, %v5520_v31  ;;  %v5591_v2 = vld [vmem:[#allocation2 + $0x808] sm:$0xff]  ;;  %v5592_v51 = vld [vmem:[#allocation2 + $0x820] sm:$0xff] }
 0x7c2   : > { %v5572_v12 = vadd.f32 %v5556_v37, %v5521_v20  ;;  %v5573_v55 = vadd.f32 %v5557_v17, %v5522_v45  ;;  %v5574_v1 = vadd.f32 %v5558_v30, %v5523_v25  ;;  %v5575_v58 = vadd.f32 %v5559_v4, %v5524_v32  ;;  %v5594_v20 = vld [vmem:[#allocation2 + $0x850] sm:$0xff]  ;;  %v5595_v45 = vld [vmem:[#allocation2 + $0x868] sm:$0xff]  ;;  %v5596_v25 = vld [vmem:[#allocation2 + $0x880] sm:$0xff] }
 0x7c3   : > { %v5576_v52 = vadd.f32 %v5560_v54, %v5525_v24  ;;  %v5577_v59 = vadd.f32 %v5561_v46, %v5526_v0  ;;  %v5578_v8 = vadd.f32 %v5562_v10, %v5527_v42  ;;  %v5579_v44 = vadd.f32 %v5563_v33, %v5528_v40  ;;  %v5597_v32 = vld [vmem:[#allocation2 + $0x898] sm:$0xff]  ;;  %v5599_v42 = vld [vmem:[#allocation2 + $0x8c8] sm:$0xff]  ;;  %v5600_v40 = vld [vmem:[#allocation2 + $0x8e0] sm:$0xff] }
 0x7c4   : > { %v5580_v63 = vadd.f32 %v5564_v50, %v5529_v14  ;;  %v5581_v31 = vadd.f32 %v5565_v26, %v5530_v9  ;;  %v5582_v35 = vadd.f32 %v5566_v19, %v5531_v48  ;;  %v5583_v5 = vadd.f32 %v5567_v56, %v5532_v28  ;;  %v5639_v37 = vld [vmem:[#allocation2 + $0x900] sm:$0xff]  ;;  %v5640_v46 = vld [vmem:[#allocation2 + $0x918] sm:$0xff]  ;;  %v5641_v10 = vld [vmem:[#allocation2 + $0x930] sm:$0xff] }
 0x7c5   : > { %v5602_v49 = vstv %s10842_s17  ;;  %v10869_v62 = vstv %s10845_s23  ;;  %v10872_v24 = vstv %s10851_s15  ;;  %v10875_v0 = vstv %s10853_s29  ;;  %v5642_v33 = vld [vmem:[#allocation2 + $0x948] sm:$0xff]  ;;  %s6096_s17 = sadd.s32 3, %s10671_s11  ;;  %s5994_s23 = sadd.s32 7, %s10829_s30 }
 0x7c6   : > { %v5603_v6 = vmul.f32 %v5602_v49, %v5586_v16  ;;  %v5604_v41 = vmul.f32 %v5602_v49, %v5587_v13  ;;  %v5605_v14 = vmul.f32 %v5602_v49, %v5588_v57  ;;  %v5606_v9 = vmul.f32 %v5602_v49, %v5589_v53  ;;  %v5643_v16 = vld [vmem:[#allocation2 + $0x960] sm:$0xff]  ;;  %v5644_v13 = vld [vmem:[#allocation2 + $0x978] sm:$0xff]  ;;  %v5645_v57 = vld [vmem:[#allocation2 + $0x990] sm:$0xff]  ;;  %s10972_s11 = smul.u32 9, %s6096_s17  ;;  %s6045_s15 = sadd.s32 8, %s10829_s30 }
 0x7c7   : > { %v5607_v48 = vmul.f32 %v5602_v49, %v5590_v15  ;;  %v5608_v28 = vmul.f32 %v5602_v49, %v5591_v2  ;;  %v5609_v29 = vmul.f32 %v5602_v49, %v5592_v51  ;;  %v5610_v27 = vmul.f32 %v5602_v49, %v5593_v22  ;;  %v5646_v22 = vld [vmem:[#allocation2 + $0x9a8] sm:$0xff]  ;;  %s10985_s30 = sld [smem:[#allocation7 + %s5994_s23]] }
 0x7c8   : > { %v5611_v47 = vmul.f32 %v5602_v49, %v5594_v20  ;;  %v5612_v43 = vmul.f32 %v5602_v49, %v5595_v45  ;;  %v5613_v61 = vmul.f32 %v5602_v49, %v5596_v25  ;;  %v5614_v21 = vmul.f32 %v5602_v49, %v5597_v32  ;;  %v5647_v20 = vld [vmem:[#allocation2 + $0x9c0] sm:$0xff]  ;;  %v5649_v25 = vld [vmem:[#allocation2 + $0x9f0] sm:$0xff]  ;;  %v5650_v32 = vld [vmem:[#allocation2 + $0xa08] sm:$0xff]  ;;  %s6149_s29 = sadd.s32 1, %s10972_s11  ;;  %s10987_s16 = sld [smem:[#allocation7 + %s6045_s15]] }
 0x7c9   : > { %v5615_v36 = vmul.f32 %v5602_v49, %v5598_v7  ;;  %v5616_v34 = vmul.f32 %v5602_v49, %v5599_v42  ;;  %v5617_v11 = vmul.f32 %v5602_v49, %v5600_v40  ;;  %v5618_v39 = vmul.f32 %v5602_v49, %v5601_v3  ;;  %s10994_s26 = sld [smem:[#allocation7 + %s10972_s11]]  ;;  %s6200_s9 = sadd.s32 2, %s10972_s11 }
 0x7ca   : > { %v5619_v17 = vadd.f32 %v5603_v6, %v5568_v18  ;;  %v5620_v30 = vadd.f32 %v5604_v41, %v5569_v60  ;;  %v5621_v4 = vadd.f32 %v5605_v14, %v5570_v38  ;;  %v5622_v54 = vadd.f32 %v5606_v9, %v5571_v23  ;;  %v5648_v18 = vld [vmem:[#allocation2 + $0x9d8] sm:$0xff]  ;;  %v5690_v9 = vld [vmem:[#allocation2 + $0x908] sm:$0xff]  ;;  %s10996_s12 = sld [smem:[#allocation7 + %s6149_s29]]  ;;  %s6404_s29 = sadd.s32 6, %s10972_s11 }
 0x7cb   : > { %v5623_v50 = vadd.f32 %v5607_v48, %v5572_v12  ;;  %v5624_v26 = vadd.f32 %v5608_v28, %v5573_v55  ;;  %v5625_v19 = vadd.f32 %v5609_v29, %v5574_v1  ;;  %v5626_v56 = vadd.f32 %v5610_v27, %v5575_v58  ;;  %v5651_v12 = vld [vmem:[#allocation2 + $0xa20] sm:$0xff]  ;;  %v5652_v55 = vld [vmem:[#allocation2 + $0xa38] sm:$0xff]  ;;  %v5653_v1 = vld [vmem:[#allocation2 + $0xa50] sm:$0xff] }
 0x7cc   : > { %v5627_v53 = vadd.f32 %v5611_v47, %v5576_v52  ;;  %v5628_v15 = vadd.f32 %v5612_v43, %v5577_v59  ;;  %v5629_v2 = vadd.f32 %v5613_v61, %v5578_v8  ;;  %v5630_v51 = vadd.f32 %v5614_v21, %v5579_v44  ;;  %v5654_v58 = vld [vmem:[#allocation2 + $0xa68] sm:$0xff]  ;;  %v5691_v47 = vld [vmem:[#allocation2 + $0x920] sm:$0xff]  ;;  %v5692_v43 = vld [vmem:[#allocation2 + $0x938] sm:$0xff] }
 0x7cd   : > { %v5631_v60 = vadd.f32 %v5615_v36, %v5580_v63  ;;  %v5632_v38 = vadd.f32 %v5616_v34, %v5581_v31  ;;  %v5633_v23 = vadd.f32 %v5617_v11, %v5582_v35  ;;  %v5634_v45 = vadd.f32 %v5618_v39, %v5583_v5  ;;  %v5693_v61 = vld [vmem:[#allocation2 + $0x950] sm:$0xff]  ;;  %v5694_v39 = vld [vmem:[#allocation2 + $0x968] sm:$0xff] }
 0x7ce   : > { %v5656_v7 = vmul.f32 %v10869_v62, %v5639_v37  ;;  %v5657_v52 = vmul.f32 %v10869_v62, %v5640_v46  ;;  %v5658_v59 = vmul.f32 %v10869_v62, %v5641_v10  ;;  %v5659_v8 = vmul.f32 %v10869_v62, %v5642_v33  ;;  %v5695_v37 = vld [vmem:[#allocation2 + $0x980] sm:$0xff]  ;;  %v5696_v46 = vld [vmem:[#allocation2 + $0x998] sm:$0xff] }
 0x7cf   : > { %v5660_v44 = vmul.f32 %v10869_v62, %v5643_v16  ;;  %v5661_v63 = vmul.f32 %v10869_v62, %v5644_v13  ;;  %v5662_v31 = vmul.f32 %v10869_v62, %v5645_v57  ;;  %v5663_v35 = vmul.f32 %v10869_v62, %v5646_v22  ;;  %v5698_v57 = vld [vmem:[#allocation2 + $0x9c8] sm:$0xff] }
 0x7d0   : > { %v5664_v5 = vmul.f32 %v10869_v62, %v5647_v20  ;;  %v5665_v49 = vmul.f32 %v10869_v62, %v5648_v18  ;;  %v5666_v42 = vmul.f32 %v10869_v62, %v5649_v25  ;;  %v5667_v40 = vmul.f32 %v10869_v62, %v5650_v32  ;;  %v5700_v20 = vld [vmem:[#allocation2 + $0x9f8] sm:$0xff]  ;;  %v5701_v18 = vld [vmem:[#allocation2 + $0xa10] sm:$0xff] }
 0x7d1   : > { %v5668_v3 = vmul.f32 %v10869_v62, %v5651_v12  ;;  %v5669_v6 = vmul.f32 %v10869_v62, %v5652_v55  ;;  %v5670_v41 = vmul.f32 %v10869_v62, %v5653_v1  ;;  %v5671_v14 = vmul.f32 %v10869_v62, %v5654_v58  ;;  %v5697_v62 = vld [vmem:[#allocation2 + $0x9b0] sm:$0xff] }
 0x7d2   : > { %v5672_v48 = vadd.f32 %v5656_v7, %v5619_v17  ;;  %v5673_v28 = vadd.f32 %v5657_v52, %v5620_v30  ;;  %v5674_v29 = vadd.f32 %v5658_v59, %v5621_v4  ;;  %v5675_v27 = vadd.f32 %v5659_v8, %v5622_v54  ;;  %v5699_v17 = vld [vmem:[#allocation2 + $0x9e0] sm:$0xff]  ;;  %v5741_v59 = vld [vmem:[#allocation2 + $0x910] sm:$0xff] }
 0x7d3   : > { %v5676_v21 = vadd.f32 %v5660_v44, %v5623_v50  ;;  %v5677_v36 = vadd.f32 %v5661_v63, %v5624_v26  ;;  %v5678_v34 = vadd.f32 %v5662_v31, %v5625_v19  ;;  %v5679_v11 = vadd.f32 %v5663_v35, %v5626_v56  ;;  %v5702_v50 = vld [vmem:[#allocation2 + $0xa28] sm:$0xff]  ;;  %v5703_v26 = vld [vmem:[#allocation2 + $0xa40] sm:$0xff]  ;;  %v5704_v19 = vld [vmem:[#allocation2 + $0xa58] sm:$0xff] }
 0x7d4   : > { %v5680_v10 = vadd.f32 %v5664_v5, %v5627_v53  ;;  %v5681_v33 = vadd.f32 %v5665_v49, %v5628_v15  ;;  %v5682_v16 = vadd.f32 %v5666_v42, %v5629_v2  ;;  %v5683_v13 = vadd.f32 %v5667_v40, %v5630_v51  ;;  %v5705_v56 = vld [vmem:[#allocation2 + $0xa70] sm:$0xff]  ;;  %v5742_v35 = vld [vmem:[#allocation2 + $0x928] sm:$0xff]  ;;  %v5743_v5 = vld [vmem:[#allocation2 + $0x940] sm:$0xff] }
 0x7d5   : > { %v5684_v30 = vadd.f32 %v5668_v3, %v5631_v60  ;;  %v5685_v4 = vadd.f32 %v5669_v6, %v5632_v38  ;;  %v5686_v54 = vadd.f32 %v5670_v41, %v5633_v23  ;;  %v5687_v22 = vadd.f32 %v5671_v14, %v5634_v45  ;;  %v5744_v49 = vld [vmem:[#allocation2 + $0x958] sm:$0xff]  ;;  %v5745_v41 = vld [vmem:[#allocation2 + $0x970] sm:$0xff]  ;;  %v5746_v14 = vld [vmem:[#allocation2 + $0x988] sm:$0xff] }
 0x7d6   : > { %v5707_v25 = vmul.f32 %v10872_v24, %v5690_v9  ;;  %v5708_v53 = vmul.f32 %v10872_v24, %v5691_v47  ;;  %v5709_v15 = vmul.f32 %v10872_v24, %v5692_v43  ;;  %v5710_v2 = vmul.f32 %v10872_v24, %v5693_v61  ;;  %v5747_v9 = vld [vmem:[#allocation2 + $0x9a0] sm:$0xff]  ;;  %v5750_v43 = vld [vmem:[#allocation2 + $0x9e8] sm:$0xff] }
 0x7d7   : > { %v5711_v51 = vmul.f32 %v10872_v24, %v5694_v39  ;;  %v5712_v60 = vmul.f32 %v10872_v24, %v5695_v37  ;;  %v5713_v38 = vmul.f32 %v10872_v24, %v5696_v46  ;;  %v5714_v23 = vmul.f32 %v10872_v24, %v5697_v62  ;;  %v5755_v62 = vld [vmem:[#allocation2 + $0xa60] sm:$0xff] }
 0x7d8   : > { %v5715_v45 = vmul.f32 %v10872_v24, %v5698_v57  ;;  %v5716_v32 = vmul.f32 %v10872_v24, %v5699_v17  ;;  %v5717_v12 = vmul.f32 %v10872_v24, %v5700_v20  ;;  %v5718_v55 = vmul.f32 %v10872_v24, %v5701_v18 }
 0x7d9   : > { %v5719_v1 = vmul.f32 %v10872_v24, %v5702_v50  ;;  %v5720_v58 = vmul.f32 %v10872_v24, %v5703_v26  ;;  %v5721_v7 = vmul.f32 %v10872_v24, %v5704_v19  ;;  %v5722_v52 = vmul.f32 %v10872_v24, %v5705_v56 }
 0x7da   : > { %v5723_v8 = vadd.f32 %v5707_v25, %v5672_v48  ;;  %v5724_v44 = vadd.f32 %v5708_v53, %v5673_v28  ;;  %v5725_v63 = vadd.f32 %v5709_v15, %v5674_v29  ;;  %v5726_v31 = vadd.f32 %v5710_v2, %v5675_v27  ;;  %v5748_v29 = vld [vmem:[#allocation2 + $0x9b8] sm:$0xff]  ;;  %v5749_v27 = vld [vmem:[#allocation2 + $0x9d0] sm:$0xff] }
 0x7db   : > { %v5727_v42 = vadd.f32 %v5711_v51, %v5676_v21  ;;  %v5728_v40 = vadd.f32 %v5712_v60, %v5677_v36  ;;  %v5729_v3 = vadd.f32 %v5713_v38, %v5678_v34  ;;  %v5730_v6 = vadd.f32 %v5714_v23, %v5679_v11  ;;  %v5751_v21 = vld [vmem:[#allocation2 + $0xa00] sm:$0xff]  ;;  %v5752_v36 = vld [vmem:[#allocation2 + $0xa18] sm:$0xff]  ;;  %v5753_v34 = vld [vmem:[#allocation2 + $0xa30] sm:$0xff] }
 0x7dc   : > { %v5731_v24 = vadd.f32 %v5715_v45, %v5680_v10  ;;  %v5732_v48 = vadd.f32 %v5716_v32, %v5681_v33  ;;  %v5733_v28 = vadd.f32 %v5717_v12, %v5682_v16  ;;  %v5734_v47 = vadd.f32 %v5718_v55, %v5683_v13  ;;  %v5754_v11 = vld [vmem:[#allocation2 + $0xa48] sm:$0xff]  ;;  %v5756_v10 = vld [vmem:[#allocation2 + $0xa78] sm:$0xff]  ;;  %v5792_v60 = vld [vmem:[#allocation2 + $0xa80] sm:$0xff] }
 0x7dd   : > { %v5735_v61 = vadd.f32 %v5719_v1, %v5684_v30  ;;  %v5736_v39 = vadd.f32 %v5720_v58, %v5685_v4  ;;  %v5737_v37 = vadd.f32 %v5721_v7, %v5686_v54  ;;  %v5738_v46 = vadd.f32 %v5722_v52, %v5687_v22  ;;  %v5793_v12 = vld [vmem:[#allocation2 + $0xa98] sm:$0xff]  ;;  %v5794_v55 = vld [vmem:[#allocation2 + $0xab0] sm:$0xff]  ;;  %v5795_v1 = vld [vmem:[#allocation2 + $0xac8] sm:$0xff] }
 0x7de   : > { %v5758_v33 = vmul.f32 %v10875_v0, %v5741_v59  ;;  %v5759_v16 = vmul.f32 %v10875_v0, %v5742_v35  ;;  %v5760_v13 = vmul.f32 %v10875_v0, %v5743_v5  ;;  %v5761_v57 = vmul.f32 %v10875_v0, %v5744_v49  ;;  %v5799_v49 = vld [vmem:[#allocation2 + $0xb28] sm:$0xff] }
 0x7df   : > { %v5762_v17 = vmul.f32 %v10875_v0, %v5745_v41  ;;  %v5763_v30 = vmul.f32 %v10875_v0, %v5746_v14  ;;  %v5764_v4 = vmul.f32 %v10875_v0, %v5747_v9  ;;  %v5765_v54 = vmul.f32 %v10875_v0, %v5748_v29  ;;  %v5804_v41 = vld [vmem:[#allocation2 + $0xba0] sm:$0xff]  ;;  %v5807_v29 = vld [vmem:[#allocation2 + $0xbe8] sm:$0xff] }
 0x7e0   : > { %v5766_v22 = vmul.f32 %v10875_v0, %v5749_v27  ;;  %v5767_v20 = vmul.f32 %v10875_v0, %v5750_v43  ;;  %v5768_v18 = vmul.f32 %v10875_v0, %v5751_v21  ;;  %v5769_v50 = vmul.f32 %v10875_v0, %v5752_v36 }
 0x7e1   : > { %v5770_v26 = vmul.f32 %v10875_v0, %v5753_v34  ;;  %v5771_v19 = vmul.f32 %v10875_v0, %v5754_v11  ;;  %v5772_v56 = vmul.f32 %v10875_v0, %v5755_v62  ;;  %v5773_v25 = vmul.f32 %v10875_v0, %v5756_v10  ;;  %v5796_v0 = vld [vmem:[#allocation2 + $0xae0] sm:$0xff] }
 0x7e2   : > { %v5774_v53 = vadd.f32 %v5758_v33, %v5723_v8  ;;  %v5775_v15 = vadd.f32 %v5759_v16, %v5724_v44  ;;  %v5776_v2 = vadd.f32 %v5760_v13, %v5725_v63  ;;  %v5777_v51 = vadd.f32 %v5761_v57, %v5726_v31  ;;  %v5797_v8 = vld [vmem:[#allocation2 + $0xaf8] sm:$0xff]  ;;  %v5798_v44 = vld [vmem:[#allocation2 + $0xb10] sm:$0xff] }
 0x7e3   : > { %v5778_v38 = vadd.f32 %v5762_v17, %v5727_v42  ;;  %v5779_v23 = vadd.f32 %v5763_v30, %v5728_v40  ;;  %v5780_v45 = vadd.f32 %v5764_v4, %v5729_v3  ;;  %v5781_v32 = vadd.f32 %v5765_v54, %v5730_v6  ;;  %v5800_v42 = vld [vmem:[#allocation2 + $0xb40] sm:$0xff]  ;;  %v5801_v40 = vld [vmem:[#allocation2 + $0xb58] sm:$0xff]  ;;  %v5802_v3 = vld [vmem:[#allocation2 + $0xb70] sm:$0xff] }
 0x7e4   : > { %v5782_v58 = vadd.f32 %v5766_v22, %v5731_v24  ;;  %v5783_v7 = vadd.f32 %v5767_v20, %v5732_v48  ;;  %v5784_v52 = vadd.f32 %v5768_v18, %v5733_v28  ;;  %v5785_v59 = vadd.f32 %v5769_v50, %v5734_v47  ;;  %v5803_v6 = vld [vmem:[#allocation2 + $0xb88] sm:$0xff]  ;;  %v5805_v28 = vld [vmem:[#allocation2 + $0xbb8] sm:$0xff]  ;;  %v5806_v47 = vld [vmem:[#allocation2 + $0xbd0] sm:$0xff] }
 0x7e5   : > { %v5786_v63 = vadd.f32 %v5770_v26, %v5735_v61  ;;  %v5787_v31 = vadd.f32 %v5771_v19, %v5736_v39  ;;  %v5788_v35 = vadd.f32 %v5772_v56, %v5737_v37  ;;  %v5789_v5 = vadd.f32 %v5773_v25, %v5738_v46  ;;  %v5843_v17 = vld [vmem:[#allocation2 + $0xa88] sm:$0xff]  ;;  %v5844_v20 = vld [vmem:[#allocation2 + $0xaa0] sm:$0xff]  ;;  %v5845_v18 = vld [vmem:[#allocation2 + $0xab8] sm:$0xff] }
 0x7e6   : > { %v5808_v14 = vstv %s10913_s27  ;;  %v10939_v9 = vstv %s10915_s10  ;;  %v10942_v24 = vstv %s10921_s14  ;;  %v10945_v48 = vstv %s10923_s28  ;;  %v5846_v50 = vld [vmem:[#allocation2 + $0xad0] sm:$0xff]  ;;  %s6251_s27 = sadd.s32 3, %s10972_s11  ;;  %s6302_s10 = sadd.s32 4, %s10972_s11 }
 0x7e7   : > { %v5809_v27 = vmul.f32 %v5808_v14, %v5792_v60  ;;  %v5810_v43 = vmul.f32 %v5808_v14, %v5793_v12  ;;  %v5811_v61 = vmul.f32 %v5808_v14, %v5794_v55  ;;  %v5812_v39 = vmul.f32 %v5808_v14, %v5795_v1  ;;  %v5847_v60 = vld [vmem:[#allocation2 + $0xae8] sm:$0xff]  ;;  %v5848_v12 = vld [vmem:[#allocation2 + $0xb00] sm:$0xff]  ;;  %v5849_v55 = vld [vmem:[#allocation2 + $0xb18] sm:$0xff]  ;;  %s6353_s14 = sadd.s32 5, %s10972_s11  ;;  %s11056_s28 = sld [smem:[#allocation7 + %s6200_s9]] }
 0x7e8   : > { %v5813_v37 = vmul.f32 %v5808_v14, %v5796_v0  ;;  %v5814_v46 = vmul.f32 %v5808_v14, %v5797_v8  ;;  %v5815_v21 = vmul.f32 %v5808_v14, %v5798_v44  ;;  %v5816_v36 = vmul.f32 %v5808_v14, %v5799_v49  ;;  %v5850_v49 = vld [vmem:[#allocation2 + $0xb30] sm:$0xff]  ;;  %s11058_s17 = sld [smem:[#allocation7 + %s6251_s27]]  ;;  %s7222_s27 = sshll.u32 %s8603_s21, 4 }
 0x7e9   : > { %v5817_v34 = vmul.f32 %v5808_v14, %v5800_v42  ;;  %v5818_v11 = vmul.f32 %v5808_v14, %v5801_v40  ;;  %v5819_v62 = vmul.f32 %v5808_v14, %v5802_v3  ;;  %v5820_v10 = vmul.f32 %v5808_v14, %v5803_v6  ;;  %v5851_v42 = vld [vmem:[#allocation2 + $0xb48] sm:$0xff]  ;;  %v5853_v3 = vld [vmem:[#allocation2 + $0xb78] sm:$0xff]  ;;  %v5854_v6 = vld [vmem:[#allocation2 + $0xb90] sm:$0xff]  ;;  %s11064_s23 = sld [smem:[#allocation7 + %s6302_s10]]  ;;  %s7223_s10 = sshll.u32 %s8607_s22, 7 }
 0x7ea   : > { %v5821_v33 = vmul.f32 %v5808_v14, %v5804_v41  ;;  %v5822_v16 = vmul.f32 %v5808_v14, %v5805_v28  ;;  %v5823_v13 = vmul.f32 %v5808_v14, %v5806_v47  ;;  %v5824_v57 = vmul.f32 %v5808_v14, %v5807_v29  ;;  %s11066_s15 = sld [smem:[#allocation7 + %s6353_s14]]  ;;  %s11198_s14 = sadd.s32 %s7223_s10, %s7222_s27 }
 0x7eb   : > { %v5825_v30 = vadd.f32 %v5809_v27, %v5774_v53  ;;  %v5826_v4 = vadd.f32 %v5810_v43, %v5775_v15  ;;  %v5827_v54 = vadd.f32 %v5811_v61, %v5776_v2  ;;  %v5828_v22 = vadd.f32 %v5812_v39, %v5777_v51  ;;  %v5852_v53 = vld [vmem:[#allocation2 + $0xb60] sm:$0xff]  ;;  %v5894_v39 = vld [vmem:[#allocation2 + $0xa90] sm:$0xff]  ;;  %s11136_s9 = sld [smem:[#allocation8 + %s8603_s21]]  ;;  %s7224_s21 = sshll.u32 %s11198_s14, 7 }
 0x7ec   : > { %v5829_v26 = vadd.f32 %v5813_v37, %v5778_v38  ;;  %v5830_v19 = vadd.f32 %v5814_v46, %v5779_v23  ;;  %v5831_v56 = vadd.f32 %v5815_v21, %v5780_v45  ;;  %v5832_v25 = vadd.f32 %v5816_v36, %v5781_v32  ;;  %v5855_v38 = vld [vmem:[#allocation2 + $0xba8] sm:$0xff]  ;;  %v5856_v23 = vld [vmem:[#allocation2 + $0xbc0] sm:$0xff]  ;;  %v5857_v45 = vld [vmem:[#allocation2 + $0xbd8] sm:$0xff]  ;;  %s6623_s22 = sshll.u32 %s8809_s6, 4  ;;  %s11223_s22 = int_to_ptr.vmem [resolvable:$true] %s6623_s22 }
 0x7ed   : > { %v5833_v1 = vadd.f32 %v5817_v34, %v5782_v58  ;;  %v5834_v0 = vadd.f32 %v5818_v11, %v5783_v7  ;;  %v5835_v8 = vadd.f32 %v5819_v62, %v5784_v52  ;;  %v5836_v44 = vadd.f32 %v5820_v10, %v5785_v59  ;;  %v5858_v32 = vld [vmem:[#allocation2 + $0xbf0] sm:$0xff]  ;;  %v5895_v34 = vld [vmem:[#allocation2 + $0xaa8] sm:$0xff]  ;;  %v5896_v11 = vld [vmem:[#allocation2 + $0xac0] sm:$0xff] }
 0x7ee   : > { %v5837_v15 = vadd.f32 %v5821_v33, %v5786_v63  ;;  %v5838_v2 = vadd.f32 %v5822_v16, %v5787_v31  ;;  %v5839_v51 = vadd.f32 %v5823_v13, %v5788_v35  ;;  %v5840_v40 = vadd.f32 %v5824_v57, %v5789_v5  ;;  %v5897_v62 = vld [vmem:[#allocation2 + $0xad8] sm:$0xff]  ;;  %v5898_v57 = vld [vmem:[#allocation2 + $0xaf0] sm:$0xff] }
 0x7ef   : > { %v5860_v41 = vmul.f32 %v10939_v9, %v5843_v17  ;;  %v5861_v58 = vmul.f32 %v10939_v9, %v5844_v20  ;;  %v5862_v7 = vmul.f32 %v10939_v9, %v5845_v18  ;;  %v5863_v52 = vmul.f32 %v10939_v9, %v5846_v50  ;;  %v5899_v17 = vld [vmem:[#allocation2 + $0xb08] sm:$0xff]  ;;  %v5900_v20 = vld [vmem:[#allocation2 + $0xb20] sm:$0xff] }
 0x7f0   : > { %v5864_v59 = vmul.f32 %v10939_v9, %v5847_v60  ;;  %v5865_v63 = vmul.f32 %v10939_v9, %v5848_v12  ;;  %v5866_v31 = vmul.f32 %v10939_v9, %v5849_v55  ;;  %v5867_v35 = vmul.f32 %v10939_v9, %v5850_v49  ;;  %v5901_v12 = vld [vmem:[#allocation2 + $0xb38] sm:$0xff] }
 0x7f1   : > { %v5868_v5 = vmul.f32 %v10939_v9, %v5851_v42  ;;  %v5869_v14 = vmul.f32 %v10939_v9, %v5852_v53  ;;  %v5870_v28 = vmul.f32 %v10939_v9, %v5853_v3  ;;  %v5871_v47 = vmul.f32 %v10939_v9, %v5854_v6  ;;  %v5904_v42 = vld [vmem:[#allocation2 + $0xb80] sm:$0xff]  ;;  %v5909_v53 = vld [vmem:[#allocation2 + $0xbf8] sm:$0xff] }
 0x7f2   : > { %v5872_v29 = vmul.f32 %v10939_v9, %v5855_v38  ;;  %v5873_v27 = vmul.f32 %v10939_v9, %v5856_v23  ;;  %v5874_v43 = vmul.f32 %v10939_v9, %v5857_v45  ;;  %v5875_v61 = vmul.f32 %v10939_v9, %v5858_v32 }
 0x7f3   : > { %v5876_v37 = vadd.f32 %v5860_v41, %v5825_v30  ;;  %v5877_v46 = vadd.f32 %v5861_v58, %v5826_v4  ;;  %v5878_v21 = vadd.f32 %v5862_v7, %v5827_v54  ;;  %v5879_v36 = vadd.f32 %v5863_v52, %v5828_v22  ;;  %v5902_v30 = vld [vmem:[#allocation2 + $0xb50] sm:$0xff]  ;;  %v5903_v4 = vld [vmem:[#allocation2 + $0xb68] sm:$0xff]  ;;  %v5945_v7 = vld [vmem:[#allocation2 + $0xc00] sm:$0xff] }
 0x7f4   : > { %v5880_v10 = vadd.f32 %v5864_v59, %v5829_v26  ;;  %v5881_v33 = vadd.f32 %v5865_v63, %v5830_v19  ;;  %v5882_v16 = vadd.f32 %v5866_v31, %v5831_v56  ;;  %v5883_v13 = vadd.f32 %v5867_v35, %v5832_v25  ;;  %v5905_v26 = vld [vmem:[#allocation2 + $0xb98] sm:$0xff]  ;;  %v5906_v19 = vld [vmem:[#allocation2 + $0xbb0] sm:$0xff]  ;;  %v5907_v56 = vld [vmem:[#allocation2 + $0xbc8] sm:$0xff] }
 0x7f5   : > { %v5884_v18 = vadd.f32 %v5868_v5, %v5833_v1  ;;  %v5885_v50 = vadd.f32 %v5869_v14, %v5834_v0  ;;  %v5886_v60 = vadd.f32 %v5870_v28, %v5835_v8  ;;  %v5887_v9 = vadd.f32 %v5871_v47, %v5836_v44  ;;  %v5908_v25 = vld [vmem:[#allocation2 + $0xbe0] sm:$0xff]  ;;  %v5946_v35 = vld [vmem:[#allocation2 + $0xc18] sm:$0xff]  ;;  %v5947_v5 = vld [vmem:[#allocation2 + $0xc30] sm:$0xff] }
 0x7f6   : > { %v5888_v54 = vadd.f32 %v5872_v29, %v5837_v15  ;;  %v5889_v22 = vadd.f32 %v5873_v27, %v5838_v2  ;;  %v5890_v55 = vadd.f32 %v5874_v43, %v5839_v51  ;;  %v5891_v49 = vadd.f32 %v5875_v61, %v5840_v40  ;;  %v5948_v14 = vld [vmem:[#allocation2 + $0xc48] sm:$0xff]  ;;  %v5949_v43 = vld [vmem:[#allocation2 + $0xc60] sm:$0xff]  ;;  %v5950_v61 = vld [vmem:[#allocation2 + $0xc78] sm:$0xff] }
 0x7f7   : > { %v5911_v3 = vmul.f32 %v10942_v24, %v5894_v39  ;;  %v5912_v1 = vmul.f32 %v10942_v24, %v5895_v34  ;;  %v5913_v0 = vmul.f32 %v10942_v24, %v5896_v11  ;;  %v5914_v8 = vmul.f32 %v10942_v24, %v5897_v62  ;;  %v5951_v39 = vld [vmem:[#allocation2 + $0xc90] sm:$0xff] }
 0x7f8   : > { %v5915_v44 = vmul.f32 %v10942_v24, %v5898_v57  ;;  %v5916_v15 = vmul.f32 %v10942_v24, %v5899_v17  ;;  %v5917_v2 = vmul.f32 %v10942_v24, %v5900_v20  ;;  %v5918_v51 = vmul.f32 %v10942_v24, %v5901_v12 }
 0x7f9   : > { %v5919_v40 = vmul.f32 %v10942_v24, %v5902_v30  ;;  %v5920_v6 = vmul.f32 %v10942_v24, %v5903_v4  ;;  %v5921_v38 = vmul.f32 %v10942_v24, %v5904_v42  ;;  %v5922_v23 = vmul.f32 %v10942_v24, %v5905_v26 }
 0x7fa   : > { %v5923_v45 = vmul.f32 %v10942_v24, %v5906_v19  ;;  %v5924_v32 = vmul.f32 %v10942_v24, %v5907_v56  ;;  %v5925_v41 = vmul.f32 %v10942_v24, %v5908_v25  ;;  %v5926_v58 = vmul.f32 %v10942_v24, %v5909_v53 }
 0x7fb   : > { %v5927_v52 = vadd.f32 %v5911_v3, %v5876_v37  ;;  %v5928_v59 = vadd.f32 %v5912_v1, %v5877_v46  ;;  %v5929_v63 = vadd.f32 %v5913_v0, %v5878_v21  ;;  %v5930_v31 = vadd.f32 %v5914_v8, %v5879_v36  ;;  %v5952_v46 = vld [vmem:[#allocation2 + $0xca8] sm:$0xff]  ;;  %v5953_v21 = vld [vmem:[#allocation2 + $0xcc0] sm:$0xff]  ;;  %v5954_v36 = vld [vmem:[#allocation2 + $0xcd8] sm:$0xff] }
 0x7fc   : > { %v5931_v28 = vadd.f32 %v5915_v44, %v5880_v10  ;;  %v5932_v47 = vadd.f32 %v5916_v15, %v5881_v33  ;;  %v5933_v29 = vadd.f32 %v5917_v2, %v5882_v16  ;;  %v5934_v27 = vadd.f32 %v5918_v51, %v5883_v13  ;;  %v5955_v10 = vld [vmem:[#allocation2 + $0xcf0] sm:$0xff]  ;;  %v5956_v33 = vld [vmem:[#allocation2 + $0xd08] sm:$0xff]  ;;  %v5957_v16 = vld [vmem:[#allocation2 + $0xd20] sm:$0xff] }
 0x7fd   : > { %v5935_v24 = vadd.f32 %v5919_v40, %v5884_v18  ;;  %v5936_v34 = vadd.f32 %v5920_v6, %v5885_v50  ;;  %v5937_v37 = vadd.f32 %v5921_v38, %v5886_v60  ;;  %v5938_v11 = vadd.f32 %v5922_v23, %v5887_v9  ;;  %v5958_v13 = vld [vmem:[#allocation2 + $0xd38] sm:$0xff]  ;;  %v5959_v18 = vld [vmem:[#allocation2 + $0xd50] sm:$0xff]  ;;  %v5960_v50 = vld [vmem:[#allocation2 + $0xd68] sm:$0xff] }
 0x7fe   : > { %v5939_v62 = vadd.f32 %v5923_v45, %v5888_v54  ;;  %v5940_v57 = vadd.f32 %v5924_v32, %v5889_v22  ;;  %v5941_v17 = vadd.f32 %v5925_v41, %v5890_v55  ;;  %v5942_v20 = vadd.f32 %v5926_v58, %v5891_v49  ;;  %v5996_v15 = vld [vmem:[#allocation2 + $0xc08] sm:$0xff]  ;;  %v5997_v38 = vld [vmem:[#allocation2 + $0xc20] sm:$0xff]  ;;  %v5998_v23 = vld [vmem:[#allocation2 + $0xc38] sm:$0xff] }
 0x7ff   : > { %v5962_v60 = vmul.f32 %v10945_v48, %v5945_v7  ;;  %v5963_v9 = vmul.f32 %v10945_v48, %v5946_v35  ;;  %v5964_v12 = vmul.f32 %v10945_v48, %v5947_v5  ;;  %v5965_v30 = vmul.f32 %v10945_v48, %v5948_v14  ;;  %v5999_v45 = vld [vmem:[#allocation2 + $0xc50] sm:$0xff] }
 0x800   : > { %v5966_v4 = vmul.f32 %v10945_v48, %v5949_v43  ;;  %v5967_v54 = vmul.f32 %v10945_v48, %v5950_v61  ;;  %v5968_v22 = vmul.f32 %v10945_v48, %v5951_v39  ;;  %v5969_v55 = vmul.f32 %v10945_v48, %v5952_v46  ;;  %v6003_v14 = vld [vmem:[#allocation2 + $0xcb0] sm:$0xff]  ;;  %v6008_v43 = vld [vmem:[#allocation2 + $0xd28] sm:$0xff] }
 0x801   : > { %v5970_v49 = vmul.f32 %v10945_v48, %v5953_v21  ;;  %v5971_v42 = vmul.f32 %v10945_v48, %v5954_v36  ;;  %v5972_v26 = vmul.f32 %v10945_v48, %v5955_v10  ;;  %v5973_v19 = vmul.f32 %v10945_v48, %v5956_v33  ;;  %v6011_v46 = vld [vmem:[#allocation2 + $0xd70] sm:$0xff] }
 0x802   : > { %v5974_v56 = vmul.f32 %v10945_v48, %v5957_v16  ;;  %v5975_v25 = vmul.f32 %v10945_v48, %v5958_v13  ;;  %v5976_v53 = vmul.f32 %v10945_v48, %v5959_v18  ;;  %v5977_v3 = vmul.f32 %v10945_v48, %v5960_v50  ;;  %v6000_v48 = vld [vmem:[#allocation2 + $0xc68] sm:$0xff] }
 0x803   : > { %v5978_v1 = vadd.f32 %v5962_v60, %v5927_v52  ;;  %v5979_v0 = vadd.f32 %v5963_v9, %v5928_v59  ;;  %v5980_v8 = vadd.f32 %v5964_v12, %v5929_v63  ;;  %v5981_v44 = vadd.f32 %v5965_v30, %v5930_v31  ;;  %v6001_v52 = vld [vmem:[#allocation2 + $0xc80] sm:$0xff]  ;;  %v6002_v59 = vld [vmem:[#allocation2 + $0xc98] sm:$0xff] }
 0x804   : > { %v5982_v2 = vadd.f32 %v5966_v4, %v5931_v28  ;;  %v5983_v51 = vadd.f32 %v5967_v54, %v5932_v47  ;;  %v5984_v40 = vadd.f32 %v5968_v22, %v5933_v29  ;;  %v5985_v6 = vadd.f32 %v5969_v55, %v5934_v27  ;;  %v6004_v28 = vld [vmem:[#allocation2 + $0xcc8] sm:$0xff]  ;;  %v6005_v47 = vld [vmem:[#allocation2 + $0xce0] sm:$0xff]  ;;  %v6006_v29 = vld [vmem:[#allocation2 + $0xcf8] sm:$0xff] }
 0x805   : > { %v5986_v32 = vadd.f32 %v5970_v49, %v5935_v24  ;;  %v5987_v41 = vadd.f32 %v5971_v42, %v5936_v34  ;;  %v5988_v58 = vadd.f32 %v5972_v26, %v5937_v37  ;;  %v5989_v7 = vadd.f32 %v5973_v19, %v5938_v11  ;;  %v6007_v27 = vld [vmem:[#allocation2 + $0xd10] sm:$0xff]  ;;  %v6009_v37 = vld [vmem:[#allocation2 + $0xd40] sm:$0xff]  ;;  %v6010_v11 = vld [vmem:[#allocation2 + $0xd58] sm:$0xff] }
 0x806   : > { %v5990_v63 = vadd.f32 %v5974_v56, %v5939_v62  ;;  %v5991_v31 = vadd.f32 %v5975_v25, %v5940_v57  ;;  %v5992_v35 = vadd.f32 %v5976_v53, %v5941_v17  ;;  %v5993_v5 = vadd.f32 %v5977_v3, %v5942_v20  ;;  %v6047_v4 = vld [vmem:[#allocation2 + $0xc10] sm:$0xff]  ;;  %v6048_v42 = vld [vmem:[#allocation2 + $0xc28] sm:$0xff]  ;;  %v6049_v26 = vld [vmem:[#allocation2 + $0xc40] sm:$0xff] }
 0x807   : > { %v6012_v61 = vstv %s10985_s30  ;;  %v11012_v39 = vstv %s10987_s16  ;;  %v11015_v24 = vstv %s10994_s26  ;;  %v11018_v34 = vstv %s10996_s12  ;;  %v6050_v19 = vld [vmem:[#allocation2 + $0xc58] sm:$0xff]  ;;  %s6455_s30 = sadd.s32 7, %s10972_s11  ;;  %s6506_s16 = sadd.s32 8, %s10972_s11 }
 0x808   : > { %v6013_v21 = vmul.f32 %v6012_v61, %v5996_v15  ;;  %v6014_v36 = vmul.f32 %v6012_v61, %v5997_v38  ;;  %v6015_v62 = vmul.f32 %v6012_v61, %v5998_v23  ;;  %v6016_v57 = vmul.f32 %v6012_v61, %v5999_v45  ;;  %v6051_v15 = vld [vmem:[#allocation2 + $0xc70] sm:$0xff]  ;;  %v6052_v38 = vld [vmem:[#allocation2 + $0xc88] sm:$0xff]  ;;  %v6053_v23 = vld [vmem:[#allocation2 + $0xca0] sm:$0xff]  ;;  %s11125_s26 = sld [smem:[#allocation7 + %s6404_s29]]  ;;  %s8513_s29 = scalar_lea.vmem %s11223_s22, 2048 }
 0x809   : > { %v6017_v17 = vmul.f32 %v6012_v61, %v6000_v48  ;;  %v6018_v20 = vmul.f32 %v6012_v61, %v6001_v52  ;;  %v6019_v10 = vmul.f32 %v6012_v61, %v6002_v59  ;;  %v6020_v33 = vmul.f32 %v6012_v61, %v6003_v14  ;;  %v6054_v14 = vld [vmem:[#allocation2 + $0xcb8] sm:$0xff]  ;;  %s11127_s12 = sld [smem:[#allocation7 + %s6455_s30]]  ;;  %p8514_p1 = scmp.ne.s32.totalorder %s11223_s22, %s8513_s29 }
 0x80a   : > { %v6021_v16 = vmul.f32 %v6012_v61, %v6004_v28  ;;  %v6022_v13 = vmul.f32 %v6012_v61, %v6005_v47  ;;  %v6023_v18 = vmul.f32 %v6012_v61, %v6006_v29  ;;  %v6024_v50 = vmul.f32 %v6012_v61, %v6007_v27  ;;  %v6055_v28 = vld [vmem:[#allocation2 + $0xcd0] sm:$0xff]  ;;  %v6057_v29 = vld [vmem:[#allocation2 + $0xd00] sm:$0xff]  ;;  %v6058_v27 = vld [vmem:[#allocation2 + $0xd18] sm:$0xff]  ;;  %s11133_s11 = sld [smem:[#allocation7 + %s6506_s16]]  ;;  %s8627_s30 = smov [#allocation10]  }
 0x80b   : > { %v6025_v60 = vmul.f32 %v6012_v61, %v6008_v43  ;;  %v6026_v9 = vmul.f32 %v6012_v61, %v6009_v37  ;;  %v6027_v12 = vmul.f32 %v6012_v61, %v6010_v11  ;;  %v6028_v30 = vmul.f32 %v6012_v61, %v6011_v46  ;;  %p8515_p5 = pnand %p8514_p1, %p11325_p4  ;;  %s8517_s16 = sshll.u32 %s8627_s30, 4  ;;  %s8518_s16 = int_to_ptr.vmem [resolvable:$false] %s8517_s16 }
 0x80c   : > { %v6029_v54 = vadd.f32 %v6013_v21, %v5978_v1  ;;  %v6030_v22 = vadd.f32 %v6014_v36, %v5979_v0  ;;  %v6031_v55 = vadd.f32 %v6015_v62, %v5980_v8  ;;  %v6032_v49 = vadd.f32 %v6016_v57, %v5981_v44  ;;  %v6056_v1 = vld [vmem:[#allocation2 + $0xce8] sm:$0xff]  ;;  %v6100_v57 = vld [vmem:[#allocation2 + $0xd80] sm:$0xff]  ;;  %p8520_p7 = scmp.lt.s32.totalorder %s11223_s22, %s8518_s16 }
 0x80d   : > { %v6033_v56 = vadd.f32 %v6017_v17, %v5982_v2  ;;  %v6034_v25 = vadd.f32 %v6018_v20, %v5983_v51  ;;  %v6035_v53 = vadd.f32 %v6019_v10, %v5984_v40  ;;  %v6036_v3 = vadd.f32 %v6020_v33, %v5985_v6  ;;  %v6059_v2 = vld [vmem:[#allocation2 + $0xd30] sm:$0xff]  ;;  %v6060_v51 = vld [vmem:[#allocation2 + $0xd48] sm:$0xff]  ;;  %v6061_v40 = vld [vmem:[#allocation2 + $0xd60] sm:$0xff]  ;;  %p8516_p6 = pneg %p8515_p5 }
 0x80e   : > { %v6037_v45 = vadd.f32 %v6021_v16, %v5986_v32  ;;  %v6038_v48 = vadd.f32 %v6022_v13, %v5987_v41  ;;  %v6039_v52 = vadd.f32 %v6023_v18, %v5988_v58  ;;  %v6040_v59 = vadd.f32 %v6024_v50, %v5989_v7  ;;  %v6062_v6 = vld [vmem:[#allocation2 + $0xd78] sm:$0xff]  ;;  %v6102_v13 = vld [vmem:[#allocation2 + $0xdb0] sm:$0xff]  ;;  %v6103_v18 = vld [vmem:[#allocation2 + $0xdc8] sm:$0xff] }
 0x80f   : > { %v6041_v0 = vadd.f32 %v6025_v60, %v5990_v63  ;;  %v6042_v8 = vadd.f32 %v6026_v9, %v5991_v31  ;;  %v6043_v44 = vadd.f32 %v6027_v12, %v5992_v35  ;;  %v6044_v47 = vadd.f32 %v6028_v30, %v5993_v5  ;;  %v6101_v16 = vld [vmem:[#allocation2 + $0xd98] sm:$0xff]  ;;  %v6104_v30 = vld [vmem:[#allocation2 + $0xde0] sm:$0xff] }
 0x810   : > { %v6064_v43 = vmul.f32 %v11012_v39, %v6047_v4  ;;  %v6065_v32 = vmul.f32 %v11012_v39, %v6048_v42  ;;  %v6066_v41 = vmul.f32 %v11012_v39, %v6049_v26  ;;  %v6067_v58 = vmul.f32 %v11012_v39, %v6050_v19  ;;  %v6105_v4 = vld [vmem:[#allocation2 + $0xdf8] sm:$0xff]  ;;  %v6106_v42 = vld [vmem:[#allocation2 + $0xe10] sm:$0xff] }
 0x811   : > { %v6068_v7 = vmul.f32 %v11012_v39, %v6051_v15  ;;  %v6069_v63 = vmul.f32 %v11012_v39, %v6052_v38  ;;  %v6070_v31 = vmul.f32 %v11012_v39, %v6053_v23  ;;  %v6071_v35 = vmul.f32 %v11012_v39, %v6054_v14  ;;  %v6108_v23 = vld [vmem:[#allocation2 + $0xe40] sm:$0xff] }
 0x812   : > { %v6072_v5 = vmul.f32 %v11012_v39, %v6055_v28  ;;  %v6073_v61 = vmul.f32 %v11012_v39, %v6056_v1  ;;  %v6074_v37 = vmul.f32 %v11012_v39, %v6057_v29  ;;  %v6075_v11 = vmul.f32 %v11012_v39, %v6058_v27  ;;  %v6110_v28 = vld [vmem:[#allocation2 + $0xe70] sm:$0xff]  ;;  %v6111_v1 = vld [vmem:[#allocation2 + $0xe88] sm:$0xff] }
 0x813   : > { %v6076_v46 = vmul.f32 %v11012_v39, %v6059_v2  ;;  %v6077_v21 = vmul.f32 %v11012_v39, %v6060_v51  ;;  %v6078_v36 = vmul.f32 %v11012_v39, %v6061_v40  ;;  %v6079_v62 = vmul.f32 %v11012_v39, %v6062_v6  ;;  %v6107_v39 = vld [vmem:[#allocation2 + $0xe28] sm:$0xff] }
 0x814   : > { %v6080_v17 = vadd.f32 %v6064_v43, %v6029_v54  ;;  %v6081_v20 = vadd.f32 %v6065_v32, %v6030_v22  ;;  %v6082_v10 = vadd.f32 %v6066_v41, %v6031_v55  ;;  %v6083_v33 = vadd.f32 %v6067_v58, %v6032_v49  ;;  %v6109_v54 = vld [vmem:[#allocation2 + $0xe58] sm:$0xff]  ;;  %v6151_v41 = vld [vmem:[#allocation2 + $0xd88] sm:$0xff] }
 0x815   : > { %v6084_v50 = vadd.f32 %v6068_v7, %v6033_v56  ;;  %v6085_v60 = vadd.f32 %v6069_v63, %v6034_v25  ;;  %v6086_v9 = vadd.f32 %v6070_v31, %v6035_v53  ;;  %v6087_v12 = vadd.f32 %v6071_v35, %v6036_v3  ;;  %v6112_v56 = vld [vmem:[#allocation2 + $0xea0] sm:$0xff]  ;;  %v6113_v25 = vld [vmem:[#allocation2 + $0xeb8] sm:$0xff]  ;;  %v6114_v53 = vld [vmem:[#allocation2 + $0xed0] sm:$0xff] }
 0x816   : > { %v6088_v26 = vadd.f32 %v6072_v5, %v6037_v45  ;;  %v6089_v19 = vadd.f32 %v6073_v61, %v6038_v48  ;;  %v6090_v15 = vadd.f32 %v6074_v37, %v6039_v52  ;;  %v6091_v38 = vadd.f32 %v6075_v11, %v6040_v59  ;;  %v6115_v3 = vld [vmem:[#allocation2 + $0xee8] sm:$0xff]  ;;  %v6152_v35 = vld [vmem:[#allocation2 + $0xda0] sm:$0xff]  ;;  %v6153_v5 = vld [vmem:[#allocation2 + $0xdb8] sm:$0xff] }
 0x817   : > { %v6092_v22 = vadd.f32 %v6076_v46, %v6041_v0  ;;  %v6093_v55 = vadd.f32 %v6077_v21, %v6042_v8  ;;  %v6094_v49 = vadd.f32 %v6078_v36, %v6043_v44  ;;  %v6095_v14 = vadd.f32 %v6079_v62, %v6044_v47  ;;  %v6154_v61 = vld [vmem:[#allocation2 + $0xdd0] sm:$0xff]  ;;  %v6155_v36 = vld [vmem:[#allocation2 + $0xde8] sm:$0xff]  ;;  %v6156_v62 = vld [vmem:[#allocation2 + $0xe00] sm:$0xff] }
 0x818   : > { %v6117_v29 = vmul.f32 %v11015_v24, %v6100_v57  ;;  %v6118_v45 = vmul.f32 %v11015_v24, %v6101_v16  ;;  %v6119_v48 = vmul.f32 %v11015_v24, %v6102_v13  ;;  %v6120_v52 = vmul.f32 %v11015_v24, %v6103_v18  ;;  %v6157_v57 = vld [vmem:[#allocation2 + $0xe18] sm:$0xff]  ;;  %v6160_v13 = vld [vmem:[#allocation2 + $0xe60] sm:$0xff] }
 0x819   : > { %v6121_v59 = vmul.f32 %v11015_v24, %v6104_v30  ;;  %v6122_v0 = vmul.f32 %v11015_v24, %v6105_v4  ;;  %v6123_v8 = vmul.f32 %v11015_v24, %v6106_v42  ;;  %v6124_v44 = vmul.f32 %v11015_v24, %v6107_v39  ;;  %v6165_v39 = vld [vmem:[#allocation2 + $0xed8] sm:$0xff] }
 0x81a   : > { %v6125_v47 = vmul.f32 %v11015_v24, %v6108_v23  ;;  %v6126_v27 = vmul.f32 %v11015_v24, %v6109_v54  ;;  %v6127_v2 = vmul.f32 %v11015_v24, %v6110_v28  ;;  %v6128_v51 = vmul.f32 %v11015_v24, %v6111_v1 }
 0x81b   : > { %v6129_v40 = vmul.f32 %v11015_v24, %v6112_v56  ;;  %v6130_v6 = vmul.f32 %v11015_v24, %v6113_v25  ;;  %v6131_v43 = vmul.f32 %v11015_v24, %v6114_v53  ;;  %v6132_v32 = vmul.f32 %v11015_v24, %v6115_v3 }
 0x81c   : > { %v6133_v58 = vadd.f32 %v6117_v29, %v6080_v17  ;;  %v6134_v7 = vadd.f32 %v6118_v45, %v6081_v20  ;;  %v6135_v63 = vadd.f32 %v6119_v48, %v6082_v10  ;;  %v6136_v31 = vadd.f32 %v6120_v52, %v6083_v33  ;;  %v6158_v10 = vld [vmem:[#allocation2 + $0xe30] sm:$0xff]  ;;  %v6159_v33 = vld [vmem:[#allocation2 + $0xe48] sm:$0xff] }
 0x81d   : > { %v6137_v37 = vadd.f32 %v6121_v59, %v6084_v50  ;;  %v6138_v11 = vadd.f32 %v6122_v0, %v6085_v60  ;;  %v6139_v46 = vadd.f32 %v6123_v8, %v6086_v9  ;;  %v6140_v21 = vadd.f32 %v6124_v44, %v6087_v12  ;;  %v6161_v50 = vld [vmem:[#allocation2 + $0xe78] sm:$0xff]  ;;  %v6162_v60 = vld [vmem:[#allocation2 + $0xe90] sm:$0xff]  ;;  %v6163_v9 = vld [vmem:[#allocation2 + $0xea8] sm:$0xff] }
 0x81e   : > { %v6141_v24 = vadd.f32 %v6125_v47, %v6088_v26  ;;  %v6142_v17 = vadd.f32 %v6126_v27, %v6089_v19  ;;  %v6143_v20 = vadd.f32 %v6127_v2, %v6090_v15  ;;  %v6144_v16 = vadd.f32 %v6128_v51, %v6091_v38  ;;  %v6164_v12 = vld [vmem:[#allocation2 + $0xec0] sm:$0xff]  ;;  %v6166_v26 = vld [vmem:[#allocation2 + $0xef0] sm:$0xff]  ;;  %v6203_v2 = vld [vmem:[#allocation2 + $0xda8] sm:$0xff] }
 0x81f   : > { %v6145_v18 = vadd.f32 %v6129_v40, %v6092_v22  ;;  %v6146_v30 = vadd.f32 %v6130_v6, %v6093_v55  ;;  %v6147_v4 = vadd.f32 %v6131_v43, %v6094_v49  ;;  %v6148_v42 = vadd.f32 %v6132_v32, %v6095_v14  ;;  %v6202_v0 = vld [vmem:[#allocation2 + $0xd90] sm:$0xff]  ;;  %v6204_v51 = vld [vmem:[#allocation2 + $0xdc0] sm:$0xff]  ;;  %v6205_v40 = vld [vmem:[#allocation2 + $0xdd8] sm:$0xff] }
 0x820   : > { %v6168_v19 = vmul.f32 %v11018_v34, %v6151_v41  ;;  %v6169_v15 = vmul.f32 %v11018_v34, %v6152_v35  ;;  %v6170_v38 = vmul.f32 %v11018_v34, %v6153_v5  ;;  %v6171_v23 = vmul.f32 %v11018_v34, %v6154_v61  ;;  %v6209_v61 = vld [vmem:[#allocation2 + $0xe38] sm:$0xff] }
 0x821   : > { %v6172_v54 = vmul.f32 %v11018_v34, %v6155_v36  ;;  %v6173_v22 = vmul.f32 %v11018_v34, %v6156_v62  ;;  %v6174_v55 = vmul.f32 %v11018_v34, %v6157_v57  ;;  %v6175_v49 = vmul.f32 %v11018_v34, %v6158_v10  ;;  %v6214_v36 = vld [vmem:[#allocation2 + $0xeb0] sm:$0xff]  ;;  %v6217_v10 = vld [vmem:[#allocation2 + $0xef8] sm:$0xff] }
 0x822   : > { %v6176_v14 = vmul.f32 %v11018_v34, %v6159_v33  ;;  %v6177_v28 = vmul.f32 %v11018_v34, %v6160_v13  ;;  %v6178_v1 = vmul.f32 %v11018_v34, %v6161_v50  ;;  %v6179_v56 = vmul.f32 %v11018_v34, %v6162_v60 }
 0x823   : > { %v6180_v25 = vmul.f32 %v11018_v34, %v6163_v9  ;;  %v6181_v53 = vmul.f32 %v11018_v34, %v6164_v12  ;;  %v6182_v3 = vmul.f32 %v11018_v34, %v6165_v39  ;;  %v6183_v29 = vmul.f32 %v11018_v34, %v6166_v26  ;;  %v6206_v34 = vld [vmem:[#allocation2 + $0xdf0] sm:$0xff] }
 0x824   : > { %v6184_v45 = vadd.f32 %v6168_v19, %v6133_v58  ;;  %v6185_v48 = vadd.f32 %v6169_v15, %v6134_v7  ;;  %v6186_v52 = vadd.f32 %v6170_v38, %v6135_v63  ;;  %v6187_v59 = vadd.f32 %v6171_v23, %v6136_v31  ;;  %v6207_v58 = vld [vmem:[#allocation2 + $0xe08] sm:$0xff]  ;;  %v6208_v7 = vld [vmem:[#allocation2 + $0xe20] sm:$0xff] }
 0x825   : > { %v6188_v8 = vadd.f32 %v6172_v54, %v6137_v37  ;;  %v6189_v44 = vadd.f32 %v6173_v22, %v6138_v11  ;;  %v6190_v47 = vadd.f32 %v6174_v55, %v6139_v46  ;;  %v6191_v27 = vadd.f32 %v6175_v49, %v6140_v21  ;;  %v6210_v37 = vld [vmem:[#allocation2 + $0xe50] sm:$0xff]  ;;  %v6211_v11 = vld [vmem:[#allocation2 + $0xe68] sm:$0xff]  ;;  %v6212_v46 = vld [vmem:[#allocation2 + $0xe80] sm:$0xff] }
 0x826   : > { %v6192_v6 = vadd.f32 %v6176_v14, %v6141_v24  ;;  %v6193_v43 = vadd.f32 %v6177_v28, %v6142_v17  ;;  %v6194_v32 = vadd.f32 %v6178_v1, %v6143_v20  ;;  %v6195_v41 = vadd.f32 %v6179_v56, %v6144_v16  ;;  %v6213_v21 = vld [vmem:[#allocation2 + $0xe98] sm:$0xff]  ;;  %v6215_v20 = vld [vmem:[#allocation2 + $0xec8] sm:$0xff]  ;;  %v6216_v16 = vld [vmem:[#allocation2 + $0xee0] sm:$0xff] }
 0x827   : > { %v6196_v63 = vadd.f32 %v6180_v25, %v6145_v18  ;;  %v6197_v31 = vadd.f32 %v6181_v53, %v6146_v30  ;;  %v6198_v35 = vadd.f32 %v6182_v3, %v6147_v4  ;;  %v6199_v5 = vadd.f32 %v6183_v29, %v6148_v42  ;;  %v6253_v54 = vld [vmem:[#allocation2 + $0xf00] sm:$0xff]  ;;  %v6254_v28 = vld [vmem:[#allocation2 + $0xf18] sm:$0xff]  ;;  %v6255_v1 = vld [vmem:[#allocation2 + $0xf30] sm:$0xff] }
 0x828   : > { %v6218_v62 = vstv %s11056_s28  ;;  %v11082_v57 = vstv %s11058_s17  ;;  %v11085_v24 = vstv %s11064_s23  ;;  %v11088_v17 = vstv %s11066_s15  ;;  %v6256_v56 = vld [vmem:[#allocation2 + $0xf48] sm:$0xff]  ;;  %s11221_s23 = scalar_lea.hbm %s11296_s5, %s7224_s21  ;;  %s11239_s15 = scalar_lea.sflag [#allocation5], %s271_s24 }
 0x829   : > { %v6219_v33 = vmul.f32 %v6218_v62, %v6202_v0  ;;  %v6220_v13 = vmul.f32 %v6218_v62, %v6203_v2  ;;  %v6221_v18 = vmul.f32 %v6218_v62, %v6204_v51  ;;  %v6222_v30 = vmul.f32 %v6218_v62, %v6205_v40  ;;  %v6257_v0 = vld [vmem:[#allocation2 + $0xf60] sm:$0xff]  ;;  %v6258_v2 = vld [vmem:[#allocation2 + $0xf78] sm:$0xff]  ;;  %v6259_v51 = vld [vmem:[#allocation2 + $0xf90] sm:$0xff] }
 0x82a   : > { %v6223_v4 = vmul.f32 %v6218_v62, %v6206_v34  ;;  %v6224_v42 = vmul.f32 %v6218_v62, %v6207_v58  ;;  %v6225_v50 = vmul.f32 %v6218_v62, %v6208_v7  ;;  %v6226_v60 = vmul.f32 %v6218_v62, %v6209_v61  ;;  %v6260_v61 = vld [vmem:[#allocation2 + $0xfa8] sm:$0xff] }
 0x82b   : > { %v6227_v9 = vmul.f32 %v6218_v62, %v6210_v37  ;;  %v6228_v12 = vmul.f32 %v6218_v62, %v6211_v11  ;;  %v6229_v39 = vmul.f32 %v6218_v62, %v6212_v46  ;;  %v6230_v26 = vmul.f32 %v6218_v62, %v6213_v21  ;;  %v6261_v37 = vld [vmem:[#allocation2 + $0xfc0] sm:$0xff]  ;;  %v6263_v46 = vld [vmem:[#allocation2 + $0xff0] sm:$0xff]  ;;  %v6264_v21 = vld [vmem:[#allocation2 + $0x1008] sm:$0xff] }
 0x82c   : > { %v6231_v19 = vmul.f32 %v6218_v62, %v6214_v36  ;;  %v6232_v15 = vmul.f32 %v6218_v62, %v6215_v20  ;;  %v6233_v38 = vmul.f32 %v6218_v62, %v6216_v16  ;;  %v6234_v23 = vmul.f32 %v6218_v62, %v6217_v10 }
 0x82d   : > { %v6235_v22 = vadd.f32 %v6219_v33, %v6184_v45  ;;  %v6236_v55 = vadd.f32 %v6220_v13, %v6185_v48  ;;  %v6237_v49 = vadd.f32 %v6221_v18, %v6186_v52  ;;  %v6238_v14 = vadd.f32 %v6222_v30, %v6187_v59  ;;  %v6262_v45 = vld [vmem:[#allocation2 + $0xfd8] sm:$0xff]  ;;  %v6304_v30 = vld [vmem:[#allocation2 + $0xf08] sm:$0xff] }
 0x82e   : > { %v6239_v25 = vadd.f32 %v6223_v4, %v6188_v8  ;;  %v6240_v53 = vadd.f32 %v6224_v42, %v6189_v44  ;;  %v6241_v3 = vadd.f32 %v6225_v50, %v6190_v47  ;;  %v6242_v29 = vadd.f32 %v6226_v60, %v6191_v27  ;;  %v6265_v8 = vld [vmem:[#allocation2 + $0x1020] sm:$0xff]  ;;  %v6266_v44 = vld [vmem:[#allocation2 + $0x1038] sm:$0xff]  ;;  %v6267_v47 = vld [vmem:[#allocation2 + $0x1050] sm:$0xff] }
 0x82f   : > { %v6243_v40 = vadd.f32 %v6227_v9, %v6192_v6  ;;  %v6244_v34 = vadd.f32 %v6228_v12, %v6193_v43  ;;  %v6245_v58 = vadd.f32 %v6229_v39, %v6194_v32  ;;  %v6246_v7 = vadd.f32 %v6230_v26, %v6195_v41  ;;  %v6268_v27 = vld [vmem:[#allocation2 + $0x1068] sm:$0xff]  ;;  %v6305_v9 = vld [vmem:[#allocation2 + $0xf20] sm:$0xff]  ;;  %v6306_v12 = vld [vmem:[#allocation2 + $0xf38] sm:$0xff] }
 0x830   : > { %v6247_v48 = vadd.f32 %v6231_v19, %v6196_v63  ;;  %v6248_v52 = vadd.f32 %v6232_v15, %v6197_v31  ;;  %v6249_v59 = vadd.f32 %v6233_v38, %v6198_v35  ;;  %v6250_v11 = vadd.f32 %v6234_v23, %v6199_v5  ;;  %v6307_v39 = vld [vmem:[#allocation2 + $0xf50] sm:$0xff]  ;;  %v6308_v23 = vld [vmem:[#allocation2 + $0xf68] sm:$0xff] }
 0x831   : > { %v6270_v36 = vmul.f32 %v11082_v57, %v6253_v54  ;;  %v6271_v6 = vmul.f32 %v11082_v57, %v6254_v28  ;;  %v6272_v43 = vmul.f32 %v11082_v57, %v6255_v1  ;;  %v6273_v32 = vmul.f32 %v11082_v57, %v6256_v56  ;;  %v6309_v54 = vld [vmem:[#allocation2 + $0xf80] sm:$0xff]  ;;  %v6310_v28 = vld [vmem:[#allocation2 + $0xf98] sm:$0xff] }
 0x832   : > { %v6274_v41 = vmul.f32 %v11082_v57, %v6257_v0  ;;  %v6275_v63 = vmul.f32 %v11082_v57, %v6258_v2  ;;  %v6276_v31 = vmul.f32 %v11082_v57, %v6259_v51  ;;  %v6277_v35 = vmul.f32 %v11082_v57, %v6260_v61  ;;  %v6312_v51 = vld [vmem:[#allocation2 + $0xfc8] sm:$0xff] }
 0x833   : > { %v6278_v5 = vmul.f32 %v11082_v57, %v6261_v37  ;;  %v6279_v62 = vmul.f32 %v11082_v57, %v6262_v45  ;;  %v6280_v20 = vmul.f32 %v11082_v57, %v6263_v46  ;;  %v6281_v16 = vmul.f32 %v11082_v57, %v6264_v21  ;;  %v6314_v37 = vld [vmem:[#allocation2 + $0xff8] sm:$0xff]  ;;  %v6315_v45 = vld [vmem:[#allocation2 + $0x1010] sm:$0xff] }
 0x834   : > { %v6282_v10 = vmul.f32 %v11082_v57, %v6265_v8  ;;  %v6283_v33 = vmul.f32 %v11082_v57, %v6266_v44  ;;  %v6284_v13 = vmul.f32 %v11082_v57, %v6267_v47  ;;  %v6285_v18 = vmul.f32 %v11082_v57, %v6268_v27  ;;  %v6311_v57 = vld [vmem:[#allocation2 + $0xfb0] sm:$0xff] }
 0x835   : > { %v6286_v4 = vadd.f32 %v6270_v36, %v6235_v22  ;;  %v6287_v42 = vadd.f32 %v6271_v6, %v6236_v55  ;;  %v6288_v50 = vadd.f32 %v6272_v43, %v6237_v49  ;;  %v6289_v60 = vadd.f32 %v6273_v32, %v6238_v14  ;;  %v6313_v22 = vld [vmem:[#allocation2 + $0xfe0] sm:$0xff]  ;;  %v6355_v43 = vld [vmem:[#allocation2 + $0xf10] sm:$0xff] }
 0x836   : > { %v6290_v26 = vadd.f32 %v6274_v41, %v6239_v25  ;;  %v6291_v19 = vadd.f32 %v6275_v63, %v6240_v53  ;;  %v6292_v15 = vadd.f32 %v6276_v31, %v6241_v3  ;;  %v6293_v38 = vadd.f32 %v6277_v35, %v6242_v29  ;;  %v6316_v25 = vld [vmem:[#allocation2 + $0x1028] sm:$0xff]  ;;  %v6317_v53 = vld [vmem:[#allocation2 + $0x1040] sm:$0xff]  ;;  %v6318_v3 = vld [vmem:[#allocation2 + $0x1058] sm:$0xff] }
 0x837   : > { %v6294_v1 = vadd.f32 %v6278_v5, %v6243_v40  ;;  %v6295_v56 = vadd.f32 %v6279_v62, %v6244_v34  ;;  %v6296_v0 = vadd.f32 %v6280_v20, %v6245_v58  ;;  %v6297_v2 = vadd.f32 %v6281_v16, %v6246_v7  ;;  %v6319_v29 = vld [vmem:[#allocation2 + $0x1070] sm:$0xff]  ;;  %v6356_v35 = vld [vmem:[#allocation2 + $0xf28] sm:$0xff]  ;;  %v6357_v5 = vld [vmem:[#allocation2 + $0xf40] sm:$0xff] }
 0x838   : > { %v6298_v55 = vadd.f32 %v6282_v10, %v6247_v48  ;;  %v6299_v49 = vadd.f32 %v6283_v33, %v6248_v52  ;;  %v6300_v14 = vadd.f32 %v6284_v13, %v6249_v59  ;;  %v6301_v61 = vadd.f32 %v6285_v18, %v6250_v11  ;;  %v6358_v62 = vld [vmem:[#allocation2 + $0xf58] sm:$0xff]  ;;  %v6359_v13 = vld [vmem:[#allocation2 + $0xf70] sm:$0xff]  ;;  %v6360_v18 = vld [vmem:[#allocation2 + $0xf88] sm:$0xff] }
 0x839   : > { %v6321_v46 = vmul.f32 %v11085_v24, %v6304_v30  ;;  %v6322_v40 = vmul.f32 %v11085_v24, %v6305_v9  ;;  %v6323_v34 = vmul.f32 %v11085_v24, %v6306_v12  ;;  %v6324_v58 = vmul.f32 %v11085_v24, %v6307_v39  ;;  %v6361_v30 = vld [vmem:[#allocation2 + $0xfa0] sm:$0xff] }
 0x83a   : > { %v6325_v7 = vmul.f32 %v11085_v24, %v6308_v23  ;;  %v6326_v48 = vmul.f32 %v11085_v24, %v6309_v54  ;;  %v6327_v52 = vmul.f32 %v11085_v24, %v6310_v28  ;;  %v6328_v59 = vmul.f32 %v11085_v24, %v6311_v57 }
 0x83b   : > { %v6329_v11 = vmul.f32 %v11085_v24, %v6312_v51  ;;  %v6330_v21 = vmul.f32 %v11085_v24, %v6313_v22  ;;  %v6331_v8 = vmul.f32 %v11085_v24, %v6314_v37  ;;  %v6332_v44 = vmul.f32 %v11085_v24, %v6315_v45 }
 0x83c   : > { %v6333_v47 = vmul.f32 %v11085_v24, %v6316_v25  ;;  %v6334_v27 = vmul.f32 %v11085_v24, %v6317_v53  ;;  %v6335_v36 = vmul.f32 %v11085_v24, %v6318_v3  ;;  %v6336_v6 = vmul.f32 %v11085_v24, %v6319_v29 }
 0x83d   : > { %v6337_v32 = vadd.f32 %v6321_v46, %v6286_v4  ;;  %v6338_v41 = vadd.f32 %v6322_v40, %v6287_v42  ;;  %v6339_v63 = vadd.f32 %v6323_v34, %v6288_v50  ;;  %v6340_v31 = vadd.f32 %v6324_v58, %v6289_v60  ;;  %v6362_v42 = vld [vmem:[#allocation2 + $0xfb8] sm:$0xff]  ;;  %v6363_v50 = vld [vmem:[#allocation2 + $0xfd0] sm:$0xff]  ;;  %v6364_v60 = vld [vmem:[#allocation2 + $0xfe8] sm:$0xff] }
 0x83e   : > { %v6341_v20 = vadd.f32 %v6325_v7, %v6290_v26  ;;  %v6342_v16 = vadd.f32 %v6326_v48, %v6291_v19  ;;  %v6343_v10 = vadd.f32 %v6327_v52, %v6292_v15  ;;  %v6344_v33 = vadd.f32 %v6328_v59, %v6293_v38  ;;  %v6365_v26 = vld [vmem:[#allocation2 + $0x1000] sm:$0xff]  ;;  %v6366_v19 = vld [vmem:[#allocation2 + $0x1018] sm:$0xff]  ;;  %v6367_v15 = vld [vmem:[#allocation2 + $0x1030] sm:$0xff] }
 0x83f   : > { %v6345_v24 = vadd.f32 %v6329_v11, %v6294_v1  ;;  %v6346_v9 = vadd.f32 %v6330_v21, %v6295_v56  ;;  %v6347_v4 = vadd.f32 %v6331_v8, %v6296_v0  ;;  %v6348_v12 = vadd.f32 %v6332_v44, %v6297_v2  ;;  %v6368_v38 = vld [vmem:[#allocation2 + $0x1048] sm:$0xff]  ;;  %v6369_v1 = vld [vmem:[#allocation2 + $0x1060] sm:$0xff]  ;;  %v6370_v56 = vld [vmem:[#allocation2 + $0x1078] sm:$0xff] }
 0x840   : > { %v6349_v39 = vadd.f32 %v6333_v47, %v6298_v55  ;;  %v6350_v23 = vadd.f32 %v6334_v27, %v6299_v49  ;;  %v6351_v54 = vadd.f32 %v6335_v36, %v6300_v14  ;;  %v6352_v28 = vadd.f32 %v6336_v6, %v6301_v61  ;;  %v6406_v48 = vld [vmem:[#allocation2 + $0x1080] sm:$0xff]  ;;  %v6407_v8 = vld [vmem:[#allocation2 + $0x1098] sm:$0xff]  ;;  %v6408_v44 = vld [vmem:[#allocation2 + $0x10b0] sm:$0xff] }
 0x841   : > { %v6372_v0 = vmul.f32 %v11088_v17, %v6355_v43  ;;  %v6373_v2 = vmul.f32 %v11088_v17, %v6356_v35  ;;  %v6374_v57 = vmul.f32 %v11088_v17, %v6357_v5  ;;  %v6375_v51 = vmul.f32 %v11088_v17, %v6358_v62  ;;  %v6409_v47 = vld [vmem:[#allocation2 + $0x10c8] sm:$0xff] }
 0x842   : > { %v6376_v22 = vmul.f32 %v11088_v17, %v6359_v13  ;;  %v6377_v55 = vmul.f32 %v11088_v17, %v6360_v18  ;;  %v6378_v49 = vmul.f32 %v11088_v17, %v6361_v30  ;;  %v6379_v14 = vmul.f32 %v11088_v17, %v6362_v42  ;;  %v6413_v62 = vld [vmem:[#allocation2 + $0x1128] sm:$0xff]  ;;  %v6418_v13 = vld [vmem:[#allocation2 + $0x11a0] sm:$0xff] }
 0x843   : > { %v6380_v61 = vmul.f32 %v11088_v17, %v6363_v50  ;;  %v6381_v37 = vmul.f32 %v11088_v17, %v6364_v60  ;;  %v6382_v45 = vmul.f32 %v11088_v17, %v6365_v26  ;;  %v6383_v25 = vmul.f32 %v11088_v17, %v6366_v19  ;;  %v6421_v42 = vld [vmem:[#allocation2 + $0x11e8] sm:$0xff] }
 0x844   : > { %v6384_v53 = vmul.f32 %v11088_v17, %v6367_v15  ;;  %v6385_v3 = vmul.f32 %v11088_v17, %v6368_v38  ;;  %v6386_v29 = vmul.f32 %v11088_v17, %v6369_v1  ;;  %v6387_v46 = vmul.f32 %v11088_v17, %v6370_v56  ;;  %v6410_v17 = vld [vmem:[#allocation2 + $0x10e0] sm:$0xff] }
 0x845   : > { %v6388_v40 = vadd.f32 %v6372_v0, %v6337_v32  ;;  %v6389_v34 = vadd.f32 %v6373_v2, %v6338_v41  ;;  %v6390_v58 = vadd.f32 %v6374_v57, %v6339_v63  ;;  %v6391_v7 = vadd.f32 %v6375_v51, %v6340_v31  ;;  %v6411_v32 = vld [vmem:[#allocation2 + $0x10f8] sm:$0xff]  ;;  %v6412_v41 = vld [vmem:[#allocation2 + $0x1110] sm:$0xff] }
 0x846   : > { %v6392_v52 = vadd.f32 %v6376_v22, %v6341_v20  ;;  %v6393_v59 = vadd.f32 %v6377_v55, %v6342_v16  ;;  %v6394_v11 = vadd.f32 %v6378_v49, %v6343_v10  ;;  %v6395_v21 = vadd.f32 %v6379_v14, %v6344_v33  ;;  %v6414_v20 = vld [vmem:[#allocation2 + $0x1140] sm:$0xff]  ;;  %v6415_v16 = vld [vmem:[#allocation2 + $0x1158] sm:$0xff]  ;;  %v6416_v10 = vld [vmem:[#allocation2 + $0x1170] sm:$0xff] }
 0x847   : > { %v6396_v27 = vadd.f32 %v6380_v61, %v6345_v24  ;;  %v6397_v36 = vadd.f32 %v6381_v37, %v6346_v9  ;;  %v6398_v6 = vadd.f32 %v6382_v45, %v6347_v4  ;;  %v6399_v43 = vadd.f32 %v6383_v25, %v6348_v12  ;;  %v6417_v33 = vld [vmem:[#allocation2 + $0x1188] sm:$0xff]  ;;  %v6419_v4 = vld [vmem:[#allocation2 + $0x11b8] sm:$0xff]  ;;  %v6420_v12 = vld [vmem:[#allocation2 + $0x11d0] sm:$0xff] }
 0x848   : > { %v6400_v63 = vadd.f32 %v6384_v53, %v6349_v39  ;;  %v6401_v31 = vadd.f32 %v6385_v3, %v6350_v23  ;;  %v6402_v35 = vadd.f32 %v6386_v29, %v6351_v54  ;;  %v6403_v5 = vadd.f32 %v6387_v46, %v6352_v28  ;;  %v6457_v22 = vld [vmem:[#allocation2 + $0x1088] sm:$0xff]  ;;  %v6458_v37 = vld [vmem:[#allocation2 + $0x10a0] sm:$0xff]  ;;  %v6459_v45 = vld [vmem:[#allocation2 + $0x10b8] sm:$0xff] }
 0x849   : > { %v6422_v18 = vstv %s11125_s26  ;;  %v11152_v30 = vstv %s11127_s12  ;;  %v11155_v24 = vstv %s11133_s11  ;;  %v11158_v9 = vstv %s11136_s9  ;;  %v6460_v25 = vld [vmem:[#allocation2 + $0x10d0] sm:$0xff]  ;;  %s8519_s26 = scalar_lea.vmem %s8518_s16, 4096 }
 0x84a   : > { %v6423_v50 = vmul.f32 %v6422_v18, %v6406_v48  ;;  %v6424_v60 = vmul.f32 %v6422_v18, %v6407_v8  ;;  %v6425_v39 = vmul.f32 %v6422_v18, %v6408_v44  ;;  %v6426_v23 = vmul.f32 %v6422_v18, %v6409_v47  ;;  %v6461_v48 = vld [vmem:[#allocation2 + $0x10e8] sm:$0xff]  ;;  %v6462_v8 = vld [vmem:[#allocation2 + $0x1100] sm:$0xff]  ;;  %v6463_v44 = vld [vmem:[#allocation2 + $0x1118] sm:$0xff]  ;;  %p8521_p9 = scmp.lt.s32.totalorder %s8519_s26, %s8513_s29 }
 0x84b   : > { %v6427_v54 = vmul.f32 %v6422_v18, %v6410_v17  ;;  %v6428_v28 = vmul.f32 %v6422_v18, %v6411_v32  ;;  %v6429_v26 = vmul.f32 %v6422_v18, %v6412_v41  ;;  %v6430_v19 = vmul.f32 %v6422_v18, %v6413_v62  ;;  %v6464_v62 = vld [vmem:[#allocation2 + $0x1130] sm:$0xff] }
 0x84c   : > { %v6431_v15 = vmul.f32 %v6422_v18, %v6414_v20  ;;  %v6432_v38 = vmul.f32 %v6422_v18, %v6415_v16  ;;  %v6433_v1 = vmul.f32 %v6422_v18, %v6416_v10  ;;  %v6434_v56 = vmul.f32 %v6422_v18, %v6417_v33  ;;  %v6465_v20 = vld [vmem:[#allocation2 + $0x1148] sm:$0xff]  ;;  %v6467_v10 = vld [vmem:[#allocation2 + $0x1178] sm:$0xff]  ;;  %v6468_v33 = vld [vmem:[#allocation2 + $0x1190] sm:$0xff]  ;;  %p8522_p11 = por %p8521_p9, %p8520_p7 }
 0x84d   : > { %v6435_v0 = vmul.f32 %v6422_v18, %v6418_v13  ;;  %v6436_v2 = vmul.f32 %v6422_v18, %v6419_v4  ;;  %v6437_v57 = vmul.f32 %v6422_v18, %v6420_v12  ;;  %v6438_v51 = vmul.f32 %v6422_v18, %v6421_v42 }
 0x84e   : > { %v6439_v55 = vadd.f32 %v6423_v50, %v6388_v40  ;;  %v6440_v49 = vadd.f32 %v6424_v60, %v6389_v34  ;;  %v6441_v14 = vadd.f32 %v6425_v39, %v6390_v58  ;;  %v6442_v61 = vadd.f32 %v6426_v23, %v6391_v7  ;;  %v6466_v40 = vld [vmem:[#allocation2 + $0x1160] sm:$0xff]  ;;  %v6508_v23 = vld [vmem:[#allocation2 + $0x1090] sm:$0xff]  ;;  %p8523_p13 = pnand %p8522_p11, %p8516_p6 }
 0x84f   : > { %v6443_v53 = vadd.f32 %v6427_v54, %v6392_v52  ;;  %v6444_v3 = vadd.f32 %v6428_v28, %v6393_v59  ;;  %v6445_v29 = vadd.f32 %v6429_v26, %v6394_v11  ;;  %v6446_v46 = vadd.f32 %v6430_v19, %v6395_v21  ;;  %v6469_v52 = vld [vmem:[#allocation2 + $0x11a8] sm:$0xff]  ;;  %v6470_v59 = vld [vmem:[#allocation2 + $0x11c0] sm:$0xff]  ;;  %v6471_v11 = vld [vmem:[#allocation2 + $0x11d8] sm:$0xff] }
 0x850   : > { %v6447_v47 = vadd.f32 %v6431_v15, %v6396_v27  ;;  %v6448_v17 = vadd.f32 %v6432_v38, %v6397_v36  ;;  %v6449_v32 = vadd.f32 %v6433_v1, %v6398_v6  ;;  %v6450_v41 = vadd.f32 %v6434_v56, %v6399_v43  ;;  %v6472_v21 = vld [vmem:[#allocation2 + $0x11f0] sm:$0xff]  ;;  %v6509_v15 = vld [vmem:[#allocation2 + $0x10a8] sm:$0xff]  ;;  %v6510_v38 = vld [vmem:[#allocation2 + $0x10c0] sm:$0xff] }
 0x851   : > { %v6451_v34 = vadd.f32 %v6435_v0, %v6400_v63  ;;  %v6452_v58 = vadd.f32 %v6436_v2, %v6401_v31  ;;  %v6453_v7 = vadd.f32 %v6437_v57, %v6402_v35  ;;  %v6454_v16 = vadd.f32 %v6438_v51, %v6403_v5  ;;  %v6511_v1 = vld [vmem:[#allocation2 + $0x10d8] sm:$0xff]  ;;  %v6512_v51 = vld [vmem:[#allocation2 + $0x10f0] sm:$0xff] }
 0x852   : > { %v6474_v13 = vmul.f32 %v11152_v30, %v6457_v22  ;;  %v6475_v27 = vmul.f32 %v11152_v30, %v6458_v37  ;;  %v6476_v36 = vmul.f32 %v11152_v30, %v6459_v45  ;;  %v6477_v6 = vmul.f32 %v11152_v30, %v6460_v25  ;;  %v6513_v22 = vld [vmem:[#allocation2 + $0x1108] sm:$0xff]  ;;  %v6514_v37 = vld [vmem:[#allocation2 + $0x1120] sm:$0xff] }
 0x853   : > { %v6478_v43 = vmul.f32 %v11152_v30, %v6461_v48  ;;  %v6479_v63 = vmul.f32 %v11152_v30, %v6462_v8  ;;  %v6480_v31 = vmul.f32 %v11152_v30, %v6463_v44  ;;  %v6481_v35 = vmul.f32 %v11152_v30, %v6464_v62  ;;  %v6516_v44 = vld [vmem:[#allocation2 + $0x1150] sm:$0xff] }
 0x854   : > { %v6482_v5 = vmul.f32 %v11152_v30, %v6465_v20  ;;  %v6483_v18 = vmul.f32 %v11152_v30, %v6466_v40  ;;  %v6484_v4 = vmul.f32 %v11152_v30, %v6467_v10  ;;  %v6485_v12 = vmul.f32 %v11152_v30, %v6468_v33  ;;  %v6518_v20 = vld [vmem:[#allocation2 + $0x1180] sm:$0xff]  ;;  %v6519_v40 = vld [vmem:[#allocation2 + $0x1198] sm:$0xff] }
 0x855   : > { %v6486_v42 = vmul.f32 %v11152_v30, %v6469_v52  ;;  %v6487_v50 = vmul.f32 %v11152_v30, %v6470_v59  ;;  %v6488_v60 = vmul.f32 %v11152_v30, %v6471_v11  ;;  %v6489_v39 = vmul.f32 %v11152_v30, %v6472_v21  ;;  %v6515_v30 = vld [vmem:[#allocation2 + $0x1138] sm:$0xff] }
 0x856   : > { %v6490_v54 = vadd.f32 %v6474_v13, %v6439_v55  ;;  %v6491_v28 = vadd.f32 %v6475_v27, %v6440_v49  ;;  %v6492_v26 = vadd.f32 %v6476_v36, %v6441_v14  ;;  %v6493_v19 = vadd.f32 %v6477_v6, %v6442_v61  ;;  %v6517_v55 = vld [vmem:[#allocation2 + $0x1168] sm:$0xff] }
 0x857   : > { %v6494_v56 = vadd.f32 %v6478_v43, %v6443_v53  ;;  %v6495_v0 = vadd.f32 %v6479_v63, %v6444_v3  ;;  %v6496_v2 = vadd.f32 %v6480_v31, %v6445_v29  ;;  %v6497_v57 = vadd.f32 %v6481_v35, %v6446_v46  ;;  %v6520_v53 = vld [vmem:[#allocation2 + $0x11b0] sm:$0xff]  ;;  %v6521_v3 = vld [vmem:[#allocation2 + $0x11c8] sm:$0xff]  ;;  %v6522_v29 = vld [vmem:[#allocation2 + $0x11e0] sm:$0xff] }
 0x858   : > { %v6498_v45 = vadd.f32 %v6482_v5, %v6447_v47  ;;  %v6499_v25 = vadd.f32 %v6483_v18, %v6448_v17  ;;  %v6500_v48 = vadd.f32 %v6484_v4, %v6449_v32  ;;  %v6501_v8 = vadd.f32 %v6485_v12, %v6450_v41  ;;  %v6523_v46 = vld [vmem:[#allocation2 + $0x11f8] sm:$0xff] }
 0x859   : > { %v6502_v49 = vadd.f32 %v6486_v42, %v6451_v34  ;;  %v6503_v14 = vadd.f32 %v6487_v50, %v6452_v58  ;;  %v6504_v61 = vadd.f32 %v6488_v60, %v6453_v7  ;;  %v6505_v62 = vadd.f32 %v6489_v39, %v6454_v16 }
 0x85a   : > { %v6525_v10 = vmul.f32 %v11155_v24, %v6508_v23  ;;  %v6526_v47 = vmul.f32 %v11155_v24, %v6509_v15  ;;  %v6527_v17 = vmul.f32 %v11155_v24, %v6510_v38  ;;  %v6528_v32 = vmul.f32 %v11155_v24, %v6511_v1 }
 0x85b   : > { %v6529_v41 = vmul.f32 %v11155_v24, %v6512_v51  ;;  %v6530_v34 = vmul.f32 %v11155_v24, %v6513_v22  ;;  %v6531_v58 = vmul.f32 %v11155_v24, %v6514_v37  ;;  %v6532_v7 = vmul.f32 %v11155_v24, %v6515_v30 }
 0x85c   : > { %v6533_v16 = vmul.f32 %v11155_v24, %v6516_v44  ;;  %v6534_v33 = vmul.f32 %v11155_v24, %v6517_v55  ;;  %v6535_v52 = vmul.f32 %v11155_v24, %v6518_v20  ;;  %v6536_v59 = vmul.f32 %v11155_v24, %v6519_v40 }
 0x85d   : > { %v6537_v11 = vmul.f32 %v11155_v24, %v6520_v53  ;;  %v6538_v21 = vmul.f32 %v11155_v24, %v6521_v3  ;;  %v6539_v13 = vmul.f32 %v11155_v24, %v6522_v29  ;;  %v6540_v27 = vmul.f32 %v11155_v24, %v6523_v46 }
 0x85e   : > { %v6541_v36 = vadd.f32 %v6525_v10, %v6490_v54  ;;  %v6542_v6 = vadd.f32 %v6526_v47, %v6491_v28  ;;  %v6543_v43 = vadd.f32 %v6527_v17, %v6492_v26  ;;  %v6544_v63 = vadd.f32 %v6528_v32, %v6493_v19 }
 0x85f   : > { %v6545_v31 = vadd.f32 %v6529_v41, %v6494_v56  ;;  %v6546_v35 = vadd.f32 %v6530_v34, %v6495_v0  ;;  %v6547_v5 = vadd.f32 %v6531_v58, %v6496_v2  ;;  %v6548_v18 = vadd.f32 %v6532_v7, %v6497_v57 }
 0x860   : > { %v6549_v4 = vadd.f32 %v6533_v16, %v6498_v45  ;;  %v6550_v12 = vadd.f32 %v6534_v33, %v6499_v25  ;;  %v6551_v42 = vadd.f32 %v6535_v52, %v6500_v48  ;;  %v6552_v50 = vadd.f32 %v6536_v59, %v6501_v8 }
 0x861   : > { %v6553_v60 = vadd.f32 %v6537_v11, %v6502_v49  ;;  %v6554_v39 = vadd.f32 %v6538_v21, %v6503_v14  ;;  %v6555_v23 = vadd.f32 %v6539_v13, %v6504_v61  ;;  %v6556_v15 = vadd.f32 %v6540_v27, %v6505_v62 }
 0x862   : > { %v6559_v24 = vadd.f32 %v11158_v9, %v6541_v36  ;;  %v6560_v54 = vadd.f32 %v11158_v9, %v6542_v6  ;;  %v6561_v28 = vadd.f32 %v11158_v9, %v6543_v43  ;;  %v6562_v26 = vadd.f32 %v11158_v9, %v6544_v63 }
 0x863   : > { %v6563_v19 = vadd.f32 %v11158_v9, %v6545_v31  ;;  %v6564_v38 = vadd.f32 %v11158_v9, %v6546_v35  ;;  %v6565_v1 = vadd.f32 %v11158_v9, %v6547_v5  ;;  %v6566_v56 = vadd.f32 %v11158_v9, %v6548_v18 }
 0x864   : > { %v6567_v0 = vadd.f32 %v11158_v9, %v6549_v4  ;;  %v6568_v2 = vadd.f32 %v11158_v9, %v6550_v12  ;;  %v6569_v57 = vadd.f32 %v11158_v9, %v6551_v42  ;;  %v6570_v51 = vadd.f32 %v11158_v9, %v6552_v50 }
 0x865   : > { %v6571_v22 = vadd.f32 %v11158_v9, %v6553_v60  ;;  %v6572_v37 = vadd.f32 %v11158_v9, %v6554_v39  ;;  %v6573_v45 = vadd.f32 %v11158_v9, %v6555_v23  ;;  %v6574_v25 = vadd.f32 %v11158_v9, %v6556_v15 }
 0x866   : > { %v6575_v48 = vmax.f32 %v6559_v24, 0.0  ;;  %v6576_v8 = vmax.f32 %v6560_v54, 0.0  ;;  %v6577_v30 = vmax.f32 %v6561_v28, 0.0  ;;  %v6578_v44 = vmax.f32 %v6562_v26, 0.0 }
 0x867   : > { %v6579_v55 = vmax.f32 %v6563_v19, 0.0  ;;  %v6580_v49 = vmax.f32 %v6564_v38, 0.0  ;;  %v6581_v14 = vmax.f32 %v6565_v1, 0.0  ;;  %v6582_v61 = vmax.f32 %v6566_v56, 0.0 }
 0x868   : > { %v6583_v62 = vmax.f32 %v6567_v0, 0.0  ;;  %v6584_v20 = vmax.f32 %v6568_v2, 0.0  ;;  %v6585_v9 = vmax.f32 %v6569_v57, 0.0  ;;  %v6586_v40 = vmax.f32 %v6570_v51, 0.0  ;;  %6591 = vst [vmem:[%s8809_s6] sm:$0xff] %v6575_v48  ;;  %6592 = vst [vmem:[%s8809_s6 + $0x8] sm:$0xff] %v6576_v8 }
 0x869   : > { %6593 = vst [vmem:[%s8809_s6 + $0x10] sm:$0xff] %v6577_v30  ;;  %6594 = vst [vmem:[%s8809_s6 + $0x18] sm:$0xff] %v6578_v44  ;;  %v6587_v53 = vmax.f32 %v6571_v22, 0.0  ;;  %v6588_v3 = vmax.f32 %v6572_v37, 0.0  ;;  %v6589_v29 = vmax.f32 %v6573_v45, 0.0  ;;  %v6590_v46 = vmax.f32 %v6574_v25, 0.0 }
 0x86a   : > { %6595 = vst [vmem:[%s8809_s6 + $0x20] sm:$0xff] %v6579_v55  ;;  %6596 = vst [vmem:[%s8809_s6 + $0x28] sm:$0xff] %v6580_v49 }
 0x86b   : > { %6597 = vst [vmem:[%s8809_s6 + $0x30] sm:$0xff] %v6581_v14  ;;  %6598 = vst [vmem:[%s8809_s6 + $0x38] sm:$0xff] %v6582_v61 }
 0x86c   : > { %6599 = vst [vmem:[%s8809_s6 + $0x40] sm:$0xff] %v6583_v62  ;;  %6600 = vst [vmem:[%s8809_s6 + $0x48] sm:$0xff] %v6584_v20 }
 0x86d   : > { %6601 = vst [vmem:[%s8809_s6 + $0x50] sm:$0xff] %v6585_v9  ;;  %6602 = vst [vmem:[%s8809_s6 + $0x58] sm:$0xff] %v6586_v40 }
 0x86e   : > { %6603 = vst [vmem:[%s8809_s6 + $0x60] sm:$0xff] %v6587_v53  ;;  %6604 = vst [vmem:[%s8809_s6 + $0x68] sm:$0xff] %v6588_v3 }
 0x86f   : > { %6605 = vst [vmem:[%s8809_s6 + $0x70] sm:$0xff] %v6589_v29  ;;  %6606 = vst [vmem:[%s8809_s6 + $0x78] sm:$0xff] %v6590_v46 }
 0x870   : > { %8526 = shalt.err (!%p8523_p13)
}
 0x871   : > { %s8527_s24 = scalar_lea.hbm %s11221_s23, 2048  ;;  %s8531_s11 = scalar_lea.hbm %s11296_s5, 32768 }
 0x872   : > { %p8528_p3 = scmp.ne.s32.totalorder %s11221_s23, %s8527_s24  ;;  %p8532_p12 = scmp.lt.u32.totalorder %s11221_s23, %s11296_s5 }
 0x873   : > { %p8533_p0 = scmp.lt.u32.totalorder %s8531_s11, %s8527_s24  ;;  %p8535_p1 = scmp.lt.u32.totalorder %s8527_s24, %s11221_s23 }
 0x874   : > { %p8529_p8 = pnand %p8528_p3, %p11325_p4 }
 0x875   : > { %p8534_p2 = por %p8533_p0, %p8532_p12 }
 0x876   : > { %p8530_p10 = pneg %p8529_p8 }
 0x877   : > { %p8536_p5 = por %p8535_p1, %p8534_p2 }
 0x879   : > { %p8537_p6 = pnand %p8536_p5, %p8530_p10 }
 0x87b   : > { %8540 = shalt.err (!%p8537_p6)
}
 0x87c   : > { %s8628_s10 = smov 128   ;;  %s8629_s14 = smov 8  }
 0x87d   : > { %8248 = dma.vmem_to_hbm [thread:$0]  (%p11325_p4), %s11223_s22, 2048, %s11221_s23, %s11239_s15, %s8628_s10, %s8628_s10, %s8629_s14  }
 0x87e PF: > { %p8270_p7 = scmp.ge.s32.totalorder %s8619_s25, 2  ;;  %s6638_s21 = sand.u32 1, %s8591_s18  }
 0x87f   : > { %p11326_p9 = scmp.ne.s32.totalorder %s11314_s8, 0  ;;  %s6639_s28 = scalar_lea.sflag [#allocation5], %s6638_s21 }
 0x881   : > { %p8261_p11 = pnand %p8270_p7, %p11326_p9 }
 0x883   : > { %8586 = dma.done.wait (!%p8261_p11), %s6639_s28, 2048  }
 0x884   : > { %8588 = vsyncadd (!%p8261_p11), %s6639_s28, 4294965248  ;;  %s21_s25 = sadd.s32 1, %s8619_s25   ;;  %s11327_s21 = sld [smem:[#allocation15_spill]] }
 0x885   : > { %p18_p13 = scmp.ge.s32.totalorder %s21_s25, 18   ;;  %s11328_s22 = sld [smem:[#allocation16_spill]] }
 0x886   : > { %s11329_s23 = sld [smem:[#allocation17_spill]]  ;;  %s11330_s24 = sld [smem:[#allocation18_spill]] }
 0x887   : > { %s11331_s18 = smov %s8595_s19  ;;  %s11332_s19 = smov %s8599_s20 }
 0x888   : > { %s11333_s20 = smov %s8739_s13  ;;  %20 = sbr.rel (!%p18_p13) target bundleno = 8 (0x8), region = 102 }
 0x88f   :  { %6644 = vsyncpa [#allocation4], 1 }
 0x890   :  { %6646 = vsyncpa [#allocation4 + $0x1], 1 }
 0x891   :  { %6647 = vsyncpa [#allocation5], 1 }
 0x892   :  { %6649 = vsyncpa [#allocation5 + $0x1], 1 }
 0x893   :  { %6650 = vsyncpa [#allocation6], 1 }
 0x894   :  { %6652 = vsyncpa [#allocation6 + $0x1], 1 }
 0x895   :  { %6653 = vsyncpa [#allocation9], 1 }

</bundles_post_ra>
